<compile_context>
chip_gen: v6e
topology: v6e:2x2x1
jax: 0.10.0
libtpu: 0.0.40
codegen_flags: <defaults>
</compile_context>

<pallas_src>
import functools

import jax
import jax.numpy as jnp
from jax import lax
from jax.experimental import pallas as pl
from jax.experimental.pallas import tpu as pltpu


def _fused_bn_relu_conv_gelu_kernel(x_ref, w_ref, b_ref, gamma_ref, beta_ref,
                                    o_ref, *, inv_m, eps):
    # x_ref:       (C_in, M)    input, channels on sublanes / M on lanes
    # w_ref:       (C_out, C_in) 1x1 conv weight
    # b_ref:       (C_out, 1)   conv bias
    # gamma/beta:  (C_in, 1)    BN affine params
    # o_ref:       (C_out, M)   lane-major output
    x = x_ref[...]

    # ---- BatchNorm2d training statistics, per channel (two-pass) ----
    mean = jnp.sum(x, axis=-1, keepdims=True) * inv_m           # XLU reduce
    xc = x - mean
    var = jnp.sum(xc * xc, axis=-1, keepdims=True) * inv_m      # biased var
    scale = gamma_ref[...] * lax.rsqrt(var + eps)               # EUP rsqrt
    xr = jnp.maximum(xc * scale + beta_ref[...], 0.0)           # BN + ReLU

    # ---- 1x1 conv as (C_out, C_in) @ (C_in, M) on the MXU ----
    y = jnp.dot(w_ref[...], xr,
                preferred_element_type=jnp.float32) + b_ref[...]

    # ---- tanh-GELU tail exactly as written in the PyTorch forward ----
    v9 = (y + (y * y * y) * 0.044715) * 0.7978845608028654
    o_ref[...] = (y * 0.5) * (jnp.tanh(v9) + 1.0)


def model_forward(x_nchw, conv_w, conv_b, bn_gamma, bn_beta, bn_eps=1e-5):
    N, C_in, H, W = x_nchw.shape
    C_out = conv_w.shape[0]
    M = N * H * W

    # Channels-major layout (C_in, M). Pure metadata reshape when N == 1.
    if N == 1:
        x_cm = x_nchw.reshape(C_in, M)
    else:
        x_cm = jnp.transpose(x_nchw, (1, 0, 2, 3)).reshape(C_in, M)

    w_mat = conv_w.reshape(C_out, C_in)
    b_c = conv_b.reshape(C_out, 1)
    gamma_c = bn_gamma.reshape(C_in, 1)
    beta_c = bn_beta.reshape(C_in, 1)

    kernel = functools.partial(_fused_bn_relu_conv_gelu_kernel,
                               inv_m=1.0 / M, eps=float(bn_eps))

    vmem = pl.BlockSpec(memory_space=pltpu.MemorySpace.VMEM)
    out_cm = pl.pallas_call(
        kernel,
        out_shape=jax.ShapeDtypeStruct((C_out, M), jnp.float32),
        in_specs=[vmem, vmem, vmem, vmem, vmem],
        out_specs=vmem,
    )(x_cm, w_mat, b_c, gamma_c, beta_c)

    if N == 1:
        return out_cm.reshape(1, C_out, H, W)
    return out_cm.reshape(C_out, N, H, W).transpose(1, 0, 2, 3)


def _reference(x_nchw, conv_w, conv_b, bn_gamma, bn_beta, bn_eps=1e-5):
    mean = jnp.mean(x_nchw, axis=(0, 2, 3), keepdims=True)
    var = jnp.mean((x_nchw - mean) ** 2, axis=(0, 2, 3), keepdims=True)
    v1 = (x_nchw - mean) / jnp.sqrt(var + bn_eps)
    v1 = v1 * bn_gamma[None, :, None, None] + bn_beta[None, :, None, None]
    v2 = jnp.maximum(v1, 0.0)
    v3 = jnp.einsum("nchw,oc->nohw", v2, conv_w.reshape(conv_w.shape[0], -1))
    v3 = v3 + conv_b[None, :, None, None]
    v4 = v3 * 0.5
    v9 = (v3 + (v3 * v3 * v3) * 0.044715) * 0.7978845608028654
    return v4 * (jnp.tanh(v9) + 1.0)


if __name__ == "__main__":
    key = jax.random.PRNGKey(0)
    k_x, k_w, k_b = jax.random.split(key, 3)

    N, C_in, H, W = 1, 19, 95, 69
    C_out = 47

    x = jax.random.normal(k_x, (N, C_in, H, W), dtype=jnp.float32)

    # deterministic Conv2d(19, 47, 1) params (PyTorch-style uniform init bound)
    bound = 1.0 / jnp.sqrt(jnp.float32(C_in))
    conv_w = jax.random.uniform(k_w, (C_out, C_in, 1, 1), jnp.float32,
                                minval=-bound, maxval=bound)
    conv_b = jax.random.uniform(k_b, (C_out,), jnp.float32,
                                minval=-bound, maxval=bound)
    # BatchNorm2d default affine init
    bn_gamma = jnp.ones((C_in,), jnp.float32)
    bn_beta = jnp.zeros((C_in,), jnp.float32)

    fwd = jax.jit(model_forward)
    out = fwd(x, conv_w, conv_b, bn_gamma, bn_beta)
    out = jax.block_until_ready(out)

    ref = _reference(x, conv_w, conv_b, bn_gamma, bn_beta)
    assert out.shape == (N, C_out, H, W)
    assert jnp.allclose(out, ref, rtol=1e-4, atol=1e-4)

    print("KERNEL_OK")
</pallas_src>

<mosaic_0001>
module attributes {stable_mosaic.version = 11 : i64} {
  func.func @_fused_bn_relu_conv_gelu_kernel(%arg0: memref<19x6555xf32, #tpu.memory_space<vmem>>, %arg1: memref<47x19xf32, #tpu.memory_space<vmem>>, %arg2: memref<47x1xf32, #tpu.memory_space<vmem>>, %arg3: memref<19x1xf32, #tpu.memory_space<vmem>>, %arg4: memref<19x1xf32, #tpu.memory_space<vmem>>, %arg5: memref<47x6555xf32, #tpu.memory_space<vmem>>) attributes {dimension_semantics = [], scalar_prefetch = 0 : i64, scratch_operands = 0 : i64, tpu.core_type = #tpu.core_type<tc>} {
    %c0 = arith.constant 0 : index
    %c0_0 = arith.constant 0 : index
    %0 = vector.load %arg0[%c0, %c0_0] : memref<19x6555xf32, #tpu.memory_space<vmem>>, vector<19x6555xf32>
    %cst = arith.constant dense<0.000000e+00> : vector<19xf32>
    %1 = vector.multi_reduction <add>, %0, %cst [1] : vector<19x6555xf32> to vector<19xf32>
    %2 = vector.shape_cast %1 : vector<19xf32> to vector<19x1xf32>
    %cst_1 = arith.constant 1.52555294E-4 : f32
    %3 = vector.broadcast %cst_1 : f32 to vector<19x1xf32>
    %4 = arith.mulf %2, %3 : vector<19x1xf32>
    %5 = vector.broadcast %4 : vector<19x1xf32> to vector<19x6555xf32>
    %6 = arith.subf %0, %5 : vector<19x6555xf32>
    %7 = arith.mulf %6, %6 : vector<19x6555xf32>
    %cst_2 = arith.constant dense<0.000000e+00> : vector<19xf32>
    %8 = vector.multi_reduction <add>, %7, %cst_2 [1] : vector<19x6555xf32> to vector<19xf32>
    %9 = vector.shape_cast %8 : vector<19xf32> to vector<19x1xf32>
    %cst_3 = arith.constant 1.52555294E-4 : f32
    %10 = vector.broadcast %cst_3 : f32 to vector<19x1xf32>
    %11 = arith.mulf %9, %10 : vector<19x1xf32>
    %c0_4 = arith.constant 0 : index
    %c0_5 = arith.constant 0 : index
    %12 = vector.load %arg3[%c0_4, %c0_5] : memref<19x1xf32, #tpu.memory_space<vmem>>, vector<19x1xf32>
    %cst_6 = arith.constant 9.99999974E-6 : f32
    %13 = vector.broadcast %cst_6 : f32 to vector<19x1xf32>
    %14 = arith.addf %11, %13 : vector<19x1xf32>
    %15 = math.rsqrt %14 : vector<19x1xf32>
    %16 = arith.mulf %12, %15 : vector<19x1xf32>
    %17 = vector.broadcast %16 : vector<19x1xf32> to vector<19x6555xf32>
    %18 = arith.mulf %6, %17 : vector<19x6555xf32>
    %c0_7 = arith.constant 0 : index
    %c0_8 = arith.constant 0 : index
    %19 = vector.load %arg4[%c0_7, %c0_8] : memref<19x1xf32, #tpu.memory_space<vmem>>, vector<19x1xf32>
    %20 = vector.broadcast %19 : vector<19x1xf32> to vector<19x6555xf32>
    %21 = arith.addf %18, %20 : vector<19x6555xf32>
    %cst_9 = arith.constant 0.000000e+00 : f32
    %22 = vector.broadcast %cst_9 : f32 to vector<19x6555xf32>
    %23 = arith.maximumf %21, %22 : vector<19x6555xf32>
    %c0_10 = arith.constant 0 : index
    %c0_11 = arith.constant 0 : index
    %24 = vector.load %arg1[%c0_10, %c0_11] : memref<47x19xf32, #tpu.memory_space<vmem>>, vector<47x19xf32>
    %cst_12 = arith.constant dense<0.000000e+00> : vector<47x6555xf32>
    %25 = tpu.matmul %24, %23, %cst_12 {dimension_numbers = #tpu.dot_dimension_numbers<[1], [0], [0], [1], [0, 0, 1, 1], [], []>} : vector<47x19xf32>, vector<19x6555xf32>, vector<47x6555xf32> -> vector<47x6555xf32>
    %c0_13 = arith.constant 0 : index
    %c0_14 = arith.constant 0 : index
    %26 = vector.load %arg2[%c0_13, %c0_14] : memref<47x1xf32, #tpu.memory_space<vmem>>, vector<47x1xf32>
    %27 = vector.broadcast %26 : vector<47x1xf32> to vector<47x6555xf32>
    %28 = arith.addf %25, %27 : vector<47x6555xf32>
    %29 = arith.mulf %28, %28 : vector<47x6555xf32>
    %30 = arith.mulf %29, %28 : vector<47x6555xf32>
    %cst_15 = arith.constant 4.471500e-02 : f32
    %31 = vector.broadcast %cst_15 : f32 to vector<47x6555xf32>
    %32 = arith.mulf %30, %31 : vector<47x6555xf32>
    %33 = arith.addf %28, %32 : vector<47x6555xf32>
    %cst_16 = arith.constant 0.797884583 : f32
    %34 = vector.broadcast %cst_16 : f32 to vector<47x6555xf32>
    %35 = arith.mulf %33, %34 : vector<47x6555xf32>
    %cst_17 = arith.constant 5.000000e-01 : f32
    %36 = vector.broadcast %cst_17 : f32 to vector<47x6555xf32>
    %37 = arith.mulf %28, %36 : vector<47x6555xf32>
    %38 = math.tanh %35 : vector<47x6555xf32>
    %cst_18 = arith.constant 1.000000e+00 : f32
    %39 = vector.broadcast %cst_18 : f32 to vector<47x6555xf32>
    %40 = arith.addf %38, %39 : vector<47x6555xf32>
    %41 = arith.mulf %37, %40 : vector<47x6555xf32>
    %c0_19 = arith.constant 0 : index
    %c0_20 = arith.constant 0 : index
    %42 = vector.load %arg5[%c0_19, %c0_20] : memref<47x6555xf32, #tpu.memory_space<vmem>>, vector<47x6555xf32>
    tpu.vector_store %arg5[%c0_19, %c0_20], %41 {strides = array<i32>} : memref<47x6555xf32, #tpu.memory_space<vmem>>, vector<47x6555xf32>,
    return
  }
}

</mosaic_0001>

<bundles_post_ra>
// kernel: model_forward.1
= control target key start
LH: loop header
LB: loop body
LE: loop exit
PB: predicated region body
PF: predicated region fallthrough
CT: control target
= control target key end

     0   :  { %vm285_vm0 = vcmask 1042432   ;;  %vm226_vm1 = vcmask 220160   ;;  %vm387_vm2 = vcmask 215040   ;;  %vm1478_vm3 = vcmask 154624   ;;  %s15554_s0 = inlined_call_operand.vmem [shape: f32[19,6555], index: 0, kind: input, shape index: {}]   ;;  %s15555_s3 = inlined_call_operand.vmem [shape: f32[19,1], index: 3, kind: input, shape index: {}]   ;;  %s15556_s2 = inlined_call_operand.vmem [shape: f32[47,1], index: 2, kind: input, shape index: {}]   ;;  %s15557_s4 = inlined_call_operand.vmem [shape: f32[19,1], index: 4, kind: input, shape index: {}]   ;;  %s15558_s1 = inlined_call_operand.vmem [shape: f32[47,19], index: 1, kind: input, shape index: {}]   ;;  %s15559_s5 = inlined_call_operand.vmem [shape: f32[47,6555], index: 5, kind: output, shape index: {}]  }
   0x1   :  { %v8307_v0 = vld [vmem:[%s15554_s0] sm:$0xff]  ;;  %v8312_v1 = vld [vmem:[%s15554_s0 + $0x8] sm:$0xff]  ;;  %v8317_v2 = vld [vmem:[%s15554_s0 + $0x10] sm:$0xff]  ;;  %vm7398_vm4 = vcmask 219136  }
   0x2   :  { %v176_v3 = vadd.f32 %v8312_v1, %v8307_v0  ;;  %v8324_v4 = vld [vmem:[%s15554_s0 + $0x18] sm:$0xff]  ;;  %v8330_v6 = vld [vmem:[%s15554_s0 + $0x20] sm:$0xff]  ;;  %v8336_v8 = vld [vmem:[%s15554_s0 + $0x28] sm:$0xff] }
   0x3   :  { %v8342_v10 = vld [vmem:[%s15554_s0 + $0x30] sm:$0xff]  ;;  %v8348_v12 = vld [vmem:[%s15554_s0 + $0x38] sm:$0xff]  ;;  %v8354_v14 = vld [vmem:[%s15554_s0 + $0x40] sm:$0xff] }
   0x4   :  { %v177_v5 = vadd.f32 %v176_v3, %v8317_v2  ;;  %v8360_v16 = vld [vmem:[%s15554_s0 + $0x48] sm:$0xff]  ;;  %v8366_v18 = vld [vmem:[%s15554_s0 + $0x50] sm:$0xff]  ;;  %v8372_v20 = vld [vmem:[%s15554_s0 + $0x58] sm:$0xff] }
   0x5   :  { %v8378_v22 = vld [vmem:[%s15554_s0 + $0x60] sm:$0xff]  ;;  %v8384_v24 = vld [vmem:[%s15554_s0 + $0x68] sm:$0xff]  ;;  %v8390_v26 = vld [vmem:[%s15554_s0 + $0x70] sm:$0xff] }
   0x6   :  { %v178_v7 = vadd.f32 %v177_v5, %v8324_v4  ;;  %v8396_v28 = vld [vmem:[%s15554_s0 + $0x78] sm:$0xff]  ;;  %v8402_v30 = vld [vmem:[%s15554_s0 + $0x80] sm:$0xff]  ;;  %v8408_v32 = vld [vmem:[%s15554_s0 + $0x88] sm:$0xff] }
   0x7   :  { %v8413_v33 = vld [vmem:[%s15554_s0 + $0x340] sm:$0x7]  ;;  %v8419_v35 = vld [vmem:[%s15554_s0 + $0x90] sm:$0xff]  ;;  %v8424_v36 = vld [vmem:[%s15554_s0 + $0x348] sm:$0x7] }
   0x8   :  { %v179_v9 = vadd.f32 %v178_v7, %v8330_v6  ;;  %v8429_v37 = vld [vmem:[%s15554_s0 + $0x350] sm:$0x7]  ;;  %v286_v39 = vsel %vm285_vm0, %v8413_v33, 0.0  ;;  %v8437_v40 = vld [vmem:[%s15554_s0 + $0x98] sm:$0xff]  ;;  %v287_v43 = vsel %vm285_vm0, %v8424_v36, 0.0  ;;  %v8452_v45 = vld [vmem:[%s15554_s0 + $0xa0] sm:$0xff] }
   0x9   :  { %v8442_v41 = vld [vmem:[%s15554_s0 + $0x358] sm:$0x7]  ;;  %v289_v44 = vsel %vm285_vm0, %v8429_v37, 0.0  ;;  %v8457_v46 = vld [vmem:[%s15554_s0 + $0x360] sm:$0x7]  ;;  %v288_v47 = vadd.f32 %v287_v43, %v286_v39  ;;  %v8465_v50 = vld [vmem:[%s15554_s0 + $0xa8] sm:$0xff] }
   0xa   :  { %v180_v11 = vadd.f32 %v179_v9, %v8336_v8  ;;  %v291_v49 = vsel %vm285_vm0, %v8442_v41, 0.0  ;;  %v8470_v51 = vld [vmem:[%s15554_s0 + $0x368] sm:$0x7]  ;;  %v293_v54 = vsel %vm285_vm0, %v8457_v46, 0.0  ;;  %v8478_v55 = vld [vmem:[%s15554_s0 + $0xb0] sm:$0xff]  ;;  %v8491_v60 = vld [vmem:[%s15554_s0 + $0xb8] sm:$0xff] }
   0xb   :  { %v290_v52 = vadd.f32 %v289_v44, %v288_v47  ;;  %v8483_v56 = vld [vmem:[%s15554_s0 + $0x370] sm:$0x7]  ;;  %v295_v59 = vsel %vm285_vm0, %v8470_v51, 0.0  ;;  %v8496_v61 = vld [vmem:[%s15554_s0 + $0x378] sm:$0x7]  ;;  %v8504_v5 = vld [vmem:[%s15554_s0 + $0xc0] sm:$0xff] }
   0xc   :  { %v181_v13 = vadd.f32 %v180_v11, %v8342_v10  ;;  %15802 = vst [vmem:[#allocation2_spill] sm:$0xff] %v8483_v56  ;;  %15803 = vst [vmem:[#allocation3_spill] sm:$0xff] %v8496_v61  ;;  %v297_v3 = vsel %vm285_vm0, %v8483_v56, 0.0  ;;  %v8509_v7 = vld [vmem:[%s15554_s0 + $0x380] sm:$0x7]  ;;  %v8548_v39 = vld [vmem:[%s15554_s0 + $0x1a8] sm:$0xff] }
   0xd   :  { %v292_v57 = vadd.f32 %v291_v49, %v290_v52  ;;  %15804 = vst [vmem:[#allocation4_spill] sm:$0xff] %v8509_v7  ;;  %15808 = vst [vmem:[#allocation8_spill] sm:$0xff] %v8548_v39  ;;  %v8558_v43 = vld [vmem:[%s15554_s0 + $0x398] sm:$0x7]  ;;  %v8566_v49 = vld [vmem:[%s15554_s0 + $0x1b0] sm:$0xff] }
   0xe   :  { %v182_v15 = vadd.f32 %v181_v13, %v8348_v12  ;;  %v299_v13 = vsel %vm285_vm0, %v8496_v61, 0.0  ;;  %15809 = vst [vmem:[#allocation9_spill] sm:$0xff] %v8558_v43  ;;  %15810 = vst [vmem:[#allocation10_spill] sm:$0xff] %v8566_v49  ;;  %v8571_v52 = vld [vmem:[%s15554_s0 + $0xe0] sm:$0xff]  ;;  %v8838_v61 = vld [vmem:[%s15554_s0 + $0x150] sm:$0xff] }
   0xf   :  { %v294_v62 = vadd.f32 %v293_v54, %v292_v57  ;;  %15843 = vst [vmem:[#allocation43_spill] sm:$0xff] %v8838_v61  ;;  %v63_v56 = vld [vmem:[%s15554_s0 + $0x158] sm:$0xff] }
  0x10   :  { %v183_v17 = vadd.f32 %v182_v15, %v8354_v14  ;;  %v8517_v15 = vld [vmem:[%s15554_s0 + $0xc8] sm:$0xff] }
  0x11   :  { %v296_v9 = vadd.f32 %v295_v59, %v294_v62  ;;  %v307_v59 = vsel %vm285_vm0, %v8558_v43, 0.0  ;;  %v8586_v62 = vld [vmem:[%s15554_s0 + $0x1b8] sm:$0xff]  ;;  %v8762_v43 = vld [vmem:[%s15554_s0 + $0x130] sm:$0xff] }
  0x12   :  { %v184_v19 = vadd.f32 %v183_v17, %v8360_v16  ;;  %v8522_v17 = vld [vmem:[%s15554_s0 + $0x388] sm:$0x7]  ;;  %15812 = vst [vmem:[#allocation12_spill] sm:$0xff] %v8586_v62  ;;  %15831 = vst [vmem:[#allocation31_spill] sm:$0xff] %v8762_v43 }
  0x13   :  { %15805 = vst [vmem:[#allocation5_spill] sm:$0xff] %v8522_v17 }
  0x14   :  { %v185_v21 = vadd.f32 %v184_v19, %v8366_v18  ;;  %v298_v19 = vadd.f32 %v297_v3, %v296_v9  ;;  %v8596_v3 = vld [vmem:[%s15554_s0 + $0x3a8] sm:$0x7] }
  0x15   :  { %15813 = vst [vmem:[#allocation13_spill] sm:$0xff] %v8596_v3 }
  0x16   :  { %v186_v23 = vadd.f32 %v185_v21, %v8372_v20 }
  0x18   :  { %v187_v25 = vadd.f32 %v186_v23, %v8378_v22  ;;  %v301_v23 = vsel %vm285_vm0, %v8509_v7, 0.0  ;;  %v8819_v7 = vld [vmem:[%s15554_s0 + $0x148] sm:$0xff] }
  0x19   :  { %15840 = vst [vmem:[#allocation40_spill] sm:$0xff] %v8819_v7 }
  0x1a   :  { %v188_v27 = vadd.f32 %v187_v25, %v8384_v24  ;;  %v8530_v25 = vld [vmem:[%s15554_s0 + $0xd0] sm:$0xff] }
  0x1c   :  { %v189_v29 = vadd.f32 %v188_v27, %v8390_v26  ;;  %v8535_v27 = vld [vmem:[%s15554_s0 + $0x390] sm:$0x7] }
  0x1d   :  { %15806 = vst [vmem:[#allocation6_spill] sm:$0xff] %v8535_v27 }
  0x1e   :  { %v190_v31 = vadd.f32 %v189_v29, %v8396_v28  ;;  %v300_v29 = vadd.f32 %v299_v13, %v298_v19 }
  0x20   :  { %v191_v34 = vadd.f32 %v190_v31, %v8402_v30  ;;  %v302_v44 = vadd.f32 %v301_v23, %v300_v29  ;;  %v8610_v23 = vld [vmem:[%s15554_s0 + $0xf0] sm:$0xff] }
  0x21   :  { %v8615_v29 = vld [vmem:[%s15554_s0 + $0x3b0] sm:$0x7] }
  0x22   :  { %v192_v38 = vadd.f32 %v191_v34, %v8408_v32  ;;  %v303_v34 = vsel %vm285_vm0, %v8522_v17, 0.0  ;;  %15815 = vst [vmem:[#allocation15_spill] sm:$0xff] %v8615_v29  ;;  %v8800_v17 = vld [vmem:[%s15554_s0 + $0x140] sm:$0xff] }
  0x23   :  { %v304_v54 = vadd.f32 %v303_v34, %v302_v44  ;;  %15837 = vst [vmem:[#allocation37_spill] sm:$0xff] %v8800_v17 }
  0x24   :  { %v193_v42 = vadd.f32 %v192_v38, %v8419_v35  ;;  %v8543_v38 = vld [vmem:[%s15554_s0 + $0x1a0] sm:$0xff] }
  0x25   :  { %15807 = vst [vmem:[#allocation7_spill] sm:$0xff] %v8543_v38  ;;  %v231_v57 = vadd.f32 %v8548_v39, %v8543_v38  ;;  %v8667_v39 = vld [vmem:[%s15554_s0 + $0x108] sm:$0xff]  ;;  %v8681_v38 = vld [vmem:[%s15554_s0 + $0x1e0] sm:$0xff] }
  0x26   :  { %v194_v48 = vadd.f32 %v193_v42, %v8437_v40  ;;  %v8553_v42 = vld [vmem:[%s15554_s0 + $0xd8] sm:$0xff]  ;;  %15822 = vst [vmem:[#allocation22_spill] sm:$0xff] %v8681_v38 }
  0x28   :  { %v195_v53 = vadd.f32 %v194_v48, %v8452_v45  ;;  %v305_v48 = vsel %vm285_vm0, %v8535_v27, 0.0  ;;  %v8781_v27 = vld [vmem:[%s15554_s0 + $0x138] sm:$0xff] }
  0x29   :  { %v306_v9 = vadd.f32 %v305_v48, %v304_v54  ;;  %v8624_v48 = vld [vmem:[%s15554_s0 + $0x1c8] sm:$0xff]  ;;  %v8629_v54 = vld [vmem:[%s15554_s0 + $0xf8] sm:$0xff]  ;;  %15834 = vst [vmem:[#allocation34_spill] sm:$0xff] %v8781_v27 }
  0x2a   :  { %v196_v58 = vadd.f32 %v195_v53, %v8465_v50  ;;  %v8576_v53 = vld [vmem:[%s15554_s0 + $0x3a0] sm:$0x7]  ;;  %15816 = vst [vmem:[#allocation16_spill] sm:$0xff] %v8624_v48 }
  0x2b   :  { %15811 = vst [vmem:[#allocation11_spill] sm:$0xff] %v8576_v53  ;;  %v309_v19 = vsel %vm285_vm0, %v8576_v53, 0.0  ;;  %v8743_v53 = vld [vmem:[%s15554_s0 + $0x128] sm:$0xff] }
  0x2c   :  { %v197_v63 = vadd.f32 %v196_v58, %v8478_v55 }
  0x2e   :  { %v198_v11 = vadd.f32 %v197_v63, %v8491_v60  ;;  %v8591_v63 = vld [vmem:[%s15554_s0 + $0xe8] sm:$0xff] }
  0x30   :  { %v199_v21 = vadd.f32 %v198_v11, %v8504_v5  ;;  %v232_v11 = vadd.f32 %v231_v57, %v8566_v49  ;;  %v8634_v57 = vld [vmem:[%s15554_s0 + $0x3b8] sm:$0x7] }
  0x31   :  { %15817 = vst [vmem:[#allocation17_spill] sm:$0xff] %v8634_v57  ;;  %v8662_v49 = vld [vmem:[%s15554_s0 + $0x1d8] sm:$0xff] }
  0x32   :  { %v200_v31 = vadd.f32 %v199_v21, %v8517_v15  ;;  %v8605_v21 = vld [vmem:[%s15554_s0 + $0x1c0] sm:$0xff]  ;;  %v233_v34 = vadd.f32 %v232_v11, %v8586_v62  ;;  %v313_v11 = vsel %vm285_vm0, %v8615_v29, 0.0  ;;  %15820 = vst [vmem:[#allocation20_spill] sm:$0xff] %v8662_v49  ;;  %v8705_v29 = vld [vmem:[%s15554_s0 + $0x118] sm:$0xff] }
  0x33   :  { %15814 = vst [vmem:[#allocation14_spill] sm:$0xff] %v8605_v21  ;;  %v8648_v62 = vld [vmem:[%s15554_s0 + $0x100] sm:$0xff] }
  0x34   :  { %v201_v47 = vadd.f32 %v200_v31, %v8530_v25  ;;  %v308_v31 = vadd.f32 %v307_v59, %v306_v9  ;;  %v234_v59 = vadd.f32 %v233_v34, %v8605_v21  ;;  %v315_v21 = vsel %vm285_vm0, %v8634_v57, 0.0  ;;  %v8686_v57 = vld [vmem:[%s15554_s0 + $0x110] sm:$0xff] }
  0x36   :  { %v202_v58 = vadd.f32 %v201_v47, %v8553_v42  ;;  %v311_v47 = vsel %vm285_vm0, %v8596_v3, 0.0  ;;  %v235_v34 = vadd.f32 %v234_v59, %v8624_v48  ;;  %v8724_v3 = vld [vmem:[%s15554_s0 + $0x120] sm:$0xff] }
  0x38   :  { %v203_v13 = vadd.f32 %v202_v58, %v8571_v52  ;;  %v310_v58 = vadd.f32 %v309_v19, %v308_v31  ;;  %v8653_v19 = vld [vmem:[%s15554_s0 + $0x3c0] sm:$0x7] }
  0x39   :  { %15819 = vst [vmem:[#allocation19_spill] sm:$0xff] %v8653_v19  ;;  %v317_v48 = vsel %vm285_vm0, %v8653_v19, 0.0  ;;  %v8700_v19 = vld [vmem:[%s15554_s0 + $0x1e8] sm:$0xff] }
  0x3a   :  { %v204_v44 = vadd.f32 %v203_v13, %v8591_v63  ;;  %v8643_v13 = vld [vmem:[%s15554_s0 + $0x1d0] sm:$0xff]  ;;  %v312_v31 = vadd.f32 %v311_v47, %v310_v58  ;;  %v8672_v47 = vld [vmem:[%s15554_s0 + $0x3c8] sm:$0x7]  ;;  %15824 = vst [vmem:[#allocation24_spill] sm:$0xff] %v8700_v19 }
  0x3b   :  { %15818 = vst [vmem:[#allocation18_spill] sm:$0xff] %v8643_v13  ;;  %15821 = vst [vmem:[#allocation21_spill] sm:$0xff] %v8672_v47  ;;  %v236_v59 = vadd.f32 %v235_v34, %v8643_v13  ;;  %v319_v13 = vsel %vm285_vm0, %v8672_v47, 0.0  ;;  %v8719_v47 = vld [vmem:[%s15554_s0 + $0x1f0] sm:$0xff] }
  0x3c   :  { %v205_v9 = vadd.f32 %v204_v44, %v8610_v23  ;;  %v314_v58 = vadd.f32 %v313_v11, %v312_v31  ;;  %v8691_v11 = vld [vmem:[%s15554_s0 + $0x3d0] sm:$0x7]  ;;  %15826 = vst [vmem:[#allocation26_spill] sm:$0xff] %v8719_v47 }
  0x3d   :  { %15823 = vst [vmem:[#allocation23_spill] sm:$0xff] %v8691_v11  ;;  %v237_v34 = vadd.f32 %v236_v59, %v8662_v49  ;;  %v321_v49 = vsel %vm285_vm0, %v8691_v11, 0.0  ;;  %v8738_v11 = vld [vmem:[%s15554_s0 + $0x1f8] sm:$0xff] }
  0x3e   :  { %v206_v44 = vadd.f32 %v205_v9, %v8629_v54  ;;  %v316_v31 = vadd.f32 %v315_v21, %v314_v58  ;;  %v8710_v21 = vld [vmem:[%s15554_s0 + $0x3d8] sm:$0x7]  ;;  %15828 = vst [vmem:[#allocation28_spill] sm:$0xff] %v8738_v11 }
  0x3f   :  { %15825 = vst [vmem:[#allocation25_spill] sm:$0xff] %v8710_v21  ;;  %v238_v59 = vadd.f32 %v237_v34, %v8681_v38  ;;  %v323_v38 = vsel %vm285_vm0, %v8710_v21, 0.0  ;;  %v8757_v21 = vld [vmem:[%s15554_s0 + $0x200] sm:$0xff] }
  0x40   :  { %v207_v9 = vadd.f32 %v206_v44, %v8648_v62  ;;  %v318_v58 = vadd.f32 %v317_v48, %v316_v31  ;;  %v8729_v48 = vld [vmem:[%s15554_s0 + $0x3e0] sm:$0x7]  ;;  %15830 = vst [vmem:[#allocation30_spill] sm:$0xff] %v8757_v21 }
  0x41   :  { %15827 = vst [vmem:[#allocation27_spill] sm:$0xff] %v8729_v48  ;;  %v239_v34 = vadd.f32 %v238_v59, %v8700_v19  ;;  %v325_v19 = vsel %vm285_vm0, %v8729_v48, 0.0  ;;  %v8776_v48 = vld [vmem:[%s15554_s0 + $0x208] sm:$0xff] }
  0x42   :  { %v208_v44 = vadd.f32 %v207_v9, %v8667_v39  ;;  %v320_v31 = vadd.f32 %v319_v13, %v318_v58  ;;  %v8748_v13 = vld [vmem:[%s15554_s0 + $0x3e8] sm:$0x7]  ;;  %15833 = vst [vmem:[#allocation33_spill] sm:$0xff] %v8776_v48 }
  0x43   :  { %15829 = vst [vmem:[#allocation29_spill] sm:$0xff] %v8748_v13  ;;  %v240_v59 = vadd.f32 %v239_v34, %v8719_v47  ;;  %v327_v47 = vsel %vm285_vm0, %v8748_v13, 0.0  ;;  %v8795_v13 = vld [vmem:[%s15554_s0 + $0x210] sm:$0xff] }
  0x44   :  { %v209_v9 = vadd.f32 %v208_v44, %v8686_v57  ;;  %v322_v58 = vadd.f32 %v321_v49, %v320_v31  ;;  %v8767_v49 = vld [vmem:[%s15554_s0 + $0x3f0] sm:$0x7]  ;;  %15836 = vst [vmem:[#allocation36_spill] sm:$0xff] %v8795_v13 }
  0x45   :  { %15832 = vst [vmem:[#allocation32_spill] sm:$0xff] %v8767_v49  ;;  %v241_v34 = vadd.f32 %v240_v59, %v8738_v11  ;;  %v329_v11 = vsel %vm285_vm0, %v8767_v49, 0.0  ;;  %v8814_v49 = vld [vmem:[%s15554_s0 + $0x218] sm:$0xff] }
  0x46   :  { %v210_v44 = vadd.f32 %v209_v9, %v8705_v29  ;;  %v324_v31 = vadd.f32 %v323_v38, %v322_v58  ;;  %v8786_v38 = vld [vmem:[%s15554_s0 + $0x3f8] sm:$0x7]  ;;  %15839 = vst [vmem:[#allocation39_spill] sm:$0xff] %v8814_v49 }
  0x47   :  { %15835 = vst [vmem:[#allocation35_spill] sm:$0xff] %v8786_v38  ;;  %v242_v59 = vadd.f32 %v241_v34, %v8757_v21  ;;  %v331_v21 = vsel %vm285_vm0, %v8786_v38, 0.0  ;;  %v8833_v38 = vld [vmem:[%s15554_s0 + $0x220] sm:$0xff] }
  0x48   :  { %v211_v9 = vadd.f32 %v210_v44, %v8724_v3  ;;  %v326_v58 = vadd.f32 %v325_v19, %v324_v31  ;;  %v8805_v19 = vld [vmem:[%s15554_s0 + $0x400] sm:$0x7]  ;;  %15842 = vst [vmem:[#allocation42_spill] sm:$0xff] %v8833_v38 }
  0x49   :  { %15838 = vst [vmem:[#allocation38_spill] sm:$0xff] %v8805_v19  ;;  %v243_v34 = vadd.f32 %v242_v59, %v8776_v48  ;;  %v333_v48 = vsel %vm285_vm0, %v8805_v19, 0.0  ;;  %v8852_v19 = vld [vmem:[%s15554_s0 + $0x228] sm:$0xff] }
  0x4a   :  { %v212_v44 = vadd.f32 %v211_v9, %v8743_v53  ;;  %v328_v31 = vadd.f32 %v327_v47, %v326_v58  ;;  %v8824_v47 = vld [vmem:[%s15554_s0 + $0x408] sm:$0x7]  ;;  %15845 = vst [vmem:[#allocation45_spill] sm:$0xff] %v8852_v19 }
  0x4b   :  { %15841 = vst [vmem:[#allocation41_spill] sm:$0xff] %v8824_v47  ;;  %v244_v59 = vadd.f32 %v243_v34, %v8795_v13  ;;  %v335_v13 = vsel %vm285_vm0, %v8824_v47, 0.0  ;;  %v8869_v47 = vld [vmem:[%s15554_s0 + $0x230] sm:$0xff] }
  0x4c   :  { %v213_v9 = vadd.f32 %v212_v44, %v8762_v43  ;;  %v330_v58 = vadd.f32 %v329_v11, %v328_v31  ;;  %v8843_v11 = vld [vmem:[%s15554_s0 + $0x410] sm:$0x7]  ;;  %15847 = vst [vmem:[#allocation47_spill] sm:$0xff] %v8869_v47 }
  0x4d   :  { %15844 = vst [vmem:[#allocation44_spill] sm:$0xff] %v8843_v11  ;;  %v245_v34 = vadd.f32 %v244_v59, %v8814_v49  ;;  %v337_v49 = vsel %vm285_vm0, %v8843_v11, 0.0  ;;  %v8885_v11 = vld [vmem:[%s15554_s0 + $0x238] sm:$0xff] }
  0x4e   :  { %v214_v44 = vadd.f32 %v213_v9, %v8781_v27  ;;  %v332_v31 = vadd.f32 %v331_v21, %v330_v58  ;;  %v8860_v21 = vld [vmem:[%s15554_s0 + $0x418] sm:$0x7]  ;;  %15849 = vst [vmem:[#allocation49_spill] sm:$0xff] %v8885_v11 }
  0x4f   :  { %15846 = vst [vmem:[#allocation46_spill] sm:$0xff] %v8860_v21  ;;  %v246_v59 = vadd.f32 %v245_v34, %v8833_v38  ;;  %v339_v38 = vsel %vm285_vm0, %v8860_v21, 0.0  ;;  %v8909_v21 = vld [vmem:[%s15554_s0 + $0x430] sm:$0x7]  ;;  %v8990_v27 = vld [vmem:[%s15554_s0 + $0x458] sm:$0x7] }
  0x50   :  { %v215_v9 = vadd.f32 %v214_v44, %v8800_v17  ;;  %v334_v58 = vadd.f32 %v333_v48, %v332_v31  ;;  %v8877_v48 = vld [vmem:[%s15554_s0 + $0x420] sm:$0x7]  ;;  %v8893_v17 = vld [vmem:[%s15554_s0 + $0x428] sm:$0x7]  ;;  %15852 = vst [vmem:[#allocation52_spill] sm:$0xff] %v8909_v21 }
  0x51   :  { %15848 = vst [vmem:[#allocation48_spill] sm:$0xff] %v8877_v48  ;;  %v247_v34 = vadd.f32 %v246_v59, %v8852_v19  ;;  %15850 = vst [vmem:[#allocation50_spill] sm:$0xff] %v8893_v17  ;;  %v341_v59 = vsel %vm285_vm0, %v8877_v48, 0.0  ;;  %v66_v19 = vld [vmem:[%s15554_s0 + $0x170] sm:$0xff]  ;;  %v8925_v48 = vld [vmem:[%s15554_s0 + $0x438] sm:$0x7] }
  0x52   :  { %v216_v44 = vadd.f32 %v215_v9, %v8819_v7  ;;  %v64_v7 = vld [vmem:[%s15554_s0 + $0x160] sm:$0xff]  ;;  %v336_v31 = vadd.f32 %v335_v13, %v334_v58  ;;  %15854 = vst [vmem:[#allocation54_spill] sm:$0xff] %v8925_v48 }
  0x54   :  { %v217_v9 = vadd.f32 %v216_v44, %v8838_v61  ;;  %v65_v61 = vld [vmem:[%s15554_s0 + $0x168] sm:$0xff]  ;;  %v338_v13 = vadd.f32 %v337_v49, %v336_v31 }
  0x56   :  { %v218_v44 = vadd.f32 %v217_v9, %v63_v56  ;;  %v248_v56 = vadd.f32 %v247_v34, %v8869_v47  ;;  %v8901_v9 = vld [vmem:[%s15554_s0 + $0x240] sm:$0xff]  ;;  %v340_v49 = vadd.f32 %v339_v38, %v338_v13  ;;  %v343_v34 = vsel %vm285_vm0, %v8893_v17, 0.0  ;;  %v67_v47 = vld [vmem:[%s15554_s0 + $0x178] sm:$0xff] }
  0x57   :  { %15851 = vst [vmem:[#allocation51_spill] sm:$0xff] %v8901_v9  ;;  %v8941_v17 = vld [vmem:[%s15554_s0 + $0x440] sm:$0x7] }
  0x58   :  { %v219_v58 = vadd.f32 %v218_v44, %v64_v7  ;;  %v249_v7 = vadd.f32 %v248_v56, %v8885_v11  ;;  %v8917_v44 = vld [vmem:[%s15554_s0 + $0x248] sm:$0xff]  ;;  %v342_v38 = vadd.f32 %v341_v59, %v340_v49  ;;  %v345_v56 = vsel %vm285_vm0, %v8909_v21, 0.0  ;;  %v68_v11 = vld [vmem:[%s15554_s0 + $0x180] sm:$0xff]  ;;  %15856 = vst [vmem:[#allocation56_spill] sm:$0xff] %v8941_v17 }
  0x59   :  { %15853 = vst [vmem:[#allocation53_spill] sm:$0xff] %v8917_v44  ;;  %v8957_v21 = vld [vmem:[%s15554_s0 + $0x448] sm:$0x7] }
  0x5a   :  { %v220_v31 = vadd.f32 %v219_v58, %v65_v61  ;;  %v250_v61 = vadd.f32 %v249_v7, %v8901_v9  ;;  %v8933_v58 = vld [vmem:[%s15554_s0 + $0x250] sm:$0xff]  ;;  %v344_v59 = vadd.f32 %v343_v34, %v342_v38  ;;  %v347_v7 = vsel %vm285_vm0, %v8925_v48, 0.0  ;;  %v69_v9 = vld [vmem:[%s15554_s0 + $0x188] sm:$0xff]  ;;  %v71_v38 = vld [vmem:[%s15554_s0 + $0x198] sm:$0xff] }
  0x5b   :  { %15855 = vst [vmem:[#allocation55_spill] sm:$0xff] %v8933_v58  ;;  %v227_v48 = vsel %vm226_vm1, %v71_v38, 0.0  ;;  %v9003_v38 = vld [vmem:[%s15554_s0 + $0x460] sm:$0x7] }
  0x5c   :  { %v221_v13 = vadd.f32 %v220_v31, %v66_v19  ;;  %v251_v19 = vadd.f32 %v250_v61, %v8917_v44  ;;  %v8949_v31 = vld [vmem:[%s15554_s0 + $0x258] sm:$0xff]  ;;  %v346_v34 = vadd.f32 %v345_v56, %v344_v59  ;;  %v8968_v44 = vld [vmem:[%s15554_s0 + $0x260] sm:$0xff]  ;;  %v70_v56 = vld [vmem:[%s15554_s0 + $0x190] sm:$0xff] }
  0x5d   :  { %15857 = vst [vmem:[#allocation57_spill] sm:$0xff] %v8949_v31  ;;  %15858 = vst [vmem:[#allocation58_spill] sm:$0xff] %v8968_v44  ;;  %v8976_v59 = vld [vmem:[%s15554_s0 + $0x450] sm:$0x7] }
  0x5e   :  { %v222_v49 = vadd.f32 %v221_v13, %v67_v47  ;;  %v252_v47 = vadd.f32 %v251_v19, %v8933_v58  ;;  %v349_v13 = vsel %vm285_vm0, %v8941_v17, 0.0  ;;  %v348_v19 = vadd.f32 %v347_v7, %v346_v34  ;;  %v8984_v17 = vld [vmem:[%s15554_s0 + $0x268] sm:$0xff] }
  0x5f   :  { %v351_v58 = vsel %vm285_vm0, %v8957_v21, 0.0  ;;  %15859 = vst [vmem:[#allocation59_spill] sm:$0xff] %v8984_v17 }
  0x60   :  { %v223_v61 = vadd.f32 %v222_v49, %v68_v11  ;;  %v253_v11 = vadd.f32 %v252_v47, %v8949_v31  ;;  %v350_v43 = vadd.f32 %v349_v13, %v348_v19  ;;  %v8998_v47 = vld [vmem:[%s15554_s0 + $0x270] sm:$0xff]  ;;  %v9011_v19 = vld [vmem:[%s15554_s0 + $0x278] sm:$0xff] }
  0x61   :  { %15860 = vst [vmem:[#allocation60_spill] sm:$0xff] %v8998_v47  ;;  %15861 = vst [vmem:[#allocation61_spill] sm:$0xff] %v9011_v19 }
  0x62   :  { %v224_v49 = vadd.f32 %v223_v61, %v69_v9  ;;  %v254_v7 = vadd.f32 %v253_v11, %v8968_v44  ;;  %v353_v9 = vsel %vm285_vm0, %v8976_v59, 0.0  ;;  %v352_v61 = vadd.f32 %v351_v58, %v350_v43  ;;  %v9016_v11 = vld [vmem:[%s15554_s0 + $0x468] sm:$0x7]  ;;  %v9029_v58 = vld [vmem:[%s15554_s0 + $0x470] sm:$0x7] }
  0x63   :  { %v357_v43 = vsel %vm285_vm0, %v9003_v38, 0.0  ;;  %15863 = vst [vmem:[#allocation63_spill] sm:$0xff] %v9029_v58 }
  0x64   :  { %v225_v34 = vadd.f32 %v224_v49, %v70_v56  ;;  %v255_v31 = vadd.f32 %v254_v7, %v8984_v17  ;;  %v355_v56 = vsel %vm285_vm0, %v8990_v27, 0.0  ;;  %v354_v49 = vadd.f32 %v353_v9, %v352_v61  ;;  %v9037_v9 = vld [vmem:[%s15554_s0 + $0x288] sm:$0xff]  ;;  %v9042_v61 = vld [vmem:[%s15554_s0 + $0x478] sm:$0x7] }
  0x65   :  { %15864 = vst [vmem:[#allocation64_spill] sm:$0xff] %v9037_v9  ;;  %15865 = vst [vmem:[#allocation65_spill] sm:$0xff] %v9042_v61 }
  0x66   :  { %v228_v13 = vadd.f32 %v227_v48, %v225_v34  ;;  %v256_v44 = vadd.f32 %v255_v31, %v8998_v47  ;;  %v9024_v48 = vld [vmem:[%s15554_s0 + $0x280] sm:$0xff]  ;;  %v356_v7 = vadd.f32 %v355_v56, %v354_v49  ;;  %v359_v31 = vsel %vm285_vm0, %v9016_v11, 0.0 }
  0x67   :  { %15862 = vst [vmem:[#allocation62_spill] sm:$0xff] %v9024_v48  ;;  %v361_v56 = vsel %vm285_vm0, %v9029_v58, 0.0  ;;  %v9055_v49 = vld [vmem:[%s15554_s0 + $0x480] sm:$0x7] }
  0x68   :  { %229 = vadd.xlane.f32.xlu1 %v228_v13  ;;  %v257_v34 = vadd.f32 %v256_v44, %v9011_v19  ;;  %v358_v13 = vadd.f32 %v357_v43, %v356_v7  ;;  %v9050_v44 = vld [vmem:[%s15554_s0 + $0x290] sm:$0xff]  ;;  %15867 = vst [vmem:[#allocation67_spill] sm:$0xff] %v9055_v49  ;;  %v363_v43 = vsel %vm285_vm0, %v9042_v61, 0.0  ;;  %v9063_v7 = vld [vmem:[%s15554_s0 + $0x298] sm:$0xff] }
  0x69   :  { %15866 = vst [vmem:[#allocation66_spill] sm:$0xff] %v9050_v44  ;;  %15868 = vst [vmem:[#allocation68_spill] sm:$0xff] %v9063_v7 }
  0x6a   :  { %v258_v47 = vadd.f32 %v257_v34, %v9024_v48  ;;  %v360_v19 = vadd.f32 %v359_v31, %v358_v13  ;;  %v9068_v34 = vld [vmem:[%s15554_s0 + $0x488] sm:$0x7]  ;;  %v365_v31 = vsel %vm285_vm0, %v9055_v49, 0.0  ;;  %v9081_v13 = vld [vmem:[%s15554_s0 + $0x490] sm:$0x7] }
  0x6b   :  { %15869 = vst [vmem:[#allocation69_spill] sm:$0xff] %v9068_v34  ;;  %15871 = vst [vmem:[#allocation71_spill] sm:$0xff] %v9081_v13 }
  0x6c   :  { %v259_v17 = vadd.f32 %v258_v47, %v9037_v9  ;;  %v362_v48 = vadd.f32 %v361_v56, %v360_v19  ;;  %v9076_v47 = vld [vmem:[%s15554_s0 + $0x2a0] sm:$0xff]  ;;  %v367_v19 = vsel %vm285_vm0, %v9068_v34, 0.0  ;;  %v9094_v56 = vld [vmem:[%s15554_s0 + $0x498] sm:$0x7] }
  0x6d   :  { %15870 = vst [vmem:[#allocation70_spill] sm:$0xff] %v9076_v47  ;;  %15873 = vst [vmem:[#allocation73_spill] sm:$0xff] %v9094_v56 }
  0x6e   :  { %v260_v58 = vadd.f32 %v259_v17, %v9050_v44  ;;  %v364_v9 = vadd.f32 %v363_v43, %v362_v48  ;;  %v9089_v17 = vld [vmem:[%s15554_s0 + $0x2a8] sm:$0xff]  ;;  %v369_v48 = vsel %vm285_vm0, %v9081_v13, 0.0  ;;  %v9107_v43 = vld [vmem:[%s15554_s0 + $0x4a0] sm:$0x7] }
  0x6f   :  { %15872 = vst [vmem:[#allocation72_spill] sm:$0xff] %v9089_v17  ;;  %15875 = vst [vmem:[#allocation75_spill] sm:$0xff] %v9107_v43 }
  0x70   :  { %v261_v61 = vadd.f32 %v260_v58, %v9063_v7  ;;  %v366_v44 = vadd.f32 %v365_v31, %v364_v9  ;;  %v9102_v58 = vld [vmem:[%s15554_s0 + $0x2b0] sm:$0xff]  ;;  %v371_v9 = vsel %vm285_vm0, %v9094_v56, 0.0  ;;  %v9120_v31 = vld [vmem:[%s15554_s0 + $0x4a8] sm:$0x7] }
  0x71   :  { %15874 = vst [vmem:[#allocation74_spill] sm:$0xff] %v9102_v58  ;;  %15877 = vst [vmem:[#allocation77_spill] sm:$0xff] %v9120_v31 }
  0x72   :  { %v262_v49 = vadd.f32 %v261_v61, %v9076_v47  ;;  %v368_v7 = vadd.f32 %v367_v19, %v366_v44  ;;  %v9115_v61 = vld [vmem:[%s15554_s0 + $0x2b8] sm:$0xff]  ;;  %v373_v44 = vsel %vm285_vm0, %v9107_v43, 0.0  ;;  %v9133_v19 = vld [vmem:[%s15554_s0 + $0x4b0] sm:$0x7] }
  0x73   :  { %15876 = vst [vmem:[#allocation76_spill] sm:$0xff] %v9115_v61  ;;  %15879 = vst [vmem:[#allocation79_spill] sm:$0xff] %v9133_v19 }
  0x74   :  { %v263_v34 = vadd.f32 %v262_v49, %v9089_v17  ;;  %v370_v47 = vadd.f32 %v369_v48, %v368_v7  ;;  %v9128_v49 = vld [vmem:[%s15554_s0 + $0x2c0] sm:$0xff]  ;;  %v375_v7 = vsel %vm285_vm0, %v9120_v31, 0.0  ;;  %v9146_v48 = vld [vmem:[%s15554_s0 + $0x4b8] sm:$0x7] }
  0x75   :  { %15878 = vst [vmem:[#allocation78_spill] sm:$0xff] %v9128_v49  ;;  %15881 = vst [vmem:[#allocation81_spill] sm:$0xff] %v9146_v48 }
  0x76   :  { %v264_v13 = vadd.f32 %v263_v34, %v9102_v58  ;;  %v372_v17 = vadd.f32 %v371_v9, %v370_v47  ;;  %v9141_v34 = vld [vmem:[%s15554_s0 + $0x2c8] sm:$0xff]  ;;  %v377_v47 = vsel %vm285_vm0, %v9133_v19, 0.0  ;;  %v9159_v9 = vld [vmem:[%s15554_s0 + $0x4c0] sm:$0x7] }
  0x77   :  { %15880 = vst [vmem:[#allocation80_spill] sm:$0xff] %v9141_v34  ;;  %15883 = vst [vmem:[#allocation83_spill] sm:$0xff] %v9159_v9 }
  0x78   :  { %v265_v56 = vadd.f32 %v264_v13, %v9115_v61  ;;  %v374_v58 = vadd.f32 %v373_v44, %v372_v17  ;;  %v9154_v13 = vld [vmem:[%s15554_s0 + $0x2d0] sm:$0xff]  ;;  %v379_v17 = vsel %vm285_vm0, %v9146_v48, 0.0  ;;  %v9172_v44 = vld [vmem:[%s15554_s0 + $0x4c8] sm:$0x7] }
  0x79   :  { %15882 = vst [vmem:[#allocation82_spill] sm:$0xff] %v9154_v13  ;;  %15885 = vst [vmem:[#allocation85_spill] sm:$0xff] %v9172_v44 }
  0x7a   :  { %v266_v43 = vadd.f32 %v265_v56, %v9128_v49  ;;  %v376_v61 = vadd.f32 %v375_v7, %v374_v58  ;;  %v9167_v56 = vld [vmem:[%s15554_s0 + $0x2d8] sm:$0xff]  ;;  %v381_v58 = vsel %vm285_vm0, %v9159_v9, 0.0  ;;  %v9185_v7 = vld [vmem:[%s15554_s0 + $0x4d0] sm:$0x7] }
  0x7b   :  { %15884 = vst [vmem:[#allocation84_spill] sm:$0xff] %v9167_v56  ;;  %15887 = vst [vmem:[#allocation87_spill] sm:$0xff] %v9185_v7 }
  0x7c   :  { %v267_v31 = vadd.f32 %v266_v43, %v9141_v34  ;;  %v378_v49 = vadd.f32 %v377_v47, %v376_v61  ;;  %v9180_v43 = vld [vmem:[%s15554_s0 + $0x2e0] sm:$0xff]  ;;  %v383_v61 = vsel %vm285_vm0, %v9172_v44, 0.0  ;;  %v9198_v47 = vld [vmem:[%s15554_s0 + $0x4d8] sm:$0x7] }
  0x7d   :  { %15886 = vst [vmem:[#allocation86_spill] sm:$0xff] %v9180_v43  ;;  %v388_v44 = vsel %vm387_vm2, %v9198_v47, 0.0 }
  0x7e   :  { %v268_v19 = vadd.f32 %v267_v31, %v9154_v13  ;;  %v380_v34 = vadd.f32 %v379_v17, %v378_v49  ;;  %v9193_v31 = vld [vmem:[%s15554_s0 + $0x2e8] sm:$0xff]  ;;  %v385_v49 = vsel %vm285_vm0, %v9185_v7, 0.0 }
  0x7f   :  { %15888 = vst [vmem:[#allocation88_spill] sm:$0xff] %v9193_v31 }
  0x80   :  { %v269_v48 = vadd.f32 %v268_v19, %v9167_v56  ;;  %v382_v13 = vadd.f32 %v381_v58, %v380_v34  ;;  %v9206_v19 = vld [vmem:[%s15554_s0 + $0x2f0] sm:$0xff]  ;;  %v9214_v34 = vld [vmem:[%s15554_s0 + $0x2f8] sm:$0xff] }
  0x81   :  { %15889 = vst [vmem:[#allocation89_spill] sm:$0xff] %v9206_v19  ;;  %15890 = vst [vmem:[#allocation90_spill] sm:$0xff] %v9214_v34 }
  0x82   :  { %v270_v9 = vadd.f32 %v269_v48, %v9180_v43  ;;  %v384_v17 = vadd.f32 %v383_v61, %v382_v13  ;;  %v9220_v43 = vld [vmem:[%s15554_s0 + $0x300] sm:$0xff] }
  0x83   :  { %15891 = vst [vmem:[#allocation91_spill] sm:$0xff] %v9220_v43 }
  0x84   :  { %v271_v56 = vadd.f32 %v270_v9, %v9193_v31  ;;  %v386_v48 = vadd.f32 %v385_v49, %v384_v17  ;;  %v9226_v9 = vld [vmem:[%s15554_s0 + $0x308] sm:$0xff] }
  0x85   :  { %15892 = vst [vmem:[#allocation92_spill] sm:$0xff] %v9226_v9 }
  0x86   :  { %v272_v58 = vadd.f32 %v271_v56, %v9206_v19  ;;  %v389_v7 = vadd.f32 %v388_v44, %v386_v48  ;;  %v9232_v56 = vld [vmem:[%s15554_s0 + $0x310] sm:$0xff]  ;;  %v119_v44 = vld [vmem:[%s15554_s0 + $0x318] sm:$0xff]  ;;  %v120_v48 = vld [vmem:[%s15554_s0 + $0x320] sm:$0xff] }
  0x87   :  { %15893 = vst [vmem:[#allocation93_spill] sm:$0xff] %v9232_v56 }
  0x88   :  { %v273_v13 = vadd.f32 %v272_v58, %v9214_v34  ;;  %390 = vadd.xlane.f32.xlu0 %v389_v7  ;;  %v121_v58 = vld [vmem:[%s15554_s0 + $0x328] sm:$0xff] }
  0x8a   :  { %v274_v61 = vadd.f32 %v273_v13, %v9220_v43  ;;  %v123_v13 = vld [vmem:[%s15554_s0 + $0x338] sm:$0xff] }
  0x8c   :  { %v275_v49 = vadd.f32 %v274_v61, %v9226_v9  ;;  %v122_v9 = vld [vmem:[%s15554_s0 + $0x330] sm:$0xff] }
  0x8e   :  { %v276_v17 = vadd.f32 %v275_v49, %v9232_v56  ;;  %v281_v49 = vsel %vm226_vm1, %v123_v13, 0.0 }
  0x90   :  { %v277_v7 = vadd.f32 %v276_v17, %v119_v44 }
  0x92   :  { %v278_v61 = vadd.f32 %v277_v7, %v120_v48 }
  0x94   :  { %v279_v43 = vadd.f32 %v278_v61, %v121_v58  ;;  %v15939_v61 = vld [vmem:[#allocation31_spill] sm:$0xff] }
  0x96   :  { %v280_v56 = vadd.f32 %v279_v43, %v122_v9 }
  0x98   :  { %v282_v34 = vadd.f32 %v281_v49, %v280_v56 }
  0x9a   :  { %283 = vadd.xlane.f32.xlu0 %v282_v34 }
  0xf1   :  { %v230_v44 = vpop.xlane.xlu1 %229 }
  0xf2   :  { %v9252_v17 = vmul.f32 0.0001525553, %v230_v44 }
  0xf4   :  { %15894 = vst [vmem:[#allocation94_spill] sm:$0xff] %v9252_v17  ;;  %v9256_v31 = vsub.f32 %v8307_v0, %v9252_v17  ;;  %v9260_v48 = vsub.f32 %v8312_v1, %v9252_v17  ;;  %v9266_v58 = vsub.f32 %v8317_v2, %v9252_v17  ;;  %v9270_v43 = vsub.f32 %v8324_v4, %v9252_v17 }
  0xf5   :  { %v9274_v34 = vsub.f32 %v8330_v6, %v9252_v17  ;;  %v9278_v0 = vsub.f32 %v8336_v8, %v9252_v17  ;;  %v9282_v1 = vsub.f32 %v8342_v10, %v9252_v17  ;;  %v9286_v2 = vsub.f32 %v8348_v12, %v9252_v17 }
  0xf6   :  { %15895 = vst [vmem:[#allocation95_spill] sm:$0xff] %v9256_v31  ;;  %15896 = vst [vmem:[#allocation96_spill] sm:$0xff] %v9260_v48  ;;  %v9290_v4 = vsub.f32 %v8354_v14, %v9252_v17  ;;  %v9294_v6 = vsub.f32 %v8360_v16, %v9252_v17  ;;  %v9298_v8 = vsub.f32 %v8366_v18, %v9252_v17 }
  0xf7   :  { %15897 = vst [vmem:[#allocation97_spill] sm:$0xff] %v9266_v58  ;;  %15898 = vst [vmem:[#allocation98_spill] sm:$0xff] %v9270_v43  ;;  %v9302_v10 = vsub.f32 %v8372_v20, %v9252_v17  ;;  %v9306_v12 = vsub.f32 %v8378_v22, %v9252_v17  ;;  %v9310_v14 = vsub.f32 %v8384_v24, %v9252_v17 }
  0xf8   :  { %15899 = vst [vmem:[#allocation99_spill] sm:$0xff] %v9274_v34  ;;  %15900 = vst [vmem:[#allocation100_spill] sm:$0xff] %v9278_v0  ;;  %v9314_v16 = vsub.f32 %v8390_v26, %v9252_v17  ;;  %v9318_v18 = vsub.f32 %v8396_v28, %v9252_v17  ;;  %v9330_v24 = vsub.f32 %v8402_v30, %v9252_v17 }
  0xf9   :  { %15901 = vst [vmem:[#allocation101_spill] sm:$0xff] %v9282_v1  ;;  %15902 = vst [vmem:[#allocation102_spill] sm:$0xff] %v9286_v2  ;;  %v9334_v26 = vsub.f32 %v8408_v32, %v9252_v17  ;;  %v9338_v28 = vsub.f32 %v8419_v35, %v9252_v17  ;;  %v9350_v30 = vsub.f32 %v8465_v50, %v9252_v17 }
  0xfa   :  { %15903 = vst [vmem:[#allocation103_spill] sm:$0xff] %v9290_v4  ;;  %15904 = vst [vmem:[#allocation104_spill] sm:$0xff] %v9294_v6  ;;  %v9354_v32 = vsub.f32 %v8478_v55, %v9252_v17  ;;  %v9370_v50 = vsub.f32 %v8517_v15, %v9252_v17  ;;  %v9374_v55 = vsub.f32 %v8530_v25, %v9252_v17 }
  0xfb   :  { %15905 = vst [vmem:[#allocation105_spill] sm:$0xff] %v9298_v8  ;;  %15906 = vst [vmem:[#allocation106_spill] sm:$0xff] %v9302_v10  ;;  %v9390_v15 = vsub.f32 %v8571_v52, %v9252_v17  ;;  %v9394_v25 = vsub.f32 %v8591_v63, %v9252_v17  ;;  %v9406_v9 = vsub.f32 %v8648_v62, %v9252_v17 }
  0xfc   :  { %15907 = vst [vmem:[#allocation107_spill] sm:$0xff] %v9306_v12  ;;  %15908 = vst [vmem:[#allocation108_spill] sm:$0xff] %v9310_v14  ;;  %v9410_v52 = vsub.f32 %v8667_v39, %v9252_v17  ;;  %v9420_v56 = vsub.f32 %v8686_v57, %v9252_v17  ;;  %v9428_v62 = vsub.f32 %v8724_v3, %v9252_v17  ;;  %v15941_v3 = vld [vmem:[#allocation34_spill] sm:$0xff] }
  0xfd   :  { %15909 = vst [vmem:[#allocation109_spill] sm:$0xff] %v9314_v16  ;;  %15910 = vst [vmem:[#allocation110_spill] sm:$0xff] %v9318_v18  ;;  %v9432_v39 = vsub.f32 %v8743_v53, %v9252_v17  ;;  %v9444_v49 = vsub.f32 %v15939_v61, %v9252_v17  ;;  %v9448_v44 = vsub.f32 %v15941_v3, %v9252_v17  ;;  %v15943_v53 = vld [vmem:[#allocation37_spill] sm:$0xff]  ;;  %v15949_v3 = vld [vmem:[#allocation43_spill] sm:$0xff] }
  0xfe   :  { %15913 = vst [vmem:[#allocation113_spill] sm:$0xff] %v9330_v24  ;;  %15914 = vst [vmem:[#allocation114_spill] sm:$0xff] %v9334_v26 }
  0xff   :  { %15915 = vst [vmem:[#allocation115_spill] sm:$0xff] %v9338_v28  ;;  %15918 = vst [vmem:[#allocation118_spill] sm:$0xff] %v9350_v30 }
 0x100   :  { %15919 = vst [vmem:[#allocation119_spill] sm:$0xff] %v9354_v32  ;;  %15923 = vst [vmem:[#allocation123_spill] sm:$0xff] %v9370_v50 }
 0x101   :  { %15924 = vst [vmem:[#allocation124_spill] sm:$0xff] %v9374_v55  ;;  %15927 = vst [vmem:[#allocation127_spill] sm:$0xff] %v9390_v15 }
 0x102   :  { %15928 = vst [vmem:[#allocation128_spill] sm:$0xff] %v9394_v25  ;;  %15931 = vst [vmem:[#allocation131_spill] sm:$0xff] %v9406_v9 }
 0x103   :  { %15932 = vst [vmem:[#allocation132_spill] sm:$0xff] %v9410_v52  ;;  %15934 = vst [vmem:[#allocation134_spill] sm:$0xff] %v9420_v56 }
 0x104   :  { %15936 = vst [vmem:[#allocation136_spill] sm:$0xff] %v9428_v62  ;;  %15937 = vst [vmem:[#allocation137_spill] sm:$0xff] %v9432_v39 }
 0x105   :  { %15940 = vst [vmem:[#allocation31_spill] sm:$0xff] %v9444_v49  ;;  %15942 = vst [vmem:[#allocation34_spill] sm:$0xff] %v9448_v44  ;;  %v9467_v44 = vsub.f32 %v15949_v3, %v9252_v17  ;;  %v553_v3 = vmul.f32 %v9266_v58, %v9266_v58 }
 0x107   :  { %15950 = vst [vmem:[#allocation43_spill] sm:$0xff] %v9467_v44 }
 0x111   :  { %v391_v19 = vpop.xlane.xlu0 %390 }
 0x112   :  { %v9262_v7 = vmul.f32 0.0001525553, %v391_v19 }
 0x114   :  { %v9322_v20 = vsub.f32 %v8413_v33, %v9262_v7  ;;  %v9326_v22 = vsub.f32 %v8424_v36, %v9262_v7  ;;  %v9342_v33 = vsub.f32 %v8437_v40, %v9252_v17  ;;  %v9346_v36 = vsub.f32 %v8452_v45, %v9252_v17 }
 0x115   :  { %v9358_v35 = vsub.f32 %v8429_v37, %v9262_v7  ;;  %v9362_v40 = vsub.f32 %v8491_v60, %v9252_v17  ;;  %v9366_v45 = vsub.f32 %v8504_v5, %v9252_v17  ;;  %v9378_v37 = vsub.f32 %v8553_v42, %v9252_v17 }
 0x116   :  { %15911 = vst [vmem:[#allocation111_spill] sm:$0xff] %v9322_v20  ;;  %15912 = vst [vmem:[#allocation112_spill] sm:$0xff] %v9326_v22  ;;  %v9382_v60 = vsub.f32 %v8442_v41, %v9262_v7  ;;  %v655_v5 = vmul.f32 %v9322_v20, %v9322_v20  ;;  %v656_v19 = vmul.f32 %v9326_v22, %v9326_v22  ;;  %v15945_v20 = vld [vmem:[#allocation40_spill] sm:$0xff] }
 0x117   :  { %15916 = vst [vmem:[#allocation116_spill] sm:$0xff] %v9342_v33  ;;  %15917 = vst [vmem:[#allocation117_spill] sm:$0xff] %v9346_v36  ;;  %v9398_v42 = vsub.f32 %v8610_v23, %v9252_v17  ;;  %v9402_v41 = vsub.f32 %v8629_v54, %v9252_v17  ;;  %v9414_v63 = vsub.f32 %v8457_v46, %v9262_v7 }
 0x118   :  { %15920 = vst [vmem:[#allocation120_spill] sm:$0xff] %v9358_v35  ;;  %15921 = vst [vmem:[#allocation121_spill] sm:$0xff] %v9362_v40  ;;  %v657_v23 = vmul.f32 %v9358_v35, %v9358_v35  ;;  %v9424_v54 = vsub.f32 %v8705_v29, %v9252_v17  ;;  %v9436_v46 = vsub.f32 %v8470_v51, %v9262_v7  ;;  %v815_v13 = vsel %vm285_vm0, %v655_v5, 0.0  ;;  %v15947_v5 = vld [vmem:[#allocation2_spill] sm:$0xff] }
 0x119   :  { %15922 = vst [vmem:[#allocation122_spill] sm:$0xff] %v9366_v45  ;;  %15925 = vst [vmem:[#allocation125_spill] sm:$0xff] %v9378_v37  ;;  %v658_v57 = vmul.f32 %v9382_v60, %v9382_v60  ;;  %v816_v29 = vsel %vm285_vm0, %v656_v19, 0.0  ;;  %v9452_v35 = vsub.f32 %v15943_v53, %v9252_v17  ;;  %v9460_v19 = vsub.f32 %v15947_v5, %v9262_v7 }
 0x11a   :  { %15926 = vst [vmem:[#allocation126_spill] sm:$0xff] %v9382_v60  ;;  %15929 = vst [vmem:[#allocation129_spill] sm:$0xff] %v9398_v42  ;;  %v817_v51 = vadd.f32 %v816_v29, %v815_v13  ;;  %v9456_v60 = vsub.f32 %v15945_v20, %v9252_v17  ;;  %v659_v61 = vmul.f32 %v9414_v63, %v9414_v63  ;;  %v818_v22 = vsel %vm285_vm0, %v657_v23, 0.0  ;;  %v15951_v29 = vld [vmem:[#allocation3_spill] sm:$0xff]  ;;  %v15986_v17 = vld [vmem:[#allocation29_spill] sm:$0xff] }
 0x11b   :  { %15930 = vst [vmem:[#allocation130_spill] sm:$0xff] %v9402_v41  ;;  %15933 = vst [vmem:[#allocation133_spill] sm:$0xff] %v9414_v63  ;;  %v551_v13 = vmul.f32 %v9256_v31, %v9256_v31  ;;  %v552_v20 = vmul.f32 %v9260_v48, %v9260_v48  ;;  %v9475_v5 = vsub.f32 %v15951_v29, %v9262_v7  ;;  %v820_v23 = vsel %vm285_vm0, %v658_v57, 0.0  ;;  %v15953_v31 = vld [vmem:[#allocation4_spill] sm:$0xff] }
 0x11c   :  { %15935 = vst [vmem:[#allocation135_spill] sm:$0xff] %v9424_v54  ;;  %15938 = vst [vmem:[#allocation138_spill] sm:$0xff] %v9436_v46  ;;  %v819_v53 = vadd.f32 %v818_v22, %v817_v51  ;;  %v660_v63 = vmul.f32 %v9436_v46, %v9436_v46  ;;  %v554_v22 = vmul.f32 %v9270_v43, %v9270_v43  ;;  %v15955_v43 = vld [vmem:[#allocation5_spill] sm:$0xff] }
 0x11d   :  { %15944 = vst [vmem:[#allocation37_spill] sm:$0xff] %v9452_v35  ;;  %15946 = vst [vmem:[#allocation40_spill] sm:$0xff] %v9456_v60  ;;  %v9486_v51 = vmul.f32 %v9274_v34, %v9274_v34  ;;  %v9490_v29 = vmul.f32 %v9278_v0, %v9278_v0  ;;  %v9494_v48 = vsub.f32 %v15953_v31, %v9262_v7  ;;  %v15988_v35 = vld [vmem:[#allocation16_spill] sm:$0xff] }
 0x11e   :  { %15948 = vst [vmem:[#allocation2_spill] sm:$0xff] %v9460_v19  ;;  %15952 = vst [vmem:[#allocation3_spill] sm:$0xff] %v9475_v5  ;;  %v821_v44 = vadd.f32 %v820_v23, %v819_v53  ;;  %v661_v57 = vmul.f32 %v9460_v19, %v9460_v19  ;;  %v822_v53 = vsel %vm285_vm0, %v659_v61, 0.0  ;;  %v9501_v23 = vmul.f32 %v9282_v1, %v9282_v1  ;;  %v15957_v19 = vld [vmem:[#allocation6_spill] sm:$0xff] }
 0x11f   :  { %15954 = vst [vmem:[#allocation4_spill] sm:$0xff] %v9494_v48  ;;  %v9505_v34 = vmul.f32 %v9286_v2, %v9286_v2  ;;  %v9509_v0 = vmul.f32 %v9290_v4, %v9290_v4  ;;  %v9513_v31 = vmul.f32 %v9294_v6, %v9294_v6  ;;  %v9517_v61 = vsub.f32 %v15955_v43, %v9262_v7 }
 0x120   :  { %v823_v58 = vadd.f32 %v822_v53, %v821_v44  ;;  %v662_v1 = vmul.f32 %v9475_v5, %v9475_v5  ;;  %v824_v44 = vsel %vm285_vm0, %v660_v63, 0.0  ;;  %v9524_v53 = vmul.f32 %v9298_v8, %v9298_v8 }
 0x121   :  { %15956 = vst [vmem:[#allocation5_spill] sm:$0xff] %v9517_v61  ;;  %v9528_v4 = vmul.f32 %v9302_v10, %v9302_v10  ;;  %v9532_v6 = vmul.f32 %v9306_v12, %v9306_v12  ;;  %v707_v43 = vadd.f32 %v552_v20, %v551_v13  ;;  %v9536_v46 = vsub.f32 %v15957_v19, %v9262_v7  ;;  %v15959_v20 = vld [vmem:[#allocation9_spill] sm:$0xff] }
 0x122   :  { %v825_v2 = vadd.f32 %v824_v44, %v823_v58  ;;  %v663_v63 = vmul.f32 %v9494_v48, %v9494_v48  ;;  %v826_v8 = vsel %vm285_vm0, %v661_v57, 0.0  ;;  %v9543_v58 = vmul.f32 %v9310_v14, %v9310_v14  ;;  %v15961_v14 = vld [vmem:[#allocation11_spill] sm:$0xff] }
 0x123   :  { %15958 = vst [vmem:[#allocation6_spill] sm:$0xff] %v9536_v46  ;;  %v9547_v10 = vmul.f32 %v9314_v16, %v9314_v16  ;;  %v9551_v13 = vmul.f32 %v9318_v18, %v9318_v18  ;;  %v9555_v19 = vmul.f32 %v9330_v24, %v9330_v24  ;;  %v9559_v57 = vsub.f32 %v15959_v20, %v9262_v7 }
 0x124   :  { %v827_v44 = vadd.f32 %v826_v8, %v825_v2  ;;  %v664_v12 = vmul.f32 %v9517_v61, %v9517_v61  ;;  %v828_v2 = vsel %vm285_vm0, %v662_v1, 0.0  ;;  %v9566_v8 = vmul.f32 %v9334_v26, %v9334_v26 }
 0x125   :  { %15960 = vst [vmem:[#allocation9_spill] sm:$0xff] %v9559_v57  ;;  %v9570_v18 = vmul.f32 %v9338_v28, %v9338_v28  ;;  %v9574_v24 = vmul.f32 %v9342_v33, %v9342_v33  ;;  %v708_v20 = vadd.f32 %v707_v43, %v553_v3  ;;  %v9578_v48 = vsub.f32 %v15961_v14, %v9262_v7  ;;  %v15963_v43 = vld [vmem:[#allocation13_spill] sm:$0xff] }
 0x126   :  { %v829_v16 = vadd.f32 %v828_v2, %v827_v44  ;;  %v665_v1 = vmul.f32 %v9536_v46, %v9536_v46  ;;  %v830_v26 = vsel %vm285_vm0, %v663_v63, 0.0  ;;  %v9585_v44 = vmul.f32 %v9346_v36, %v9346_v36  ;;  %v284_v2 = vpop.xlane.xlu0 %283  ;;  %v15965_v46 = vld [vmem:[#allocation15_spill] sm:$0xff] }
 0x127   :  { %15962 = vst [vmem:[#allocation11_spill] sm:$0xff] %v9578_v48  ;;  %v9589_v33 = vmul.f32 %v9350_v30, %v9350_v30  ;;  %v9593_v3 = vmul.f32 %v9354_v32, %v9354_v32  ;;  %v9597_v14 = vmul.f32 %v9362_v40, %v9362_v40  ;;  %v9601_v63 = vsub.f32 %v15963_v43, %v9262_v7 }
 0x128   :  { %v831_v28 = vadd.f32 %v830_v26, %v829_v16  ;;  %v666_v36 = vmul.f32 %v9559_v57, %v9559_v57  ;;  %v832_v16 = vsel %vm285_vm0, %v664_v12, 0.0  ;;  %v9608_v26 = vmul.f32 %v9366_v45, %v9366_v45 }
 0x129   :  { %15964 = vst [vmem:[#allocation13_spill] sm:$0xff] %v9601_v63  ;;  %v9612_v32 = vmul.f32 %v9370_v50, %v9370_v50  ;;  %v9616_v40 = vmul.f32 %v9374_v55, %v9374_v55  ;;  %v709_v43 = vadd.f32 %v708_v20, %v554_v22  ;;  %v9620_v61 = vsub.f32 %v15965_v46, %v9262_v7  ;;  %v15967_v22 = vld [vmem:[#allocation17_spill] sm:$0xff]  ;;  %v15971_v50 = vld [vmem:[#allocation7_spill] sm:$0xff] }
 0x12a   :  { %v833_v30 = vadd.f32 %v832_v16, %v831_v28  ;;  %v9622_v57 = vmul.f32 0.0001525553, %v284_v2  ;;  %v667_v12 = vmul.f32 %v9578_v48, %v9578_v48  ;;  %v834_v28 = vsel %vm285_vm0, %v665_v1, 0.0 }
 0x12b   :  { %15966 = vst [vmem:[#allocation15_spill] sm:$0xff] %v9620_v61  ;;  %v9629_v45 = vmul.f32 %v9378_v37, %v9378_v37  ;;  %v9633_v55 = vmul.f32 %v9390_v15, %v9390_v15  ;;  %v9637_v46 = vmul.f32 %v9394_v25, %v9394_v25  ;;  %v9641_v20 = vsub.f32 %v15967_v22, %v9262_v7 }
 0x12c   :  { %v835_v16 = vadd.f32 %v834_v28, %v833_v30  ;;  %v668_v1 = vmul.f32 %v9601_v63, %v9601_v63  ;;  %v836_v30 = vsel %vm285_vm0, %v666_v36, 0.0  ;;  %v9648_v2 = vmul.f32 %v9398_v42, %v9398_v42  ;;  %v15969_v28 = vld [vmem:[#allocation19_spill] sm:$0xff]  ;;  %v15973_v36 = vld [vmem:[#allocation8_spill] sm:$0xff] }
 0x12d   :  { %15968 = vst [vmem:[#allocation17_spill] sm:$0xff] %v9641_v20  ;;  %v9652_v15 = vsub.f32 %v15969_v28, %v9262_v7  ;;  %v9656_v25 = vmul.f32 %v9402_v41, %v9402_v41  ;;  %v710_v22 = vadd.f32 %v709_v43, %v9486_v51  ;;  %v9661_v48 = vsub.f32 %v15971_v50, %v9622_v57  ;;  %v15975_v43 = vld [vmem:[#allocation21_spill] sm:$0xff] }
 0x12e   :  { %v837_v37 = vadd.f32 %v836_v30, %v835_v16  ;;  %v9665_v63 = vsub.f32 %v15973_v36, %v9622_v57  ;;  %v669_v42 = vmul.f32 %v9620_v61, %v9620_v61  ;;  %v838_v28 = vsel %vm285_vm0, %v667_v12, 0.0 }
 0x12f   :  { %15970 = vst [vmem:[#allocation19_spill] sm:$0xff] %v9652_v15  ;;  %15972 = vst [vmem:[#allocation7_spill] sm:$0xff] %v9661_v48  ;;  %v9672_v30 = vmul.f32 %v9406_v9, %v9406_v9  ;;  %v9676_v51 = vmul.f32 %v9410_v52, %v9410_v52  ;;  %v9680_v50 = vmul.f32 %v9420_v56, %v9420_v56  ;;  %v15977_v9 = vld [vmem:[#allocation23_spill] sm:$0xff]  ;;  %v15979_v56 = vld [vmem:[#allocation10_spill] sm:$0xff] }
 0x130   :  { %15974 = vst [vmem:[#allocation8_spill] sm:$0xff] %v9665_v63  ;;  %v839_v16 = vadd.f32 %v838_v28, %v837_v37  ;;  %v9684_v36 = vsub.f32 %v15975_v43, %v9262_v7  ;;  %v670_v12 = vmul.f32 %v9641_v20, %v9641_v20  ;;  %v840_v37 = vsel %vm285_vm0, %v668_v1, 0.0 }
 0x131   :  { %v9691_v28 = vmul.f32 %v9424_v54, %v9424_v54  ;;  %v9695_v52 = vsub.f32 %v15977_v9, %v9262_v7  ;;  %v9699_v41 = vsub.f32 %v15979_v56, %v9622_v57  ;;  %v711_v43 = vadd.f32 %v710_v22, %v9490_v29  ;;  %v15980_v9 = vld [vmem:[#allocation25_spill] sm:$0xff] }
 0x132   :  { %15976 = vst [vmem:[#allocation21_spill] sm:$0xff] %v9684_v36  ;;  %v841_v61 = vadd.f32 %v840_v37, %v839_v16  ;;  %v671_v20 = vmul.f32 %v9652_v15, %v9652_v15  ;;  %v842_v1 = vsel %vm285_vm0, %v669_v42, 0.0  ;;  %v603_v54 = vmul.f32 %v9661_v48, %v9661_v48  ;;  %v15982_v42 = vld [vmem:[#allocation12_spill] sm:$0xff] }
 0x133   :  { %15978 = vst [vmem:[#allocation23_spill] sm:$0xff] %v9695_v52  ;;  %v604_v5 = vmul.f32 %v9665_v63, %v9665_v63  ;;  %v9711_v60 = vsub.f32 %v15980_v9, %v9262_v7  ;;  %v9715_v16 = vmul.f32 %v9428_v62, %v9428_v62  ;;  %v9719_v29 = vmul.f32 %v9432_v39, %v9432_v39  ;;  %v15985_v62 = vld [vmem:[#allocation14_spill] sm:$0xff] }
 0x134   :  { %v843_v56 = vadd.f32 %v842_v1, %v841_v61  ;;  %v9723_v22 = vsub.f32 %v15982_v42, %v9622_v57  ;;  %v672_v37 = vmul.f32 %v9684_v36, %v9684_v36  ;;  %v844_v15 = vsel %vm285_vm0, %v670_v12, 0.0  ;;  %v15983_v1 = vld [vmem:[#allocation27_spill] sm:$0xff] }
 0x135   :  { %15981 = vst [vmem:[#allocation10_spill] sm:$0xff] %v9711_v60  ;;  %v9730_v61 = vmul.f32 %v9444_v49, %v9444_v49  ;;  %v9734_v9 = vsub.f32 %v15983_v1, %v9262_v7  ;;  %v9738_v39 = vsub.f32 %v15985_v62, %v9622_v57  ;;  %v673_v42 = vmul.f32 %v9695_v52, %v9695_v52 }
 0x136   :  { %v845_v48 = vadd.f32 %v844_v15, %v843_v56  ;;  %v846_v36 = vsel %vm285_vm0, %v671_v20, 0.0  ;;  %v605_v12 = vmul.f32 %v9699_v41, %v9699_v41  ;;  %v761_v63 = vadd.f32 %v604_v5, %v603_v54 }
 0x137   :  { %15984 = vst [vmem:[#allocation25_spill] sm:$0xff] %v9734_v9  ;;  %v712_v49 = vadd.f32 %v711_v43, %v9501_v23  ;;  %v9748_v1 = vsub.f32 %v15986_v17, %v9262_v7  ;;  %v9752_v62 = vsub.f32 %v15988_v35, %v9622_v57  ;;  %v674_v52 = vmul.f32 %v9711_v60, %v9711_v60  ;;  %v15989_v23 = vld [vmem:[#allocation32_spill] sm:$0xff]  ;;  %v15991_v43 = vld [vmem:[#allocation18_spill] sm:$0xff] }
 0x138   :  { %v847_v15 = vadd.f32 %v846_v36, %v845_v48  ;;  %v848_v20 = vsel %vm285_vm0, %v672_v37, 0.0  ;;  %v606_v56 = vmul.f32 %v9723_v22, %v9723_v22  ;;  %v762_v54 = vadd.f32 %v761_v63, %v605_v12 }
 0x139   :  { %15987 = vst [vmem:[#allocation12_spill] sm:$0xff] %v9748_v1  ;;  %v713_v5 = vadd.f32 %v712_v49, %v9505_v34  ;;  %v9762_v17 = vsub.f32 %v15989_v23, %v9262_v7  ;;  %v9766_v35 = vsub.f32 %v15991_v43, %v9622_v57  ;;  %v675_v60 = vmul.f32 %v9734_v9, %v9734_v9  ;;  %v15992_v49 = vld [vmem:[#allocation35_spill] sm:$0xff]  ;;  %v15994_v23 = vld [vmem:[#allocation20_spill] sm:$0xff] }
 0x13a   :  { %v849_v48 = vadd.f32 %v848_v20, %v847_v15  ;;  %v850_v36 = vsel %vm285_vm0, %v673_v42, 0.0  ;;  %v607_v37 = vmul.f32 %v9738_v39, %v9738_v39  ;;  %v763_v63 = vadd.f32 %v762_v54, %v606_v56  ;;  %v15995_v54 = vld [vmem:[#allocation38_spill] sm:$0xff] }
 0x13b   :  { %15990 = vst [vmem:[#allocation27_spill] sm:$0xff] %v9762_v17  ;;  %v714_v34 = vadd.f32 %v713_v5, %v9509_v0  ;;  %v9776_v12 = vsub.f32 %v15992_v49, %v9262_v7  ;;  %v9780_v43 = vsub.f32 %v15994_v23, %v9622_v57  ;;  %v676_v9 = vmul.f32 %v9748_v1, %v9748_v1  ;;  %v15997_v49 = vld [vmem:[#allocation22_spill] sm:$0xff] }
 0x13c   :  { %v851_v15 = vadd.f32 %v850_v36, %v849_v48  ;;  %v852_v42 = vsel %vm285_vm0, %v674_v52, 0.0  ;;  %v608_v20 = vmul.f32 %v9752_v62, %v9752_v62  ;;  %v764_v56 = vadd.f32 %v763_v63, %v607_v37  ;;  %v15998_v63 = vld [vmem:[#allocation41_spill] sm:$0xff] }
 0x13d   :  { %15993 = vst [vmem:[#allocation14_spill] sm:$0xff] %v9776_v12  ;;  %v715_v0 = vadd.f32 %v714_v34, %v9513_v31  ;;  %v9790_v5 = vsub.f32 %v15995_v54, %v9262_v7  ;;  %v9794_v23 = vsub.f32 %v15997_v49, %v9622_v57  ;;  %v677_v1 = vmul.f32 %v9762_v17, %v9762_v17  ;;  %v16000_v54 = vld [vmem:[#allocation24_spill] sm:$0xff] }
 0x13e   :  { %v853_v48 = vadd.f32 %v852_v42, %v851_v15  ;;  %v854_v52 = vsel %vm285_vm0, %v675_v60, 0.0  ;;  %v609_v36 = vmul.f32 %v9766_v35, %v9766_v35  ;;  %v765_v37 = vadd.f32 %v764_v56, %v608_v20  ;;  %v16001_v56 = vld [vmem:[#allocation44_spill] sm:$0xff] }
 0x13f   :  { %15996 = vst [vmem:[#allocation29_spill] sm:$0xff] %v9790_v5  ;;  %v716_v31 = vadd.f32 %v715_v0, %v9524_v53  ;;  %v9804_v34 = vsub.f32 %v15998_v63, %v9262_v7  ;;  %v9808_v49 = vsub.f32 %v16000_v54, %v9622_v57  ;;  %v678_v17 = vmul.f32 %v9776_v12, %v9776_v12  ;;  %v16003_v63 = vld [vmem:[#allocation26_spill] sm:$0xff] }
 0x140   :  { %v855_v15 = vadd.f32 %v854_v52, %v853_v48  ;;  %v856_v60 = vsel %vm285_vm0, %v676_v9, 0.0  ;;  %v610_v42 = vmul.f32 %v9780_v43, %v9780_v43  ;;  %v766_v20 = vadd.f32 %v765_v37, %v609_v36  ;;  %v16004_v37 = vld [vmem:[#allocation46_spill] sm:$0xff] }
 0x141   :  { %15999 = vst [vmem:[#allocation16_spill] sm:$0xff] %v9804_v34  ;;  %v717_v53 = vadd.f32 %v716_v31, %v9528_v4  ;;  %v9818_v0 = vsub.f32 %v16001_v56, %v9262_v7  ;;  %v9822_v54 = vsub.f32 %v16003_v63, %v9622_v57  ;;  %v679_v12 = vmul.f32 %v9790_v5, %v9790_v5  ;;  %v16006_v56 = vld [vmem:[#allocation28_spill] sm:$0xff] }
 0x142   :  { %v857_v48 = vadd.f32 %v856_v60, %v855_v15  ;;  %v858_v9 = vsel %vm285_vm0, %v677_v1, 0.0  ;;  %v611_v52 = vmul.f32 %v9794_v23, %v9794_v23  ;;  %v767_v36 = vadd.f32 %v766_v20, %v610_v42  ;;  %v16007_v20 = vld [vmem:[#allocation48_spill] sm:$0xff] }
 0x143   :  { %16002 = vst [vmem:[#allocation32_spill] sm:$0xff] %v9818_v0  ;;  %v718_v4 = vadd.f32 %v717_v53, %v9532_v6  ;;  %v9832_v31 = vsub.f32 %v16004_v37, %v9262_v7  ;;  %v9836_v63 = vsub.f32 %v16006_v56, %v9622_v57  ;;  %v680_v5 = vmul.f32 %v9804_v34, %v9804_v34  ;;  %v16009_v37 = vld [vmem:[#allocation30_spill] sm:$0xff] }
 0x144   :  { %v859_v15 = vadd.f32 %v858_v9, %v857_v48  ;;  %v860_v1 = vsel %vm285_vm0, %v678_v17, 0.0  ;;  %v612_v60 = vmul.f32 %v9808_v49, %v9808_v49  ;;  %v768_v42 = vadd.f32 %v767_v36, %v611_v52  ;;  %v16010_v36 = vld [vmem:[#allocation50_spill] sm:$0xff] }
 0x145   :  { %16005 = vst [vmem:[#allocation18_spill] sm:$0xff] %v9832_v31  ;;  %v719_v6 = vadd.f32 %v718_v4, %v9543_v58  ;;  %v9846_v53 = vsub.f32 %v16007_v20, %v9262_v7  ;;  %v9850_v56 = vsub.f32 %v16009_v37, %v9622_v57  ;;  %v681_v34 = vmul.f32 %v9818_v0, %v9818_v0  ;;  %v16012_v20 = vld [vmem:[#allocation33_spill] sm:$0xff] }
 0x146   :  { %v861_v48 = vadd.f32 %v860_v1, %v859_v15  ;;  %v862_v17 = vsel %vm285_vm0, %v679_v12, 0.0  ;;  %v613_v9 = vmul.f32 %v9822_v54, %v9822_v54  ;;  %v769_v52 = vadd.f32 %v768_v42, %v612_v60  ;;  %v16013_v42 = vld [vmem:[#allocation52_spill] sm:$0xff] }
 0x147   :  { %16008 = vst [vmem:[#allocation35_spill] sm:$0xff] %v9846_v53  ;;  %v720_v58 = vadd.f32 %v719_v6, %v9547_v10  ;;  %v9860_v4 = vsub.f32 %v16010_v36, %v9262_v7  ;;  %v9864_v37 = vsub.f32 %v16012_v20, %v9622_v57  ;;  %v682_v0 = vmul.f32 %v9832_v31, %v9832_v31  ;;  %v16014_v36 = vld [vmem:[#allocation36_spill] sm:$0xff] }
 0x148   :  { %v863_v15 = vadd.f32 %v862_v17, %v861_v48  ;;  %v864_v12 = vsel %vm285_vm0, %v680_v5, 0.0  ;;  %v614_v1 = vmul.f32 %v9836_v63, %v9836_v63  ;;  %v770_v60 = vadd.f32 %v769_v52, %v613_v9  ;;  %v16015_v52 = vld [vmem:[#allocation54_spill] sm:$0xff] }
 0x149   :  { %16011 = vst [vmem:[#allocation20_spill] sm:$0xff] %v9860_v4  ;;  %v721_v10 = vadd.f32 %v720_v58, %v9551_v13  ;;  %v9874_v6 = vsub.f32 %v16013_v42, %v9262_v7  ;;  %v9878_v20 = vsub.f32 %v16014_v36, %v9622_v57  ;;  %v683_v31 = vmul.f32 %v9846_v53, %v9846_v53  ;;  %v16016_v42 = vld [vmem:[#allocation39_spill] sm:$0xff] }
 0x14a   :  { %v865_v48 = vadd.f32 %v864_v12, %v863_v15  ;;  %v866_v5 = vsel %vm285_vm0, %v681_v34, 0.0  ;;  %v615_v17 = vmul.f32 %v9850_v56, %v9850_v56  ;;  %v771_v9 = vadd.f32 %v770_v60, %v614_v1  ;;  %v16017_v60 = vld [vmem:[#allocation56_spill] sm:$0xff] }
 0x14b   :  { %v722_v13 = vadd.f32 %v721_v10, %v9555_v19  ;;  %v9888_v58 = vsub.f32 %v16015_v52, %v9262_v7  ;;  %v9892_v36 = vsub.f32 %v16016_v42, %v9622_v57  ;;  %v684_v53 = vmul.f32 %v9860_v4, %v9860_v4  ;;  %v16018_v52 = vld [vmem:[#allocation42_spill] sm:$0xff] }
 0x14c   :  { %v867_v15 = vadd.f32 %v866_v5, %v865_v48  ;;  %v868_v34 = vsel %vm285_vm0, %v682_v0, 0.0  ;;  %v616_v12 = vmul.f32 %v9864_v37, %v9864_v37  ;;  %v772_v1 = vadd.f32 %v771_v9, %v615_v17 }
 0x14d   :  { %v723_v19 = vadd.f32 %v722_v13, %v9566_v8  ;;  %v9902_v10 = vsub.f32 %v16017_v60, %v9262_v7  ;;  %v9906_v42 = vsub.f32 %v16018_v52, %v9622_v57  ;;  %v685_v4 = vmul.f32 %v9874_v6, %v9874_v6  ;;  %v16019_v13 = vld [vmem:[#allocation45_spill] sm:$0xff] }
 0x14e   :  { %v869_v48 = vadd.f32 %v868_v34, %v867_v15  ;;  %v870_v0 = vsel %vm285_vm0, %v683_v31, 0.0  ;;  %v617_v5 = vmul.f32 %v9878_v20, %v9878_v20  ;;  %v773_v17 = vadd.f32 %v772_v1, %v616_v12  ;;  %v16021_v1 = vld [vmem:[#allocation47_spill] sm:$0xff] }
 0x14f   :  { %v724_v8 = vadd.f32 %v723_v19, %v9570_v18  ;;  %v9916_v9 = vsub.f32 %v8957_v21, %v9262_v7  ;;  %v9920_v60 = vsub.f32 %v16019_v13, %v9622_v57  ;;  %v686_v52 = vmul.f32 %v9888_v58, %v9888_v58 }
 0x150   :  { %v871_v15 = vadd.f32 %v870_v0, %v869_v48  ;;  %v872_v31 = vsel %vm285_vm0, %v684_v53, 0.0  ;;  %v618_v34 = vmul.f32 %v9892_v36, %v9892_v36  ;;  %v774_v12 = vadd.f32 %v773_v17, %v617_v5  ;;  %v16022_v17 = vld [vmem:[#allocation49_spill] sm:$0xff] }
 0x151   :  { %v725_v18 = vadd.f32 %v724_v8, %v9574_v24  ;;  %v9930_v21 = vsub.f32 %v8976_v59, %v9262_v7  ;;  %v9934_v19 = vsub.f32 %v16021_v1, %v9622_v57  ;;  %v687_v13 = vmul.f32 %v9902_v10, %v9902_v10 }
 0x152   :  { %v873_v48 = vadd.f32 %v872_v31, %v871_v15  ;;  %v874_v53 = vsel %vm285_vm0, %v685_v4, 0.0  ;;  %v619_v0 = vmul.f32 %v9906_v42, %v9906_v42  ;;  %v775_v5 = vadd.f32 %v774_v12, %v618_v34  ;;  %v16024_v12 = vld [vmem:[#allocation51_spill] sm:$0xff] }
 0x153   :  { %16020 = vst [vmem:[#allocation38_spill] sm:$0xff] %v9930_v21  ;;  %v726_v24 = vadd.f32 %v725_v18, %v9585_v44  ;;  %v9944_v59 = vsub.f32 %v8990_v27, %v9262_v7  ;;  %v9948_v8 = vsub.f32 %v16022_v17, %v9622_v57  ;;  %v688_v1 = vmul.f32 %v9916_v9, %v9916_v9 }
 0x154   :  { %v875_v15 = vadd.f32 %v874_v53, %v873_v48  ;;  %v876_v4 = vsel %vm285_vm0, %v686_v52, 0.0  ;;  %v620_v31 = vmul.f32 %v9920_v60, %v9920_v60  ;;  %v776_v34 = vadd.f32 %v775_v5, %v619_v0  ;;  %v16026_v5 = vld [vmem:[#allocation53_spill] sm:$0xff] }
 0x155   :  { %v727_v44 = vadd.f32 %v726_v24, %v9589_v33  ;;  %v9958_v27 = vsub.f32 %v9003_v38, %v9262_v7  ;;  %v9962_v18 = vsub.f32 %v16024_v12, %v9622_v57  ;;  %v689_v17 = vmul.f32 %v9930_v21, %v9930_v21 }
 0x156   :  { %v877_v48 = vadd.f32 %v876_v4, %v875_v15  ;;  %v878_v52 = vsel %vm285_vm0, %v687_v13, 0.0  ;;  %v621_v53 = vmul.f32 %v9934_v19, %v9934_v19  ;;  %v777_v0 = vadd.f32 %v776_v34, %v620_v31  ;;  %v16027_v34 = vld [vmem:[#allocation63_spill] sm:$0xff] }
 0x157   :  { %16023 = vst [vmem:[#allocation22_spill] sm:$0xff] %v9958_v27  ;;  %v728_v33 = vadd.f32 %v727_v44, %v9593_v3  ;;  %v9972_v38 = vsub.f32 %v9016_v11, %v9262_v7  ;;  %v9976_v24 = vsub.f32 %v16026_v5, %v9622_v57  ;;  %v690_v12 = vmul.f32 %v9944_v59, %v9944_v59  ;;  %v16029_v44 = vld [vmem:[#allocation55_spill] sm:$0xff] }
 0x158   :  { %v879_v15 = vadd.f32 %v878_v52, %v877_v48  ;;  %v880_v13 = vsel %vm285_vm0, %v688_v1, 0.0  ;;  %v622_v4 = vmul.f32 %v9948_v8, %v9948_v8  ;;  %v778_v31 = vadd.f32 %v777_v0, %v621_v53  ;;  %v16030_v0 = vld [vmem:[#allocation65_spill] sm:$0xff] }
 0x159   :  { %16025 = vst [vmem:[#allocation41_spill] sm:$0xff] %v9972_v38  ;;  %v729_v3 = vadd.f32 %v728_v33, %v9597_v14  ;;  %v9986_v11 = vsub.f32 %v16027_v34, %v9262_v7  ;;  %v9990_v5 = vsub.f32 %v16029_v44, %v9622_v57  ;;  %v691_v21 = vmul.f32 %v9958_v27, %v9958_v27  ;;  %v16032_v34 = vld [vmem:[#allocation57_spill] sm:$0xff] }
 0x15a   :  { %v881_v48 = vadd.f32 %v880_v13, %v879_v15  ;;  %v882_v1 = vsel %vm285_vm0, %v689_v17, 0.0  ;;  %v623_v52 = vmul.f32 %v9962_v18, %v9962_v18  ;;  %v779_v53 = vadd.f32 %v778_v31, %v622_v4  ;;  %v16033_v31 = vld [vmem:[#allocation67_spill] sm:$0xff] }
 0x15b   :  { %16028 = vst [vmem:[#allocation24_spill] sm:$0xff] %v9986_v11  ;;  %v730_v14 = vadd.f32 %v729_v3, %v9608_v26  ;;  %v10000_v33 = vsub.f32 %v16030_v0, %v9262_v7  ;;  %v10004_v44 = vsub.f32 %v16032_v34, %v9622_v57  ;;  %v692_v27 = vmul.f32 %v9972_v38, %v9972_v38  ;;  %v16035_v0 = vld [vmem:[#allocation58_spill] sm:$0xff] }
 0x15c   :  { %v883_v15 = vadd.f32 %v882_v1, %v881_v48  ;;  %v884_v17 = vsel %vm285_vm0, %v690_v12, 0.0  ;;  %v624_v13 = vmul.f32 %v9976_v24, %v9976_v24  ;;  %v780_v4 = vadd.f32 %v779_v53, %v623_v52  ;;  %v16036_v53 = vld [vmem:[#allocation69_spill] sm:$0xff] }
 0x15d   :  { %16031 = vst [vmem:[#allocation44_spill] sm:$0xff] %v10000_v33  ;;  %v731_v26 = vadd.f32 %v730_v14, %v9612_v32  ;;  %v10014_v3 = vsub.f32 %v16033_v31, %v9262_v7  ;;  %v10018_v34 = vsub.f32 %v16035_v0, %v9622_v57  ;;  %v693_v38 = vmul.f32 %v9986_v11, %v9986_v11  ;;  %v16038_v31 = vld [vmem:[#allocation59_spill] sm:$0xff] }
 0x15e   :  { %v885_v48 = vadd.f32 %v884_v17, %v883_v15  ;;  %v886_v12 = vsel %vm285_vm0, %v691_v21, 0.0  ;;  %v625_v1 = vmul.f32 %v9990_v5, %v9990_v5  ;;  %v781_v52 = vadd.f32 %v780_v4, %v624_v13  ;;  %v16039_v4 = vld [vmem:[#allocation71_spill] sm:$0xff] }
 0x15f   :  { %16034 = vst [vmem:[#allocation26_spill] sm:$0xff] %v10014_v3  ;;  %v732_v32 = vadd.f32 %v731_v26, %v9616_v40  ;;  %v10028_v14 = vsub.f32 %v16036_v53, %v9262_v7  ;;  %v10032_v0 = vsub.f32 %v16038_v31, %v9622_v57  ;;  %v694_v11 = vmul.f32 %v10000_v33, %v10000_v33  ;;  %v16041_v53 = vld [vmem:[#allocation60_spill] sm:$0xff] }
 0x160   :  { %v887_v15 = vadd.f32 %v886_v12, %v885_v48  ;;  %v888_v21 = vsel %vm285_vm0, %v692_v27, 0.0  ;;  %v626_v17 = vmul.f32 %v10004_v44, %v10004_v44  ;;  %v782_v13 = vadd.f32 %v781_v52, %v625_v1  ;;  %v16042_v52 = vld [vmem:[#allocation73_spill] sm:$0xff] }
 0x161   :  { %16037 = vst [vmem:[#allocation46_spill] sm:$0xff] %v10028_v14  ;;  %v733_v40 = vadd.f32 %v732_v32, %v9629_v45  ;;  %v10042_v26 = vsub.f32 %v16039_v4, %v9262_v7  ;;  %v10046_v31 = vsub.f32 %v16041_v53, %v9622_v57  ;;  %v695_v33 = vmul.f32 %v10014_v3, %v10014_v3  ;;  %v16044_v4 = vld [vmem:[#allocation61_spill] sm:$0xff] }
 0x162   :  { %v889_v48 = vadd.f32 %v888_v21, %v887_v15  ;;  %v890_v27 = vsel %vm285_vm0, %v693_v38, 0.0  ;;  %v627_v12 = vmul.f32 %v10018_v34, %v10018_v34  ;;  %v783_v1 = vadd.f32 %v782_v13, %v626_v17  ;;  %v16045_v13 = vld [vmem:[#allocation75_spill] sm:$0xff] }
 0x163   :  { %16040 = vst [vmem:[#allocation28_spill] sm:$0xff] %v10042_v26  ;;  %v734_v45 = vadd.f32 %v733_v40, %v9633_v55  ;;  %v10056_v32 = vsub.f32 %v16042_v52, %v9262_v7  ;;  %v10060_v53 = vsub.f32 %v16044_v4, %v9622_v57  ;;  %v696_v3 = vmul.f32 %v10028_v14, %v10028_v14  ;;  %v16047_v52 = vld [vmem:[#allocation62_spill] sm:$0xff] }
 0x164   :  { %v891_v15 = vadd.f32 %v890_v27, %v889_v48  ;;  %v892_v38 = vsel %vm285_vm0, %v694_v11, 0.0  ;;  %v628_v21 = vmul.f32 %v10032_v0, %v10032_v0  ;;  %v784_v17 = vadd.f32 %v783_v1, %v627_v12  ;;  %v16049_v1 = vld [vmem:[#allocation77_spill] sm:$0xff] }
 0x165   :  { %16043 = vst [vmem:[#allocation48_spill] sm:$0xff] %v10056_v32  ;;  %v735_v55 = vadd.f32 %v734_v45, %v9637_v46  ;;  %v10070_v40 = vsub.f32 %v16045_v13, %v9262_v7  ;;  %v10074_v4 = vsub.f32 %v16047_v52, %v9622_v57  ;;  %v697_v14 = vmul.f32 %v10042_v26, %v10042_v26  ;;  %v16050_v13 = vld [vmem:[#allocation64_spill] sm:$0xff] }
 0x166   :  { %v893_v48 = vadd.f32 %v892_v38, %v891_v15  ;;  %v894_v11 = vsel %vm285_vm0, %v695_v33, 0.0  ;;  %v629_v27 = vmul.f32 %v10046_v31, %v10046_v31  ;;  %v785_v12 = vadd.f32 %v784_v17, %v628_v21  ;;  %v16052_v17 = vld [vmem:[#allocation79_spill] sm:$0xff] }
 0x167   :  { %16046 = vst [vmem:[#allocation30_spill] sm:$0xff] %v10070_v40  ;;  %16048 = vst [vmem:[#allocation50_spill] sm:$0xff] %v10074_v4  ;;  %v736_v46 = vadd.f32 %v735_v55, %v9648_v2  ;;  %v10084_v45 = vsub.f32 %v16049_v1, %v9262_v7  ;;  %v10088_v52 = vsub.f32 %v16050_v13, %v9622_v57  ;;  %v896_v33 = vsel %vm285_vm0, %v696_v3, 0.0  ;;  %v16053_v1 = vld [vmem:[#allocation66_spill] sm:$0xff] }
 0x168   :  { %v698_v26 = vmul.f32 %v10056_v32, %v10056_v32  ;;  %v895_v15 = vadd.f32 %v894_v11, %v893_v48  ;;  %v630_v38 = vmul.f32 %v10060_v53, %v10060_v53  ;;  %v786_v21 = vadd.f32 %v785_v12, %v629_v27  ;;  %v16055_v12 = vld [vmem:[#allocation81_spill] sm:$0xff] }
 0x169   :  { %16051 = vst [vmem:[#allocation33_spill] sm:$0xff] %v10088_v52  ;;  %v737_v2 = vadd.f32 %v736_v46, %v9656_v25  ;;  %v10098_v55 = vsub.f32 %v16052_v17, %v9262_v7  ;;  %v10102_v13 = vsub.f32 %v16053_v1, %v9622_v57  ;;  %v699_v32 = vmul.f32 %v10070_v40, %v10070_v40  ;;  %v16056_v17 = vld [vmem:[#allocation68_spill] sm:$0xff] }
 0x16a   :  { %v897_v48 = vadd.f32 %v896_v33, %v895_v15  ;;  %v898_v3 = vsel %vm285_vm0, %v697_v14, 0.0  ;;  %v631_v11 = vmul.f32 %v10074_v4, %v10074_v4  ;;  %v787_v27 = vadd.f32 %v786_v21, %v630_v38  ;;  %v16057_v21 = vld [vmem:[#allocation83_spill] sm:$0xff] }
 0x16b   :  { %16054 = vst [vmem:[#allocation52_spill] sm:$0xff] %v10102_v13  ;;  %v738_v25 = vadd.f32 %v737_v2, %v9672_v30  ;;  %v10112_v46 = vsub.f32 %v16055_v12, %v9262_v7  ;;  %v10116_v1 = vsub.f32 %v16056_v17, %v9622_v57  ;;  %v700_v40 = vmul.f32 %v10084_v45, %v10084_v45  ;;  %v16058_v12 = vld [vmem:[#allocation70_spill] sm:$0xff] }
 0x16c   :  { %v899_v15 = vadd.f32 %v898_v3, %v897_v48  ;;  %v900_v14 = vsel %vm285_vm0, %v698_v26, 0.0  ;;  %v632_v33 = vmul.f32 %v10088_v52, %v10088_v52  ;;  %v788_v38 = vadd.f32 %v787_v27, %v631_v11  ;;  %v16060_v27 = vld [vmem:[#allocation85_spill] sm:$0xff] }
 0x16d   :  { %v739_v30 = vadd.f32 %v738_v25, %v9676_v51  ;;  %v10126_v2 = vsub.f32 %v16057_v21, %v9262_v7  ;;  %v10130_v17 = vsub.f32 %v16058_v12, %v9622_v57  ;;  %v701_v4 = vmul.f32 %v10098_v55, %v10098_v55  ;;  %v16061_v21 = vld [vmem:[#allocation72_spill] sm:$0xff] }
 0x16e   :  { %v901_v48 = vadd.f32 %v900_v14, %v899_v15  ;;  %v902_v26 = vsel %vm285_vm0, %v699_v32, 0.0  ;;  %v633_v3 = vmul.f32 %v10102_v13, %v10102_v13  ;;  %v789_v11 = vadd.f32 %v788_v38, %v632_v33  ;;  %v16063_v38 = vld [vmem:[#allocation87_spill] sm:$0xff] }
 0x16f   :  { %16059 = vst [vmem:[#allocation36_spill] sm:$0xff] %v10130_v17  ;;  %v740_v51 = vadd.f32 %v739_v30, %v9680_v50  ;;  %v10140_v25 = vsub.f32 %v16060_v27, %v9262_v7  ;;  %v10144_v12 = vsub.f32 %v16061_v21, %v9622_v57  ;;  %v702_v52 = vmul.f32 %v10112_v46, %v10112_v46  ;;  %v16064_v27 = vld [vmem:[#allocation74_spill] sm:$0xff] }
 0x170   :  { %v903_v15 = vadd.f32 %v902_v26, %v901_v48  ;;  %v904_v32 = vsel %vm285_vm0, %v700_v40, 0.0  ;;  %v634_v14 = vmul.f32 %v10116_v1, %v10116_v1  ;;  %v790_v33 = vadd.f32 %v789_v11, %v633_v3 }
 0x171   :  { %16062 = vst [vmem:[#allocation54_spill] sm:$0xff] %v10144_v12  ;;  %v741_v50 = vadd.f32 %v740_v51, %v9691_v28  ;;  %v10154_v30 = vsub.f32 %v16063_v38, %v9262_v7  ;;  %v10158_v21 = vsub.f32 %v16064_v27, %v9622_v57  ;;  %v703_v13 = vmul.f32 %v10126_v2, %v10126_v2  ;;  %v16066_v51 = vld [vmem:[#allocation76_spill] sm:$0xff] }
 0x172   :  { %v905_v48 = vadd.f32 %v904_v32, %v903_v15  ;;  %v906_v40 = vsel %vm285_vm0, %v701_v4, 0.0  ;;  %v635_v26 = vmul.f32 %v10130_v17, %v10130_v17  ;;  %v791_v3 = vadd.f32 %v790_v33, %v634_v14  ;;  %v16068_v33 = vld [vmem:[#allocation78_spill] sm:$0xff] }
 0x173   :  { %16065 = vst [vmem:[#allocation39_spill] sm:$0xff] %v10158_v21  ;;  %v742_v28 = vadd.f32 %v741_v50, %v9715_v16  ;;  %v10168_v11 = vsub.f32 %v9198_v47, %v9262_v7  ;;  %v10172_v38 = vsub.f32 %v16066_v51, %v9622_v57  ;;  %v704_v27 = vmul.f32 %v10140_v25, %v10140_v25  ;;  %v16070_v51 = vld [vmem:[#allocation34_spill] sm:$0xff] }
 0x174   :  { %v907_v15 = vadd.f32 %v906_v40, %v905_v48  ;;  %v908_v4 = vsel %vm285_vm0, %v702_v52, 0.0  ;;  %v636_v32 = vmul.f32 %v10144_v12, %v10144_v12  ;;  %v792_v14 = vadd.f32 %v791_v3, %v635_v26 }
 0x175   :  { %16067 = vst [vmem:[#allocation56_spill] sm:$0xff] %v10172_v38  ;;  %v743_v16 = vadd.f32 %v742_v28, %v9719_v29  ;;  %v10182_v47 = vsub.f32 %v16068_v33, %v9622_v57  ;;  %v705_v7 = vmul.f32 %v10154_v30, %v10154_v30  ;;  %v590_v17 = vmul.f32 %v16070_v51, %v16070_v51  ;;  %v16071_v29 = vld [vmem:[#allocation80_spill] sm:$0xff] }
 0x176   :  { %v909_v50 = vadd.f32 %v908_v4, %v907_v15  ;;  %v910_v48 = vsel %vm285_vm0, %v703_v13, 0.0  ;;  %v637_v52 = vmul.f32 %v10158_v21, %v10158_v21  ;;  %v793_v40 = vadd.f32 %v792_v14, %v636_v32  ;;  %v16073_v15 = vld [vmem:[#allocation37_spill] sm:$0xff]  ;;  %v16074_v14 = vld [vmem:[#allocation94_spill] sm:$0xff] }
 0x177   :  { %16069 = vst [vmem:[#allocation42_spill] sm:$0xff] %v10182_v47  ;;  %v744_v26 = vadd.f32 %v743_v16, %v9730_v61  ;;  %v10194_v3 = vsub.f32 %v16071_v29, %v9622_v57  ;;  %v706_v28 = vmul.f32 %v10168_v11, %v10168_v11  ;;  %v591_v4 = vmul.f32 %v16073_v15, %v16073_v15  ;;  %v8246_v61 = vld [vmem:[%s15554_s0 + $0x158] sm:$0xff]  ;;  %v16076_v29 = vld [vmem:[#allocation82_spill] sm:$0xff]  ;;  %v16078_v15 = vld [vmem:[#allocation40_spill] sm:$0xff] }
 0x178   :  { %v911_v33 = vadd.f32 %v910_v48, %v909_v50  ;;  %v912_v51 = vsel %vm285_vm0, %v704_v27, 0.0  ;;  %v638_v13 = vmul.f32 %v10172_v38, %v10172_v38  ;;  %v794_v21 = vadd.f32 %v793_v40, %v637_v52 }
 0x179   :  { %16072 = vst [vmem:[#allocation45_spill] sm:$0xff] %v10194_v3  ;;  %v745_v32 = vadd.f32 %v744_v26, %v590_v17  ;;  %v10207_v16 = vsub.f32 %v8246_v61, %v16074_v14  ;;  %v10211_v50 = vsub.f32 %v16076_v29, %v9622_v57  ;;  %v592_v27 = vmul.f32 %v16078_v15, %v16078_v15  ;;  %v8247_v26 = vld [vmem:[%s15554_s0 + $0x160] sm:$0xff]  ;;  %v16080_v29 = vld [vmem:[#allocation84_spill] sm:$0xff]  ;;  %v16082_v15 = vld [vmem:[#allocation43_spill] sm:$0xff] }
 0x17a   :  { %v913_v48 = vadd.f32 %v912_v51, %v911_v33  ;;  %v914_v12 = vsel %vm285_vm0, %v705_v7, 0.0  ;;  %v639_v17 = vmul.f32 %v10182_v47, %v10182_v47  ;;  %v795_v52 = vadd.f32 %v794_v21, %v638_v13 }
 0x17b   :  { %16075 = vst [vmem:[#allocation47_spill] sm:$0xff] %v10207_v16  ;;  %16077 = vst [vmem:[#allocation49_spill] sm:$0xff] %v10211_v50  ;;  %v746_v40 = vadd.f32 %v745_v32, %v591_v4  ;;  %v10222_v61 = vsub.f32 %v8247_v26, %v16074_v14  ;;  %v10226_v51 = vsub.f32 %v16080_v29, %v9622_v57  ;;  %v916_v38 = vsel %vm387_vm2, %v706_v28, 0.0  ;;  %v8248_v32 = vld [vmem:[%s15554_s0 + $0x168] sm:$0xff] }
 0x17c   :  { %v915_v33 = vadd.f32 %v914_v12, %v913_v48  ;;  %v593_v7 = vmul.f32 %v16082_v15, %v16082_v15  ;;  %v640_v21 = vmul.f32 %v10194_v3, %v10194_v3  ;;  %v796_v4 = vadd.f32 %v795_v52, %v639_v17  ;;  %v16084_v48 = vld [vmem:[#allocation86_spill] sm:$0xff]  ;;  %v8249_v52 = vld [vmem:[%s15554_s0 + $0x170] sm:$0xff] }
 0x17d   :  { %16079 = vst [vmem:[#allocation51_spill] sm:$0xff] %v10222_v61  ;;  %16081 = vst [vmem:[#allocation53_spill] sm:$0xff] %v10226_v51  ;;  %v747_v13 = vadd.f32 %v746_v40, %v592_v27  ;;  %v10237_v26 = vsub.f32 %v8248_v32, %v16074_v14  ;;  %v594_v12 = vmul.f32 %v10207_v16, %v10207_v16 }
 0x17e   :  { %v917_v29 = vadd.f32 %v916_v38, %v915_v33  ;;  %v10243_v15 = vsub.f32 %v16084_v48, %v9622_v57  ;;  %v641_v28 = vmul.f32 %v10211_v50, %v10211_v50  ;;  %v797_v17 = vadd.f32 %v796_v4, %v640_v21  ;;  %v16087_v33 = vld [vmem:[#allocation88_spill] sm:$0xff]  ;;  %v8250_v4 = vld [vmem:[%s15554_s0 + $0x178] sm:$0xff] }
 0x17f   :  { %16083 = vst [vmem:[#allocation63_spill] sm:$0xff] %v10237_v26  ;;  %v748_v27 = vadd.f32 %v747_v13, %v593_v7  ;;  %v10251_v40 = vsub.f32 %v8249_v52, %v16074_v14  ;;  %v595_v38 = vmul.f32 %v10222_v61, %v10222_v61  ;;  %v10257_v32 = vsub.f32 %v16087_v33, %v9622_v57  ;;  %v16090_v52 = vld [vmem:[#allocation89_spill] sm:$0xff] }
 0x180   :  { %16085 = vst [vmem:[#allocation55_spill] sm:$0xff] %v10243_v15  ;;  %918 = vadd.xlane.f32.xlu1 %v917_v29  ;;  %v642_v48 = vmul.f32 %v10226_v51, %v10226_v51  ;;  %v798_v21 = vadd.f32 %v797_v17, %v641_v28  ;;  %v10265_v13 = vsub.f32 %v8250_v4, %v16074_v14  ;;  %v16093_v4 = vld [vmem:[#allocation90_spill] sm:$0xff] }
 0x181   :  { %16086 = vst [vmem:[#allocation65_spill] sm:$0xff] %v10251_v40  ;;  %16088 = vst [vmem:[#allocation57_spill] sm:$0xff] %v10257_v32  ;;  %v749_v7 = vadd.f32 %v748_v27, %v594_v12  ;;  %v596_v29 = vmul.f32 %v10237_v26, %v10237_v26  ;;  %v10271_v61 = vsub.f32 %v16090_v52, %v9622_v57  ;;  %v8251_v12 = vld [vmem:[%s15554_s0 + $0x180] sm:$0xff] }
 0x182   :  { %16089 = vst [vmem:[#allocation67_spill] sm:$0xff] %v10265_v13  ;;  %v643_v33 = vmul.f32 %v10243_v15, %v10243_v15  ;;  %v799_v16 = vadd.f32 %v798_v21, %v642_v48  ;;  %v10279_v17 = vsub.f32 %v8251_v12, %v16074_v14  ;;  %v597_v27 = vmul.f32 %v10251_v40, %v10251_v40  ;;  %v16096_v12 = vld [vmem:[#allocation91_spill] sm:$0xff] }
 0x183   :  { %16091 = vst [vmem:[#allocation58_spill] sm:$0xff] %v10271_v61  ;;  %v750_v28 = vadd.f32 %v749_v7, %v595_v38  ;;  %v10285_v26 = vsub.f32 %v16093_v4, %v9622_v57  ;;  %v644_v52 = vmul.f32 %v10257_v32, %v10257_v32  ;;  %v8252_v38 = vld [vmem:[%s15554_s0 + $0x188] sm:$0xff]  ;;  %v598_v7 = vmul.f32 %v10265_v13, %v10265_v13 }
 0x184   :  { %16092 = vst [vmem:[#allocation69_spill] sm:$0xff] %v10279_v17  ;;  %v800_v15 = vadd.f32 %v799_v16, %v643_v33  ;;  %v10293_v21 = vsub.f32 %v8252_v38, %v16074_v14  ;;  %v10299_v40 = vsub.f32 %v16096_v12, %v9622_v57  ;;  %v645_v4 = vmul.f32 %v10271_v61, %v10271_v61  ;;  %v16102_v61 = vld [vmem:[#allocation93_spill] sm:$0xff] }
 0x185   :  { %16094 = vst [vmem:[#allocation59_spill] sm:$0xff] %v10285_v26  ;;  %v751_v48 = vadd.f32 %v750_v28, %v596_v29  ;;  %v8253_v29 = vld [vmem:[%s15554_s0 + $0x190] sm:$0xff]  ;;  %v8254_v28 = vld [vmem:[%s15554_s0 + $0x198] sm:$0xff]  ;;  %v599_v12 = vmul.f32 %v10279_v17, %v10279_v17  ;;  %v10327_v50 = vsub.f32 %v16102_v61, %v9622_v57 }
 0x186   :  { %16095 = vst [vmem:[#allocation71_spill] sm:$0xff] %v10293_v21  ;;  %16097 = vst [vmem:[#allocation60_spill] sm:$0xff] %v10299_v40  ;;  %v801_v32 = vadd.f32 %v800_v15, %v644_v52  ;;  %v10307_v33 = vsub.f32 %v8253_v29, %v16074_v14  ;;  %v10313_v38 = vsub.f32 %v8254_v28, %v16074_v14  ;;  %v16100_v15 = vld [vmem:[#allocation92_spill] sm:$0xff] }
 0x187   :  { %v752_v16 = vadd.f32 %v751_v48, %v597_v27  ;;  %v10319_v27 = vsub.f32 %v16100_v15, %v9622_v57  ;;  %v646_v52 = vmul.f32 %v10285_v26, %v10285_v26  ;;  %v600_v13 = vmul.f32 %v10293_v21, %v10293_v21  ;;  %16103 = vst [vmem:[#allocation62_spill] sm:$0xff] %v10327_v50 }
 0x188   :  { %16098 = vst [vmem:[#allocation73_spill] sm:$0xff] %v10307_v33  ;;  %16099 = vst [vmem:[#allocation61_spill] sm:$0xff] %v10313_v38  ;;  %v802_v48 = vadd.f32 %v801_v32, %v645_v4  ;;  %v647_v14 = vmul.f32 %v10299_v40, %v10299_v40  ;;  %v601_v15 = vmul.f32 %v10307_v33, %v10307_v33  ;;  %v8255_v32 = vld [vmem:[%s15554_s0 + $0x318] sm:$0xff]  ;;  %v8272_v21 = vmov 0   ;;  %v16119_v40 = vld [vmem:[#allocation96_spill] sm:$0xff] }
 0x189   :  { %16101 = vst [vmem:[#allocation75_spill] sm:$0xff] %v10319_v27  ;;  %v753_v29 = vadd.f32 %v752_v16, %v598_v7  ;;  %v602_v26 = vmul.f32 %v10313_v38, %v10313_v38  ;;  %v10339_v7 = vsub.f32 %v8255_v32, %v9622_v57  ;;  %v648_v61 = vmul.f32 %v10319_v27, %v10319_v27  ;;  %v8257_v38 = vld [vmem:[%s15554_s0 + $0x328] sm:$0xff] }
 0x18a   :  { %v803_v28 = vadd.f32 %v802_v48, %v646_v52  ;;  %v649_v48 = vmul.f32 %v10327_v50, %v10327_v50  ;;  %7614 = vset.pattern.permute.xlu0 %v8272_v21  ;;  %7615 = vset.pattern.permute.xlu1 %v8272_v21  ;;  %v1447_v21 = vld [vmem:[%s15556_s2 + $0x28] sm:$0x7f] }
 0x18b   :  { %v754_v17 = vadd.f32 %v753_v29, %v599_v12  ;;  %16104 = vst [vmem:[#allocation77_spill] sm:$0xff] %v10339_v7  ;;  %v8256_v12 = vld [vmem:[%s15554_s0 + $0x320] sm:$0xff]  ;;  %v757_v32 = vsel %vm226_vm1, %v602_v26, 0.0  ;;  %v8259_v26 = vld [vmem:[%s15554_s0 + $0x330] sm:$0xff]  ;;  %v16121_v27 = vld [vmem:[#allocation95_spill] sm:$0xff] }
 0x18c   :  { %v804_v4 = vadd.f32 %v803_v28, %v647_v14  ;;  %v10347_v52 = vsub.f32 %v8256_v12, %v9622_v57  ;;  %v8258_v12 = vld [vmem:[%s15554_s0 + $0x338] sm:$0xff] }
 0x18d   :  { %v755_v16 = vadd.f32 %v754_v17, %v600_v13  ;;  %v10356_v13 = vsub.f32 %v8257_v38, %v9622_v57  ;;  %v650_v17 = vmul.f32 %v10339_v7, %v10339_v7  ;;  %v16120_v7 = vld [vmem:[#allocation98_spill] sm:$0xff] }
 0x18e   :  { %16105 = vst [vmem:[#allocation64_spill] sm:$0xff] %v10347_v52  ;;  %v805_v29 = vadd.f32 %v804_v4, %v648_v61  ;;  %v10370_v61 = vsub.f32 %v8259_v26, %v9622_v57  ;;  %v651_v38 = vmul.f32 %v10347_v52, %v10347_v52 }
 0x18f   :  { %v756_v33 = vadd.f32 %v755_v16, %v601_v15  ;;  %16106 = vst [vmem:[#allocation79_spill] sm:$0xff] %v10356_v13  ;;  %v10364_v15 = vsub.f32 %v8258_v12, %v9622_v57 }
 0x190   :  { %v806_v14 = vadd.f32 %v805_v29, %v649_v48  ;;  %16108 = vst [vmem:[#allocation81_spill] sm:$0xff] %v10370_v61  ;;  %v653_v29 = vmul.f32 %v10370_v61, %v10370_v61 }
 0x191   :  { %v758_v28 = vadd.f32 %v757_v32, %v756_v33  ;;  %16107 = vst [vmem:[#allocation66_spill] sm:$0xff] %v10364_v15  ;;  %v652_v33 = vmul.f32 %v10356_v13, %v10356_v13  ;;  %v654_v48 = vmul.f32 %v10364_v15, %v10364_v15 }
 0x192   :  { %v807_v4 = vadd.f32 %v806_v14, %v650_v17 }
 0x193   :  { %759 = vadd.xlane.f32.xlu1 %v758_v28  ;;  %v811_v57 = vsel %vm226_vm1, %v654_v48, 0.0 }
 0x194   :  { %v808_v16 = vadd.f32 %v807_v4, %v651_v38  ;;  %v925_v38 = vld [vmem:[%s15555_s3 + $0x10] sm:$0x7] }
 0x196   :  { %v809_v32 = vadd.f32 %v808_v16, %v652_v33  ;;  %v1445_v33 = vld [vmem:[%s15556_s2 + $0x18] sm:$0xff] }
 0x198   :  { %v810_v12 = vadd.f32 %v809_v32, %v653_v29 }
 0x19a   :  { %v812_v26 = vadd.f32 %v811_v57, %v810_v12 }
 0x19c   :  { %813 = vadd.xlane.f32.xlu0 %v812_v26 }
 0x209   :  { %v919_v17 = vpop.xlane.xlu1 %918 }
 0x20a   :  { %v922_v14 = vmul.f32 0.0001525553, %v919_v17 }
 0x20c   :  { %v928_v28 = vadd.f32 1e-05, %v922_v14  ;;  %v1108_v14 = vld [vmem:[%s15557_s4 + $0x10] sm:$0x7] }
 0x20e   :  { %7616 = vrsqrt.f32 %v928_v28 }
 0x21b   :  { %v7617_v4 = vpop.eup %7616 }
 0x21c   :  { %v934_v52 = vmul.f32 %v7617_v4, %v925_v38  ;;  %v760_v48 = vpop.xlane.xlu1 %759  ;;  %v923_v38 = vld [vmem:[%s15555_s3] sm:$0xff] }
 0x21d   :  { %v920_v12 = vmul.f32 0.0001525553, %v760_v48  ;;  %v15761_v48 = vmov 0.0  }
 0x21e   :  { %947 = vperm.xlu0 %7614, %v934_v52   ;;  %v924_v52 = vld [vmem:[%s15555_s3 + $0x8] sm:$0xff]  ;;  %1717 = vmatprep.mubr.f32.mxu0 %v15761_v48 }
 0x21f   :  { %v926_v57 = vadd.f32 1e-05, %v920_v12  ;;  %1818 = vmatprep.mubr.f32.mxu1 %v15761_v48  ;;  %v1446_v12 = vld [vmem:[%s15556_s2 + $0x20] sm:$0xff] }
 0x222   :  { %1465 = vperm.xlu0 %7614, %v1445_v33   ;;  %v1107_v33 = vld [vmem:[%s15557_s4 + $0x8] sm:$0xff] }
 0x225   :  { %v814_v16 = vpop.xlane.xlu0 %813 }
 0x226   :  { %1475 = vperm.xlu0 %7614, %v1447_v21   ;;  %v921_v29 = vmul.f32 0.0001525553, %v814_v16  ;;  %v1106_v21 = vld [vmem:[%s15557_s4] sm:$0xff] }
 0x227   :  { %v1442_v16 = vld [vmem:[%s15556_s2] sm:$0xff] }
 0x228   :  { %v927_v32 = vadd.f32 1e-05, %v921_v29  ;;  %v1443_v29 = vld [vmem:[%s15556_s2 + $0x8] sm:$0xff] }
 0x22a   :  { %7618 = vrsqrt.f32 %v927_v32  ;;  %v1444_v32 = vld [vmem:[%s15556_s2 + $0x10] sm:$0xff] }
 0x22b   :  { %7620 = vrsqrt.f32 %v926_v57 }
 0x237   :  { %v7619_v26 = vpop.eup %7618 }
 0x238   :  { %v933_v17 = vmul.f32 %v7619_v26, %v924_v52  ;;  %v7621_v28 = vpop.eup %7620  ;;  %v16109_v26 = vld [vmem:[#allocation112_spill] sm:$0xff] }
 0x239   :  { %v932_v4 = vmul.f32 %v7621_v28, %v923_v38  ;;  %v16111_v38 = vld [vmem:[#allocation111_spill] sm:$0xff] }
 0x23a   :  { %942 = vperm.xlu1 %7615, %v933_v17  }
 0x23e   :  { %1121 = vperm.xlu1 %7615, %v1108_v14   ;;  %v16110_v14 = vld [vmem:[#allocation126_spill] sm:$0xff] }
 0x242   :  { %937 = vperm.xlu1 %7615, %v932_v4  }
 0x246   :  { %1116 = vperm.xlu1 %7615, %v1107_v33   ;;  %v16112_v33 = vld [vmem:[#allocation120_spill] sm:$0xff] }
 0x24a   :  { %1111 = vperm.xlu1 %7615, %v1106_v21  }
 0x24e   :  { %1450 = vperm.xlu1 %7615, %v1442_v16  }
 0x252   :  { %1455 = vperm.xlu1 %7615, %v1443_v29  }
 0x256   :  { %1460 = vperm.xlu1 %7615, %v1444_v32  }
 0x25a   :  { %1470 = vperm.xlu1 %7615, %v1446_v12  }
 0x299   :  { %v10419_v57 = vpop.permute.xlu0 %947 }
 0x29a   :  { %v1055_v17 = vmul.f32 %v10419_v57, %v16109_v26  ;;  %v1057_v28 = vmul.f32 %v10419_v57, %v16110_v14  ;;  %v1054_v4 = vmul.f32 %v10419_v57, %v16111_v38  ;;  %v1056_v21 = vmul.f32 %v10419_v57, %v16112_v33 }
 0x2b5   :  { %v10421_v52 = vpop.permute.xlu1 %942 }
 0x2b6   :  { %v1005_v38 = vmul.f32 %v10421_v52, %v9723_v22 }
 0x2b9   :  { %v10431_v16 = vpop.permute.xlu1 %1121 }
 0x2ba   :  { %v1229_v29 = vadd.f32 %v10431_v16, %v1055_v17  ;;  %v1231_v32 = vadd.f32 %v10431_v16, %v1057_v28  ;;  %v1228_v12 = vadd.f32 %v10431_v16, %v1054_v4  ;;  %v1230_v48 = vadd.f32 %v10431_v16, %v1056_v21  ;;  %v16113_v17 = vld [vmem:[#allocation8_spill] sm:$0xff]  ;;  %v16114_v4 = vld [vmem:[#allocation7_spill] sm:$0xff] }
 0x2bb   :  { %v1003_v28 = vmul.f32 %v10421_v52, %v16113_v17  ;;  %v1002_v33 = vmul.f32 %v10421_v52, %v16114_v4 }
 0x2bc   :  { %v1385_v26 = vmax.f32 %v1229_v29, 0.0  ;;  %v1387_v61 = vmax.f32 %v1231_v32, 0.0  ;;  %v1384_v15 = vmax.f32 %v1228_v12, 0.0  ;;  %v1386_v14 = vmax.f32 %v1230_v48, 0.0  ;;  %v16115_v29 = vld [vmem:[#allocation138_spill] sm:$0xff]  ;;  %v16117_v12 = vld [vmem:[#allocation133_spill] sm:$0xff] }
 0x2bd   :  { %v10437_v13 = vpop.permute.xlu1 %937  ;;  %v1004_v48 = vmul.f32 %v10421_v52, %v9699_v41 }
 0x2be   :  { %7404 = vmatprep.subr.msk.mxu0 %vm285_vm0, %v1385_v26  ;;  %7412 = vmatprep.subr.msk.mxu1 %vm285_vm0, %v1387_v61  ;;  %v1059_v61 = vmul.f32 %v10419_v57, %v16115_v29  ;;  %v1058_v26 = vmul.f32 %v10419_v57, %v16117_v12  ;;  %v951_v29 = vmul.f32 %v10437_v13, %v16119_v40 }
 0x2bf   :  { %7405 = vmatpush1.msk.msra.mxu0 %vm285_vm0, %v1384_v15  ;;  %7413 = vmatpush1.msk.msra.mxu1 %vm285_vm0, %v1386_v14  ;;  %v16116_v15 = vld [vmem:[#allocation3_spill] sm:$0xff]  ;;  %v16118_v14 = vld [vmem:[#allocation2_spill] sm:$0xff]  ;;  %v950_v12 = vmul.f32 %v10437_v13, %v16121_v27  ;;  %v1006_v27 = vmul.f32 %v10421_v52, %v9738_v39 }
 0x2c0   :  { %v1061_v32 = vmul.f32 %v10419_v57, %v16116_v15  ;;  %v1060_v22 = vmul.f32 %v10419_v57, %v16118_v14  ;;  %v953_v15 = vmul.f32 %v10437_v13, %v16120_v7  ;;  %v1007_v14 = vmul.f32 %v10421_v52, %v9752_v62 }
 0x2c1   :  { %v10451_v21 = vpop.permute.xlu1 %1116  ;;  %v1233_v40 = vadd.f32 %v10431_v16, %v1059_v61  ;;  %v1009_v7 = vmul.f32 %v10421_v52, %v9780_v43  ;;  %v1232_v43 = vadd.f32 %v10431_v16, %v1058_v26 }
 0x2c2   :  { %v1177_v17 = vadd.f32 %v10451_v21, %v1003_v28  ;;  %v1179_v4 = vadd.f32 %v10451_v21, %v1005_v38  ;;  %v1176_v41 = vadd.f32 %v10451_v21, %v1002_v33  ;;  %v1178_v50 = vadd.f32 %v10451_v21, %v1004_v48  ;;  %v16122_v33 = vld [vmem:[#allocation97_spill] sm:$0xff] }
 0x2c3   :  { %v952_v48 = vmul.f32 %v10437_v13, %v16122_v33  ;;  %v1235_v61 = vadd.f32 %v10431_v16, %v1061_v32  ;;  %v1008_v32 = vmul.f32 %v10421_v52, %v9766_v35  ;;  %v1389_v26 = vmax.f32 %v1233_v40, 0.0  ;;  %v16126_v35 = vld [vmem:[#allocation102_spill] sm:$0xff] }
 0x2c4   :  { %v1333_v47 = vmax.f32 %v1177_v17, 0.0  ;;  %v1335_v28 = vmax.f32 %v1179_v4, 0.0  ;;  %v1332_v51 = vmax.f32 %v1176_v41, 0.0  ;;  %v1334_v38 = vmax.f32 %v1178_v50, 0.0 }
 0x2c5   :  { %v10473_v3 = vpop.permute.xlu1 %1111  ;;  %v1388_v40 = vmax.f32 %v1232_v43, 0.0 }
 0x2c6   :  { %1681 = vmatprep.subr.mxu0 %v1333_v47  ;;  %1782 = vmatprep.subr.mxu1 %v1335_v28  ;;  %v1125_v62 = vadd.f32 %v10473_v3, %v951_v29  ;;  %v1127_v17 = vadd.f32 %v10473_v3, %v953_v15  ;;  %v1124_v50 = vadd.f32 %v10473_v3, %v950_v12  ;;  %v10492_v29 = vld [vmem:[%s15558_s1] sm:$0xff]  ;;  %v16123_v12 = vld [vmem:[#allocation100_spill] sm:$0xff] }
 0x2c7   :  { %1682 = vmatpush1.msra.mxu0 %v1332_v51  ;;  %1783 = vmatpush1.msra.mxu1 %v1334_v38  ;;  %v1126_v4 = vadd.f32 %v10473_v3, %v952_v48  ;;  %v1234_v47 = vadd.f32 %v10431_v16, %v1060_v22  ;;  %v1181_v51 = vadd.f32 %v10451_v21, %v1007_v14  ;;  %v16124_v22 = vld [vmem:[#allocation5_spill] sm:$0xff]  ;;  %v1391_v14 = vmax.f32 %v1235_v61, 0.0 }
 0x2c8   :  { %v1281_v41 = vmax.f32 %v1125_v62, 0.0  ;;  %v1283_v33 = vmax.f32 %v1127_v17, 0.0  ;;  %v1280_v39 = vmax.f32 %v1124_v50, 0.0  ;;  %v1183_v15 = vadd.f32 %v10451_v21, %v1009_v7  ;;  %v16125_v62 = vld [vmem:[#allocation9_spill] sm:$0xff] }
 0x2c9   :  { %v1282_v28 = vmax.f32 %v1126_v4, 0.0  ;;  %v955_v38 = vmul.f32 %v10437_v13, %v16123_v12  ;;  %v1063_v48 = vmul.f32 %v10419_v57, %v16124_v22  ;;  %v1065_v17 = vmul.f32 %v10419_v57, %v16125_v62 }
 0x2ca   :  { %1683 = vmatprep.subr.mxu0 %v1281_v41  ;;  %1784 = vmatprep.subr.mxu1 %v1283_v33  ;;  %v1180_v7 = vadd.f32 %v10451_v21, %v1006_v27  ;;  %v1182_v50 = vadd.f32 %v10451_v21, %v1008_v32  ;;  %v957_v4 = vmul.f32 %v10437_v13, %v16126_v35  ;;  %v1390_v41 = vmax.f32 %v1234_v47, 0.0  ;;  %v16127_v33 = vld [vmem:[#allocation99_spill] sm:$0xff] }
 0x2cb   :  { %1684 = vmatpush1.msra.mxu0 %v1280_v39  ;;  %1785 = vmatpush1.msra.mxu1 %v1282_v28  ;;  %v954_v39 = vmul.f32 %v10437_v13, %v16127_v33  ;;  %v16128_v28 = vld [vmem:[#allocation101_spill] sm:$0xff]  ;;  %v1337_v27 = vmax.f32 %v1181_v51, 0.0  ;;  %v1339_v32 = vmax.f32 %v1183_v15, 0.0  ;;  %v1129_v12 = vadd.f32 %v10473_v3, %v955_v38  ;;  %v10527_v51 = vld [vmem:[%s15558_s1 + $0x8] sm:$0xff]  ;;  %v10566_v33 = vld [vmem:[%s15558_s1 + $0x20] sm:$0xff] }
 0x2cc   :  { %7406 = vmatmul.mubr.msk.f32.vlgmr.msra.gmra.mxu0 %vm1478_vm3, %v10492_v29  ;;  %7414 = vmatmul.mubr.msk.f32.vlgmr.msra.gmra.mxu1 %vm1478_vm3, %v10492_v29  ;;  %v956_v61 = vmul.f32 %v10437_v13, %v16128_v28  ;;  %v1131_v22 = vadd.f32 %v10473_v3, %v957_v4  ;;  %v1336_v62 = vmax.f32 %v1180_v7, 0.0  ;;  %v1237_v15 = vadd.f32 %v10431_v16, %v1063_v48 }
 0x2cd   :  { %7420 = vmatprep.subr.msk.mxu0 %vm285_vm0, %v1389_v26  ;;  %7428 = vmatprep.subr.msk.mxu1 %vm285_vm0, %v1391_v14  ;;  %v1128_v43 = vadd.f32 %v10473_v3, %v954_v39  ;;  %v1338_v26 = vmax.f32 %v1182_v50, 0.0  ;;  %v1239_v38 = vadd.f32 %v10431_v16, %v1065_v17  ;;  %v16129_v14 = vmov 0.0   ;;  %v16130_v39 = vld [vmem:[#allocation4_spill] sm:$0xff] }
 0x2ce   :  { %7421 = vmatpush1.msk.msra.mxu0 %vm285_vm0, %v1388_v40  ;;  %7429 = vmatpush1.msk.msra.mxu1 %vm285_vm0, %v1390_v41  ;;  %v1130_v47 = vadd.f32 %v10473_v3, %v956_v61  ;;  %v1285_v35 = vmax.f32 %v1129_v12, 0.0  ;;  %v1287_v4 = vmax.f32 %v1131_v22, 0.0  ;;  %v1393_v48 = vmax.f32 %v1237_v15, 0.0  ;;  %v10540_v40 = vld [vmem:[%s15558_s1 + $0x10] sm:$0xff]  ;;  %v10555_v41 = vld [vmem:[%s15558_s1 + $0x18] sm:$0xff]  ;;  %v16131_v61 = vld [vmem:[#allocation6_spill] sm:$0xff] }
 0x2cf   :  { %1883 = vmatprep.subr.mxu0 %v1337_v27  ;;  %1984 = vmatprep.subr.mxu1 %v1339_v32  ;;  %v1284_v7 = vmax.f32 %v1128_v43, 0.0  ;;  %v1395_v17 = vmax.f32 %v1239_v38, 0.0  ;;  %v1062_v28 = vmul.f32 %v10419_v57, %v16130_v39  ;;  %v1064_v27 = vmul.f32 %v10419_v57, %v16131_v61  ;;  %v10581_v32 = vld [vmem:[%s15558_s1 + $0x28] sm:$0x7f]  ;;  %v16135_v61 = vld [vmem:[#allocation105_spill] sm:$0xff] }
 0x2d0   :  { %1723 = vmatprep.mubr.f32.mxu0 %v16129_v14  ;;  %1824 = vmatprep.mubr.f32.mxu1 %v16129_v14  ;;  %v1286_v50 = vmax.f32 %v1130_v47, 0.0  ;;  %v1011_v43 = vmul.f32 %v10421_v52, %v9808_v49  ;;  %v1013_v47 = vmul.f32 %v10421_v52, %v9836_v63  ;;  %v16132_v49 = vld [vmem:[#allocation104_spill] sm:$0xff]  ;;  %v16133_v63 = vld [vmem:[#allocation106_spill] sm:$0xff]  ;;  %v16134_v39 = vld [vmem:[#allocation103_spill] sm:$0xff] }
 0x2d1   :  { %1884 = vmatpush1.msra.mxu0 %v1336_v62  ;;  %1985 = vmatpush1.msra.mxu1 %v1338_v26  ;;  %v1236_v12 = vadd.f32 %v10431_v16, %v1062_v28  ;;  %v1238_v22 = vadd.f32 %v10431_v16, %v1064_v27  ;;  %v1010_v62 = vmul.f32 %v10421_v52, %v9794_v23 }
 0x2d2   :  { %7407 = vmatmul.mubr.msk.f32.gmra.mxu0 %vm1478_vm3, %v10527_v51  ;;  %7415 = vmatmul.mubr.msk.f32.gmra.mxu1 %vm1478_vm3, %v10527_v51  ;;  %v1012_v26 = vmul.f32 %v10421_v52, %v9822_v54  ;;  %v1185_v15 = vadd.f32 %v10451_v21, %v1011_v43  ;;  %v1187_v38 = vadd.f32 %v10451_v21, %v1013_v47 }
 0x2d3   :  { %1885 = vmatprep.subr.mxu0 %v1285_v35  ;;  %1986 = vmatprep.subr.mxu1 %v1287_v4  ;;  %v959_v35 = vmul.f32 %v10437_v13, %v16132_v49  ;;  %v1184_v23 = vadd.f32 %v10451_v21, %v1010_v62  ;;  %v961_v4 = vmul.f32 %v10437_v13, %v16133_v63  ;;  %v16137_v62 = vld [vmem:[#allocation17_spill] sm:$0xff] }
 0x2d4   :  { %1886 = vmatpush1.msra.mxu0 %v1284_v7  ;;  %1987 = vmatpush1.msra.mxu1 %v1286_v50  ;;  %v1186_v54 = vadd.f32 %v10451_v21, %v1012_v26  ;;  %v1392_v7 = vmax.f32 %v1236_v12, 0.0  ;;  %v1394_v50 = vmax.f32 %v1238_v22, 0.0  ;;  %v958_v28 = vmul.f32 %v10437_v13, %v16134_v39  ;;  %v16136_v12 = vld [vmem:[#allocation13_spill] sm:$0xff] }
 0x2d5   :  { %7436 = vmatprep.subr.msk.mxu0 %vm285_vm0, %v1393_v48  ;;  %7444 = vmatprep.subr.msk.mxu1 %vm285_vm0, %v1395_v17  ;;  %v1133_v48 = vadd.f32 %v10473_v3, %v959_v35  ;;  %v1135_v17 = vadd.f32 %v10473_v3, %v961_v4  ;;  %v960_v27 = vmul.f32 %v10437_v13, %v16135_v61  ;;  %v1341_v43 = vmax.f32 %v1185_v15, 0.0 }
 0x2d6   :  { %1729 = vmatprep.mubr.f32.mxu0 %v16129_v14  ;;  %1830 = vmatprep.mubr.f32.mxu1 %v16129_v14  ;;  %v1343_v47 = vmax.f32 %v1187_v38, 0.0  ;;  %v1067_v22 = vmul.f32 %v10419_v57, %v16136_v12  ;;  %v1069_v26 = vmul.f32 %v10419_v57, %v16137_v62  ;;  %v1340_v49 = vmax.f32 %v1184_v23, 0.0 }
 0x2d7   :  { %7408 = vmatmul.mubr.msk.f32.gmra.mxu0 %vm1478_vm3, %v10540_v40  ;;  %7416 = vmatmul.mubr.msk.f32.gmra.mxu1 %vm1478_vm3, %v10540_v40  ;;  %v1342_v35 = vmax.f32 %v1186_v54, 0.0  ;;  %v1132_v63 = vadd.f32 %v10473_v3, %v958_v28  ;;  %v1134_v4 = vadd.f32 %v10473_v3, %v960_v27  ;;  %v1289_v39 = vmax.f32 %v1133_v48, 0.0  ;;  %v16138_v48 = vld [vmem:[#allocation11_spill] sm:$0xff] }
 0x2d8   :  { %1735 = vmatprep.mubr.f32.mxu0 %v16129_v14  ;;  %1836 = vmatprep.mubr.f32.mxu1 %v16129_v14  ;;  %v1241_v15 = vadd.f32 %v10431_v16, %v1067_v22  ;;  %v1243_v38 = vadd.f32 %v10431_v16, %v1069_v26  ;;  %v1291_v61 = vmax.f32 %v1135_v17, 0.0  ;;  %v1066_v17 = vmul.f32 %v10419_v57, %v16138_v48  ;;  %v16139_v28 = vld [vmem:[#allocation15_spill] sm:$0xff] }
 0x2d9   :  { %v1288_v23 = vmax.f32 %v1132_v63, 0.0  ;;  %v1290_v54 = vmax.f32 %v1134_v4, 0.0  ;;  %v1068_v27 = vmul.f32 %v10419_v57, %v16139_v28  ;;  %v1017_v22 = vmul.f32 %v10421_v52, %v9892_v36  ;;  %v16140_v36 = vld [vmem:[#allocation108_spill] sm:$0xff]  ;;  %v16141_v63 = vld [vmem:[#allocation110_spill] sm:$0xff]  ;;  %v16144_v28 = vld [vmem:[#allocation21_spill] sm:$0xff] }
 0x2da   :  { %v1014_v62 = vmul.f32 %v10421_v52, %v9850_v56  ;;  %v1016_v26 = vmul.f32 %v10421_v52, %v9878_v20  ;;  %v963_v20 = vmul.f32 %v10437_v13, %v16140_v36  ;;  %v965_v4 = vmul.f32 %v10437_v13, %v16141_v63 }
 0x2db   :  { %7409 = vmatmul.mubr.msk.f32.gmra.mxu0 %vm1478_vm3, %v10555_v41  ;;  %7417 = vmatmul.mubr.msk.f32.gmra.mxu1 %vm1478_vm3, %v10555_v41  ;;  %v1242_v12 = vadd.f32 %v10431_v16, %v1068_v27  ;;  %v1071_v27 = vmul.f32 %v10419_v57, %v16144_v28 }
 0x2dc   :  { %1741 = vmatprep.mubr.f32.mxu0 %v16129_v14  ;;  %1842 = vmatprep.mubr.f32.mxu1 %v16129_v14  ;;  %v1190_v56 = vadd.f32 %v10451_v21, %v1016_v26 }
 0x2df   :  { %7410 = vmatmul.mubr.msk.f32.gmra.mxu0 %vm1478_vm3, %v10566_v33  ;;  %7418 = vmatmul.mubr.msk.f32.gmra.mxu1 %vm1478_vm3, %v10566_v33 }
 0x2e0   :  { %1747 = vmatprep.mubr.f32.mxu0 %v16129_v14  ;;  %1848 = vmatprep.mubr.f32.mxu1 %v16129_v14 }
 0x2e3   :  { %7411 = vmatmul.mubr.msk.f32.gmra.mxu0 %vm1478_vm3, %v10581_v32  ;;  %7419 = vmatmul.mubr.msk.f32.gmra.mxu1 %vm1478_vm3, %v10581_v32 }
 0x2e4   :  { %1919 = vmatprep.mubr.f32.mxu0 %v16129_v14  ;;  %2020 = vmatprep.mubr.f32.mxu1 %v16129_v14 }
 0x2e7   :  { %7422 = vmatmul.mubr.msk.f32.vlgmr.msra.gmra.mxu0 %vm1478_vm3, %v10492_v29  ;;  %7430 = vmatmul.mubr.msk.f32.vlgmr.msra.gmra.mxu1 %vm1478_vm3, %v10492_v29 }
 0x2e8   :  { %7437 = vmatpush1.msk.msra.mxu0 %vm285_vm0, %v1392_v7  ;;  %7445 = vmatpush1.msk.msra.mxu1 %vm285_vm0, %v1394_v50  ;;  %v1397_v7 = vmax.f32 %v1241_v15, 0.0  ;;  %v1399_v50 = vmax.f32 %v1243_v38, 0.0  ;;  %v1398_v38 = vmax.f32 %v1242_v12, 0.0 }
 0x2e9   :  { %2085 = vmatprep.subr.mxu0 %v1341_v43  ;;  %2186 = vmatprep.subr.mxu1 %v1343_v47  ;;  %v1015_v43 = vmul.f32 %v10421_v52, %v9864_v37  ;;  %v1240_v47 = vadd.f32 %v10431_v16, %v1066_v17 }
 0x2ea   :  { %2086 = vmatpush1.msra.mxu0 %v1340_v49  ;;  %2187 = vmatpush1.msra.mxu1 %v1342_v35  ;;  %v1191_v49 = vadd.f32 %v10451_v21, %v1017_v22  ;;  %v1188_v35 = vadd.f32 %v10451_v21, %v1014_v62  ;;  %v1346_v22 = vmax.f32 %v1190_v56, 0.0 }
 0x2eb   :  { %1925 = vmatprep.mubr.f32.mxu0 %v16129_v14  ;;  %2026 = vmatprep.mubr.f32.mxu1 %v16129_v14  ;;  %v1189_v37 = vadd.f32 %v10451_v21, %v1015_v43  ;;  %v1396_v15 = vmax.f32 %v1240_v47, 0.0  ;;  %v16145_v43 = vld [vmem:[#allocation10_spill] sm:$0xff] }
 0x2ec   :  { %2087 = vmatprep.subr.mxu0 %v1289_v39  ;;  %2188 = vmatprep.subr.mxu1 %v1291_v61  ;;  %v1137_v39 = vadd.f32 %v10473_v3, %v963_v20  ;;  %v1139_v61 = vadd.f32 %v10473_v3, %v965_v4  ;;  %v1347_v17 = vmax.f32 %v1191_v49, 0.0  ;;  %v1073_v47 = vmul.f32 %v10419_v57, %v16145_v43 }
 0x2ed   :  { %7423 = vmatmul.mubr.msk.f32.gmra.mxu0 %vm1478_vm3, %v10527_v51  ;;  %7431 = vmatmul.mubr.msk.f32.gmra.mxu1 %vm1478_vm3, %v10527_v51  ;;  %v1345_v48 = vmax.f32 %v1189_v37, 0.0  ;;  %v1344_v12 = vmax.f32 %v1188_v35, 0.0  ;;  %v1245_v37 = vadd.f32 %v10431_v16, %v1071_v27 }
 0x2ee   :  { %2088 = vmatpush1.msra.mxu0 %v1288_v23  ;;  %2189 = vmatpush1.msra.mxu1 %v1290_v54  ;;  %v16142_v23 = vld [vmem:[#allocation107_spill] sm:$0xff]  ;;  %v1247_v49 = vadd.f32 %v10431_v16, %v1073_v47  ;;  %v1293_v36 = vmax.f32 %v1137_v39, 0.0  ;;  %v1295_v20 = vmax.f32 %v1139_v61, 0.0 }
 0x2ef   :  { %7452 = vmatprep.subr.msk.mxu0 %vm285_vm0, %v1397_v7  ;;  %7460 = vmatprep.subr.msk.mxu1 %vm285_vm0, %v1399_v50  ;;  %v962_v54 = vmul.f32 %v10437_v13, %v16142_v23  ;;  %v16143_v7 = vld [vmem:[#allocation109_spill] sm:$0xff]  ;;  %v1401_v63 = vmax.f32 %v1245_v37, 0.0  ;;  %v16147_v39 = vld [vmem:[#allocation23_spill] sm:$0xff] }
 0x2f0   :  { %1931 = vmatprep.mubr.f32.mxu0 %v16129_v14  ;;  %2032 = vmatprep.mubr.f32.mxu1 %v16129_v14  ;;  %v964_v50 = vmul.f32 %v10437_v13, %v16143_v7  ;;  %v1403_v4 = vmax.f32 %v1247_v49, 0.0  ;;  %v1072_v61 = vmul.f32 %v10419_v57, %v16147_v39  ;;  %v1019_v7 = vmul.f32 %v10421_v52, %v9920_v60  ;;  %v16148_v60 = vld [vmem:[#allocation114_spill] sm:$0xff]  ;;  %v16150_v37 = vld [vmem:[#allocation113_spill] sm:$0xff] }
 0x2f1   :  { %7424 = vmatmul.mubr.msk.f32.gmra.mxu0 %vm1478_vm3, %v10540_v40  ;;  %7432 = vmatmul.mubr.msk.f32.gmra.mxu1 %vm1478_vm3, %v10540_v40  ;;  %v1136_v62 = vadd.f32 %v10473_v3, %v962_v54  ;;  %v967_v43 = vmul.f32 %v10437_v13, %v16148_v60  ;;  %v966_v49 = vmul.f32 %v10437_v13, %v16150_v37 }
 0x2f2   :  { %1937 = vmatprep.mubr.f32.mxu0 %v16129_v14  ;;  %2038 = vmatprep.mubr.f32.mxu1 %v16129_v14  ;;  %v1138_v26 = vadd.f32 %v10473_v3, %v964_v50  ;;  %v1246_v54 = vadd.f32 %v10431_v16, %v1072_v61  ;;  %v1021_v50 = vmul.f32 %v10421_v52, %v9948_v8  ;;  %v16149_v8 = vld [vmem:[#allocation116_spill] sm:$0xff] }
 0x2f3   :  { %v1292_v35 = vmax.f32 %v1136_v62, 0.0  ;;  %v1193_v28 = vadd.f32 %v10451_v21, %v1019_v7  ;;  %v969_v47 = vmul.f32 %v10437_v13, %v16149_v8  ;;  %v1141_v62 = vadd.f32 %v10473_v3, %v967_v43  ;;  %v16155_v8 = vld [vmem:[#allocation27_spill] sm:$0xff] }
 0x2f4   :  { %v1294_v56 = vmax.f32 %v1138_v26, 0.0  ;;  %v1195_v27 = vadd.f32 %v10451_v21, %v1021_v50  ;;  %v1022_v37 = vmul.f32 %v10421_v52, %v9962_v18 }
 0x2f5   :  { %7425 = vmatmul.mubr.msk.f32.gmra.mxu0 %vm1478_vm3, %v10555_v41  ;;  %7433 = vmatmul.mubr.msk.f32.gmra.mxu1 %vm1478_vm3, %v10555_v41  ;;  %v1143_v26 = vadd.f32 %v10473_v3, %v969_v47  ;;  %v1076_v47 = vmul.f32 %v10419_v57, %v16155_v8 }
 0x2f6   :  { %1943 = vmatprep.mubr.f32.mxu0 %v16129_v14  ;;  %2044 = vmatprep.mubr.f32.mxu1 %v16129_v14 }
 0x2f9   :  { %7426 = vmatmul.mubr.msk.f32.gmra.mxu0 %vm1478_vm3, %v10566_v33  ;;  %7434 = vmatmul.mubr.msk.f32.gmra.mxu1 %vm1478_vm3, %v10566_v33 }
 0x2fa   :  { %1949 = vmatprep.mubr.f32.mxu0 %v16129_v14  ;;  %2050 = vmatprep.mubr.f32.mxu1 %v16129_v14 }
 0x2fd   :  { %7427 = vmatmul.mubr.msk.f32.gmra.mxu0 %vm1478_vm3, %v10581_v32  ;;  %7435 = vmatmul.mubr.msk.f32.gmra.mxu1 %vm1478_vm3, %v10581_v32 }
 0x2fe   :  { %2121 = vmatprep.mubr.f32.mxu0 %v16129_v14  ;;  %2222 = vmatprep.mubr.f32.mxu1 %v16129_v14 }
 0x301   :  { %7438 = vmatmul.mubr.msk.f32.vlgmr.msra.gmra.mxu0 %vm1478_vm3, %v10492_v29  ;;  %7446 = vmatmul.mubr.msk.f32.vlgmr.msra.gmra.mxu1 %vm1478_vm3, %v10492_v29 }
 0x302   :  { %7453 = vmatpush1.msk.msra.mxu0 %vm285_vm0, %v1396_v15  ;;  %7461 = vmatpush1.msk.msra.mxu1 %vm285_vm0, %v1398_v38  ;;  %v16146_v15 = vld [vmem:[#allocation19_spill] sm:$0xff] }
 0x303   :  { %2287 = vmatprep.subr.mxu0 %v1345_v48  ;;  %2388 = vmatprep.subr.mxu1 %v1347_v17  ;;  %v1070_v38 = vmul.f32 %v10419_v57, %v16146_v15  ;;  %v1018_v48 = vmul.f32 %v10421_v52, %v9906_v42  ;;  %v1020_v17 = vmul.f32 %v10421_v52, %v9934_v19  ;;  %v16153_v15 = vld [vmem:[#allocation14_spill] sm:$0xff] }
 0x304   :  { %2288 = vmatpush1.msra.mxu0 %v1344_v12  ;;  %2389 = vmatpush1.msra.mxu1 %v1346_v22  ;;  %v1402_v22 = vmax.f32 %v1246_v54, 0.0 }
 0x305   :  { %2127 = vmatprep.mubr.f32.mxu0 %v16129_v14  ;;  %2228 = vmatprep.mubr.f32.mxu1 %v16129_v14  ;;  %v1244_v23 = vadd.f32 %v10431_v16, %v1070_v38  ;;  %v1192_v42 = vadd.f32 %v10451_v21, %v1018_v48  ;;  %v1194_v19 = vadd.f32 %v10451_v21, %v1020_v17  ;;  %v1297_v48 = vmax.f32 %v1141_v62, 0.0 }
 0x306   :  { %2289 = vmatprep.subr.mxu0 %v1293_v36  ;;  %2390 = vmatprep.subr.mxu1 %v1295_v20  ;;  %v16151_v36 = vld [vmem:[#allocation115_spill] sm:$0xff]  ;;  %v1077_v38 = vmul.f32 %v10419_v57, %v16153_v15  ;;  %v1299_v17 = vmax.f32 %v1143_v26, 0.0  ;;  %v1023_v62 = vmul.f32 %v10421_v52, %v9976_v24  ;;  %v1025_v26 = vmul.f32 %v10421_v52, %v10004_v44  ;;  %v16156_v44 = vld [vmem:[#allocation118_spill] sm:$0xff] }
 0x307   :  { %7439 = vmatmul.mubr.msk.f32.gmra.mxu0 %vm1478_vm3, %v10527_v51  ;;  %7447 = vmatmul.mubr.msk.f32.gmra.mxu1 %vm1478_vm3, %v10527_v51  ;;  %v1400_v12 = vmax.f32 %v1244_v23, 0.0  ;;  %v968_v20 = vmul.f32 %v10437_v13, %v16151_v36  ;;  %v1348_v39 = vmax.f32 %v1192_v42, 0.0  ;;  %v1350_v61 = vmax.f32 %v1194_v19, 0.0  ;;  %v16154_v42 = vld [vmem:[#allocation25_spill] sm:$0xff] }
 0x308   :  { %2290 = vmatpush1.msra.mxu0 %v1292_v35  ;;  %2391 = vmatpush1.msra.mxu1 %v1294_v56  ;;  %v1349_v35 = vmax.f32 %v1193_v28, 0.0  ;;  %v1351_v56 = vmax.f32 %v1195_v27, 0.0  ;;  %v1140_v23 = vadd.f32 %v10473_v3, %v966_v49  ;;  %v1251_v50 = vadd.f32 %v10431_v16, %v1077_v38 }
 0x309   :  { %7468 = vmatprep.subr.msk.mxu0 %vm285_vm0, %v1401_v63  ;;  %7476 = vmatprep.subr.msk.mxu1 %vm285_vm0, %v1403_v4  ;;  %v16152_v63 = vld [vmem:[#allocation12_spill] sm:$0xff]  ;;  %v1142_v54 = vadd.f32 %v10473_v3, %v968_v20  ;;  %v1074_v19 = vmul.f32 %v10419_v57, %v16154_v42  ;;  %v1024_v49 = vmul.f32 %v10421_v52, %v9990_v5 }
 0x30a   :  { %2133 = vmatprep.mubr.f32.mxu0 %v16129_v14  ;;  %2234 = vmatprep.mubr.f32.mxu1 %v16129_v14  ;;  %v1075_v4 = vmul.f32 %v10419_v57, %v16152_v63  ;;  %v1296_v28 = vmax.f32 %v1140_v23, 0.0  ;;  %v1407_v43 = vmax.f32 %v1251_v50, 0.0  ;;  %v1197_v36 = vadd.f32 %v10451_v21, %v1023_v62  ;;  %v16159_v23 = vld [vmem:[#allocation119_spill] sm:$0xff] }
 0x30b   :  { %7440 = vmatmul.mubr.msk.f32.gmra.mxu0 %vm1478_vm3, %v10540_v40  ;;  %7448 = vmatmul.mubr.msk.f32.gmra.mxu1 %vm1478_vm3, %v10540_v40  ;;  %v1298_v27 = vmax.f32 %v1142_v54, 0.0  ;;  %v1199_v20 = vadd.f32 %v10451_v21, %v1025_v26  ;;  %v1196_v24 = vadd.f32 %v10451_v21, %v1022_v37  ;;  %v1198_v18 = vadd.f32 %v10451_v21, %v1024_v49 }
 0x30c   :  { %2139 = vmatprep.mubr.f32.mxu0 %v16129_v14  ;;  %2240 = vmatprep.mubr.f32.mxu1 %v16129_v14  ;;  %v1249_v7 = vadd.f32 %v10431_v16, %v1075_v4  ;;  %v971_v5 = vmul.f32 %v10437_v13, %v16156_v44  ;;  %v972_v54 = vmul.f32 %v10437_v13, %v16159_v23 }
 0x30d   :  { %v1355_v50 = vmax.f32 %v1199_v20, 0.0 }
 0x30e   :  { %v1405_v60 = vmax.f32 %v1249_v7, 0.0  ;;  %v1145_v15 = vadd.f32 %v10473_v3, %v971_v5  ;;  %v1353_v7 = vmax.f32 %v1197_v36, 0.0  ;;  %v16162_v36 = vld [vmem:[#allocation29_spill] sm:$0xff] }
 0x30f   :  { %7441 = vmatmul.mubr.msk.f32.gmra.mxu0 %vm1478_vm3, %v10555_v41  ;;  %7449 = vmatmul.mubr.msk.f32.gmra.mxu1 %vm1478_vm3, %v10555_v41  ;;  %v1078_v20 = vmul.f32 %v10419_v57, %v16162_v36 }
 0x310   :  { %2145 = vmatprep.mubr.f32.mxu0 %v16129_v14  ;;  %2246 = vmatprep.mubr.f32.mxu1 %v16129_v14 }
 0x311   :  { %v1252_v44 = vadd.f32 %v10431_v16, %v1078_v20 }
 0x313   :  { %7442 = vmatmul.mubr.msk.f32.gmra.mxu0 %vm1478_vm3, %v10566_v33  ;;  %7450 = vmatmul.mubr.msk.f32.gmra.mxu1 %vm1478_vm3, %v10566_v33  ;;  %v1408_v23 = vmax.f32 %v1252_v44, 0.0  ;;  %v16169_v44 = vld [vmem:[#allocation35_spill] sm:$0xff] }
 0x314   :  { %2151 = vmatprep.mubr.f32.mxu0 %v16129_v14  ;;  %2252 = vmatprep.mubr.f32.mxu1 %v16129_v14 }
 0x317   :  { %7443 = vmatmul.mubr.msk.f32.gmra.mxu0 %vm1478_vm3, %v10581_v32  ;;  %7451 = vmatmul.mubr.msk.f32.gmra.mxu1 %vm1478_vm3, %v10581_v32 }
 0x318   :  { %2323 = vmatprep.mubr.f32.mxu0 %v16129_v14  ;;  %2424 = vmatprep.mubr.f32.mxu1 %v16129_v14 }
 0x31b   :  { %7454 = vmatmul.mubr.msk.f32.vlgmr.msra.gmra.mxu0 %vm1478_vm3, %v10492_v29  ;;  %7462 = vmatmul.mubr.msk.f32.vlgmr.msra.gmra.mxu1 %vm1478_vm3, %v10492_v29 }
 0x31c   :  { %7469 = vmatpush1.msk.msra.mxu0 %vm285_vm0, %v1400_v12  ;;  %7477 = vmatpush1.msk.msra.mxu1 %vm285_vm0, %v1402_v22  ;;  %v1248_v12 = vadd.f32 %v10431_v16, %v1074_v19  ;;  %v1250_v22 = vadd.f32 %v10431_v16, %v1076_v47  ;;  %v1146_v19 = vadd.f32 %v10473_v3, %v972_v54 }
 0x31d   :  { %2489 = vmatprep.subr.mxu0 %v1349_v35  ;;  %2590 = vmatprep.subr.mxu1 %v1351_v56  ;;  %v16157_v35 = vld [vmem:[#allocation121_spill] sm:$0xff] }
 0x31e   :  { %2490 = vmatpush1.msra.mxu0 %v1348_v39  ;;  %2591 = vmatpush1.msra.mxu1 %v1350_v61  ;;  %v973_v56 = vmul.f32 %v10437_v13, %v16157_v35  ;;  %v1404_v63 = vmax.f32 %v1248_v12, 0.0  ;;  %v1406_v4 = vmax.f32 %v1250_v22, 0.0  ;;  %v16158_v39 = vld [vmem:[#allocation117_spill] sm:$0xff]  ;;  %v1301_v12 = vmax.f32 %v1145_v15, 0.0 }
 0x31f   :  { %2329 = vmatprep.mubr.f32.mxu0 %v16129_v14  ;;  %2430 = vmatprep.mubr.f32.mxu1 %v16129_v14  ;;  %v970_v61 = vmul.f32 %v10437_v13, %v16158_v39  ;;  %v1302_v26 = vmax.f32 %v1146_v19, 0.0  ;;  %v1027_v35 = vmul.f32 %v10421_v52, %v10032_v0  ;;  %v16164_v0 = vld [vmem:[#allocation123_spill] sm:$0xff] }
 0x320   :  { %2491 = vmatprep.subr.mxu0 %v1297_v48  ;;  %2592 = vmatprep.subr.mxu1 %v1299_v17  ;;  %v1147_v38 = vadd.f32 %v10473_v3, %v973_v56  ;;  %v16160_v48 = vld [vmem:[#allocation16_spill] sm:$0xff]  ;;  %v1029_v56 = vmul.f32 %v10421_v52, %v10060_v53  ;;  %v975_v39 = vmul.f32 %v10437_v13, %v16164_v0  ;;  %v16165_v53 = vld [vmem:[#allocation125_spill] sm:$0xff] }
 0x321   :  { %7455 = vmatmul.mubr.msk.f32.gmra.mxu0 %vm1478_vm3, %v10527_v51  ;;  %7463 = vmatmul.mubr.msk.f32.gmra.mxu1 %vm1478_vm3, %v10527_v51  ;;  %v1079_v17 = vmul.f32 %v10419_v57, %v16160_v48  ;;  %v1144_v42 = vadd.f32 %v10473_v3, %v970_v61  ;;  %v1201_v15 = vadd.f32 %v10451_v21, %v1027_v35  ;;  %v16166_v48 = vld [vmem:[#allocation122_spill] sm:$0xff]  ;;  %v16171_v0 = vld [vmem:[#allocation41_spill] sm:$0xff] }
 0x322   :  { %2492 = vmatpush1.msra.mxu0 %v1296_v28  ;;  %2593 = vmatpush1.msra.mxu1 %v1298_v27  ;;  %v16161_v28 = vld [vmem:[#allocation18_spill] sm:$0xff]  ;;  %v1303_v22 = vmax.f32 %v1147_v38, 0.0  ;;  %v1203_v38 = vadd.f32 %v10451_v21, %v1029_v56  ;;  %v977_v61 = vmul.f32 %v10437_v13, %v16165_v53  ;;  %v1084_v35 = vmul.f32 %v10419_v57, %v9874_v6 }
 0x323   :  { %7484 = vmatprep.subr.msk.mxu0 %vm285_vm0, %v1405_v60  ;;  %7492 = vmatprep.subr.msk.mxu1 %vm285_vm0, %v1407_v43  ;;  %v1081_v27 = vmul.f32 %v10419_v57, %v16161_v28  ;;  %v1352_v60 = vmax.f32 %v1196_v24, 0.0  ;;  %v1354_v43 = vmax.f32 %v1198_v18, 0.0  ;;  %v1253_v8 = vadd.f32 %v10431_v16, %v1079_v17  ;;  %v16163_v24 = vld [vmem:[#allocation32_spill] sm:$0xff]  ;;  %v16175_v53 = vld [vmem:[#allocation46_spill] sm:$0xff] }
 0x324   :  { %2335 = vmatprep.mubr.f32.mxu0 %v16129_v14  ;;  %2436 = vmatprep.mubr.f32.mxu1 %v16129_v14  ;;  %v1300_v62 = vmax.f32 %v1144_v42, 0.0  ;;  %v1080_v18 = vmul.f32 %v10419_v57, %v16163_v24  ;;  %v974_v17 = vmul.f32 %v10437_v13, %v16166_v48  ;;  %v16167_v28 = vld [vmem:[#allocation124_spill] sm:$0xff]  ;;  %v1087_v56 = vmul.f32 %v10419_v57, %v9916_v9 }
 0x325   :  { %7456 = vmatmul.mubr.msk.f32.gmra.mxu0 %vm1478_vm3, %v10540_v40  ;;  %7464 = vmatmul.mubr.msk.f32.gmra.mxu1 %vm1478_vm3, %v10540_v40  ;;  %v1255_v47 = vadd.f32 %v10431_v16, %v1081_v27  ;;  %v1409_v37 = vmax.f32 %v1253_v8, 0.0  ;;  %v976_v27 = vmul.f32 %v10437_v13, %v16167_v28  ;;  %v16168_v42 = vld [vmem:[#allocation20_spill] sm:$0xff]  ;;  %v1085_v8 = vmul.f32 %v10419_v57, %v9888_v58 }
 0x326   :  { %2341 = vmatprep.mubr.f32.mxu0 %v16129_v14  ;;  %2442 = vmatprep.mubr.f32.mxu1 %v16129_v14  ;;  %v1254_v5 = vadd.f32 %v10431_v16, %v1080_v18  ;;  %v1083_v19 = vmul.f32 %v10419_v57, %v16168_v42  ;;  %v10965_v6 = vmul.f32 %v10419_v57, %v16171_v0  ;;  %v16172_v9 = vld [vmem:[#allocation44_spill] sm:$0xff] }
 0x327   :  { %v1411_v49 = vmax.f32 %v1255_v47, 0.0  ;;  %v16178_v48 = vld [vmem:[#allocation28_spill] sm:$0xff]  ;;  %v10999_v28 = vmul.f32 %v10419_v57, %v10084_v45  ;;  %v11011_v42 = vmul.f32 %v10419_v57, %v10098_v55  ;;  %v16180_v45 = vld [vmem:[#allocation33_spill] sm:$0xff] }
 0x328   :  { %v1410_v54 = vmax.f32 %v1254_v5, 0.0  ;;  %v1082_v5 = vmul.f32 %v10419_v57, %v16169_v44  ;;  %v16185_v44 = vld [vmem:[#allocation127_spill] sm:$0xff] }
 0x329   :  { %7457 = vmatmul.mubr.msk.f32.gmra.mxu0 %vm1478_vm3, %v10555_v41  ;;  %7465 = vmatmul.mubr.msk.f32.gmra.mxu1 %vm1478_vm3, %v10555_v41 }
 0x32a   :  { %2347 = vmatprep.mubr.f32.mxu0 %v16129_v14  ;;  %2448 = vmatprep.mubr.f32.mxu1 %v16129_v14  ;;  %v1256_v55 = vadd.f32 %v10431_v16, %v1082_v5  ;;  %v978_v5 = vmul.f32 %v10437_v13, %v16185_v44  ;;  %v16193_v44 = vld [vmem:[#allocation131_spill] sm:$0xff] }
 0x32d   :  { %7458 = vmatmul.mubr.msk.f32.gmra.mxu0 %vm1478_vm3, %v10566_v33  ;;  %7466 = vmatmul.mubr.msk.f32.gmra.mxu1 %vm1478_vm3, %v10566_v33 }
 0x32e   :  { %2353 = vmatprep.mubr.f32.mxu0 %v16129_v14  ;;  %2454 = vmatprep.mubr.f32.mxu1 %v16129_v14 }
 0x331   :  { %7459 = vmatmul.mubr.msk.f32.gmra.mxu0 %vm1478_vm3, %v10581_v32  ;;  %7467 = vmatmul.mubr.msk.f32.gmra.mxu1 %vm1478_vm3, %v10581_v32 }
 0x332   :  { %2525 = vmatprep.mubr.f32.mxu0 %v16129_v14  ;;  %2626 = vmatprep.mubr.f32.mxu1 %v16129_v14 }
 0x335   :  { %7470 = vmatmul.mubr.msk.f32.vlgmr.msra.gmra.mxu0 %vm1478_vm3, %v10492_v29  ;;  %7478 = vmatmul.mubr.msk.f32.vlgmr.msra.gmra.mxu1 %vm1478_vm3, %v10492_v29 }
 0x336   :  { %7485 = vmatpush1.msk.msra.mxu0 %vm285_vm0, %v1404_v63  ;;  %7493 = vmatpush1.msk.msra.mxu1 %vm285_vm0, %v1406_v4  ;;  %v1026_v63 = vmul.f32 %v10421_v52, %v10018_v34  ;;  %v1028_v4 = vmul.f32 %v10421_v52, %v10046_v31 }
 0x337   :  { %2691 = vmatprep.subr.mxu0 %v1353_v7  ;;  %2792 = vmatprep.subr.mxu1 %v1355_v50  ;;  %v1149_v7 = vadd.f32 %v10473_v3, %v975_v39  ;;  %v1151_v50 = vadd.f32 %v10473_v3, %v977_v61  ;;  %v16173_v39 = vld [vmem:[#allocation22_spill] sm:$0xff]  ;;  %v10983_v61 = vmul.f32 %v10419_v57, %v16175_v53 }
 0x338   :  { %2692 = vmatpush1.msra.mxu0 %v1352_v60  ;;  %2793 = vmatpush1.msra.mxu1 %v1354_v43  ;;  %v1200_v34 = vadd.f32 %v10451_v21, %v1026_v63  ;;  %v1202_v31 = vadd.f32 %v10451_v21, %v1028_v4  ;;  %v1357_v60 = vmax.f32 %v1201_v15, 0.0  ;;  %v1359_v43 = vmax.f32 %v1203_v38, 0.0  ;;  %v16170_v15 = vld [vmem:[#allocation38_spill] sm:$0xff] }
 0x339   :  { %2531 = vmatprep.mubr.f32.mxu0 %v16129_v14  ;;  %2632 = vmatprep.mubr.f32.mxu1 %v16129_v14  ;;  %v1307_v58 = vmax.f32 %v1151_v50, 0.0  ;;  %v1089_v63 = vmul.f32 %v10419_v57, %v9944_v59  ;;  %v1086_v4 = vmul.f32 %v10419_v57, %v9902_v10  ;;  %v1088_v38 = vmul.f32 %v10419_v57, %v16170_v15  ;;  %v16174_v10 = vld [vmem:[#allocation24_spill] sm:$0xff] }
 0x33a   :  { %2693 = vmatprep.subr.mxu0 %v1301_v12  ;;  %2794 = vmatprep.subr.mxu1 %v1303_v22  ;;  %v1356_v47 = vmax.f32 %v1200_v34, 0.0  ;;  %v1358_v12 = vmax.f32 %v1202_v31, 0.0  ;;  %v1148_v22 = vadd.f32 %v10473_v3, %v974_v17  ;;  %v10971_v59 = vmul.f32 %v10419_v57, %v16172_v9 }
 0x33b   :  { %7471 = vmatmul.mubr.msk.f32.gmra.mxu0 %vm1478_vm3, %v10527_v51  ;;  %7479 = vmatmul.mubr.msk.f32.gmra.mxu1 %vm1478_vm3, %v10527_v51  ;;  %v10975_v34 = vmul.f32 %v10419_v57, %v16173_v39  ;;  %v10979_v31 = vmul.f32 %v10419_v57, %v16174_v10  ;;  %v10995_v17 = vmul.f32 %v10419_v57, %v16178_v48 }
 0x33c   :  { %2694 = vmatpush1.msra.mxu0 %v1300_v62  ;;  %2795 = vmatpush1.msra.mxu1 %v1302_v26  ;;  %v1150_v62 = vadd.f32 %v10473_v3, %v976_v27  ;;  %v1257_v26 = vadd.f32 %v10431_v16, %v1083_v19  ;;  %v1304_v36 = vmax.f32 %v1148_v22, 0.0  ;;  %v11003_v27 = vmul.f32 %v10419_v57, %v10112_v46 }
 0x33d   :  { %7500 = vmatprep.subr.msk.mxu0 %vm285_vm0, %v1409_v37  ;;  %7508 = vmatprep.subr.msk.mxu1 %vm285_vm0, %v1411_v49  ;;  %v1259_v37 = vadd.f32 %v10431_v16, %v1085_v8  ;;  %v1305_v49 = vmax.f32 %v1149_v7, 0.0  ;;  %v16177_v7 = vld [vmem:[#allocation26_spill] sm:$0xff]  ;;  %v1031_v19 = vmul.f32 %v10421_v52, %v16180_v45  ;;  %v1033_v46 = vmul.f32 %v10421_v52, %v10116_v1  ;;  %v16182_v1 = vld [vmem:[#allocation52_spill] sm:$0xff] }
 0x33e   :  { %2537 = vmatprep.mubr.f32.mxu0 %v16129_v14  ;;  %2638 = vmatprep.mubr.f32.mxu1 %v16129_v14  ;;  %v1306_v20 = vmax.f32 %v1150_v62, 0.0  ;;  %v1413_v24 = vmax.f32 %v1257_v26, 0.0  ;;  %v10991_v50 = vmul.f32 %v10419_v57, %v16177_v7  ;;  %v11023_v8 = vmul.f32 %v10419_v57, %v10140_v25 }
 0x33f   :  { %7472 = vmatmul.mubr.msk.f32.gmra.mxu0 %vm1478_vm3, %v10540_v40  ;;  %7480 = vmatmul.mubr.msk.f32.gmra.mxu1 %vm1478_vm3, %v10540_v40  ;;  %v1415_v18 = vmax.f32 %v1259_v37, 0.0  ;;  %v1205_v22 = vadd.f32 %v10451_v21, %v1031_v19  ;;  %v1207_v62 = vadd.f32 %v10451_v21, %v1033_v46  ;;  %v1032_v26 = vmul.f32 %v10421_v52, %v16182_v1  ;;  %v16187_v19 = vld [vmem:[#allocation54_spill] sm:$0xff] }
 0x340   :  { %2543 = vmatprep.mubr.f32.mxu0 %v16129_v14  ;;  %2644 = vmatprep.mubr.f32.mxu1 %v16129_v14  ;;  %v11037_v25 = vmul.f32 %v10419_v57, %v10168_v11  ;;  %v1152_v39 = vadd.f32 %v10473_v3, %v978_v5  ;;  %v1263_v7 = vadd.f32 %v10431_v16, %v1089_v63  ;;  %v16188_v63 = vld [vmem:[#allocation56_spill] sm:$0xff] }
 0x341   :  { %v1206_v11 = vadd.f32 %v10451_v21, %v1032_v26  ;;  %v1363_v0 = vmax.f32 %v1207_v62, 0.0  ;;  %v11077_v45 = vadd.f32 %v10431_v16, %v1088_v38  ;;  %v1035_v46 = vmul.f32 %v10421_v52, %v16187_v19  ;;  %v16191_v62 = vld [vmem:[#allocation132_spill] sm:$0xff] }
 0x342   :  { %v983_v1 = vmul.f32 %v10437_v13, %v16191_v62  ;;  %v982_v5 = vmul.f32 %v10437_v13, %v16193_v44  ;;  %v16200_v44 = vld [vmem:[#allocation34_spill] sm:$0xff] }
 0x343   :  { %7473 = vmatmul.mubr.msk.f32.gmra.mxu0 %vm1478_vm3, %v10555_v41  ;;  %7481 = vmatmul.mubr.msk.f32.gmra.mxu1 %vm1478_vm3, %v10555_v41  ;;  %v1362_v48 = vmax.f32 %v1206_v11, 0.0 }
 0x344   :  { %2549 = vmatprep.mubr.f32.mxu0 %v16129_v14  ;;  %2650 = vmatprep.mubr.f32.mxu1 %v16129_v14 }
 0x347   :  { %7474 = vmatmul.mubr.msk.f32.gmra.mxu0 %vm1478_vm3, %v10566_v33  ;;  %7482 = vmatmul.mubr.msk.f32.gmra.mxu1 %vm1478_vm3, %v10566_v33 }
 0x348   :  { %2555 = vmatprep.mubr.f32.mxu0 %v16129_v14  ;;  %2656 = vmatprep.mubr.f32.mxu1 %v16129_v14 }
 0x34b   :  { %7475 = vmatmul.mubr.msk.f32.gmra.mxu0 %vm1478_vm3, %v10581_v32  ;;  %7483 = vmatmul.mubr.msk.f32.gmra.mxu1 %vm1478_vm3, %v10581_v32 }
 0x34c   :  { %2727 = vmatprep.mubr.f32.mxu0 %v16129_v14  ;;  %2828 = vmatprep.mubr.f32.mxu1 %v16129_v14 }
 0x34f   :  { %7486 = vmatmul.mubr.msk.f32.vlgmr.msra.gmra.mxu0 %vm1478_vm3, %v10492_v29  ;;  %7494 = vmatmul.mubr.msk.f32.vlgmr.msra.gmra.mxu1 %vm1478_vm3, %v10492_v29 }
 0x350   :  { %7501 = vmatpush1.msk.msra.mxu0 %vm285_vm0, %v1408_v23  ;;  %7509 = vmatpush1.msk.msra.mxu1 %vm285_vm0, %v1410_v54  ;;  %v16176_v23 = vld [vmem:[#allocation48_spill] sm:$0xff] }
 0x351   :  { %2893 = vmatprep.subr.mxu0 %v1357_v60  ;;  %2994 = vmatprep.subr.mxu1 %v1359_v43  ;;  %v10987_v54 = vmul.f32 %v10419_v57, %v16176_v23  ;;  %v16179_v60 = vld [vmem:[#allocation30_spill] sm:$0xff]  ;;  %v1261_v23 = vadd.f32 %v10431_v16, %v1087_v56 }
 0x352   :  { %2894 = vmatpush1.msra.mxu0 %v1356_v47  ;;  %2995 = vmatpush1.msra.mxu1 %v1358_v12  ;;  %v11007_v43 = vmul.f32 %v10419_v57, %v16179_v60  ;;  %v1258_v47 = vadd.f32 %v10431_v16, %v1084_v35  ;;  %v16181_v12 = vld [vmem:[#allocation50_spill] sm:$0xff]  ;;  %v16186_v35 = vld [vmem:[#allocation129_spill] sm:$0xff]  ;;  %v11074_v60 = vadd.f32 %v10431_v16, %v1086_v4 }
 0x353   :  { %2733 = vmatprep.mubr.f32.mxu0 %v16129_v14  ;;  %2834 = vmatprep.mubr.f32.mxu1 %v16129_v14  ;;  %v980_v15 = vmul.f32 %v10437_v13, %v16186_v35  ;;  %v1417_v11 = vmax.f32 %v1261_v23, 0.0  ;;  %v11133_v23 = vadd.f32 %v10431_v16, %v10965_v6  ;;  %v16196_v6 = vld [vmem:[#allocation53_spill] sm:$0xff] }
 0x354   :  { %2895 = vmatprep.subr.mxu0 %v1305_v49  ;;  %2996 = vmatprep.subr.mxu1 %v1307_v58  ;;  %v16183_v49 = vld [vmem:[#allocation128_spill] sm:$0xff]  ;;  %v1416_v35 = vmax.f32 %v11074_v60, 0.0 }
 0x355   :  { %7487 = vmatmul.mubr.msk.f32.gmra.mxu0 %vm1478_vm3, %v10527_v51  ;;  %7495 = vmatmul.mubr.msk.f32.gmra.mxu1 %vm1478_vm3, %v10527_v51  ;;  %v979_v58 = vmul.f32 %v10437_v13, %v16183_v49  ;;  %v1154_v53 = vadd.f32 %v10473_v3, %v980_v15  ;;  %v1418_v15 = vmax.f32 %v11077_v45, 0.0 }
 0x356   :  { %2896 = vmatpush1.msra.mxu0 %v1304_v36  ;;  %2997 = vmatpush1.msra.mxu1 %v1306_v20  ;;  %v11044_v36 = vmul.f32 %v10419_v57, %v10126_v2  ;;  %v11048_v20 = vmul.f32 %v10419_v57, %v10154_v30  ;;  %v1412_v2 = vmax.f32 %v1256_v55, 0.0  ;;  %v1414_v30 = vmax.f32 %v1258_v47, 0.0  ;;  %v16189_v47 = vld [vmem:[#allocation36_spill] sm:$0xff] }
 0x357   :  { %7516 = vmatprep.subr.msk.mxu0 %vm285_vm0, %v1413_v24  ;;  %7524 = vmatprep.subr.msk.mxu1 %vm285_vm0, %v1415_v18  ;;  %v16184_v24 = vld [vmem:[#allocation130_spill] sm:$0xff]  ;;  %v1153_v57 = vadd.f32 %v10473_v3, %v979_v58  ;;  %v1037_v55 = vmul.f32 %v10421_v52, %v16188_v63  ;;  %v1310_v26 = vmax.f32 %v1154_v53, 0.0  ;;  %v1041_v63 = vmul.f32 %v10421_v52, %v16196_v6  ;;  %v16202_v6 = vld [vmem:[#allocation31_spill] sm:$0xff] }
 0x358   :  { %2739 = vmatprep.mubr.f32.mxu0 %v16129_v14  ;;  %2840 = vmatprep.mubr.f32.mxu1 %v16129_v14  ;;  %v981_v18 = vmul.f32 %v10437_v13, %v16184_v24  ;;  %v16192_v24 = vld [vmem:[#allocation135_spill] sm:$0xff] }
 0x359   :  { %7488 = vmatmul.mubr.msk.f32.gmra.mxu0 %vm1478_vm3, %v10540_v40  ;;  %7496 = vmatmul.mubr.msk.f32.gmra.mxu1 %vm1478_vm3, %v10540_v40  ;;  %v1309_v56 = vmax.f32 %v1153_v57, 0.0  ;;  %v1419_v57 = vmax.f32 %v1263_v7, 0.0  ;;  %v16195_v7 = vld [vmem:[#allocation45_spill] sm:$0xff] }
 0x35a   :  { %2745 = vmatprep.mubr.f32.mxu0 %v16129_v14  ;;  %2846 = vmatprep.mubr.f32.mxu1 %v16129_v14  ;;  %v1155_v9 = vadd.f32 %v10473_v3, %v981_v18  ;;  %v985_v18 = vmul.f32 %v10437_v13, %v16192_v24  ;;  %v16199_v24 = vld [vmem:[#allocation137_spill] sm:$0xff] }
 0x35c   :  { %v1311_v38 = vmax.f32 %v1155_v9, 0.0  ;;  %v11122_v9 = vadd.f32 %v10473_v3, %v985_v18  ;;  %v987_v18 = vmul.f32 %v10437_v13, %v16199_v24 }
 0x35d   :  { %7489 = vmatmul.mubr.msk.f32.gmra.mxu0 %vm1478_vm3, %v10555_v41  ;;  %7497 = vmatmul.mubr.msk.f32.gmra.mxu1 %vm1478_vm3, %v10555_v41 }
 0x35e   :  { %2751 = vmatprep.mubr.f32.mxu0 %v16129_v14  ;;  %2852 = vmatprep.mubr.f32.mxu1 %v16129_v14 }
 0x361   :  { %7490 = vmatmul.mubr.msk.f32.gmra.mxu0 %vm1478_vm3, %v10566_v33  ;;  %7498 = vmatmul.mubr.msk.f32.gmra.mxu1 %vm1478_vm3, %v10566_v33  ;;  %v1030_v33 = vmul.f32 %v10421_v52, %v16181_v12  ;;  %v16190_v12 = vld [vmem:[#allocation39_spill] sm:$0xff] }
 0x362   :  { %2757 = vmatprep.mubr.f32.mxu0 %v16129_v14  ;;  %2858 = vmatprep.mubr.f32.mxu1 %v16129_v14  ;;  %v1036_v4 = vmul.f32 %v10421_v52, %v16190_v12 }
 0x363   :  { %v1204_v37 = vadd.f32 %v10451_v21, %v1030_v33  ;;  %v1308_v33 = vmax.f32 %v1152_v39, 0.0  ;;  %v11125_v39 = vadd.f32 %v10473_v3, %v982_v5  ;;  %v989_v5 = vmul.f32 %v10437_v13, %v16200_v44 }
 0x364   :  { %v11101_v58 = vadd.f32 %v10451_v21, %v1036_v4  ;;  %v16211_v4 = vld [vmem:[#allocation43_spill] sm:$0xff] }
 0x365   :  { %7491 = vmatmul.mubr.msk.f32.gmra.mxu0 %vm1478_vm3, %v10581_v32  ;;  %7499 = vmatmul.mubr.msk.f32.gmra.mxu1 %vm1478_vm3, %v10581_v32  ;;  %v1361_v32 = vmax.f32 %v1205_v22, 0.0  ;;  %v1360_v10 = vmax.f32 %v1204_v37, 0.0  ;;  %v11090_v22 = vadd.f32 %v10451_v21, %v1035_v46  ;;  %v11095_v37 = vadd.f32 %v10451_v21, %v1037_v55 }
 0x366   :  { %2929 = vmatprep.mubr.f32.mxu0 %v16129_v14  ;;  %3030 = vmatprep.mubr.f32.mxu1 %v16129_v14  ;;  %v11156_v55 = vadd.f32 %v10431_v16, %v10979_v31  ;;  %v11171_v31 = vadd.f32 %v10451_v21, %v1041_v63  ;;  %v988_v63 = vmul.f32 %v10437_v13, %v16202_v6  ;;  %v16204_v6 = vld [vmem:[#allocation59_spill] sm:$0xff] }
 0x367   :  { %v1045_v24 = vmul.f32 %v10421_v52, %v16204_v6  ;;  %v11248_v6 = vld [vmem:[%s15558_s1 + $0x20] sm:$0xff]  ;;  %v16225_v60 = vmax.f32 %v11095_v37, 0.0 }
 0x368   :  { %v11214_v44 = vadd.f32 %v10473_v3, %v988_v63  ;;  %v16205_v63 = vld [vmem:[#allocation55_spill] sm:$0xff] }
 0x369   :  { %7502 = vmatmul.mubr.msk.f32.vlgmr.msra.gmra.mxu0 %vm1478_vm3, %v10492_v29  ;;  %7510 = vmatmul.mubr.msk.f32.vlgmr.msra.gmra.mxu1 %vm1478_vm3, %v10492_v29  ;;  %v1034_v29 = vmul.f32 %v10421_v52, %v16189_v47 }
 0x36a   :  { %7517 = vmatpush1.msk.msra.mxu0 %vm285_vm0, %v1412_v2  ;;  %7525 = vmatpush1.msk.msra.mxu1 %vm285_vm0, %v1414_v30  ;;  %v16194_v2 = vld [vmem:[#allocation134_spill] sm:$0xff] }
 0x36b   :  { %3095 = vmatprep.subr.mxu0 %v1361_v32  ;;  %3196 = vmatprep.subr.mxu1 %v1363_v0  ;;  %v11098_v49 = vadd.f32 %v10451_v21, %v1034_v29  ;;  %v984_v30 = vmul.f32 %v10437_v13, %v16194_v2  ;;  %v11114_v32 = vadd.f32 %v10473_v3, %v983_v1  ;;  %v16197_v29 = vld [vmem:[#allocation42_spill] sm:$0xff]  ;;  %v16201_v2 = vld [vmem:[#allocation136_spill] sm:$0xff] }
 0x36c   :  { %3096 = vmatpush1.msra.mxu0 %v1360_v10  ;;  %3197 = vmatpush1.msra.mxu1 %v1362_v48  ;;  %v1039_v48 = vmul.f32 %v10421_v52, %v16195_v7  ;;  %v16206_v7 = vld [vmem:[#allocation58_spill] sm:$0xff] }
 0x36d   :  { %2935 = vmatprep.mubr.f32.mxu0 %v16129_v14  ;;  %3036 = vmatprep.mubr.f32.mxu1 %v16129_v14  ;;  %v11128_v10 = vadd.f32 %v10473_v3, %v984_v30  ;;  %v986_v30 = vmul.f32 %v10437_v13, %v16201_v2  ;;  %v11224_v2 = vadd.f32 %v10431_v16, %v10987_v54  ;;  %v16229_v53 = vmax.f32 %v11098_v49, 0.0 }
 0x36e   :  { %3097 = vmatprep.subr.mxu0 %v1309_v56  ;;  %3198 = vmatprep.subr.mxu1 %v1311_v38  ;;  %v11147_v56 = vadd.f32 %v10431_v16, %v10975_v34  ;;  %v11159_v47 = vadd.f32 %v10451_v21, %v1039_v48  ;;  %v1038_v34 = vmul.f32 %v10421_v52, %v16197_v29 }
 0x36f   :  { %7503 = vmatmul.mubr.msk.f32.gmra.mxu0 %vm1478_vm3, %v10527_v51  ;;  %7511 = vmatmul.mubr.msk.f32.gmra.mxu1 %vm1478_vm3, %v10527_v51  ;;  %v11137_v51 = vadd.f32 %v10431_v16, %v10971_v59  ;;  %v1042_v29 = vmul.f32 %v10421_v52, %v16205_v63  ;;  %v1044_v54 = vmul.f32 %v10421_v52, %v16206_v7 }
 0x370   :  { %3098 = vmatpush1.msra.mxu0 %v1308_v33  ;;  %3199 = vmatpush1.msra.mxu1 %v1310_v26  ;;  %v11178_v1 = vadd.f32 %v10451_v21, %v1038_v34  ;;  %v11202_v34 = vadd.f32 %v10473_v3, %v987_v18  ;;  %v16203_v18 = vld [vmem:[#allocation57_spill] sm:$0xff]  ;;  %v11257_v7 = vadd.f32 %v10451_v21, %v1045_v24  ;;  %v16208_v33 = vld [vmem:[#allocation47_spill] sm:$0xff] }
 0x371   :  { %7532 = vmatprep.subr.msk.mxu0 %vm285_vm0, %v1417_v11  ;;  %7540 = vmatprep.subr.msk.mxu1 %vm285_vm0, %v1419_v57  ;;  %v16207_v57 = vld [vmem:[#allocation40_spill] sm:$0xff]  ;;  %v11267_v62 = vadd.f32 %v10451_v21, %v1044_v54  ;;  %v993_v38 = vmul.f32 %v10437_v13, %v16208_v33  ;;  %v16209_v54 = vld [vmem:[#allocation37_spill] sm:$0xff]  ;;  %v16212_v33 = vld [vmem:[#allocation75_spill] sm:$0xff]  ;;  %v11316_v59 = vadd.f32 %v10431_v16, %v11003_v27 }
 0x372   :  { %2941 = vmatprep.mubr.f32.mxu0 %v16129_v14  ;;  %3042 = vmatprep.mubr.f32.mxu1 %v16129_v14  ;;  %v990_v12 = vmul.f32 %v10437_v13, %v16209_v54  ;;  %v992_v54 = vmul.f32 %v10437_v13, %v16211_v4  ;;  %v1047_v63 = vmul.f32 %v10421_v52, %v16212_v33  ;;  %v11336_v27 = vld [vmem:[%s15558_s1] sm:$0xff] }
 0x373   :  { %7504 = vmatmul.mubr.msk.f32.gmra.mxu0 %vm1478_vm3, %v10540_v40  ;;  %7512 = vmatmul.mubr.msk.f32.gmra.mxu1 %vm1478_vm3, %v10540_v40  ;;  %v16198_v40 = vld [vmem:[#allocation49_spill] sm:$0xff]  ;;  %v11294_v11 = vadd.f32 %v10473_v3, %v993_v38  ;;  %v11312_v4 = vadd.f32 %v10431_v16, %v10999_v28  ;;  %v11326_v33 = vadd.f32 %v10431_v16, %v11011_v42  ;;  %v16217_v28 = vld [vmem:[#allocation60_spill] sm:$0xff] }
 0x374   :  { %2947 = vmatprep.mubr.f32.mxu0 %v16129_v14  ;;  %3048 = vmatprep.mubr.f32.mxu1 %v16129_v14  ;;  %v1040_v26 = vmul.f32 %v10421_v52, %v16198_v40  ;;  %v11205_v40 = vadd.f32 %v10473_v3, %v989_v5  ;;  %v1043_v5 = vmul.f32 %v10421_v52, %v16203_v18 }
 0x375   :  { %16210 = vst [vmem:[#allocation68_spill] sm:$0xff] %v11294_v11  ;;  %v11303_v24 = vadd.f32 %v10473_v3, %v990_v12  ;;  %v11308_v38 = vadd.f32 %v10473_v3, %v992_v54  ;;  %v11322_v12 = vadd.f32 %v10431_v16, %v11007_v43  ;;  %16215 = vst [vmem:[#allocation70_spill] sm:$0xff] %v11326_v33 }
 0x376   :  { %v11192_v48 = vadd.f32 %v10451_v21, %v1040_v26  ;;  %v11208_v26 = vadd.f32 %v10473_v3, %v986_v30  ;;  %v11228_v30 = vadd.f32 %v10431_v16, %v10991_v50  ;;  %v11239_v18 = vadd.f32 %v10451_v21, %v1043_v5 }
 0x377   :  { %7505 = vmatmul.mubr.msk.f32.gmra.mxu0 %vm1478_vm3, %v10555_v41  ;;  %7513 = vmatmul.mubr.msk.f32.gmra.mxu1 %vm1478_vm3, %v10555_v41  ;;  %v11218_v41 = vadd.f32 %v10431_v16, %v10983_v61  ;;  %v11236_v61 = vadd.f32 %v10431_v16, %v10995_v17  ;;  %v991_v50 = vmul.f32 %v10437_v13, %v16207_v57 }
 0x378   :  { %2953 = vmatprep.mubr.f32.mxu0 %v16129_v14  ;;  %3054 = vmatprep.mubr.f32.mxu1 %v16129_v14  ;;  %v11260_v57 = vadd.f32 %v10451_v21, %v1042_v29  ;;  %v16213_v29 = vld [vmem:[#allocation77_spill] sm:$0xff]  ;;  %16214 = vst [vmem:[#allocation83_spill] sm:$0xff] %v11322_v12  ;;  %v11329_v54 = vadd.f32 %v10451_v21, %v1047_v63  ;;  %v16219_v63 = vld [vmem:[#allocation62_spill] sm:$0xff] }
 0x379   :  { %v11270_v17 = vadd.f32 %v10473_v3, %v991_v50  ;;  %v11285_v50 = vld [vmem:[%s15558_s1 + $0x28] sm:$0x7f]  ;;  %v1049_v5 = vmul.f32 %v10421_v52, %v16213_v29  ;;  %v1046_v46 = vmul.f32 %v10421_v52, %v16217_v28  ;;  %v1048_v29 = vmul.f32 %v10421_v52, %v16219_v63 }
 0x37a   :  { %16216 = vst [vmem:[#allocation85_spill] sm:$0xff] %v11329_v54  ;;  %v16220_v28 = vld [vmem:[#allocation63_spill] sm:$0xff]  ;;  %v16267_v54 = vmax.f32 %v11178_v1, 0.0 }
 0x37b   :  { %7506 = vmatmul.mubr.msk.f32.gmra.mxu0 %vm1478_vm3, %v11248_v6  ;;  %7514 = vmatmul.mubr.msk.f32.gmra.mxu1 %vm1478_vm3, %v11248_v6  ;;  %v11344_v42 = vadd.f32 %v10451_v21, %v1049_v5  ;;  %v995_v19 = vmul.f32 %v10437_v13, %v16220_v28  ;;  %v11358_v43 = vadd.f32 %v10451_v21, %v1046_v46  ;;  %v16222_v5 = vld [vmem:[#allocation67_spill] sm:$0xff]  ;;  %v16224_v28 = vmax.f32 %v11090_v22, 0.0  ;;  %v16228_v46 = vld [vmem:[#allocation65_spill] sm:$0xff] }
 0x37c   :  { %2959 = vmatprep.mubr.f32.mxu0 %v16129_v14  ;;  %3060 = vmatprep.mubr.f32.mxu1 %v16129_v14  ;;  %v997_v0 = vmul.f32 %v10437_v13, %v16222_v5  ;;  %v16223_v63 = vld [vmem:[#allocation51_spill] sm:$0xff]  ;;  %v996_v5 = vmul.f32 %v10437_v13, %v16228_v46  ;;  %v16230_v22 = vmax.f32 %v11101_v58, 0.0  ;;  %v11435_v46 = vadd.f32 %v10431_v16, %v11048_v20 }
 0x37d   :  { %16218 = vst [vmem:[#allocation72_spill] sm:$0xff] %v11344_v42  ;;  %16221 = vst [vmem:[#allocation87_spill] sm:$0xff] %v11358_v43  ;;  %v994_v11 = vmul.f32 %v10437_v13, %v16223_v63 }
 0x37e   :  { %v11394_v58 = vadd.f32 %v10473_v3, %v996_v5  ;;  %v16238_v5 = vld [vmem:[#allocation79_spill] sm:$0xff]  ;;  %16242 = vst [vmem:[#allocation88_spill] sm:$0xff] %v11435_v46 }
 0x37f   :  { %7507 = vmatmul.mubr.msk.f32.gmra.mxu0 %vm1478_vm3, %v11285_v50  ;;  %7515 = vmatmul.mubr.msk.f32.gmra.mxu1 %vm1478_vm3, %v11285_v50  ;;  %v11391_v49 = vadd.f32 %v10473_v3, %v994_v11  ;;  %v11408_v11 = vadd.f32 %v10431_v16, %v11037_v25  ;;  %v16244_v25 = vld [vmem:[#allocation66_spill] sm:$0xff] }
 0x380   :  { %3131 = vmatprep.mubr.f32.mxu0 %v16129_v14  ;;  %3232 = vmatprep.mubr.f32.mxu1 %v16129_v14  ;;  %16233 = vst [vmem:[#allocation94_spill] sm:$0xff] %v11394_v58 }
 0x381   :  { %16232 = vst [vmem:[#allocation80_spill] sm:$0xff] %v11391_v49  ;;  %16237 = vst [vmem:[#allocation84_spill] sm:$0xff] %v11408_v11 }
 0x383   :  { %7518 = vmatmul.mubr.msk.f32.vlgmr.msra.gmra.mxu0 %vm1478_vm3, %v11336_v27  ;;  %7526 = vmatmul.mubr.msk.f32.vlgmr.msra.gmra.mxu1 %vm1478_vm3, %v11336_v27 }
 0x384   :  { %7533 = vmatpush1.msk.msra.mxu0 %vm285_vm0, %v1416_v35  ;;  %7541 = vmatpush1.msk.msra.mxu1 %vm285_vm0, %v1418_v15  ;;  %v11370_v35 = vadd.f32 %v10451_v21, %v1048_v29  ;;  %v11373_v15 = vadd.f32 %v10473_v3, %v995_v19  ;;  %v11385_v29 = vadd.f32 %v10473_v3, %v997_v0  ;;  %v16236_v0 = vmax.f32 %v11122_v9, 0.0 }
 0x385   :  { %3297 = vmatprep.subr.mxu0 %v16224_v28  ;;  %3398 = vmatprep.subr.mxu1 %v16225_v60  ;;  %v16235_v60 = vmax.f32 %v11114_v32, 0.0  ;;  %v1051_v19 = vmul.f32 %v10421_v52, %v16238_v5  ;;  %v16241_v5 = vmax.f32 %v11128_v10, 0.0  ;;  %v1053_v32 = vmul.f32 %v10421_v52, %v16244_v25 }
 0x386   :  { %16226 = vst [vmem:[#allocation74_spill] sm:$0xff] %v11370_v35  ;;  %16227 = vst [vmem:[#allocation76_spill] sm:$0xff] %v11373_v15  ;;  %3298 = vmatpush1.msra.mxu0 %v16229_v53  ;;  %3399 = vmatpush1.msra.mxu1 %v16230_v22  ;;  %v11398_v53 = vadd.f32 %v10431_v16, %v11023_v8  ;;  %v11415_v8 = vld [vmem:[%s15558_s1 + $0x8] sm:$0xff]  ;;  %v16246_v10 = vmax.f32 %v11137_v51, 0.0 }
 0x387   :  { %16231 = vst [vmem:[#allocation78_spill] sm:$0xff] %v11385_v29  ;;  %3137 = vmatprep.mubr.f32.mxu0 %v16129_v14  ;;  %3238 = vmatprep.mubr.f32.mxu1 %v16129_v14  ;;  %v11438_v9 = vadd.f32 %v10451_v21, %v1051_v19  ;;  %v16247_v19 = vld [vmem:[#allocation64_spill] sm:$0xff]  ;;  %v11459_v51 = vadd.f32 %v10451_v21, %v1053_v32 }
 0x388   :  { %16234 = vst [vmem:[#allocation82_spill] sm:$0xff] %v11398_v53  ;;  %3299 = vmatprep.subr.mxu0 %v16235_v60  ;;  %3400 = vmatprep.subr.mxu1 %v16236_v0  ;;  %v11426_v60 = vadd.f32 %v10431_v16, %v11044_v36  ;;  %v16240_v0 = vmax.f32 %v11125_v39, 0.0  ;;  %v11442_v36 = vpop.permute.xlu1 %1450  ;;  %v16245_v39 = vmax.f32 %v11133_v23, 0.0  ;;  %v16250_v16 = vld [vmem:[#allocation71_spill] sm:$0xff] }
 0x389   :  { %7519 = vmatmul.mubr.msk.f32.gmra.mxu0 %vm1478_vm3, %v11415_v8  ;;  %7527 = vmatmul.mubr.msk.f32.gmra.mxu1 %vm1478_vm3, %v11415_v8  ;;  %16243 = vst [vmem:[#allocation89_spill] sm:$0xff] %v11438_v9  ;;  %16248 = vst [vmem:[#allocation90_spill] sm:$0xff] %v11459_v51  ;;  %v999_v20 = vmul.f32 %v10437_v13, %v16250_v16 }
 0x38a   :  { %16239 = vst [vmem:[#allocation86_spill] sm:$0xff] %v11426_v60  ;;  %3300 = vmatpush1.msra.mxu0 %v16240_v0  ;;  %3401 = vmatpush1.msra.mxu1 %v16241_v5  ;;  %v1050_v5 = vmul.f32 %v10421_v52, %v16247_v19  ;;  %v11468_v19 = vld [vmem:[%s15558_s1 + $0x10] sm:$0xff]  ;;  %v16255_v60 = vld [vmem:[#allocation69_spill] sm:$0xff] }
 0x38b   :  { %7548 = vmatprep.subr.msk.mxu0 %vm285_vm0, %v16245_v39  ;;  %7556 = vmatprep.subr.msk.mxu1 %vm285_vm0, %v16246_v10  ;;  %v16249_v10 = vld [vmem:[#allocation81_spill] sm:$0xff]  ;;  %v11498_v45 = vadd.f32 %v10473_v3, %v999_v20  ;;  %v998_v28 = vmul.f32 %v10437_v13, %v16255_v60 }
 0x38c   :  { %3143 = vmatprep.mubr.f32.mxu0 %v16129_v14  ;;  %3244 = vmatprep.mubr.f32.mxu1 %v16129_v14  ;;  %v1719_v23 = vpop.f32.mrf.mxu0  ;;  %v1820_v25 = vpop.f32.mrf.mxu1  ;;  %v1052_v0 = vmul.f32 %v10421_v52, %v16249_v10  ;;  %v11482_v16 = vadd.f32 %v10451_v21, %v1050_v5  ;;  %v11517_v20 = vld [vmem:[%s15558_s1 + $0x18] sm:$0xff] }
 0x38d   :  { %7520 = vmatmul.mubr.msk.f32.gmra.mxu0 %vm1478_vm3, %v11468_v19  ;;  %7528 = vmatmul.mubr.msk.f32.gmra.mxu1 %vm1478_vm3, %v11468_v19  ;;  %v11475_v32 = vadd.f32 %v1719_v23, %v11442_v36  ;;  %v11478_v39 = vadd.f32 %v1820_v25, %v11442_v36  ;;  %v16253_v25 = vld [vmem:[#allocation61_spill] sm:$0xff]  ;;  %16254 = vst [vmem:[#allocation93_spill] sm:$0xff] %v11498_v45  ;;  %v11512_v9 = vpop.permute.xlu1 %1455 }
 0x38e   :  { %16251 = vst [vmem:[#allocation91_spill] sm:$0xff] %v11482_v16  ;;  %3149 = vmatprep.mubr.f32.mxu0 %v16129_v14  ;;  %3250 = vmatprep.mubr.f32.mxu1 %v16129_v14  ;;  %v1721_v10 = vpop.f32.mrf.mxu0  ;;  %v1822_v22 = vpop.f32.mrf.mxu1  ;;  %v11489_v23 = vadd.f32 %v10451_v21, %v1052_v0  ;;  %v1001_v37 = vmul.f32 %v10437_v13, %v16253_v25  ;;  %16257 = vst [vmem:[#allocation126_spill] sm:$0xff] %v11512_v9 }
 0x38f   :  { %v4279_v5 = vmul.f32 %v11475_v32, %v11475_v32  ;;  %v4281_v52 = vmul.f32 %v11478_v39, %v11478_v39  ;;  %v11503_v63 = vadd.f32 %v1721_v10, %v11442_v36  ;;  %v11506_v21 = vadd.f32 %v1822_v22, %v11442_v36  ;;  %v16258_v10 = vld [vmem:[#allocation73_spill] sm:$0xff] }
 0x390   :  { %16252 = vst [vmem:[#allocation92_spill] sm:$0xff] %v11489_v23  ;;  %v11510_v25 = vadd.f32 %v10473_v3, %v1001_v37  ;;  %v1000_v0 = vmul.f32 %v10437_v13, %v16258_v10 }
 0x391   :  { %7521 = vmatmul.mubr.msk.f32.gmra.mxu0 %vm1478_vm3, %v11517_v20  ;;  %7529 = vmatmul.mubr.msk.f32.gmra.mxu1 %vm1478_vm3, %v11517_v20  ;;  %v4591_v22 = vmul.f32 %v4279_v5, %v11475_v32  ;;  %v4593_v60 = vmul.f32 %v4281_v52, %v11478_v39  ;;  %v4280_v51 = vmul.f32 %v11503_v63, %v11503_v63 }
 0x392   :  { %16256 = vst [vmem:[#allocation112_spill] sm:$0xff] %v11510_v25  ;;  %3155 = vmatprep.mubr.f32.mxu0 %v16129_v14  ;;  %3256 = vmatprep.mubr.f32.mxu1 %v16129_v14  ;;  %v4282_v46 = vmul.f32 %v11506_v21, %v11506_v21  ;;  %v1725_v11 = vpop.f32.mrf.mxu0  ;;  %v1826_v53 = vpop.f32.mrf.mxu1  ;;  %v11536_v52 = vadd.f32 %v10473_v3, %v998_v28 }
 0x393   :  { %v4903_v37 = vmul.f32 0.044715, %v4591_v22  ;;  %v4905_v16 = vmul.f32 0.044715, %v4593_v60  ;;  %v11539_v13 = vadd.f32 %v1725_v11, %v11512_v9  ;;  %v11542_v10 = vadd.f32 %v1826_v53, %v11512_v9 }
 0x394   :  { %16259 = vst [vmem:[#allocation111_spill] sm:$0xff] %v11536_v52  ;;  %v4592_v58 = vmul.f32 %v4280_v51, %v11503_v63  ;;  %v4594_v49 = vmul.f32 %v4282_v46, %v11506_v21  ;;  %v1727_v29 = vpop.f32.mrf.mxu0  ;;  %v1828_v15 = vpop.f32.mrf.mxu1  ;;  %v11548_v5 = vadd.f32 %v10473_v3, %v1000_v0 }
 0x395   :  { %7522 = vmatmul.mubr.msk.f32.gmra.mxu0 %vm1478_vm3, %v11248_v6  ;;  %7530 = vmatmul.mubr.msk.f32.gmra.mxu1 %vm1478_vm3, %v11248_v6  ;;  %v5215_v28 = vadd.f32 %v4903_v37, %v11475_v32  ;;  %v5217_v53 = vadd.f32 %v4905_v16, %v11478_v39  ;;  %v4331_v46 = vmul.f32 %v11539_v13, %v11539_v13 }
 0x396   :  { %16260 = vst [vmem:[#allocation120_spill] sm:$0xff] %v11548_v5  ;;  %3161 = vmatprep.mubr.f32.mxu0 %v16129_v14  ;;  %3262 = vmatprep.mubr.f32.mxu1 %v16129_v14  ;;  %v4904_v3 = vmul.f32 0.044715, %v4592_v58  ;;  %v4906_v51 = vmul.f32 0.044715, %v4594_v49  ;;  %v4333_v0 = vmul.f32 %v11542_v10, %v11542_v10  ;;  %v11566_v35 = vadd.f32 %v1727_v29, %v11512_v9 }
 0x397   :  { %v5527_v60 = vmul.f32 0.7978846, %v5215_v28  ;;  %v5529_v37 = vmul.f32 0.7978846, %v5217_v53  ;;  %v4643_v16 = vmul.f32 %v4331_v46, %v11539_v13  ;;  %v1731_v45 = vpop.f32.mrf.mxu0  ;;  %v1832_v11 = vpop.f32.mrf.mxu1  ;;  %v11572_v58 = vadd.f32 %v1828_v15, %v11512_v9 }
 0x398   :  { %v5216_v25 = vadd.f32 %v4904_v3, %v11503_v63  ;;  %v5218_v23 = vadd.f32 %v4906_v51, %v11506_v21  ;;  %v4645_v49 = vmul.f32 %v4333_v0, %v11542_v10  ;;  %v4332_v28 = vmul.f32 %v11566_v35, %v11566_v35  ;;  %v11581_v51 = vpop.permute.xlu1 %1460 }
 0x399   :  { %7523 = vmatmul.mubr.msk.f32.gmra.mxu0 %vm1478_vm3, %v11285_v50  ;;  %7531 = vmatmul.mubr.msk.f32.gmra.mxu1 %vm1478_vm3, %v11285_v50  ;;  %7622 = vtanh.f32 %v5527_v60  ;;  %v4955_v29 = vmul.f32 0.044715, %v4643_v16  ;;  %v1733_v53 = vpop.f32.mrf.mxu0  ;;  %v1834_v46 = vpop.f32.mrf.mxu1  ;;  %16261 = vst [vmem:[#allocation8_spill] sm:$0xff] %v11581_v51  ;;  %v11586_v60 = vmul.f32 0.5, %v11475_v32  ;;  %v4334_v3 = vmul.f32 %v11572_v58, %v11572_v58 }
 0x39a   :  { %3333 = vmatprep.mubr.f32.mxu0 %v16129_v14  ;;  %3434 = vmatprep.mubr.f32.mxu1 %v16129_v14  ;;  %7624 = vtanh.f32 %v5529_v37  ;;  %v5528_v15 = vmul.f32 0.7978846, %v5216_v25  ;;  %v5530_v0 = vmul.f32 0.7978846, %v5218_v23  ;;  %v4957_v22 = vmul.f32 0.044715, %v4645_v49 }
 0x39b   :  { %v5267_v16 = vadd.f32 %v4955_v29, %v11539_v13  ;;  %v4644_v52 = vmul.f32 %v4332_v28, %v11566_v35  ;;  %v1737_v5 = vpop.f32.mrf.mxu0  ;;  %v11592_v43 = vpop.f32.mrf.mxu1  ;;  %v11596_v25 = vadd.f32 %v1731_v45, %v11581_v51  ;;  %v11599_v23 = vadd.f32 %v1832_v11, %v11581_v51 }
 0x39c   :  { %7626 = vtanh.f32 %v5528_v15  ;;  %v5269_v42 = vadd.f32 %v4957_v22, %v11542_v10  ;;  %v4646_v49 = vmul.f32 %v4334_v3, %v11572_v58  ;;  %v11611_v45 = vmul.f32 0.5, %v11478_v39 }
 0x39d   :  { %7534 = vmatmul.mubr.msk.f32.vlgmr.msra.gmra.mxu0 %vm1478_vm3, %v11336_v27  ;;  %7542 = vmatmul.mubr.msk.f32.vlgmr.msra.gmra.mxu1 %vm1478_vm3, %v11336_v27  ;;  %7628 = vtanh.f32 %v5530_v0  ;;  %v5579_v32 = vmul.f32 0.7978846, %v5267_v16  ;;  %v4956_v37 = vmul.f32 0.044715, %v4644_v52  ;;  %v11606_v29 = vpop.f32.mrf.mxu0  ;;  %v11608_v22 = vpop.f32.mrf.mxu1  ;;  %v16262_v11 = vmax.f32 %v11147_v56, 0.0 }
 0x39e   :  { %v16263_v28 = vmax.f32 %v11156_v55, 0.0  ;;  %v5581_v15 = vmul.f32 0.7978846, %v5269_v42  ;;  %v4383_v52 = vmul.f32 %v11596_v25, %v11596_v25  ;;  %v4385_v3 = vmul.f32 %v11599_v23, %v11599_v23  ;;  %3339 = vmatprep.mubr.f32.mxu0 %v16129_v14  ;;  %3440 = vmatprep.mubr.f32.mxu1 %v16129_v14 }
 0x39f   :  { %7549 = vmatpush1.msk.msra.mxu0 %vm285_vm0, %v16262_v11  ;;  %v16264_v0 = vmax.f32 %v11159_v47, 0.0  ;;  %v16265_v39 = vmax.f32 %v11171_v31, 0.0  ;;  %v11628_v56 = vmul.f32 0.5, %v11503_v63  ;;  %7630 = vtanh.f32 %v5579_v32  ;;  %v11631_v42 = vpop.f32.mrf.mxu0  ;;  %v11633_v11 = vpop.f32.mrf.mxu1 }
 0x3a0   :  { %7557 = vmatpush1.msk.msra.mxu1 %vm285_vm0, %v16263_v28  ;;  %v5268_v55 = vadd.f32 %v4956_v37, %v11566_v35  ;;  %v4958_v16 = vmul.f32 0.044715, %v4646_v49  ;;  %v11635_v28 = vpop.permute.xlu0 %1465  ;;  %v16268_v47 = vmax.f32 %v11192_v48, 0.0  ;;  %7632 = vtanh.f32 %v5581_v15 }
 0x3a1   :  { %3499 = vmatprep.subr.mxu0 %v16264_v0  ;;  %3600 = vmatprep.subr.mxu1 %v16265_v39  ;;  %16266 = vst [vmem:[#allocation7_spill] sm:$0xff] %v11635_v28  ;;  %v4695_v31 = vmul.f32 %v4383_v52, %v11596_v25  ;;  %v4697_v63 = vmul.f32 %v4385_v3, %v11599_v23  ;;  %v11657_v15 = vpop.f32.mrf.mxu1  ;;  %v16269_v52 = vmax.f32 %v11202_v34, 0.0  ;;  %v16270_v3 = vmax.f32 %v11205_v40, 0.0 }
 0x3a2   :  { %3500 = vmatpush1.msra.mxu0 %v16267_v54  ;;  %3601 = vmatpush1.msra.mxu1 %v16268_v47  ;;  %v11644_v32 = vadd.f32 %v1733_v53, %v11581_v51  ;;  %v5580_v37 = vmul.f32 0.7978846, %v5268_v55  ;;  %v5270_v49 = vadd.f32 %v4958_v16, %v11572_v58  ;;  %v11650_v1 = vadd.f32 %v1834_v46, %v11581_v51  ;;  %v11655_v54 = vpop.f32.mrf.mxu0 }
 0x3a3   :  { %v11653_v48 = vadd.f32 %v1737_v5, %v11635_v28  ;;  %v11660_v53 = vmul.f32 0.5, %v11506_v21  ;;  %3501 = vmatprep.subr.mxu0 %v16269_v52  ;;  %3602 = vmatprep.subr.mxu1 %v16270_v3  ;;  %v5007_v0 = vmul.f32 0.044715, %v4695_v31  ;;  %v5009_v39 = vmul.f32 0.044715, %v4697_v63  ;;  %v11679_v55 = vpop.f32.mrf.mxu1 }
 0x3a4   :  { %v4384_v46 = vmul.f32 %v11644_v32, %v11644_v32  ;;  %v11669_v5 = vmul.f32 0.5, %v11539_v13  ;;  %7535 = vmatmul.mubr.msk.f32.gmra.mxu0 %vm1478_vm3, %v11415_v8  ;;  %7543 = vmatmul.mubr.msk.f32.gmra.mxu1 %vm1478_vm3, %v11415_v8  ;;  %7634 = vtanh.f32 %v5580_v37  ;;  %v5582_v34 = vmul.f32 0.7978846, %v5270_v49  ;;  %v11677_v21 = vpop.f32.mrf.mxu0 }
 0x3a5   :  { %v4386_v40 = vmul.f32 %v11650_v1, %v11650_v1  ;;  %v11682_v16 = vmul.f32 0.5, %v11542_v10  ;;  %v16271_v13 = vmax.f32 %v11208_v26, 0.0  ;;  %v16272_v47 = vmax.f32 %v11214_v44, 0.0  ;;  %3345 = vmatprep.mubr.f32.mxu0 %v16129_v14  ;;  %3446 = vmatprep.mubr.f32.mxu1 %v16129_v14 }
 0x3a6   :  { %v5319_v31 = vadd.f32 %v5007_v0, %v11596_v25  ;;  %v5321_v63 = vadd.f32 %v5009_v39, %v11599_v23  ;;  %v4696_v37 = vmul.f32 %v4384_v46, %v11644_v32  ;;  %v16273_v49 = vmax.f32 %v11218_v41, 0.0  ;;  %v11704_v3 = vpop.f32.mrf.mxu0  ;;  %v11706_v0 = vpop.f32.mrf.mxu1 }
 0x3a7   :  { %3502 = vmatpush1.msra.mxu0 %v16271_v13  ;;  %3603 = vmatpush1.msra.mxu1 %v16272_v47  ;;  %v16274_v52 = vmax.f32 %v11224_v2, 0.0  ;;  %7636 = vtanh.f32 %v5582_v34  ;;  %v4698_v26 = vmul.f32 %v4386_v40, %v11650_v1  ;;  %v4435_v44 = vmul.f32 %v11653_v48, %v11653_v48  ;;  %v7623_v41 = vpop.eup %7622 }
 0x3a8   :  { %7564 = vmatprep.subr.msk.mxu0 %vm285_vm0, %v16273_v49  ;;  %v11702_v10 = vadd.f32 %v11592_v43, %v11635_v28  ;;  %v5631_v2 = vmul.f32 0.7978846, %v5319_v31  ;;  %v5633_v39 = vmul.f32 0.7978846, %v5321_v63  ;;  %v5008_v46 = vmul.f32 0.044715, %v4696_v37  ;;  %v7625_v40 = vpop.eup %7624  ;;  %7536 = vmatmul.mubr.msk.f32.gmra.mxu0 %vm1478_vm3, %v11468_v19  ;;  %v11721_v63 = vpop.f32.mrf.mxu0 }
 0x3a9   :  { %7572 = vmatprep.subr.msk.mxu1 %vm285_vm0, %v16274_v52  ;;  %v11712_v34 = vadd.f32 %v11606_v29, %v11635_v28  ;;  %v6463_v13 = vadd.f32 1.0, %v7623_v41  ;;  %7544 = vmatmul.mubr.msk.f32.gmra.mxu1 %vm1478_vm3, %v11468_v19  ;;  %v5010_v43 = vmul.f32 0.044715, %v4698_v26  ;;  %v4747_v47 = vmul.f32 %v4435_v44, %v11653_v48  ;;  %v11723_v37 = vpop.f32.mrf.mxu1  ;;  %v7627_v26 = vpop.eup %7626 }
 0x3aa   :  { %v4437_v31 = vmul.f32 %v11702_v10, %v11702_v10  ;;  %v6465_v29 = vadd.f32 1.0, %v7625_v40  ;;  %v11726_v49 = vmul.f32 0.5, %v11566_v35  ;;  %7638 = vtanh.f32 %v5631_v2  ;;  %3351 = vmatprep.mubr.f32.mxu0 %v16129_v14  ;;  %3452 = vmatprep.mubr.f32.mxu1 %v16129_v14  ;;  %v11733_v33 = vpop.f32.mrf.mxu0  ;;  %v7629_v35 = vpop.eup %7628 }
 0x3ab   :  { %v5320_v52 = vadd.f32 %v5008_v46, %v11644_v32  ;;  %v6775_v44 = vmul.f32 %v6463_v13, %v11586_v60  ;;  %7640 = vtanh.f32 %v5633_v39  ;;  %v5322_v41 = vadd.f32 %v5010_v43, %v11650_v1  ;;  %v11735_v40 = vpop.f32.mrf.mxu1 }
 0x3ac   :  { %v5059_v51 = vmul.f32 0.044715, %v4747_v47  ;;  %v6777_v2 = vmul.f32 %v6465_v29, %v11611_v45  ;;  %v6464_v12 = vadd.f32 1.0, %v7627_v26  ;;  %v4749_v9 = vmul.f32 %v4437_v31, %v11702_v10  ;;  %7537 = vmatmul.mubr.msk.f32.gmra.mxu0 %vm1478_vm3, %v11517_v20  ;;  %v7631_v43 = vpop.eup %7630 }
 0x3ad   :  { %v5632_v46 = vmul.f32 0.7978846, %v5320_v52  ;;  %7087 = vst [vmem:[%s15559_s5] sm:$0xff] %v6775_v44  ;;  %v6466_v60 = vadd.f32 1.0, %v7629_v35  ;;  %v5634_v39 = vmul.f32 0.7978846, %v5322_v41  ;;  %7545 = vmatmul.mubr.msk.f32.gmra.mxu1 %vm1478_vm3, %v11517_v20  ;;  %v4436_v45 = vmul.f32 %v11712_v34, %v11712_v34  ;;  %3357 = vmatprep.mubr.f32.mxu0 %v16129_v14  ;;  %v7633_v29 = vpop.eup %7632  ;;  %v11759_v41 = vpop.f32.mrf.mxu0 }
 0x3ae   :  { %v5371_v13 = vadd.f32 %v5059_v51, %v11653_v48  ;;  %7089 = vst [vmem:[%s15559_s5 + $0x10] sm:$0xff] %v6777_v2  ;;  %v6776_v47 = vmul.f32 %v6464_v12, %v11628_v56  ;;  %v11754_v31 = vmul.f32 0.5, %v11572_v58  ;;  %v5061_v51 = vmul.f32 0.044715, %v4749_v9  ;;  %3458 = vmatprep.mubr.f32.mxu1 %v16129_v14  ;;  %v11761_v35 = vpop.f32.mrf.mxu1  ;;  %v11763_v12 = vpop.permute.xlu1 %1470 }
 0x3af   :  { %7642 = vtanh.f32 %v5632_v46  ;;  %v6778_v52 = vmul.f32 %v6466_v60, %v11660_v53  ;;  %v6515_v26 = vadd.f32 1.0, %v7631_v43  ;;  %v6517_v9 = vadd.f32 1.0, %v7633_v29 }
 0x3b0   :  { %7644 = vtanh.f32 %v5634_v39  ;;  %v5683_v44 = vmul.f32 0.7978846, %v5371_v13  ;;  %7088 = vst [vmem:[%s15559_s5 + $0x8] sm:$0xff] %v6776_v47  ;;  %v5373_v58 = vadd.f32 %v5061_v51, %v11702_v10  ;;  %v4748_v56 = vmul.f32 %v4436_v45, %v11712_v34  ;;  %7538 = vmatmul.mubr.msk.f32.gmra.mxu0 %vm1478_vm3, %v11248_v6  ;;  %v11792_v39 = vpop.f32.mrf.mxu1 }
 0x3b1   :  { %v11772_v53 = vadd.f32 %v11608_v22, %v11635_v28  ;;  %7090 = vst [vmem:[%s15559_s5 + $0x18] sm:$0xff] %v6778_v52  ;;  %v6827_v2 = vmul.f32 %v6515_v26, %v11669_v5  ;;  %v11780_v46 = vadd.f32 %v11631_v42, %v11763_v12  ;;  %v11784_v60 = vadd.f32 %v11633_v11, %v11763_v12  ;;  %v11790_v22 = vpop.f32.mrf.mxu0  ;;  %v7635_v5 = vpop.eup %7634 }
 0x3b2   :  { %7646 = vtanh.f32 %v5683_v44  ;;  %7546 = vmatmul.mubr.msk.f32.gmra.mxu1 %vm1478_vm3, %v11248_v6  ;;  %v6829_v13 = vmul.f32 %v6517_v9, %v11682_v16  ;;  %v5685_v45 = vmul.f32 0.7978846, %v5373_v58  ;;  %v5060_v42 = vmul.f32 0.044715, %v4748_v56  ;;  %3363 = vmatprep.mubr.f32.mxu0 %v16129_v14  ;;  %v11808_v52 = vpop.f32.mrf.mxu1 }
 0x3b3   :  { %v4438_v43 = vmul.f32 %v11772_v53, %v11772_v53  ;;  %3464 = vmatprep.mubr.f32.mxu1 %v16129_v14  ;;  %7139 = vst [vmem:[%s15559_s5 + $0x1a0] sm:$0xff] %v6827_v2  ;;  %v6516_v11 = vadd.f32 1.0, %v7635_v5  ;;  %v5943_v47 = vmul.f32 0.5, %v11596_v25  ;;  %v5945_v51 = vmul.f32 0.5, %v11599_v23  ;;  %v11806_v29 = vpop.f32.mrf.mxu0 }
 0x3b4   :  { %v4487_v16 = vmul.f32 %v11780_v46, %v11780_v46  ;;  %v7637_v26 = vpop.eup %7636  ;;  %7141 = vst [vmem:[%s15559_s5 + $0x1b0] sm:$0xff] %v6829_v13  ;;  %7648 = vtanh.f32 %v5685_v45  ;;  %v5372_v44 = vadd.f32 %v5060_v42, %v11712_v34  ;;  %v4489_v25 = vmul.f32 %v11784_v60, %v11784_v60  ;;  %7539 = vmatmul.mubr.msk.f32.gmra.mxu0 %vm1478_vm3, %v11285_v50  ;;  %v11828_v13 = vpop.f32.mrf.mxu1 }
 0x3b5   :  { %v4750_v9 = vmul.f32 %v4438_v43, %v11772_v53  ;;  %v6828_v23 = vmul.f32 %v6516_v11, %v11726_v49  ;;  %v6518_v58 = vadd.f32 1.0, %v7637_v26  ;;  %v11819_v56 = vmul.f32 0.5, %v11644_v32  ;;  %v11826_v5 = vpop.f32.mrf.mxu0  ;;  %16275 = vst [vmem:[#allocation138_spill] sm:$0xff] %v11828_v13  ;;  %3535 = vmatprep.mubr.f32.mxu0 %v16129_v14 }
 0x3b6   :  { %v4799_v2 = vmul.f32 %v4487_v16, %v11780_v46  ;;  %7547 = vmatmul.mubr.msk.f32.gmra.mxu1 %vm1478_vm3, %v11285_v50  ;;  %v5684_v45 = vmul.f32 0.7978846, %v5372_v44  ;;  %v4801_v49 = vmul.f32 %v4489_v25, %v11784_v60  ;;  %v11833_v32 = vadd.f32 %v11655_v54, %v11763_v12  ;;  %v11846_v44 = vpop.permute.xlu0 %1475 }
 0x3b7   :  { %v5062_v42 = vmul.f32 0.044715, %v4750_v9  ;;  %3636 = vmatprep.mubr.f32.mxu1 %v16129_v14  ;;  %v7639_v43 = vpop.eup %7638  ;;  %7140 = vst [vmem:[%s15559_s5 + $0x1a8] sm:$0xff] %v6828_v23  ;;  %v6830_v50 = vmul.f32 %v6518_v58, %v11754_v31  ;;  %v5946_v11 = vmul.f32 0.5, %v11650_v1  ;;  %v11844_v26 = vadd.f32 %v11657_v15, %v11763_v12  ;;  %v11849_v13 = vpop.f32.mrf.mxu0 }
 0x3b8   :  { %v5111_v16 = vmul.f32 0.044715, %v4799_v2  ;;  %v7641_v54 = vpop.eup %7640  ;;  %v6567_v9 = vadd.f32 1.0, %v7639_v43  ;;  %7650 = vtanh.f32 %v5684_v45  ;;  %v5113_v28 = vmul.f32 0.044715, %v4801_v49  ;;  %7550 = vmatmul.mubr.msk.f32.vlgmr.msra.gmra.mxu0 %vm1478_vm3, %v11336_v27  ;;  %v11865_v58 = vpop.f32.mrf.mxu1 }
 0x3b9   :  { %v5374_v25 = vadd.f32 %v5062_v42, %v11772_v53  ;;  %7142 = vst [vmem:[%s15559_s5 + $0x1b8] sm:$0xff] %v6830_v50  ;;  %v6569_v1 = vadd.f32 1.0, %v7641_v54  ;;  %v4488_v15 = vmul.f32 %v11833_v32, %v11833_v32  ;;  %v11859_v23 = vadd.f32 %v11677_v21, %v11846_v44  ;;  %3541 = vmatprep.mubr.f32.mxu0 %v16129_v14 }
 0x3ba   :  { %v5423_v31 = vadd.f32 %v5111_v16, %v11780_v46  ;;  %7558 = vmatmul.mubr.msk.f32.vlgmr.msra.gmra.mxu1 %vm1478_vm3, %v11336_v27  ;;  %v6879_v2 = vmul.f32 %v6567_v9, %v5943_v47  ;;  %v5425_v42 = vadd.f32 %v5113_v28, %v11784_v60  ;;  %v4490_v49 = vmul.f32 %v11844_v26, %v11844_v26 }
 0x3bb   :  { %v5686_v45 = vmul.f32 0.7978846, %v5374_v25  ;;  %v16276_v43 = vmax.f32 %v11228_v30, 0.0  ;;  %v16277_v21 = vmax.f32 %v11236_v61, 0.0  ;;  %v6881_v16 = vmul.f32 %v6569_v1, %v5945_v51  ;;  %3642 = vmatprep.mubr.f32.mxu1 %v16129_v14 }
 0x3bc   :  { %v7643_v50 = vpop.eup %7642  ;;  %v5995_v27 = vmul.f32 0.5, %v11653_v48  ;;  %v5735_v54 = vmul.f32 0.7978846, %v5423_v31  ;;  %v4800_v47 = vmul.f32 %v4488_v15, %v11833_v32  ;;  %v16278_v28 = vmax.f32 %v11239_v18, 0.0  ;;  %7191 = vst [vmem:[%s15559_s5 + $0x340] sm:$0xff] %v6879_v2  ;;  %v11890_v18 = vpop.f32.mrf.mxu0  ;;  %7551 = vmatmul.mubr.msk.f32.gmra.mxu0 %vm1478_vm3, %v11415_v8 }
 0x3bd   :  { %7565 = vmatpush1.msk.msra.mxu0 %vm285_vm0, %v16276_v43  ;;  %7573 = vmatpush1.msk.msra.mxu1 %vm285_vm0, %v16277_v21  ;;  %v16279_v9 = vmax.f32 %v11257_v7, 0.0  ;;  %v7645_v30 = vpop.eup %7644  ;;  %v6568_v61 = vadd.f32 1.0, %v7643_v50  ;;  %7652 = vtanh.f32 %v5686_v45  ;;  %v5737_v25 = vmul.f32 0.7978846, %v5425_v42  ;;  %7193 = vst [vmem:[%s15559_s5 + $0x350] sm:$0xff] %v6881_v16  ;;  %v16283_v43 = vld [vmem:[#allocation68_spill] sm:$0xff] }
 0x3be   :  { %3701 = vmatprep.subr.mxu0 %v16278_v28  ;;  %v4802_v51 = vmul.f32 %v4490_v49, %v11844_v26  ;;  %v16280_v48 = vmax.f32 %v11260_v57, 0.0  ;;  %v16281_v1 = vmax.f32 %v11267_v62, 0.0  ;;  %v6570_v7 = vadd.f32 1.0, %v7645_v30  ;;  %v11899_v57 = vpop.f32.mrf.mxu1  ;;  %7559 = vmatmul.mubr.msk.f32.gmra.mxu1 %vm1478_vm3, %v11415_v8  ;;  %v11931_v28 = vpop.f32.mrf.mxu0 }
 0x3bf   :  { %3802 = vmatprep.subr.mxu1 %v16279_v9  ;;  %7654 = vtanh.f32 %v5735_v54  ;;  %v5112_v31 = vmul.f32 0.044715, %v4800_v47  ;;  %v4539_v15 = vmul.f32 %v11859_v23, %v11859_v23  ;;  %v7647_v62 = vpop.eup %7646  ;;  %v6880_v2 = vmul.f32 %v6568_v61, %v11819_v56  ;;  %3547 = vmatprep.mubr.f32.mxu0 %v16129_v14 }
 0x3c0   :  { %3702 = vmatpush1.msra.mxu0 %v16280_v48  ;;  %3803 = vmatpush1.msra.mxu1 %v16281_v1  ;;  %v5997_v45 = vmul.f32 0.5, %v11702_v10  ;;  %7656 = vtanh.f32 %v5737_v25  ;;  %v5114_v42 = vmul.f32 0.044715, %v4802_v51  ;;  %v16282_v49 = vmax.f32 %v11270_v17, 0.0  ;;  %v11945_v25 = vpop.f32.mrf.mxu1 }
 0x3c1   :  { %v16284_v21 = vmax.f32 %v16283_v43, 0.0  ;;  %v6882_v50 = vmul.f32 %v6570_v7, %v5946_v11  ;;  %v6619_v16 = vadd.f32 1.0, %v7647_v62  ;;  %v5424_v54 = vadd.f32 %v5112_v31, %v11833_v32  ;;  %7192 = vst [vmem:[%s15559_s5 + $0x348] sm:$0xff] %v6880_v2  ;;  %v7649_v9 = vpop.eup %7648  ;;  %3648 = vmatprep.mubr.f32.mxu1 %v16129_v14  ;;  %7552 = vmatmul.mubr.msk.f32.gmra.mxu0 %vm1478_vm3, %v11468_v19 }
 0x3c2   :  { %3703 = vmatprep.subr.mxu0 %v16282_v49  ;;  %v4851_v47 = vmul.f32 %v4539_v15, %v11859_v23  ;;  %v5426_v17 = vadd.f32 %v5114_v42, %v11844_v26  ;;  %v11919_v10 = vadd.f32 %v11679_v55, %v11846_v44  ;;  %v11923_v56 = vadd.f32 %v11704_v3, %v11846_v44  ;;  %v11977_v49 = vpop.f32.mrf.mxu1 }
 0x3c3   :  { %3804 = vmatprep.subr.mxu1 %v16284_v21  ;;  %v11927_v11 = vadd.f32 %v11706_v0, %v11846_v44  ;;  %v16285_v8 = vmax.f32 %v11303_v24, 0.0  ;;  %7194 = vst [vmem:[%s15559_s5 + $0x358] sm:$0xff] %v6882_v50  ;;  %v6931_v55 = vmul.f32 %v6619_v16, %v5995_v27  ;;  %v5736_v30 = vmul.f32 0.7978846, %v5424_v54  ;;  %7560 = vmatmul.mubr.msk.f32.gmra.mxu1 %vm1478_vm3, %v11468_v19 }
 0x3c4   :  { %v5163_v61 = vmul.f32 0.044715, %v4851_v47  ;;  %v11938_v3 = vadd.f32 %v11721_v63, %v11442_v36  ;;  %v16286_v0 = vmax.f32 %v11308_v38, 0.0  ;;  %v16287_v24 = vmax.f32 %v11312_v4, 0.0  ;;  %3553 = vmatprep.mubr.f32.mxu0 %v16129_v14  ;;  %3654 = vmatprep.mubr.f32.mxu1 %v16129_v14 }
 0x3c5   :  { %3704 = vmatpush1.msra.mxu0 %v16285_v8  ;;  %v6621_v51 = vadd.f32 1.0, %v7649_v9  ;;  %v5996_v48 = vmul.f32 0.5, %v11712_v34  ;;  %v5738_v1 = vmul.f32 0.7978846, %v5426_v17  ;;  %v4541_v27 = vmul.f32 %v11919_v10, %v11919_v10  ;;  %7243 = vst [vmem:[%s15559_s5 + $0x4e0] sm:$0xff] %v6931_v55  ;;  %v7651_v15 = vpop.eup %7650 }
 0x3c6   :  { %3805 = vmatpush1.msra.mxu1 %v16286_v0  ;;  %7580 = vmatprep.subr.msk.mxu0 %vm285_vm0, %v16287_v24  ;;  %v16288_v7 = vmax.f32 %v11316_v59, 0.0  ;;  %v5998_v38 = vmul.f32 0.5, %v11772_v53  ;;  %7658 = vtanh.f32 %v5736_v30  ;;  %v5475_v4 = vadd.f32 %v5163_v61, %v11859_v23  ;;  %v11970_v53 = vpop.f32.mrf.mxu0 }
 0x3c7   :  { %v4540_v34 = vmul.f32 %v11923_v56, %v11923_v56  ;;  %v6933_v59 = vmul.f32 %v6621_v51, %v5997_v45  ;;  %7660 = vtanh.f32 %v5738_v1  ;;  %v4853_v63 = vmul.f32 %v4541_v27, %v11919_v10  ;;  %7553 = vmatmul.mubr.msk.f32.gmra.mxu0 %vm1478_vm3, %v11517_v20  ;;  %7561 = vmatmul.mubr.msk.f32.gmra.mxu1 %vm1478_vm3, %v11517_v20 }
 0x3c8   :  { %7588 = vmatprep.subr.msk.mxu1 %vm285_vm0, %v16288_v7  ;;  %v4542_v31 = vmul.f32 %v11927_v11, %v11927_v11  ;;  %v6047_v62 = vmul.f32 0.5, %v11780_v46  ;;  %v5787_v2 = vmul.f32 0.7978846, %v5475_v4  ;;  %v4283_v45 = vmul.f32 %v11938_v3, %v11938_v3  ;;  %3559 = vmatprep.mubr.f32.mxu0 %v16129_v14  ;;  %v11999_v9 = vpop.f32.mrf.mxu0 }
 0x3c9   :  { %v4852_v42 = vmul.f32 %v4540_v34, %v11923_v56  ;;  %7245 = vst [vmem:[%s15559_s5 + $0x4f0] sm:$0xff] %v6933_v59  ;;  %v6620_v19 = vadd.f32 1.0, %v7651_v15  ;;  %v6049_v43 = vmul.f32 0.5, %v11784_v60  ;;  %v5165_v21 = vmul.f32 0.044715, %v4853_v63  ;;  %3660 = vmatprep.mubr.f32.mxu1 %v16129_v14  ;;  %v12023_v15 = vld [vmem:[%s15558_s1 + $0x20] sm:$0xff] }
 0x3ca   :  { %v4854_v46 = vmul.f32 %v4542_v31, %v11927_v11  ;;  %7662 = vtanh.f32 %v5787_v2  ;;  %v4595_v16 = vmul.f32 %v4283_v45, %v11938_v3  ;;  %v11987_v54 = vadd.f32 %v11723_v37, %v11442_v36  ;;  %v7653_v37 = vpop.eup %7652  ;;  %v12028_v2 = vpop.f32.mrf.mxu0 }
 0x3cb   :  { %v5164_v50 = vmul.f32 0.044715, %v4852_v42  ;;  %v6932_v47 = vmul.f32 %v6620_v19, %v5996_v48  ;;  %v5477_v17 = vadd.f32 %v5165_v21, %v11919_v10  ;;  %v11994_v60 = vadd.f32 %v11733_v33, %v11442_v36  ;;  %v12008_v33 = vpop.f32.mrf.mxu1  ;;  %7554 = vmatmul.mubr.msk.f32.gmra.mxu0 %vm1478_vm3, %v11248_v6  ;;  %7562 = vmatmul.mubr.msk.f32.gmra.mxu1 %vm1478_vm3, %v12023_v15 }
 0x3cc   :  { %v5166_v8 = vmul.f32 0.044715, %v4854_v46  ;;  %v12002_v55 = vmul.f32 0.5, %v11833_v32  ;;  %v4907_v61 = vmul.f32 0.044715, %v4595_v16  ;;  %v4285_v0 = vmul.f32 %v11987_v54, %v11987_v54  ;;  %v7655_v24 = vpop.eup %7654  ;;  %3565 = vmatprep.mubr.f32.mxu0 %v16129_v14  ;;  %3666 = vmatprep.mubr.f32.mxu1 %v16129_v14  ;;  %v16289_v16 = vld [vmem:[#allocation126_spill] sm:$0xff] }
 0x3cd   :  { %v5476_v30 = vadd.f32 %v5164_v50, %v11923_v56  ;;  %7244 = vst [vmem:[%s15559_s5 + $0x4e8] sm:$0xff] %v6932_v47  ;;  %v6622_v20 = vadd.f32 1.0, %v7653_v37  ;;  %v5789_v51 = vmul.f32 0.7978846, %v5477_v17  ;;  %v4284_v48 = vmul.f32 %v11994_v60, %v11994_v60  ;;  %v7657_v1 = vpop.eup %7656  ;;  %v12071_v37 = vpop.f32.mrf.mxu0 }
 0x3ce   :  { %v5478_v32 = vadd.f32 %v5166_v8, %v11927_v11  ;;  %v6671_v27 = vadd.f32 1.0, %v7655_v24  ;;  %v5219_v4 = vadd.f32 %v4907_v61, %v11938_v3  ;;  %v4597_v34 = vmul.f32 %v4285_v0, %v11987_v54 }
 0x3cf   :  { %v5788_v7 = vmul.f32 0.7978846, %v5476_v30  ;;  %v6934_v59 = vmul.f32 %v6622_v20, %v5998_v38  ;;  %v6673_v63 = vadd.f32 1.0, %v7657_v1  ;;  %7664 = vtanh.f32 %v5789_v51  ;;  %v12031_v38 = vpop.f32.mrf.mxu1 }
 0x3d0   :  { %v5790_v31 = vmul.f32 0.7978846, %v5478_v32  ;;  %v6983_v42 = vmul.f32 %v6671_v27, %v6047_v62  ;;  %v5531_v45 = vmul.f32 0.7978846, %v5219_v4  ;;  %v4909_v6 = vmul.f32 0.044715, %v4597_v34 }
 0x3d1   :  { %7666 = vtanh.f32 %v5788_v7  ;;  %7246 = vst [vmem:[%s15559_s5 + $0x4f8] sm:$0xff] %v6934_v59  ;;  %v6985_v19 = vmul.f32 %v6673_v63, %v6049_v43  ;;  %v6050_v21 = vmul.f32 0.5, %v11844_v26  ;;  %v4596_v46 = vmul.f32 %v4284_v48, %v11994_v60  ;;  %v12053_v26 = vld [vmem:[%s15558_s1 + $0x28] sm:$0x7f]  ;;  %v12096_v27 = vld [vmem:[%s15558_s1] sm:$0xff] }
 0x3d2   :  { %7668 = vtanh.f32 %v5790_v31  ;;  %7295 = vst [vmem:[%s15559_s5 + $0x680] sm:$0xff] %v6983_v42  ;;  %v5221_v62 = vadd.f32 %v4909_v6, %v11987_v54  ;;  %v12044_v50 = vadd.f32 %v11735_v40, %v11442_v36  ;;  %v12048_v47 = vadd.f32 %v11759_v41, %v16289_v16  ;;  %7555 = vmatmul.mubr.msk.f32.gmra.mxu0 %vm1478_vm3, %v12053_v26  ;;  %v16290_v59 = vld [vmem:[#allocation83_spill] sm:$0xff]  ;;  %v12109_v31 = vpop.f32.mrf.mxu0 }
 0x3d3   :  { %7670 = vtanh.f32 %v5531_v45  ;;  %v7659_v43 = vpop.eup %7658  ;;  %7297 = vst [vmem:[%s15559_s5 + $0x690] sm:$0xff] %v6985_v19  ;;  %v6099_v40 = vmul.f32 0.5, %v11859_v23  ;;  %v12062_v17 = vmul.f32 0.5, %v11919_v10  ;;  %v4908_v41 = vmul.f32 0.044715, %v4596_v46  ;;  %7563 = vmatmul.mubr.msk.f32.gmra.mxu1 %vm1478_vm3, %v12053_v26  ;;  %3737 = vmatprep.mubr.f32.mxu0 %v16129_v14  ;;  %v16292_v19 = vld [vmem:[#allocation70_spill] sm:$0xff] }
 0x3d4   :  { %v12066_v8 = vadd.f32 %v11761_v35, %v16289_v16  ;;  %v7661_v30 = vpop.eup %7660  ;;  %v6672_v61 = vadd.f32 1.0, %v7659_v43  ;;  %v5533_v0 = vmul.f32 0.7978846, %v5221_v62  ;;  %v4286_v23 = vmul.f32 %v12044_v50, %v12044_v50  ;;  %3838 = vmatprep.mubr.f32.mxu1 %v16129_v14  ;;  %v12080_v35 = vpop.f32.mrf.mxu1  ;;  %v16294_v46 = vld [vmem:[#allocation85_spill] sm:$0xff] }
 0x3d5   :  { %v12077_v10 = vadd.f32 %v11790_v22, %v16289_v16  ;;  %v6674_v24 = vadd.f32 1.0, %v7661_v30  ;;  %v5220_v20 = vadd.f32 %v4908_v41, %v11994_v60  ;;  %v4335_v51 = vmul.f32 %v12048_v47, %v12048_v47 }
 0x3d6   :  { %v12087_v32 = vadd.f32 %v11792_v39, %v16289_v16  ;;  %v6984_v48 = vmul.f32 %v6672_v61, %v12002_v55  ;;  %7672 = vtanh.f32 %v5533_v0  ;;  %v4598_v22 = vmul.f32 %v4286_v23, %v12044_v50  ;;  %7566 = vmatmul.mubr.msk.f32.vlgmr.msra.gmra.mxu0 %vm1478_vm3, %v12096_v27  ;;  %v12122_v43 = vpop.f32.mrf.mxu1  ;;  %v16296_v0 = vld [vmem:[#allocation72_spill] sm:$0xff] }
 0x3d7   :  { %v4337_v1 = vmul.f32 %v12066_v8, %v12066_v8  ;;  %v7663_v7 = vpop.eup %7662  ;;  %v6986_v4 = vmul.f32 %v6674_v24, %v6050_v21  ;;  %v12101_v39 = vmul.f32 0.5, %v11923_v56  ;;  %v5532_v55 = vmul.f32 0.7978846, %v5220_v20  ;;  %7574 = vmatmul.mubr.msk.f32.vlgmr.msra.gmra.mxu1 %vm1478_vm3, %v12096_v27  ;;  %v16298_v24 = vld [vmem:[#allocation87_spill] sm:$0xff]  ;;  %3743 = vmatprep.mubr.f32.mxu0 %v16129_v14 }
 0x3d8   :  { %v4647_v34 = vmul.f32 %v4335_v51, %v12048_v47  ;;  %v16291_v63 = vmax.f32 %v16290_v59, 0.0  ;;  %7296 = vst [vmem:[%s15559_s5 + $0x688] sm:$0xff] %v6984_v48  ;;  %v6723_v42 = vadd.f32 1.0, %v7663_v7  ;;  %v4910_v45 = vmul.f32 0.044715, %v4598_v22  ;;  %v16300_v7 = vld [vmem:[#allocation74_spill] sm:$0xff]  ;;  %3844 = vmatprep.mubr.f32.mxu1 %v16129_v14 }
 0x3d9   :  { %v4649_v56 = vmul.f32 %v4337_v1, %v12066_v8  ;;  %v4336_v6 = vmul.f32 %v12077_v10, %v12077_v10  ;;  %v16293_v21 = vmax.f32 %v16292_v19, 0.0  ;;  %v16295_v62 = vmax.f32 %v16294_v46, 0.0  ;;  %7298 = vst [vmem:[%s15559_s5 + $0x698] sm:$0xff] %v6986_v4  ;;  %v16302_v59 = vld [vmem:[#allocation8_spill] sm:$0xff] }
 0x3da   :  { %7581 = vmatpush1.msk.msra.mxu0 %vm285_vm0, %v16291_v63  ;;  %v6102_v41 = vmul.f32 0.5, %v11927_v11  ;;  %7674 = vtanh.f32 %v5532_v55  ;;  %v4959_v30 = vmul.f32 0.044715, %v4647_v34  ;;  %v4338_v61 = vmul.f32 %v12087_v32, %v12087_v32 }
 0x3db   :  { %7589 = vmatpush1.msk.msra.mxu1 %vm285_vm0, %v16293_v21  ;;  %3903 = vmatprep.subr.mxu0 %v16295_v62  ;;  %v16297_v23 = vmax.f32 %v16296_v0, 0.0  ;;  %v16299_v20 = vmax.f32 %v16298_v24, 0.0  ;;  %v7035_v51 = vmul.f32 %v6723_v42, %v6099_v40  ;;  %v5222_v48 = vadd.f32 %v4910_v45, %v12044_v50  ;;  %v16303_v40 = vld [vmem:[#allocation76_spill] sm:$0xff]  ;;  %v12149_v45 = vpop.f32.mrf.mxu0  ;;  %v16305_v21 = vld [vmem:[#allocation78_spill] sm:$0xff]  ;;  %v12161_v62 = vpop.f32.mrf.mxu1 }
 0x3dc   :  { %v4961_v22 = vmul.f32 0.044715, %v4649_v56  ;;  %v4648_v1 = vmul.f32 %v4336_v6, %v12077_v10  ;;  %v16301_v4 = vmax.f32 %v16300_v7, 0.0  ;;  %v5843_v11 = vmul.f32 0.5, %v11938_v3  ;;  %v7665_v56 = vpop.eup %7664 }
 0x3dd   :  { %4004 = vmatprep.subr.mxu1 %v16297_v23  ;;  %3904 = vmatpush1.msra.mxu0 %v16299_v20  ;;  %v5271_v55 = vadd.f32 %v4959_v30, %v12048_v47  ;;  %v4650_v34 = vmul.f32 %v4338_v61, %v12087_v32  ;;  %v12144_v63 = vadd.f32 %v11806_v29, %v16302_v59  ;;  %v16304_v42 = vmax.f32 %v16303_v40, 0.0  ;;  %v12166_v30 = vld [vmem:[%s15558_s1 + $0x8] sm:$0xff]  ;;  %v16307_v20 = vld [vmem:[#allocation80_spill] sm:$0xff] }
 0x3de   :  { %4005 = vmatpush1.msra.mxu1 %v16301_v4  ;;  %7347 = vst [vmem:[%s15559_s5 + $0x820] sm:$0x7f] %v7035_v51  ;;  %v5534_v3 = vmul.f32 0.7978846, %v5222_v48  ;;  %v5273_v6 = vadd.f32 %v4961_v22, %v12066_v8  ;;  %v4960_v19 = vmul.f32 0.044715, %v4648_v1  ;;  %v12157_v29 = vadd.f32 %v11808_v52, %v16302_v59  ;;  %7567 = vmatmul.mubr.msk.f32.gmra.mxu0 %vm1478_vm3, %v12166_v30  ;;  %v7667_v61 = vpop.eup %7666 }
 0x3df   :  { %3905 = vmatprep.subr.mxu0 %v16304_v42  ;;  %v16306_v46 = vmax.f32 %v16305_v21, 0.0  ;;  %v6725_v0 = vadd.f32 1.0, %v7665_v56  ;;  %v5583_v23 = vmul.f32 0.7978846, %v5271_v55  ;;  %v4962_v24 = vmul.f32 0.044715, %v4650_v34  ;;  %7575 = vmatmul.mubr.msk.f32.gmra.mxu1 %vm1478_vm3, %v12166_v30  ;;  %v7669_v48 = vpop.eup %7668 }
 0x3e0   :  { %v4387_v52 = vmul.f32 %v12144_v63, %v12144_v63  ;;  %v16308_v51 = vmax.f32 %v16307_v20, 0.0  ;;  %v6724_v22 = vadd.f32 1.0, %v7667_v61  ;;  %7676 = vtanh.f32 %v5534_v3  ;;  %v16309_v4 = vld [vmem:[#allocation94_spill] sm:$0xff]  ;;  %v7671_v42 = vpop.eup %7670  ;;  %v16313_v20 = vld [vmem:[#allocation84_spill] sm:$0xff]  ;;  %v12187_v3 = vpop.f32.mrf.mxu0  ;;  %3749 = vmatprep.mubr.f32.mxu0 %v16129_v14  ;;  %3850 = vmatprep.mubr.f32.mxu1 %v16129_v14 }
 0x3e1   :  { %4006 = vmatprep.subr.mxu1 %v16306_v46  ;;  %v5585_v1 = vmul.f32 0.7978846, %v5273_v6  ;;  %v5272_v7 = vadd.f32 %v4960_v19, %v12077_v10  ;;  %v16310_v40 = vmax.f32 %v16309_v4, 0.0  ;;  %v16311_v55 = vld [vmem:[#allocation82_spill] sm:$0xff]  ;;  %v7037_v56 = vmul.f32 %v6725_v0, %v12062_v17  ;;  %v12191_v4 = vpop.f32.mrf.mxu1  ;;  %v12197_v17 = vld [vmem:[%s15558_s1 + $0x10] sm:$0xff] }
 0x3e2   :  { %3906 = vmatpush1.msra.mxu0 %v16308_v51  ;;  %v16312_v34 = vmax.f32 %v16311_v55, 0.0  ;;  %v6726_v21 = vadd.f32 1.0, %v7669_v48  ;;  %7678 = vtanh.f32 %v5583_v23  ;;  %v5274_v46 = vadd.f32 %v4962_v24, %v12087_v32 }
 0x3e3   :  { %4007 = vmatpush1.msra.mxu1 %v16310_v40  ;;  %v16314_v61 = vmax.f32 %v16313_v20, 0.0  ;;  %v7036_v6 = vmul.f32 %v6724_v22, %v12101_v39  ;;  %v6467_v19 = vadd.f32 1.0, %v7671_v42  ;;  %7680 = vtanh.f32 %v5585_v1  ;;  %7568 = vmatmul.mubr.msk.f32.gmra.mxu0 %vm1478_vm3, %v12197_v17  ;;  %7349 = vst [vmem:[%s15559_s5 + $0x830] sm:$0x7f] %v7037_v56  ;;  %v12241_v56 = vpop.f32.mrf.mxu1 }
 0x3e4   :  { %7596 = vmatprep.subr.msk.mxu0 %vm285_vm0, %v16312_v34  ;;  %v5584_v51 = vmul.f32 0.7978846, %v5272_v7  ;;  %v7038_v39 = vmul.f32 %v6726_v21, %v6102_v41  ;;  %v5845_v0 = vmul.f32 0.5, %v11987_v54  ;;  %v5586_v23 = vmul.f32 0.7978846, %v5274_v46  ;;  %7576 = vmatmul.mubr.msk.f32.gmra.mxu1 %vm1478_vm3, %v12197_v17  ;;  %v7673_v54 = vpop.eup %7672  ;;  %v12227_v7 = vpop.f32.mrf.mxu0  ;;  %v16316_v34 = vld [vmem:[#allocation7_spill] sm:$0xff] }
 0x3e5   :  { %7604 = vmatprep.subr.msk.mxu1 %vm285_vm0, %v16314_v61  ;;  %v4699_v24 = vmul.f32 %v4387_v52, %v12144_v63  ;;  %3755 = vmatprep.mubr.f32.mxu0 %v16129_v14  ;;  %7348 = vst [vmem:[%s15559_s5 + $0x828] sm:$0x7f] %v7036_v6  ;;  %v6779_v48 = vmul.f32 %v6467_v19, %v5843_v11  ;;  %v5844_v22 = vmul.f32 0.5, %v11994_v60  ;;  %v16315_v11 = vld [vmem:[#allocation138_spill] sm:$0xff]  ;;  %v6469_v40 = vadd.f32 1.0, %v7673_v54  ;;  %v12246_v21 = vld [vmem:[%s15558_s1 + $0x18] sm:$0xff] }
 0x3e6   :  { %7682 = vtanh.f32 %v5584_v51  ;;  %v4389_v41 = vmul.f32 %v12157_v29, %v12157_v29  ;;  %3856 = vmatprep.mubr.f32.mxu1 %v16129_v14  ;;  %7350 = vst [vmem:[%s15559_s5 + $0x838] sm:$0x7f] %v7038_v39  ;;  %v12221_v1 = vadd.f32 %v11826_v5, %v16302_v59  ;;  %v12225_v60 = vadd.f32 %v16315_v11, %v16302_v59  ;;  %v12275_v11 = vpop.f32.mrf.mxu1 }
 0x3e7   :  { %7684 = vtanh.f32 %v5586_v23  ;;  %v5011_v52 = vmul.f32 0.044715, %v4699_v24  ;;  %7091 = vst [vmem:[%s15559_s5 + $0x20] sm:$0xff] %v6779_v48  ;;  %v12235_v42 = vadd.f32 %v11849_v13, %v16316_v34  ;;  %v12239_v5 = vadd.f32 %v11865_v58, %v16316_v34  ;;  %7569 = vmatmul.mubr.msk.f32.gmra.mxu0 %vm1478_vm3, %v12246_v21  ;;  %v7675_v61 = vpop.eup %7674 }
 0x3e8   :  { %v4701_v55 = vmul.f32 %v4389_v41, %v12157_v29  ;;  %v5846_v46 = vmul.f32 0.5, %v12044_v50  ;;  %v4388_v13 = vmul.f32 %v12221_v1, %v12221_v1  ;;  %v4390_v58 = vmul.f32 %v12225_v60, %v12225_v60  ;;  %7577 = vmatmul.mubr.msk.f32.gmra.mxu1 %vm1478_vm3, %v12246_v21  ;;  %3761 = vmatprep.mubr.f32.mxu0 %v16129_v14  ;;  %v12265_v41 = vpop.f32.mrf.mxu0 }
 0x3e9   :  { %v5323_v20 = vadd.f32 %v5011_v52, %v12144_v63  ;;  %v6781_v6 = vmul.f32 %v6469_v40, %v5845_v0  ;;  %v5895_v19 = vmul.f32 0.5, %v12048_v47  ;;  %v4439_v50 = vmul.f32 %v12235_v42, %v12235_v42  ;;  %3862 = vmatprep.mubr.f32.mxu1 %v16129_v14 }
 0x3ea   :  { %v5013_v51 = vmul.f32 0.044715, %v4701_v55  ;;  %v6468_v39 = vadd.f32 1.0, %v7675_v61  ;;  %v4700_v24 = vmul.f32 %v4388_v13, %v12221_v1  ;;  %v4702_v48 = vmul.f32 %v4390_v58, %v12225_v60 }
 0x3eb   :  { %v5635_v23 = vmul.f32 0.7978846, %v5323_v20  ;;  %7093 = vst [vmem:[%s15559_s5 + $0x30] sm:$0xff] %v6781_v6  ;;  %v5897_v47 = vmul.f32 0.5, %v12066_v8  ;;  %v4751_v54 = vmul.f32 %v4439_v50, %v12235_v42  ;;  %v4441_v52 = vmul.f32 %v12239_v5, %v12239_v5  ;;  %7570 = vmatmul.mubr.msk.f32.gmra.mxu0 %vm1478_vm3, %v12023_v15 }
 0x3ec   :  { %v5325_v0 = vadd.f32 %v5013_v51, %v12157_v29  ;;  %v6780_v40 = vmul.f32 %v6468_v39, %v5844_v22  ;;  %v5012_v55 = vmul.f32 0.044715, %v4700_v24  ;;  %v5014_v20 = vmul.f32 0.044715, %v4702_v48  ;;  %7578 = vmatmul.mubr.msk.f32.gmra.mxu1 %vm1478_vm3, %v12023_v15  ;;  %3767 = vmatprep.mubr.f32.mxu0 %v16129_v14  ;;  %v12298_v39 = vpop.f32.mrf.mxu0 }
 0x3ed   :  { %7686 = vtanh.f32 %v5635_v23  ;;  %v5896_v8 = vmul.f32 0.5, %v12077_v10  ;;  %v5063_v58 = vmul.f32 0.044715, %v4751_v54  ;;  %v4753_v61 = vmul.f32 %v4441_v52, %v12239_v5  ;;  %3868 = vmatprep.mubr.f32.mxu1 %v16129_v14  ;;  %v7677_v6 = vpop.eup %7676  ;;  %16317 = vst [vmem:[#allocation3_spill] sm:$0xff] %v12298_v39  ;;  %v12301_v54 = vpop.f32.mrf.mxu1 }
 0x3ee   :  { %v5637_v13 = vmul.f32 0.7978846, %v5325_v0  ;;  %7092 = vst [vmem:[%s15559_s5 + $0x28] sm:$0xff] %v6780_v40  ;;  %v5324_v22 = vadd.f32 %v5012_v55, %v12221_v1  ;;  %v5326_v51 = vadd.f32 %v5014_v20, %v12225_v60  ;;  %v12292_v50 = vadd.f32 %v11890_v18, %v16316_v34  ;;  %16318 = vst [vmem:[#allocation133_spill] sm:$0xff] %v12301_v54 }
 0x3ef   :  { %v12296_v10 = vadd.f32 %v11899_v57, %v16316_v34  ;;  %v7679_v23 = vpop.eup %7678  ;;  %v6470_v24 = vadd.f32 1.0, %v7677_v6  ;;  %v5375_v48 = vadd.f32 %v5063_v58, %v12235_v42  ;;  %v5065_v0 = vmul.f32 0.044715, %v4753_v61  ;;  %7571 = vmatmul.mubr.msk.f32.gmra.mxu0 %vm1478_vm3, %v12053_v26 }
 0x3f0   :  { %7688 = vtanh.f32 %v5637_v13  ;;  %v7681_v52 = vpop.eup %7680  ;;  %v6519_v18 = vadd.f32 1.0, %v7679_v23  ;;  %v5636_v40 = vmul.f32 0.7978846, %v5324_v22  ;;  %v5638_v55 = vmul.f32 0.7978846, %v5326_v51  ;;  %7579 = vmatmul.mubr.msk.f32.gmra.mxu1 %vm1478_vm3, %v12053_v26  ;;  %3939 = vmatprep.mubr.f32.mxu0 %v16129_v14  ;;  %v12314_v23 = vpop.f32.mrf.mxu0 }
 0x3f1   :  { %v4440_v57 = vmul.f32 %v12292_v50, %v12292_v50  ;;  %v6782_v20 = vmul.f32 %v6470_v24, %v5846_v46  ;;  %v6521_v13 = vadd.f32 1.0, %v7681_v52  ;;  %v5687_v58 = vmul.f32 0.7978846, %v5375_v48  ;;  %4040 = vmatprep.mubr.f32.mxu1 %v16129_v14 }
 0x3f2   :  { %v5377_v61 = vadd.f32 %v5065_v0, %v12239_v5  ;;  %v6831_v54 = vmul.f32 %v6519_v18, %v5895_v19  ;;  %v5898_v22 = vmul.f32 0.5, %v12087_v32  ;;  %7690 = vtanh.f32 %v5636_v40  ;;  %v12319_v0 = vpop.f32.mrf.mxu1 }
 0x3f3   :  { %v7683_v6 = vpop.eup %7682  ;;  %v4752_v51 = vmul.f32 %v4440_v57, %v12292_v50  ;;  %7094 = vst [vmem:[%s15559_s5 + $0x38] sm:$0xff] %v6782_v20  ;;  %v6833_v46 = vmul.f32 %v6521_v13, %v5897_v47  ;;  %7692 = vtanh.f32 %v5638_v55  ;;  %7582 = vmatmul.mubr.msk.f32.vlgmr.msra.gmra.mxu0 %vm1478_vm3, %v12096_v27  ;;  %v4442_v52 = vmul.f32 %v12296_v10, %v12296_v10  ;;  %v16319_v47 = vld [vmem:[#allocation86_spill] sm:$0xff]  ;;  %v16321_v55 = vld [vmem:[#allocation88_spill] sm:$0xff]  ;;  %v16323_v20 = vld [vmem:[#allocation89_spill] sm:$0xff] }
 0x3f4   :  { %v7685_v39 = vpop.eup %7684  ;;  %v6520_v24 = vadd.f32 1.0, %v7683_v6  ;;  %v5689_v48 = vmul.f32 0.7978846, %v5377_v61  ;;  %7143 = vst [vmem:[%s15559_s5 + $0x1c0] sm:$0xff] %v6831_v54  ;;  %7694 = vtanh.f32 %v5687_v58  ;;  %7590 = vmatmul.mubr.msk.f32.vlgmr.msra.gmra.mxu1 %vm1478_vm3, %v12096_v27  ;;  %v16320_v18 = vmax.f32 %v16319_v47, 0.0  ;;  %3945 = vmatprep.mubr.f32.mxu0 %v16129_v14 }
 0x3f5   :  { %v6522_v32 = vadd.f32 1.0, %v7685_v39  ;;  %v5064_v19 = vmul.f32 0.044715, %v4752_v51  ;;  %7145 = vst [vmem:[%s15559_s5 + $0x1d0] sm:$0xff] %v6833_v46  ;;  %v5947_v54 = vmul.f32 0.5, %v12144_v63  ;;  %v12339_v39 = vadd.f32 %v11931_v28, %v11763_v12  ;;  %v16325_v28 = vld [vmem:[#allocation90_spill] sm:$0xff]  ;;  %4046 = vmatprep.mubr.f32.mxu1 %v16129_v14 }
 0x3f6   :  { %7597 = vmatpush1.msk.msra.mxu0 %vm285_vm0, %v16320_v18  ;;  %v6832_v40 = vmul.f32 %v6520_v24, %v5896_v8  ;;  %7696 = vtanh.f32 %v5689_v48  ;;  %v16322_v57 = vmax.f32 %v16321_v55, 0.0  ;;  %v16324_v13 = vmax.f32 %v16323_v20, 0.0  ;;  %v12352_v8 = vpop.f32.mrf.mxu0  ;;  %v12370_v48 = vpop.f32.mrf.mxu1 }
 0x3f7   :  { %v6834_v58 = vmul.f32 %v6522_v32, %v5898_v22  ;;  %v5376_v61 = vadd.f32 %v5064_v19, %v12292_v50  ;;  %v4754_v6 = vmul.f32 %v4442_v52, %v12296_v10  ;;  %v12350_v63 = vadd.f32 %v11945_v25, %v11763_v12  ;;  %v16327_v32 = vld [vmem:[#allocation91_spill] sm:$0xff]  ;;  %v16329_v52 = vld [vmem:[#allocation92_spill] sm:$0xff]  ;;  %7583 = vmatmul.mubr.msk.f32.gmra.mxu0 %vm1478_vm3, %v12166_v30 }
 0x3f8   :  { %7605 = vmatpush1.msk.msra.mxu1 %vm285_vm0, %v16322_v57  ;;  %4105 = vmatprep.subr.mxu0 %v16324_v13  ;;  %v16326_v51 = vmax.f32 %v16325_v28, 0.0  ;;  %7144 = vst [vmem:[%s15559_s5 + $0x1c8] sm:$0xff] %v6832_v40  ;;  %v5949_v46 = vmul.f32 0.5, %v12157_v29  ;;  %v4491_v22 = vmul.f32 %v12339_v39, %v12339_v39  ;;  %v12364_v24 = vadd.f32 %v11970_v53, %v11763_v12  ;;  %v16331_v13 = vld [vmem:[#allocation93_spill] sm:$0xff] }
 0x3f9   :  { %v12368_v25 = vadd.f32 %v11977_v49, %v11763_v12  ;;  %v16328_v19 = vmax.f32 %v16327_v32, 0.0  ;;  %v16330_v47 = vmax.f32 %v16329_v52, 0.0  ;;  %7146 = vst [vmem:[%s15559_s5 + $0x1d8] sm:$0xff] %v6834_v58  ;;  %v12380_v29 = vmul.f32 0.5, %v12221_v1  ;;  %v12400_v32 = vpop.f32.mrf.mxu0  ;;  %7591 = vmatmul.mubr.msk.f32.gmra.mxu1 %vm1478_vm3, %v12166_v30  ;;  %3951 = vmatprep.mubr.f32.mxu0 %v16129_v14 }
 0x3fa   :  { %4206 = vmatprep.subr.mxu1 %v16326_v51  ;;  %v5688_v53 = vmul.f32 0.7978846, %v5376_v61  ;;  %v5066_v18 = vmul.f32 0.044715, %v4754_v6  ;;  %v4493_v49 = vmul.f32 %v12350_v63, %v12350_v63  ;;  %v7687_v40 = vpop.eup %7686  ;;  %v12387_v55 = vmul.f32 0.5, %v12225_v60  ;;  %v16333_v61 = vld [vmem:[#allocation112_spill] sm:$0xff]  ;;  %4052 = vmatprep.mubr.f32.mxu1 %v16129_v14 }
 0x3fb   :  { %4106 = vmatpush1.msra.mxu0 %v16328_v19  ;;  %4207 = vmatpush1.msra.mxu1 %v16330_v47  ;;  %v4803_v57 = vmul.f32 %v4491_v22, %v12339_v39  ;;  %v4492_v20 = vmul.f32 %v12364_v24, %v12364_v24  ;;  %v4494_v1 = vmul.f32 %v12368_v25, %v12368_v25  ;;  %v16332_v58 = vmax.f32 %v16331_v13, 0.0 }
 0x3fc   :  { %v16334_v6 = vmax.f32 %v16333_v61, 0.0  ;;  %v6571_v28 = vadd.f32 1.0, %v7687_v40  ;;  %7698 = vtanh.f32 %v5688_v53  ;;  %v5378_v51 = vadd.f32 %v5066_v18, %v12296_v10  ;;  %16335 = vst [vmem:[#allocation2_spill] sm:$0xff] %v12400_v32  ;;  %v12409_v53 = vpop.f32.mrf.mxu1  ;;  %v16336_v18 = vld [vmem:[#allocation111_spill] sm:$0xff]  ;;  %7584 = vmatmul.mubr.msk.f32.gmra.mxu0 %vm1478_vm3, %v12197_v17 }
 0x3fd   :  { %4107 = vmatprep.subr.mxu0 %v16332_v58  ;;  %v4805_v60 = vmul.f32 %v4493_v49, %v12350_v63  ;;  %v5999_v22 = vmul.f32 0.5, %v12235_v42  ;;  %v5115_v19 = vmul.f32 0.044715, %v4803_v57  ;;  %v4804_v52 = vmul.f32 %v4492_v20, %v12364_v24  ;;  %v16338_v49 = vld [vmem:[#allocation120_spill] sm:$0xff]  ;;  %v7689_v58 = vpop.eup %7688  ;;  %7592 = vmatmul.mubr.msk.f32.gmra.mxu1 %vm1478_vm3, %v12197_v17 }
 0x3fe   :  { %4208 = vmatprep.subr.mxu1 %v16334_v6  ;;  %v4806_v47 = vmul.f32 %v4494_v1, %v12368_v25  ;;  %v16337_v40 = vmax.f32 %v16336_v18, 0.0  ;;  %v16339_v13 = vmax.f32 %v16338_v49, 0.0  ;;  %v6883_v61 = vmul.f32 %v6571_v28, %v5947_v54  ;;  %3957 = vmatprep.mubr.f32.mxu0 %v16129_v14 }
 0x3ff   :  { %v5690_v6 = vmul.f32 0.7978846, %v5378_v51  ;;  %v5117_v32 = vmul.f32 0.044715, %v4805_v60  ;;  %v12417_v42 = vadd.f32 %v11999_v9, %v11846_v44  ;;  %v6573_v57 = vadd.f32 1.0, %v7689_v58  ;;  %v12429_v51 = vpop.f32.mrf.mxu0  ;;  %v7691_v60 = vpop.eup %7690  ;;  %4058 = vmatprep.mubr.f32.mxu1 %v16129_v14 }
 0x400   :  { %4108 = vmatpush1.msra.mxu0 %v16337_v40  ;;  %4209 = vmatpush1.msra.mxu1 %v16339_v13  ;;  %v5427_v20 = vadd.f32 %v5115_v19, %v12339_v39  ;;  %v5116_v1 = vmul.f32 0.044715, %v4804_v52  ;;  %v5118_v18 = vmul.f32 0.044715, %v4806_v47  ;;  %7195 = vst [vmem:[%s15559_s5 + $0x360] sm:$0xff] %v6883_v61  ;;  %v6001_v54 = vmul.f32 0.5, %v12239_v5  ;;  %v12437_v40 = vpop.f32.mrf.mxu1 }
 0x401   :  { %7700 = vtanh.f32 %v5690_v6  ;;  %v5429_v28 = vadd.f32 %v5117_v32, %v12350_v63  ;;  %v4543_v9 = vmul.f32 %v12417_v42, %v12417_v42  ;;  %v6885_v19 = vmul.f32 %v6573_v57, %v5949_v46  ;;  %v7693_v32 = vpop.eup %7692  ;;  %7585 = vmatmul.mubr.msk.f32.gmra.mxu0 %vm1478_vm3, %v12246_v21  ;;  %7593 = vmatmul.mubr.msk.f32.gmra.mxu1 %vm1478_vm3, %v12246_v21 }
 0x402   :  { %v5739_v52 = vmul.f32 0.7978846, %v5427_v20  ;;  %v5428_v47 = vadd.f32 %v5116_v1, %v12364_v24  ;;  %v5430_v5 = vadd.f32 %v5118_v18, %v12368_v25  ;;  %v6572_v49 = vadd.f32 1.0, %v7691_v60  ;;  %v7695_v46 = vpop.eup %7694  ;;  %3963 = vmatprep.mubr.f32.mxu0 %v16129_v14  ;;  %4064 = vmatprep.mubr.f32.mxu1 %v16129_v14 }
 0x403   :  { %v5741_v13 = vmul.f32 0.7978846, %v5429_v28  ;;  %v4855_v58 = vmul.f32 %v4543_v9, %v12417_v42  ;;  %v12444_v61 = vadd.f32 %v12008_v33, %v11846_v44  ;;  %7197 = vst [vmem:[%s15559_s5 + $0x370] sm:$0xff] %v6885_v19  ;;  %v6574_v6 = vadd.f32 1.0, %v7693_v32  ;;  %v7697_v1 = vpop.eup %7696  ;;  %v12450_v9 = vpop.f32.mrf.mxu0 }
 0x404   :  { %7702 = vtanh.f32 %v5739_v52  ;;  %v5740_v57 = vmul.f32 0.7978846, %v5428_v47  ;;  %v5742_v20 = vmul.f32 0.7978846, %v5430_v5  ;;  %v6884_v18 = vmul.f32 %v6572_v49, %v12380_v29  ;;  %v12459_v47 = vpop.f32.mrf.mxu1 }
 0x405   :  { %v6623_v60 = vadd.f32 1.0, %v7695_v46  ;;  %7704 = vtanh.f32 %v5741_v13  ;;  %v5167_v28 = vmul.f32 0.044715, %v4855_v58  ;;  %v6886_v33 = vmul.f32 %v6574_v6, %v12387_v55  ;;  %7586 = vmatmul.mubr.msk.f32.gmra.mxu0 %vm1478_vm3, %v12023_v15  ;;  %7594 = vmatmul.mubr.msk.f32.gmra.mxu1 %vm1478_vm3, %v12023_v15 }
 0x406   :  { %v6625_v19 = vadd.f32 1.0, %v7697_v1  ;;  %7706 = vtanh.f32 %v5740_v57  ;;  %v4545_v52 = vmul.f32 %v12444_v61, %v12444_v61  ;;  %7196 = vst [vmem:[%s15559_s5 + $0x368] sm:$0xff] %v6884_v18  ;;  %v6000_v5 = vmul.f32 0.5, %v12292_v50  ;;  %v12509_v57 = vpop.f32.mrf.mxu1  ;;  %3969 = vmatprep.mubr.f32.mxu0 %v16129_v14  ;;  %4070 = vmatprep.mubr.f32.mxu1 %v16129_v14 }
 0x407   :  { %v6935_v29 = vmul.f32 %v6623_v60, %v5999_v22  ;;  %7708 = vtanh.f32 %v5742_v20  ;;  %v5479_v55 = vadd.f32 %v5167_v28, %v12417_v42  ;;  %7198 = vst [vmem:[%s15559_s5 + $0x378] sm:$0xff] %v6886_v33  ;;  %v12474_v13 = vadd.f32 %v12028_v2, %v11846_v44  ;;  %v12492_v2 = vpop.f32.mrf.mxu0 }
 0x408   :  { %v6937_v32 = vmul.f32 %v6625_v19, %v6001_v54  ;;  %v4857_v49 = vmul.f32 %v4545_v52, %v12444_v61  ;;  %v12478_v58 = vadd.f32 %v12031_v38, %v11846_v44  ;;  %v6002_v50 = vmul.f32 0.5, %v12296_v10 }
 0x409   :  { %7247 = vst [vmem:[%s15559_s5 + $0x500] sm:$0xff] %v6935_v29  ;;  %v5791_v22 = vmul.f32 0.7978846, %v5479_v55  ;;  %v12486_v54 = vadd.f32 %v12071_v37, %v11442_v36  ;;  %v12490_v46 = vadd.f32 %v12080_v35, %v11442_v36  ;;  %v7699_v38 = vpop.eup %7698  ;;  %v4544_v37 = vmul.f32 %v12474_v13, %v12474_v13  ;;  %v12524_v55 = vpop.f32.mrf.mxu0  ;;  %7587 = vmatmul.mubr.msk.f32.gmra.mxu0 %vm1478_vm3, %v12053_v26 }
 0x40a   :  { %7249 = vst [vmem:[%s15559_s5 + $0x510] sm:$0xff] %v6937_v32  ;;  %v5169_v10 = vmul.f32 0.044715, %v4857_v49  ;;  %v4546_v35 = vmul.f32 %v12478_v58, %v12478_v58  ;;  %v12507_v6 = vadd.f32 %v12109_v31, %v11442_v36  ;;  %v6624_v20 = vadd.f32 1.0, %v7699_v38  ;;  %16340 = vst [vmem:[#allocation96_spill] sm:$0xff] %v12524_v55  ;;  %7595 = vmatmul.mubr.msk.f32.gmra.mxu1 %vm1478_vm3, %v12053_v26 }
 0x40b   :  { %v6051_v1 = vmul.f32 0.5, %v12339_v39  ;;  %7710 = vtanh.f32 %v5791_v22  ;;  %v4287_v18 = vmul.f32 %v12486_v54, %v12486_v54  ;;  %v6053_v60 = vmul.f32 0.5, %v12350_v63  ;;  %4141 = vmatprep.mubr.f32.mxu0 %v16129_v14  ;;  %4242 = vmatprep.mubr.f32.mxu1 %v16129_v14 }
 0x40c   :  { %v5481_v28 = vadd.f32 %v5169_v10, %v12444_v61  ;;  %v4856_v31 = vmul.f32 %v4544_v37, %v12474_v13  ;;  %v4858_v33 = vmul.f32 %v4546_v35, %v12478_v58  ;;  %v6936_v19 = vmul.f32 %v6624_v20, %v6000_v5  ;;  %v12532_v5 = vpop.f32.mrf.mxu1 }
 0x40d   :  { %v6052_v52 = vmul.f32 0.5, %v12364_v24  ;;  %v4599_v29 = vmul.f32 %v4287_v18, %v12486_v54  ;;  %v4289_v39 = vmul.f32 %v12490_v46, %v12490_v46  ;;  %v4288_v24 = vmul.f32 %v12507_v6, %v12507_v6  ;;  %16341 = vst [vmem:[#allocation98_spill] sm:$0xff] %v12532_v5  ;;  %7598 = vmatmul.mubr.msk.f32.vlgmr.msra.gmra.mxu0 %vm1478_vm3, %v12096_v27 }
 0x40e   :  { %v7701_v63 = vpop.eup %7700  ;;  %v5793_v32 = vmul.f32 0.7978846, %v5481_v28  ;;  %v5168_v49 = vmul.f32 0.044715, %v4856_v31  ;;  %v5170_v22 = vmul.f32 0.044715, %v4858_v33  ;;  %7606 = vmatmul.mubr.msk.f32.vlgmr.msra.gmra.mxu1 %vm1478_vm3, %v12096_v27  ;;  %4147 = vmatprep.mubr.f32.mxu0 %v16129_v14 }
 0x40f   :  { %7248 = vst [vmem:[%s15559_s5 + $0x508] sm:$0xff] %v6936_v19  ;;  %v6626_v38 = vadd.f32 1.0, %v7701_v63  ;;  %v6054_v10 = vmul.f32 0.5, %v12368_v25  ;;  %v4911_v37 = vmul.f32 0.044715, %v4599_v29  ;;  %v4601_v35 = vmul.f32 %v4289_v39, %v12490_v46  ;;  %v12549_v25 = vpop.f32.mrf.mxu0  ;;  %4248 = vmatprep.mubr.f32.mxu1 %v16129_v14 }
 0x410   :  { %7712 = vtanh.f32 %v5793_v32  ;;  %v5480_v20 = vadd.f32 %v5168_v49, %v12474_v13  ;;  %v5482_v18 = vadd.f32 %v5170_v22, %v12478_v58  ;;  %v4600_v28 = vmul.f32 %v4288_v24, %v12507_v6  ;;  %16342 = vst [vmem:[#allocation95_spill] sm:$0xff] %v12549_v25  ;;  %v12559_v49 = vpop.f32.mrf.mxu1 }
 0x411   :  { %v7703_v31 = vpop.eup %7702  ;;  %v6938_v33 = vmul.f32 %v6626_v38, %v6002_v50  ;;  %v5223_v5 = vadd.f32 %v4911_v37, %v12486_v54  ;;  %v4913_v55 = vmul.f32 0.044715, %v4601_v35  ;;  %v12547_v19 = vadd.f32 %v12122_v43, %v11442_v36  ;;  %16343 = vst [vmem:[#allocation97_spill] sm:$0xff] %v12559_v49  ;;  %v12569_v25 = vpop.f32.mrf.mxu0  ;;  %7599 = vmatmul.mubr.msk.f32.gmra.mxu0 %vm1478_vm3, %v12166_v30 }
 0x412   :  { %v7705_v29 = vpop.eup %7704  ;;  %v6675_v39 = vadd.f32 1.0, %v7703_v31  ;;  %v5792_v63 = vmul.f32 0.7978846, %v5480_v20  ;;  %v5794_v32 = vmul.f32 0.7978846, %v5482_v18  ;;  %v12557_v50 = vadd.f32 %v12149_v45, %v16289_v16  ;;  %7607 = vmatmul.mubr.msk.f32.gmra.mxu1 %vm1478_vm3, %v12166_v30  ;;  %4153 = vmatprep.mubr.f32.mxu0 %v16129_v14 }
 0x413   :  { %v7707_v43 = vpop.eup %7706  ;;  %7250 = vst [vmem:[%s15559_s5 + $0x518] sm:$0xff] %v6938_v33  ;;  %v6677_v27 = vadd.f32 1.0, %v7705_v29  ;;  %v5535_v22 = vmul.f32 0.7978846, %v5223_v5  ;;  %v5225_v24 = vadd.f32 %v4913_v55, %v12490_v46  ;;  %v4912_v38 = vmul.f32 0.044715, %v4600_v28  ;;  %v12580_v5 = vpop.f32.mrf.mxu1  ;;  %4254 = vmatprep.mubr.f32.mxu1 %v16129_v14 }
 0x414   :  { %v7709_v37 = vpop.eup %7708  ;;  %v6987_v35 = vmul.f32 %v6675_v39, %v6051_v1  ;;  %v6676_v45 = vadd.f32 1.0, %v7707_v43  ;;  %7714 = vtanh.f32 %v5792_v63  ;;  %v4290_v20 = vmul.f32 %v12547_v19, %v12547_v19  ;;  %v12609_v43 = vpop.f32.mrf.mxu0 }
 0x415   :  { %v6989_v18 = vmul.f32 %v6677_v27, %v6053_v60  ;;  %v6678_v31 = vadd.f32 1.0, %v7709_v37  ;;  %7716 = vtanh.f32 %v5794_v32  ;;  %v5537_v49 = vmul.f32 0.7978846, %v5225_v24  ;;  %7600 = vmatmul.mubr.msk.f32.gmra.mxu0 %vm1478_vm3, %v12197_v17 }
 0x416   :  { %7299 = vst [vmem:[%s15559_s5 + $0x6a0] sm:$0xff] %v6987_v35  ;;  %v6988_v1 = vmul.f32 %v6676_v45, %v6052_v52  ;;  %7718 = vtanh.f32 %v5535_v22  ;;  %v5224_v55 = vadd.f32 %v4912_v38, %v12507_v6  ;;  %v4602_v60 = vmul.f32 %v4290_v20, %v12547_v19  ;;  %7608 = vmatmul.mubr.msk.f32.gmra.mxu1 %vm1478_vm3, %v12197_v17  ;;  %v12619_v22 = vpop.f32.mrf.mxu1 }
 0x417   :  { %7301 = vst [vmem:[%s15559_s5 + $0x6b0] sm:$0xff] %v6989_v18  ;;  %v6990_v30 = vmul.f32 %v6678_v31, %v6054_v10  ;;  %7720 = vtanh.f32 %v5537_v49  ;;  %v4339_v52 = vmul.f32 %v12557_v50, %v12557_v50  ;;  %v6103_v33 = vmul.f32 0.5, %v12417_v42  ;;  %4159 = vmatprep.mubr.f32.mxu0 %v16129_v14  ;;  %4260 = vmatprep.mubr.f32.mxu1 %v16129_v14 }
 0x418   :  { %v7711_v28 = vpop.eup %7710  ;;  %7300 = vst [vmem:[%s15559_s5 + $0x6a8] sm:$0xff] %v6988_v1  ;;  %v5536_v29 = vmul.f32 0.7978846, %v5224_v55  ;;  %v4914_v39 = vmul.f32 0.044715, %v4602_v60  ;;  %v12595_v63 = vadd.f32 %v12161_v62, %v16289_v16  ;;  %v12603_v49 = vadd.f32 %v12187_v3, %v16289_v16  ;;  %v12643_v1 = vpop.f32.mrf.mxu0 }
 0x419   :  { %7302 = vst [vmem:[%s15559_s5 + $0x6b8] sm:$0xff] %v6990_v30  ;;  %v6727_v10 = vadd.f32 1.0, %v7711_v28  ;;  %v4651_v32 = vmul.f32 %v4339_v52, %v12557_v50  ;;  %v12607_v42 = vadd.f32 %v12191_v4, %v16289_v16  ;;  %v6105_v62 = vmul.f32 0.5, %v12444_v61  ;;  %7601 = vmatmul.mubr.msk.f32.gmra.mxu0 %vm1478_vm3, %v12246_v21  ;;  %v12648_v52 = vpop.f32.mrf.mxu1 }
 0x41a   :  { %7722 = vtanh.f32 %v5536_v29  ;;  %v5226_v27 = vadd.f32 %v4914_v39, %v12547_v19  ;;  %v4341_v3 = vmul.f32 %v12595_v63, %v12595_v63  ;;  %v6104_v24 = vmul.f32 0.5, %v12474_v13  ;;  %7609 = vmatmul.mubr.msk.f32.gmra.mxu1 %vm1478_vm3, %v12246_v21  ;;  %4165 = vmatprep.mubr.f32.mxu0 %v16129_v14 }
 0x41b   :  { %v7039_v4 = vmul.f32 %v6727_v10, %v6103_v33  ;;  %v4963_v38 = vmul.f32 0.044715, %v4651_v32  ;;  %v4340_v17 = vmul.f32 %v12603_v49, %v12603_v49  ;;  %v6106_v61 = vmul.f32 0.5, %v12478_v58  ;;  %4266 = vmatprep.mubr.f32.mxu1 %v16129_v14 }
 0x41c   :  { %v5538_v37 = vmul.f32 0.7978846, %v5226_v27  ;;  %v4653_v35 = vmul.f32 %v4341_v3, %v12595_v63  ;;  %v4342_v45 = vmul.f32 %v12607_v42, %v12607_v42  ;;  %v12637_v31 = vadd.f32 %v12227_v7, %v16302_v59 }
 0x41d   :  { %v7713_v20 = vpop.eup %7712  ;;  %7351 = vst [vmem:[%s15559_s5 + $0x840] sm:$0x7f] %v7039_v4  ;;  %v5275_v18 = vadd.f32 %v4963_v38, %v12557_v50  ;;  %v4652_v13 = vmul.f32 %v4340_v17, %v12603_v49  ;;  %v12641_v58 = vadd.f32 %v12241_v56, %v16302_v59  ;;  %v5847_v7 = vmul.f32 0.5, %v12486_v54  ;;  %v12663_v4 = vpop.f32.mrf.mxu0  ;;  %7602 = vmatmul.mubr.msk.f32.gmra.mxu0 %vm1478_vm3, %v12023_v15 }
 0x41e   :  { %v6729_v55 = vadd.f32 1.0, %v7713_v20  ;;  %7724 = vtanh.f32 %v5538_v37  ;;  %v4965_v60 = vmul.f32 0.044715, %v4653_v35  ;;  %v4654_v30 = vmul.f32 %v4342_v45, %v12607_v42  ;;  %v12672_v35 = vpop.f32.mrf.mxu1  ;;  %7610 = vmatmul.mubr.msk.f32.gmra.mxu1 %vm1478_vm3, %v12023_v15  ;;  %4171 = vmatprep.mubr.f32.mxu0 %v16129_v14 }
 0x41f   :  { %v5587_v56 = vmul.f32 0.7978846, %v5275_v18  ;;  %v4964_v28 = vmul.f32 0.044715, %v4652_v13  ;;  %v4391_v33 = vmul.f32 %v12637_v31, %v12637_v31  ;;  %v4393_v32 = vmul.f32 %v12641_v58, %v12641_v58  ;;  %4272 = vmatprep.mubr.f32.mxu1 %v16129_v14 }
 0x420   :  { %v7041_v29 = vmul.f32 %v6729_v55, %v6105_v62  ;;  %v5277_v39 = vadd.f32 %v4965_v60, %v12595_v63  ;;  %v4966_v10 = vmul.f32 0.044715, %v4654_v30  ;;  %v5849_v21 = vmul.f32 0.5, %v12490_v46 }
 0x421   :  { %v7715_v27 = vpop.eup %7714  ;;  %7726 = vtanh.f32 %v5587_v56  ;;  %v5276_v54 = vadd.f32 %v4964_v28, %v12603_v49  ;;  %v4703_v3 = vmul.f32 %v4391_v33, %v12637_v31  ;;  %v4705_v46 = vmul.f32 %v4393_v32, %v12641_v58 }
 0x422   :  { %v7717_v62 = vpop.eup %7716  ;;  %7353 = vst [vmem:[%s15559_s5 + $0x850] sm:$0x7f] %v7041_v29  ;;  %v6728_v38 = vadd.f32 1.0, %v7715_v27  ;;  %v5589_v17 = vmul.f32 0.7978846, %v5277_v39  ;;  %v5278_v37 = vadd.f32 %v4966_v10, %v12607_v42  ;;  %v12679_v55 = vadd.f32 %v12265_v41, %v16302_v59  ;;  %v12683_v39 = vpop.f32.mrf.mxu0  ;;  %7603 = vmatmul.mubr.msk.f32.gmra.mxu0 %vm1478_vm3, %v12053_v26 }
 0x423   :  { %v7719_v45 = vpop.eup %7718  ;;  %v6730_v20 = vadd.f32 1.0, %v7717_v62  ;;  %v5588_v18 = vmul.f32 0.7978846, %v5276_v54  ;;  %v5015_v13 = vmul.f32 0.044715, %v4703_v3  ;;  %v5848_v27 = vmul.f32 0.5, %v12507_v6 }
 0x424   :  { %v7721_v60 = vpop.eup %7720  ;;  %v7040_v30 = vmul.f32 %v6728_v38, %v6104_v24  ;;  %v6471_v56 = vadd.f32 1.0, %v7719_v45  ;;  %7728 = vtanh.f32 %v5589_v17  ;;  %v5590_v28 = vmul.f32 0.7978846, %v5278_v37  ;;  %v16344_v38 = vld [vmem:[#allocation3_spill] sm:$0xff] }
 0x425   :  { %v7042_v33 = vmul.f32 %v6730_v20, %v6106_v61  ;;  %v6473_v29 = vadd.f32 1.0, %v7721_v60  ;;  %7730 = vtanh.f32 %v5588_v18  ;;  %v5327_v15 = vadd.f32 %v5015_v13, %v12637_v31  ;;  %v12692_v61 = vpop.f32.mrf.mxu1  ;;  %7611 = vmatmul.mubr.msk.f32.gmra.mxu1 %vm1478_vm3, %v12053_v26 }
 0x426   :  { %7352 = vst [vmem:[%s15559_s5 + $0x848] sm:$0x7f] %v7040_v30  ;;  %v6783_v14 = vmul.f32 %v6471_v56, %v5847_v7  ;;  %7732 = vtanh.f32 %v5590_v28  ;;  %v5017_v41 = vmul.f32 0.044715, %v4705_v46  ;;  %v4392_v24 = vmul.f32 %v12679_v55, %v12679_v55 }
 0x427   :  { %v7723_v10 = vpop.eup %7722  ;;  %7354 = vst [vmem:[%s15559_s5 + $0x858] sm:$0x7f] %v7042_v33  ;;  %v6785_v32 = vmul.f32 %v6473_v29, %v5849_v21  ;;  %v5639_v54 = vmul.f32 0.7978846, %v5327_v15  ;;  %v12702_v7 = vadd.f32 %v12275_v11, %v16302_v59  ;;  %v12711_v17 = vadd.f32 %v16344_v38, %v16316_v34  ;;  %v16345_v21 = vld [vmem:[#allocation133_spill] sm:$0xff] }
 0x428   :  { %7095 = vst [vmem:[%s15559_s5 + $0x40] sm:$0xff] %v6783_v14  ;;  %v6472_v3 = vadd.f32 1.0, %v7723_v10  ;;  %v5329_v26 = vadd.f32 %v5017_v41, %v12641_v58  ;;  %v4704_v62 = vmul.f32 %v4392_v24, %v12679_v55  ;;  %v5850_v11 = vmul.f32 0.5, %v12547_v19 }
 0x429   :  { %7097 = vst [vmem:[%s15559_s5 + $0x50] sm:$0xff] %v6785_v32  ;;  %7734 = vtanh.f32 %v5639_v54  ;;  %v4394_v6 = vmul.f32 %v12702_v7, %v12702_v7  ;;  %v12721_v37 = vadd.f32 %v16345_v21, %v16316_v34  ;;  %v4443_v18 = vmul.f32 %v12711_v17, %v12711_v17 }
 0x42a   :  { %v6784_v46 = vmul.f32 %v6472_v3, %v5848_v27  ;;  %v5641_v45 = vmul.f32 0.7978846, %v5329_v26  ;;  %v5016_v20 = vmul.f32 0.044715, %v4704_v62  ;;  %v5899_v60 = vmul.f32 0.5, %v12557_v50 }
 0x42b   :  { %v7725_v13 = vpop.eup %7724  ;;  %v5901_v30 = vmul.f32 0.5, %v12595_v63  ;;  %v4706_v19 = vmul.f32 %v4394_v6, %v12702_v7  ;;  %v4445_v56 = vmul.f32 %v12721_v37, %v12721_v37  ;;  %v4755_v29 = vmul.f32 %v4443_v18, %v12711_v17 }
 0x42c   :  { %7096 = vst [vmem:[%s15559_s5 + $0x48] sm:$0xff] %v6784_v46  ;;  %v6474_v28 = vadd.f32 1.0, %v7725_v13  ;;  %7736 = vtanh.f32 %v5641_v45  ;;  %v5328_v33 = vadd.f32 %v5016_v20, %v12679_v55  ;;  %v12738_v63 = vadd.f32 %v12314_v23, %v16316_v34 }
 0x42d   :  { %v5018_v15 = vmul.f32 0.044715, %v4706_v19  ;;  %v4757_v50 = vmul.f32 %v4445_v56, %v12721_v37  ;;  %v12742_v14 = vadd.f32 %v12319_v0, %v16316_v34  ;;  %v5900_v10 = vmul.f32 0.5, %v12603_v49 }
 0x42e   :  { %v7727_v41 = vpop.eup %7726  ;;  %v6786_v24 = vmul.f32 %v6474_v28, %v5850_v11  ;;  %v5640_v32 = vmul.f32 0.7978846, %v5328_v33  ;;  %v5067_v27 = vmul.f32 0.044715, %v4755_v29  ;;  %v4444_v62 = vmul.f32 %v12738_v63, %v12738_v63 }
 0x42f   :  { %v6523_v54 = vadd.f32 1.0, %v7727_v41  ;;  %v5330_v3 = vadd.f32 %v5018_v15, %v12702_v7  ;;  %v5069_v26 = vmul.f32 0.044715, %v4757_v50  ;;  %v4446_v0 = vmul.f32 %v12742_v14, %v12742_v14 }
 0x430   :  { %7098 = vst [vmem:[%s15559_s5 + $0x58] sm:$0xff] %v6786_v24  ;;  %7738 = vtanh.f32 %v5640_v32  ;;  %v5379_v23 = vadd.f32 %v5067_v27, %v12711_v17  ;;  %v12756_v49 = vadd.f32 %v12352_v8, %v11763_v12  ;;  %v4756_v46 = vmul.f32 %v4444_v62, %v12738_v63  ;;  %v16346_v62 = vld [vmem:[#allocation2_spill] sm:$0xff] }
 0x431   :  { %v7729_v38 = vpop.eup %7728  ;;  %v6835_v11 = vmul.f32 %v6523_v54, %v5899_v60  ;;  %v5642_v6 = vmul.f32 0.7978846, %v5330_v3  ;;  %v5381_v21 = vadd.f32 %v5069_v26, %v12721_v37  ;;  %v5902_v18 = vmul.f32 0.5, %v12607_v42 }
 0x432   :  { %v7731_v45 = vpop.eup %7730  ;;  %v6525_v20 = vadd.f32 1.0, %v7729_v38  ;;  %v5691_v13 = vmul.f32 0.7978846, %v5379_v23  ;;  %v4758_v19 = vmul.f32 %v4446_v0, %v12742_v14  ;;  %v5068_v28 = vmul.f32 0.044715, %v4756_v46 }
 0x433   :  { %v7733_v56 = vpop.eup %7732  ;;  %7147 = vst [vmem:[%s15559_s5 + $0x1e0] sm:$0xff] %v6835_v11  ;;  %v6524_v8 = vadd.f32 1.0, %v7731_v45  ;;  %7740 = vtanh.f32 %v5642_v6  ;;  %v5693_v60 = vmul.f32 0.7978846, %v5381_v21  ;;  %v4495_v41 = vmul.f32 %v12756_v49, %v12756_v49 }
 0x434   :  { %v6837_v33 = vmul.f32 %v6525_v20, %v5901_v30  ;;  %v6526_v29 = vadd.f32 1.0, %v7733_v56  ;;  %7742 = vtanh.f32 %v5691_v13  ;;  %v5070_v15 = vmul.f32 0.044715, %v4758_v19 }
 0x435   :  { %v6836_v50 = vmul.f32 %v6524_v8, %v5900_v10  ;;  %7744 = vtanh.f32 %v5693_v60  ;;  %v5380_v42 = vadd.f32 %v5068_v28, %v12738_v63  ;;  %v5951_v27 = vmul.f32 0.5, %v12637_v31 }
 0x436   :  { %v7735_v24 = vpop.eup %7734  ;;  %7149 = vst [vmem:[%s15559_s5 + $0x1f0] sm:$0xff] %v6837_v33  ;;  %v6838_v32 = vmul.f32 %v6526_v29, %v5902_v18  ;;  %v5382_v30 = vadd.f32 %v5070_v15, %v12742_v14  ;;  %v12775_v54 = vadd.f32 %v12370_v48, %v11763_v12  ;;  %v4807_v26 = vmul.f32 %v4495_v41, %v12756_v49 }
 0x437   :  { %7148 = vst [vmem:[%s15559_s5 + $0x1e8] sm:$0xff] %v6836_v50  ;;  %v6575_v10 = vadd.f32 1.0, %v7735_v24  ;;  %v5692_v3 = vmul.f32 0.7978846, %v5380_v42  ;;  %v12783_v23 = vadd.f32 %v16346_v62, %v11763_v12  ;;  %v5953_v31 = vmul.f32 0.5, %v12641_v58 }
 0x438   :  { %7150 = vst [vmem:[%s15559_s5 + $0x1f8] sm:$0xff] %v6838_v32  ;;  %v5694_v48 = vmul.f32 0.7978846, %v5382_v30  ;;  %v4497_v0 = vmul.f32 %v12775_v54, %v12775_v54  ;;  %v12793_v38 = vadd.f32 %v12409_v53, %v11763_v12  ;;  %v5119_v21 = vmul.f32 0.044715, %v4807_v26 }
 0x439   :  { %v7737_v11 = vpop.eup %7736  ;;  %v6887_v6 = vmul.f32 %v6575_v10, %v5951_v27  ;;  %7746 = vtanh.f32 %v5692_v3  ;;  %v4496_v46 = vmul.f32 %v12783_v23, %v12783_v23  ;;  %v5952_v20 = vmul.f32 0.5, %v12679_v55 }
 0x43a   :  { %v6577_v45 = vadd.f32 1.0, %v7737_v11  ;;  %7748 = vtanh.f32 %v5694_v48  ;;  %v4809_v58 = vmul.f32 %v4497_v0, %v12775_v54  ;;  %v5954_v53 = vmul.f32 0.5, %v12702_v7 }
 0x43b   :  { %7199 = vst [vmem:[%s15559_s5 + $0x380] sm:$0xff] %v6887_v6  ;;  %v5431_v18 = vadd.f32 %v5119_v21, %v12756_v49  ;;  %v4808_v13 = vmul.f32 %v4496_v46, %v12783_v23  ;;  %v4498_v19 = vmul.f32 %v12793_v38, %v12793_v38  ;;  %v12809_v55 = vadd.f32 %v12429_v51, %v11846_v44 }
 0x43c   :  { %v6889_v56 = vmul.f32 %v6577_v45, %v5953_v31  ;;  %v5121_v8 = vmul.f32 0.044715, %v4809_v58  ;;  %v12813_v60 = vadd.f32 %v12437_v40, %v11846_v44  ;;  %v6003_v7 = vmul.f32 0.5, %v12711_v17 }
 0x43d   :  { %v7739_v28 = vpop.eup %7738  ;;  %v5743_v33 = vmul.f32 0.7978846, %v5431_v18  ;;  %v5120_v29 = vmul.f32 0.044715, %v4808_v13  ;;  %v4810_v15 = vmul.f32 %v4498_v19, %v12793_v38  ;;  %v4547_v51 = vmul.f32 %v12809_v55, %v12809_v55 }
 0x43e   :  { %7201 = vst [vmem:[%s15559_s5 + $0x390] sm:$0xff] %v6889_v56  ;;  %v6576_v50 = vadd.f32 1.0, %v7739_v28  ;;  %v5433_v42 = vadd.f32 %v5121_v8, %v12775_v54  ;;  %v12825_v40 = vadd.f32 %v12450_v9, %v11846_v44  ;;  %v4549_v24 = vmul.f32 %v12813_v60, %v12813_v60 }
 0x43f   :  { %7750 = vtanh.f32 %v5743_v33  ;;  %v5432_v17 = vadd.f32 %v5120_v29, %v12783_v23  ;;  %v5122_v41 = vmul.f32 0.044715, %v4810_v15  ;;  %v6005_v30 = vmul.f32 0.5, %v12721_v37 }
 0x440   :  { %v7741_v32 = vpop.eup %7740  ;;  %v6888_v27 = vmul.f32 %v6576_v50, %v5952_v20  ;;  %v5745_v10 = vmul.f32 0.7978846, %v5433_v42  ;;  %v4859_v3 = vmul.f32 %v4547_v51, %v12809_v55  ;;  %v4861_v48 = vmul.f32 %v4549_v24, %v12813_v60 }
 0x441   :  { %v7743_v26 = vpop.eup %7742  ;;  %v6578_v62 = vadd.f32 1.0, %v7741_v32  ;;  %v5744_v31 = vmul.f32 0.7978846, %v5432_v17  ;;  %v5434_v9 = vadd.f32 %v5122_v41, %v12793_v38  ;;  %v4548_v37 = vmul.f32 %v12825_v40, %v12825_v40 }
 0x442   :  { %v7745_v0 = vpop.eup %7744  ;;  %7200 = vst [vmem:[%s15559_s5 + $0x388] sm:$0xff] %v6888_v27  ;;  %v6627_v11 = vadd.f32 1.0, %v7743_v26  ;;  %7752 = vtanh.f32 %v5745_v10  ;;  %v5171_v6 = vmul.f32 0.044715, %v4859_v3  ;;  %v5173_v18 = vmul.f32 0.044715, %v4861_v48 }
 0x443   :  { %v6890_v21 = vmul.f32 %v6578_v62, %v5954_v53  ;;  %v6629_v46 = vadd.f32 1.0, %v7745_v0  ;;  %7754 = vtanh.f32 %v5744_v31  ;;  %v5746_v45 = vmul.f32 0.7978846, %v5434_v9  ;;  %v16347_v26 = vld [vmem:[#allocation96_spill] sm:$0xff]  ;;  %v16348_v48 = vld [vmem:[#allocation98_spill] sm:$0xff] }
 0x444   :  { %v6939_v20 = vmul.f32 %v6627_v11, %v6003_v7  ;;  %v5483_v58 = vadd.f32 %v5171_v6, %v12809_v55  ;;  %v4860_v13 = vmul.f32 %v4548_v37, %v12825_v40  ;;  %v6004_v56 = vmul.f32 0.5, %v12738_v63 }
 0x445   :  { %7202 = vst [vmem:[%s15559_s5 + $0x398] sm:$0xff] %v6890_v21  ;;  %v6941_v19 = vmul.f32 %v6629_v46, %v6005_v30  ;;  %7756 = vtanh.f32 %v5746_v45  ;;  %v12847_v53 = vadd.f32 %v12459_v47, %v11846_v44  ;;  %v5485_v7 = vadd.f32 %v5173_v18, %v12813_v60 }
 0x446   :  { %v7747_v8 = vpop.eup %7746  ;;  %7251 = vst [vmem:[%s15559_s5 + $0x520] sm:$0xff] %v6939_v20  ;;  %v5795_v28 = vmul.f32 0.7978846, %v5483_v58  ;;  %v5172_v33 = vmul.f32 0.044715, %v4860_v13  ;;  %v12855_v29 = vadd.f32 %v12492_v2, %v11442_v36  ;;  %v6006_v63 = vmul.f32 0.5, %v12742_v14 }
 0x447   :  { %v7749_v15 = vpop.eup %7748  ;;  %7253 = vst [vmem:[%s15559_s5 + $0x530] sm:$0xff] %v6941_v19  ;;  %v6628_v47 = vadd.f32 1.0, %v7747_v8  ;;  %v4550_v50 = vmul.f32 %v12847_v53, %v12847_v53  ;;  %v12865_v42 = vadd.f32 %v12509_v57, %v11442_v36  ;;  %v5797_v17 = vmul.f32 0.7978846, %v5485_v7 }
 0x448   :  { %v6630_v51 = vadd.f32 1.0, %v7749_v15  ;;  %7758 = vtanh.f32 %v5795_v28  ;;  %v5484_v2 = vadd.f32 %v5172_v33, %v12825_v40  ;;  %v6055_v24 = vmul.f32 0.5, %v12756_v49 }
 0x449   :  { %v6940_v41 = vmul.f32 %v6628_v47, %v6004_v56  ;;  %v4862_v32 = vmul.f32 %v4550_v50, %v12847_v53  ;;  %v4291_v14 = vmul.f32 %v12855_v29, %v12855_v29  ;;  %7760 = vtanh.f32 %v5797_v17 }
 0x44a   :  { %v6942_v27 = vmul.f32 %v6630_v51, %v6006_v63  ;;  %v5796_v30 = vmul.f32 0.7978846, %v5484_v2  ;;  %v4293_v57 = vmul.f32 %v12865_v42, %v12865_v42  ;;  %v6057_v10 = vmul.f32 0.5, %v12775_v54  ;;  %v16349_v54 = vld [vmem:[#allocation95_spill] sm:$0xff] }
 0x44b   :  { %7252 = vst [vmem:[%s15559_s5 + $0x528] sm:$0xff] %v6940_v41  ;;  %v5174_v3 = vmul.f32 0.044715, %v4862_v32  ;;  %v4603_v49 = vmul.f32 %v4291_v14, %v12855_v29  ;;  %v12881_v62 = vadd.f32 %v16347_v26, %v11442_v36  ;;  %v12889_v0 = vadd.f32 %v16348_v48, %v11442_v36 }
 0x44c   :  { %v7751_v31 = vpop.eup %7750  ;;  %7254 = vst [vmem:[%s15559_s5 + $0x538] sm:$0xff] %v6942_v27  ;;  %7762 = vtanh.f32 %v5796_v30  ;;  %v4605_v9 = vmul.f32 %v4293_v57, %v12865_v42  ;;  %v12893_v11 = vadd.f32 %v16349_v54, %v16289_v16  ;;  %v6056_v45 = vmul.f32 0.5, %v12783_v23 }
 0x44d   :  { %v6679_v6 = vadd.f32 1.0, %v7751_v31  ;;  %v5486_v37 = vadd.f32 %v5174_v3, %v12847_v53  ;;  %v4915_v21 = vmul.f32 0.044715, %v4603_v49  ;;  %v4292_v46 = vmul.f32 %v12881_v62, %v12881_v62  ;;  %v16350_v31 = vld [vmem:[#allocation97_spill] sm:$0xff] }
 0x44e   :  { %v6058_v20 = vmul.f32 0.5, %v12793_v38  ;;  %v4917_v58 = vmul.f32 0.044715, %v4605_v9  ;;  %v4294_v18 = vmul.f32 %v12889_v0, %v12889_v0  ;;  %v4343_v23 = vmul.f32 %v12893_v11, %v12893_v11 }
 0x44f   :  { %v7753_v13 = vpop.eup %7752  ;;  %v6991_v19 = vmul.f32 %v6679_v6, %v6055_v24  ;;  %v5798_v56 = vmul.f32 0.7978846, %v5486_v37  ;;  %v5227_v8 = vadd.f32 %v4915_v21, %v12855_v29  ;;  %v4604_v28 = vmul.f32 %v4292_v46, %v12881_v62 }
 0x450   :  { %v7755_v7 = vpop.eup %7754  ;;  %v6681_v33 = vadd.f32 1.0, %v7753_v13  ;;  %v5229_v15 = vadd.f32 %v4917_v58, %v12865_v42  ;;  %v4606_v47 = vmul.f32 %v4294_v18, %v12889_v0  ;;  %v4655_v24 = vmul.f32 %v4343_v23, %v12893_v11 }
 0x451   :  { %7303 = vst [vmem:[%s15559_s5 + $0x6c0] sm:$0xff] %v6991_v19  ;;  %v6680_v38 = vadd.f32 1.0, %v7755_v7  ;;  %7764 = vtanh.f32 %v5798_v56  ;;  %v5539_v63 = vmul.f32 0.7978846, %v5227_v8  ;;  %v4916_v50 = vmul.f32 0.044715, %v4604_v28 }
 0x452   :  { %v7757_v51 = vpop.eup %7756  ;;  %v6993_v17 = vmul.f32 %v6681_v33, %v6057_v10  ;;  %v5541_v2 = vmul.f32 0.7978846, %v5229_v15  ;;  %v4918_v41 = vmul.f32 0.044715, %v4606_v47  ;;  %v6107_v30 = vmul.f32 0.5, %v12809_v55 }
 0x453   :  { %v6992_v32 = vmul.f32 %v6680_v38, %v6056_v45  ;;  %v6682_v14 = vadd.f32 1.0, %v7757_v51  ;;  %7766 = vtanh.f32 %v5539_v63  ;;  %v5228_v27 = vadd.f32 %v4916_v50, %v12881_v62 }
 0x454   :  { %7305 = vst [vmem:[%s15559_s5 + $0x6d0] sm:$0xff] %v6993_v17  ;;  %7768 = vtanh.f32 %v5541_v2  ;;  %v5230_v57 = vadd.f32 %v4918_v41, %v12889_v0  ;;  %v4967_v3 = vmul.f32 0.044715, %v4655_v24  ;;  %v12923_v9 = vadd.f32 %v16350_v31, %v16289_v16 }
 0x455   :  { %v7759_v10 = vpop.eup %7758  ;;  %7304 = vst [vmem:[%s15559_s5 + $0x6c8] sm:$0xff] %v6992_v32  ;;  %v6994_v49 = vmul.f32 %v6682_v14, %v6058_v20  ;;  %v5540_v26 = vmul.f32 0.7978846, %v5228_v27  ;;  %v12927_v48 = vadd.f32 %v12569_v25, %v16289_v16  ;;  %v12932_v37 = vadd.f32 %v12580_v5, %v16289_v16 }
 0x456   :  { %v6731_v55 = vadd.f32 1.0, %v7759_v10  ;;  %v5542_v54 = vmul.f32 0.7978846, %v5230_v57  ;;  %v5279_v6 = vadd.f32 %v4967_v3, %v12893_v11  ;;  %v7761_v21 = vpop.eup %7760  ;;  %v6109_v46 = vmul.f32 0.5, %v12813_v60 }
 0x457   :  { %7306 = vst [vmem:[%s15559_s5 + $0x6d8] sm:$0xff] %v6994_v49  ;;  %7770 = vtanh.f32 %v5540_v26  ;;  %v4345_v25 = vmul.f32 %v12923_v9, %v12923_v9  ;;  %v4344_v45 = vmul.f32 %v12927_v48, %v12927_v48  ;;  %v6733_v58 = vadd.f32 1.0, %v7761_v21 }
 0x458   :  { %v7043_v20 = vmul.f32 %v6731_v55, %v6107_v30  ;;  %7772 = vtanh.f32 %v5542_v54  ;;  %v5591_v18 = vmul.f32 0.7978846, %v5279_v6  ;;  %v6108_v13 = vmul.f32 0.5, %v12825_v40 }
 0x459   :  { %v7763_v5 = vpop.eup %7762  ;;  %v4657_v19 = vmul.f32 %v4345_v25, %v12923_v9  ;;  %v4656_v56 = vmul.f32 %v4344_v45, %v12927_v48  ;;  %v4346_v60 = vmul.f32 %v12932_v37, %v12932_v37  ;;  %v7045_v8 = vmul.f32 %v6733_v58, %v6109_v46 }
 0x45a   :  { %7355 = vst [vmem:[%s15559_s5 + $0x860] sm:$0x7f] %v7043_v20  ;;  %v6732_v28 = vadd.f32 1.0, %v7763_v5  ;;  %v6110_v7 = vmul.f32 0.5, %v12847_v53  ;;  %7774 = vtanh.f32 %v5591_v18  ;;  %v12954_v47 = vadd.f32 %v12609_v43, %v16302_v59 }
 0x45b   :  { %v4969_v33 = vmul.f32 0.044715, %v4657_v19  ;;  %v4968_v15 = vmul.f32 0.044715, %v4656_v56  ;;  %v4658_v40 = vmul.f32 %v4346_v60, %v12932_v37  ;;  %7357 = vst [vmem:[%s15559_s5 + $0x870] sm:$0x7f] %v7045_v8  ;;  %v12962_v63 = vadd.f32 %v12619_v22, %v16302_v59 }
 0x45c   :  { %v7044_v23 = vmul.f32 %v6732_v28, %v6108_v13  ;;  %v5851_v38 = vmul.f32 0.5, %v12855_v29  ;;  %v12966_v53 = vadd.f32 %v12643_v1, %v16302_v59  ;;  %v4395_v17 = vmul.f32 %v12954_v47, %v12954_v47 }
 0x45d   :  { %v5281_v50 = vadd.f32 %v4969_v33, %v12923_v9  ;;  %v5280_v43 = vadd.f32 %v4968_v15, %v12927_v48  ;;  %v4970_v51 = vmul.f32 0.044715, %v4658_v40  ;;  %v5853_v22 = vmul.f32 0.5, %v12865_v42 }
 0x45e   :  { %v7765_v2 = vpop.eup %7764  ;;  %7356 = vst [vmem:[%s15559_s5 + $0x868] sm:$0x7f] %v7044_v23  ;;  %v4397_v29 = vmul.f32 %v12962_v63, %v12962_v63  ;;  %v4396_v1 = vmul.f32 %v12966_v53, %v12966_v53  ;;  %v12982_v41 = vadd.f32 %v12648_v52, %v16302_v59  ;;  %v5852_v57 = vmul.f32 0.5, %v12881_v62 }
 0x45f   :  { %v6734_v24 = vadd.f32 1.0, %v7765_v2  ;;  %v5593_v32 = vmul.f32 0.7978846, %v5281_v50  ;;  %v5592_v14 = vmul.f32 0.7978846, %v5280_v43  ;;  %v5282_v27 = vadd.f32 %v4970_v51, %v12932_v37  ;;  %v2349_v2 = vpop.f32.mrf.mxu0 }
 0x460   :  { %v7767_v30 = vpop.eup %7766  ;;  %v4707_v42 = vmul.f32 %v4395_v17, %v12954_v47  ;;  %v4709_v3 = vmul.f32 %v4397_v29, %v12962_v63  ;;  %v4708_v10 = vmul.f32 %v4396_v1, %v12966_v53  ;;  %v4398_v46 = vmul.f32 %v12982_v41, %v12982_v41 }
 0x461   :  { %v7769_v49 = vpop.eup %7768  ;;  %v7046_v26 = vmul.f32 %v6734_v24, %v6110_v7  ;;  %v6475_v31 = vadd.f32 1.0, %v7767_v30  ;;  %7776 = vtanh.f32 %v5593_v32  ;;  %v5594_v52 = vmul.f32 0.7978846, %v5282_v27 }
 0x462   :  { %v6477_v55 = vadd.f32 1.0, %v7769_v49  ;;  %7778 = vtanh.f32 %v5592_v14  ;;  %v5019_v54 = vmul.f32 0.044715, %v4707_v42  ;;  %v5021_v6 = vmul.f32 0.044715, %v4709_v3 }
 0x463   :  { %7358 = vst [vmem:[%s15559_s5 + $0x878] sm:$0x7f] %v7046_v26  ;;  %v6787_v62 = vmul.f32 %v6475_v31, %v5851_v38  ;;  %7780 = vtanh.f32 %v5594_v52  ;;  %v5020_v21 = vmul.f32 0.044715, %v4708_v10  ;;  %v5854_v20 = vmul.f32 0.5, %v12889_v0  ;;  %v2351_v52 = vpop.f32.mrf.mxu0 }
 0x464   :  { %v7771_v25 = vpop.eup %7770  ;;  %v6789_v45 = vmul.f32 %v6477_v55, %v5853_v22  ;;  %v5331_v58 = vadd.f32 %v5019_v54, %v12954_v47  ;;  %v5333_v18 = vadd.f32 %v5021_v6, %v12962_v63  ;;  %v4710_v56 = vmul.f32 %v4398_v46, %v12982_v41  ;;  %v2450_v22 = vpop.f32.mrf.mxu1 }
 0x465   :  { %v7773_v5 = vpop.eup %7772  ;;  %7099 = vst [vmem:[%s15559_s5 + $0x60] sm:$0xff] %v6787_v62  ;;  %v6476_v13 = vadd.f32 1.0, %v7771_v25  ;;  %v5332_v19 = vadd.f32 %v5020_v21, %v12966_v53  ;;  %v13004_v60 = vadd.f32 %v12663_v4, %v16316_v34  ;;  %v13011_v7 = vadd.f32 %v12672_v35, %v16316_v34 }
 0x466   :  { %7101 = vst [vmem:[%s15559_s5 + $0x70] sm:$0xff] %v6789_v45  ;;  %v6478_v0 = vadd.f32 1.0, %v7773_v5  ;;  %v5643_v8 = vmul.f32 0.7978846, %v5331_v58  ;;  %v5645_v28 = vmul.f32 0.7978846, %v5333_v18  ;;  %v13029_v1 = vadd.f32 %v12683_v39, %v16316_v34 }
 0x467   :  { %v7775_v33 = vpop.eup %7774  ;;  %v6788_v15 = vmul.f32 %v6476_v13, %v5852_v57  ;;  %v5644_v40 = vmul.f32 0.7978846, %v5332_v19  ;;  %v5022_v23 = vmul.f32 0.044715, %v4710_v56  ;;  %v4447_v38 = vmul.f32 %v13004_v60, %v13004_v60 }
 0x468   :  { %v6790_v4 = vmul.f32 %v6478_v0, %v5854_v20  ;;  %v5903_v50 = vmul.f32 0.5, %v12893_v11  ;;  %v6527_v43 = vadd.f32 1.0, %v7775_v33  ;;  %7782 = vtanh.f32 %v5643_v8  ;;  %v2452_v20 = vpop.f32.mrf.mxu1  ;;  %v2355_v8 = vpop.f32.mrf.mxu0 }
 0x469   :  { %7100 = vst [vmem:[%s15559_s5 + $0x68] sm:$0xff] %v6788_v15  ;;  %7784 = vtanh.f32 %v5645_v28  ;;  %v5334_v35 = vadd.f32 %v5022_v23, %v12982_v41  ;;  %v4759_v51 = vmul.f32 %v4447_v38, %v13004_v60  ;;  %v4449_v17 = vmul.f32 %v13011_v7, %v13011_v7 }
 0x46a   :  { %7102 = vst [vmem:[%s15559_s5 + $0x78] sm:$0xff] %v6790_v4  ;;  %v6839_v11 = vmul.f32 %v6527_v43, %v5903_v50  ;;  %v5905_v29 = vmul.f32 0.5, %v12923_v9  ;;  %7786 = vtanh.f32 %v5644_v40  ;;  %v13034_v27 = vadd.f32 %v12692_v61, %v16316_v34  ;;  %v2456_v50 = vpop.f32.mrf.mxu1 }
 0x46b   :  { %v5646_v24 = vmul.f32 0.7978846, %v5334_v35  ;;  %v5071_v32 = vmul.f32 0.044715, %v4759_v51  ;;  %v4761_v14 = vmul.f32 %v4449_v17, %v13011_v7  ;;  %v5904_v30 = vmul.f32 0.5, %v12927_v48 }
 0x46c   :  { %7151 = vst [vmem:[%s15559_s5 + $0x200] sm:$0xff] %v6839_v11  ;;  %v4448_v9 = vmul.f32 %v13029_v1, %v13029_v1  ;;  %v13043_v39 = vadd.f32 %v2349_v2, %v11763_v12  ;;  %v13046_v57 = vadd.f32 %v2450_v22, %v11763_v12  ;;  %v4450_v3 = vmul.f32 %v13034_v27, %v13034_v27 }
 0x46d   :  { %7788 = vtanh.f32 %v5646_v24  ;;  %v5383_v42 = vadd.f32 %v5071_v32, %v13004_v60  ;;  %v5073_v61 = vmul.f32 0.044715, %v4761_v14  ;;  %v5906_v49 = vmul.f32 0.5, %v12932_v37 }
 0x46e   :  { %v7777_v10 = vpop.eup %7776  ;;  %v5955_v48 = vmul.f32 0.5, %v12954_v47  ;;  %v4760_v26 = vmul.f32 %v4448_v9, %v13029_v1  ;;  %v4499_v31 = vmul.f32 %v13043_v39, %v13043_v39  ;;  %v4762_v21 = vmul.f32 %v4450_v3, %v13034_v27  ;;  %v2357_v3 = vpop.f32.mrf.mxu0 }
 0x46f   :  { %v7779_v55 = vpop.eup %7778  ;;  %v6529_v54 = vadd.f32 1.0, %v7777_v10  ;;  %v5695_v6 = vmul.f32 0.7978846, %v5383_v42  ;;  %v5385_v62 = vadd.f32 %v5073_v61, %v13011_v7  ;;  %v4501_v47 = vmul.f32 %v13046_v57, %v13046_v57 }
 0x470   :  { %v7781_v46 = vpop.eup %7780  ;;  %v6528_v25 = vadd.f32 1.0, %v7779_v55  ;;  %v5072_v45 = vmul.f32 0.044715, %v4760_v26  ;;  %v4811_v37 = vmul.f32 %v4499_v31, %v13043_v39  ;;  %v5074_v56 = vmul.f32 0.044715, %v4762_v21 }
 0x471   :  { %v6841_v58 = vmul.f32 %v6529_v54, %v5905_v29  ;;  %v6530_v18 = vadd.f32 1.0, %v7781_v46  ;;  %7790 = vtanh.f32 %v5695_v6  ;;  %v5697_v5 = vmul.f32 0.7978846, %v5385_v62  ;;  %v2458_v6 = vpop.f32.mrf.mxu1 }
 0x472   :  { %v6840_v13 = vmul.f32 %v6528_v25, %v5904_v30  ;;  %v5384_v19 = vadd.f32 %v5072_v45, %v13029_v1  ;;  %v5123_v0 = vmul.f32 0.044715, %v4811_v37  ;;  %v5957_v33 = vmul.f32 0.5, %v12962_v63 }
 0x473   :  { %7153 = vst [vmem:[%s15559_s5 + $0x210] sm:$0xff] %v6841_v58  ;;  %v6842_v28 = vmul.f32 %v6530_v18, %v5906_v49  ;;  %7792 = vtanh.f32 %v5697_v5  ;;  %v4813_v15 = vmul.f32 %v4501_v47, %v13046_v57  ;;  %v5386_v23 = vadd.f32 %v5074_v56, %v13034_v27  ;;  %v2527_v47 = vpop.f32.mrf.mxu0 }
 0x474   :  { %7152 = vst [vmem:[%s15559_s5 + $0x208] sm:$0xff] %v6840_v13  ;;  %v5696_v40 = vmul.f32 0.7978846, %v5384_v19  ;;  %v5435_v38 = vadd.f32 %v5123_v0, %v13043_v39  ;;  %v13073_v4 = vadd.f32 %v2351_v52, %v11763_v12  ;;  %v5956_v63 = vmul.f32 0.5, %v12966_v53 }
 0x475   :  { %v7783_v43 = vpop.eup %7782  ;;  %7154 = vst [vmem:[%s15559_s5 + $0x218] sm:$0xff] %v6842_v28  ;;  %v5125_v35 = vmul.f32 0.044715, %v4813_v15  ;;  %v13080_v51 = vadd.f32 %v2452_v20, %v11763_v12  ;;  %v13083_v17 = vadd.f32 %v2355_v8, %v11846_v44  ;;  %v5698_v11 = vmul.f32 0.7978846, %v5386_v23 }
 0x476   :  { %v7785_v2 = vpop.eup %7784  ;;  %v6579_v22 = vadd.f32 1.0, %v7783_v43  ;;  %7794 = vtanh.f32 %v5696_v40  ;;  %v5747_v29 = vmul.f32 0.7978846, %v5435_v38  ;;  %v4500_v30 = vmul.f32 %v13073_v4, %v13073_v4 }
 0x477   :  { %v7787_v24 = vpop.eup %7786  ;;  %v6581_v32 = vadd.f32 1.0, %v7785_v2  ;;  %v5437_v14 = vadd.f32 %v5125_v35, %v13046_v57  ;;  %v13089_v53 = vadd.f32 %v2456_v50, %v11846_v44  ;;  %7796 = vtanh.f32 %v5698_v11  ;;  %v2628_v35 = vpop.f32.mrf.mxu1 }
 0x478   :  { %v6891_v9 = vmul.f32 %v6579_v22, %v5955_v48  ;;  %v6580_v42 = vadd.f32 1.0, %v7787_v24  ;;  %v4502_v61 = vmul.f32 %v13080_v51, %v13080_v51  ;;  %7798 = vtanh.f32 %v5747_v29  ;;  %v2529_v29 = vpop.f32.mrf.mxu0 }
 0x479   :  { %v6893_v10 = vmul.f32 %v6581_v32, %v5957_v33  ;;  %v5749_v49 = vmul.f32 0.7978846, %v5437_v14  ;;  %v4812_v26 = vmul.f32 %v4500_v30, %v13073_v4  ;;  %v5958_v55 = vmul.f32 0.5, %v12982_v41 }
 0x47a   :  { %v7789_v31 = vpop.eup %7788  ;;  %7203 = vst [vmem:[%s15559_s5 + $0x3a0] sm:$0xff] %v6891_v9  ;;  %v6892_v52 = vmul.f32 %v6580_v42, %v5956_v63  ;;  %v4814_v48 = vmul.f32 %v4502_v61, %v13080_v51  ;;  %v4551_v54 = vmul.f32 %v13083_v17, %v13083_v17  ;;  %v6007_v21 = vmul.f32 0.5, %v13004_v60 }
 0x47b   :  { %7205 = vst [vmem:[%s15559_s5 + $0x3b0] sm:$0xff] %v6893_v10  ;;  %v6582_v62 = vadd.f32 1.0, %v7789_v31  ;;  %7800 = vtanh.f32 %v5749_v49  ;;  %v5124_v46 = vmul.f32 0.044715, %v4812_v26  ;;  %v6009_v41 = vmul.f32 0.5, %v13011_v7 }
 0x47c   :  { %7204 = vst [vmem:[%s15559_s5 + $0x3a8] sm:$0xff] %v6892_v52  ;;  %v5126_v25 = vmul.f32 0.044715, %v4814_v48  ;;  %v4863_v45 = vmul.f32 %v4551_v54, %v13083_v17  ;;  %v4553_v37 = vmul.f32 %v13089_v53, %v13089_v53  ;;  %v13114_v60 = vadd.f32 %v2357_v3, %v11846_v44  ;;  %v2630_v52 = vpop.f32.mrf.mxu1 }
 0x47d   :  { %v6894_v20 = vmul.f32 %v6582_v62, %v5958_v55  ;;  %v5436_v58 = vadd.f32 %v5124_v46, %v13073_v4  ;;  %v13117_v18 = vadd.f32 %v2458_v6, %v11846_v44  ;;  %v6008_v13 = vmul.f32 0.5, %v13029_v1  ;;  %v2533_v62 = vpop.f32.mrf.mxu0 }
 0x47e   :  { %v7791_v5 = vpop.eup %7790  ;;  %v5438_v7 = vadd.f32 %v5126_v25, %v13080_v51  ;;  %v5175_v19 = vmul.f32 0.044715, %v4863_v45  ;;  %v4865_v56 = vmul.f32 %v4553_v37, %v13089_v53  ;;  %v4552_v28 = vmul.f32 %v13114_v60, %v13114_v60 }
 0x47f   :  { %7206 = vst [vmem:[%s15559_s5 + $0x3b8] sm:$0xff] %v6894_v20  ;;  %v6631_v0 = vadd.f32 1.0, %v7791_v5  ;;  %v5748_v8 = vmul.f32 0.7978846, %v5436_v58  ;;  %v13128_v33 = vadd.f32 %v2527_v47, %v11442_v36  ;;  %v4554_v38 = vmul.f32 %v13117_v18, %v13117_v18 }
 0x480   :  { %v7793_v15 = vpop.eup %7792  ;;  %v5750_v40 = vmul.f32 0.7978846, %v5438_v7  ;;  %v5487_v1 = vadd.f32 %v5175_v19, %v13083_v17  ;;  %v5177_v23 = vmul.f32 0.044715, %v4865_v56  ;;  %v4864_v63 = vmul.f32 %v4552_v28, %v13114_v60  ;;  %v2634_v7 = vpop.f32.mrf.mxu1 }
 0x481   :  { %v6943_v50 = vmul.f32 %v6631_v0, %v6007_v21  ;;  %v6633_v43 = vadd.f32 1.0, %v7793_v15  ;;  %7802 = vtanh.f32 %v5748_v8  ;;  %v4866_v11 = vmul.f32 %v4554_v38, %v13117_v18  ;;  %v2535_v0 = vpop.f32.mrf.mxu0 }
 0x482   :  { %7804 = vtanh.f32 %v5750_v40  ;;  %v5799_v2 = vmul.f32 0.7978846, %v5487_v1  ;;  %v5489_v22 = vadd.f32 %v5177_v23, %v13089_v53  ;;  %v6010_v14 = vmul.f32 0.5, %v13034_v27 }
 0x483   :  { %v7795_v24 = vpop.eup %7794  ;;  %7255 = vst [vmem:[%s15559_s5 + $0x540] sm:$0xff] %v6943_v50  ;;  %v6945_v32 = vmul.f32 %v6633_v43, %v6009_v41  ;;  %v5176_v30 = vmul.f32 0.044715, %v4864_v63  ;;  %v4295_v9 = vmul.f32 %v13128_v33, %v13128_v33  ;;  %v5178_v3 = vmul.f32 0.044715, %v4866_v11 }
 0x484   :  { %v6632_v42 = vadd.f32 1.0, %v7795_v24  ;;  %7806 = vtanh.f32 %v5799_v2  ;;  %v5801_v61 = vmul.f32 0.7978846, %v5489_v22  ;;  %v7797_v10 = vpop.eup %7796  ;;  %v6059_v49 = vmul.f32 0.5, %v13043_v39 }
 0x485   :  { %7257 = vst [vmem:[%s15559_s5 + $0x550] sm:$0xff] %v6945_v32  ;;  %v5488_v26 = vadd.f32 %v5176_v30, %v13114_v60  ;;  %v4607_v31 = vmul.f32 %v4295_v9, %v13128_v33  ;;  %v13149_v27 = vadd.f32 %v2628_v35, %v11442_v36  ;;  %v7799_v55 = vpop.eup %7798  ;;  %v6634_v54 = vadd.f32 1.0, %v7797_v10  ;;  %v2636_v9 = vpop.f32.mrf.mxu1 }
 0x486   :  { %v6944_v48 = vmul.f32 %v6632_v42, %v6008_v13  ;;  %7808 = vtanh.f32 %v5801_v61  ;;  %v5490_v6 = vadd.f32 %v5178_v3, %v13117_v18  ;;  %v6683_v21 = vadd.f32 1.0, %v7799_v55 }
 0x487   :  { %v5800_v46 = vmul.f32 0.7978846, %v5488_v26  ;;  %v4919_v41 = vmul.f32 0.044715, %v4607_v31  ;;  %v4297_v39 = vmul.f32 %v13149_v27, %v13149_v27  ;;  %v6946_v45 = vmul.f32 %v6634_v54, %v6010_v14  ;;  %v2539_v54 = vpop.f32.mrf.mxu0 }
 0x488   :  { %v7801_v25 = vpop.eup %7800  ;;  %7256 = vst [vmem:[%s15559_s5 + $0x548] sm:$0xff] %v6944_v48  ;;  %v6061_v37 = vmul.f32 0.5, %v13046_v57  ;;  %v5802_v47 = vmul.f32 0.7978846, %v5490_v6  ;;  %v13159_v20 = vadd.f32 %v2529_v29, %v11442_v36  ;;  %v6995_v58 = vmul.f32 %v6683_v21, %v6059_v49 }
 0x489   :  { %v6685_v5 = vadd.f32 1.0, %v7801_v25  ;;  %7810 = vtanh.f32 %v5800_v46  ;;  %v5231_v13 = vadd.f32 %v4919_v41, %v13128_v33  ;;  %7258 = vst [vmem:[%s15559_s5 + $0x558] sm:$0xff] %v6946_v45  ;;  %v6060_v19 = vmul.f32 0.5, %v13073_v4 }
 0x48a   :  { %7812 = vtanh.f32 %v5802_v47  ;;  %v4609_v56 = vmul.f32 %v4297_v39, %v13149_v27  ;;  %v4296_v57 = vmul.f32 %v13159_v20, %v13159_v20  ;;  %7307 = vst [vmem:[%s15559_s5 + $0x6e0] sm:$0xff] %v6995_v58  ;;  %v13173_v15 = vadd.f32 %v2630_v52, %v11442_v36  ;;  %v2640_v39 = vpop.f32.mrf.mxu1 }
 0x48b   :  { %v6997_v8 = vmul.f32 %v6685_v5, %v6061_v37  ;;  %v5543_v28 = vmul.f32 0.7978846, %v5231_v13  ;;  %v13176_v40 = vadd.f32 %v2533_v62, %v16289_v16  ;;  %v6062_v4 = vmul.f32 0.5, %v13080_v51 }
 0x48c   :  { %v4921_v1 = vmul.f32 0.044715, %v4609_v56  ;;  %v4608_v23 = vmul.f32 %v4296_v57, %v13159_v20  ;;  %v13181_v38 = vadd.f32 %v2634_v7, %v16289_v16  ;;  %v4298_v50 = vmul.f32 %v13173_v15, %v13173_v15 }
 0x48d   :  { %7309 = vst [vmem:[%s15559_s5 + $0x6f0] sm:$0xff] %v6997_v8  ;;  %7814 = vtanh.f32 %v5543_v28  ;;  %v4347_v43 = vmul.f32 %v13176_v40, %v13176_v40  ;;  %v13191_v63 = vadd.f32 %v2535_v0, %v16289_v16  ;;  %v6111_v35 = vmul.f32 0.5, %v13083_v17  ;;  %v2541_v0 = vpop.f32.mrf.mxu0 }
 0x48e   :  { %v7803_v51 = vpop.eup %7802  ;;  %v5233_v2 = vadd.f32 %v4921_v1, %v13149_v27  ;;  %v4920_v22 = vmul.f32 0.044715, %v4608_v23  ;;  %v4349_v11 = vmul.f32 %v13181_v38, %v13181_v38  ;;  %v6113_v32 = vmul.f32 0.5, %v13089_v53 }
 0x48f   :  { %v7805_v29 = vpop.eup %7804  ;;  %v6684_v24 = vadd.f32 1.0, %v7803_v51  ;;  %v4610_v14 = vmul.f32 %v4298_v50, %v13173_v15  ;;  %v4659_v30 = vmul.f32 %v4347_v43, %v13176_v40  ;;  %v4348_v52 = vmul.f32 %v13191_v63, %v13191_v63  ;;  %v2642_v51 = vpop.f32.mrf.mxu1 }
 0x490   :  { %v6686_v42 = vadd.f32 1.0, %v7805_v29  ;;  %v5545_v61 = vmul.f32 0.7978846, %v5233_v2  ;;  %v5232_v3 = vadd.f32 %v4920_v22, %v13159_v20  ;;  %v4661_v17 = vmul.f32 %v4349_v11, %v13181_v38 }
 0x491   :  { %v7807_v10 = vpop.eup %7806  ;;  %v6996_v49 = vmul.f32 %v6684_v24, %v6060_v19  ;;  %v4922_v26 = vmul.f32 0.044715, %v4610_v14  ;;  %v4971_v31 = vmul.f32 0.044715, %v4659_v30  ;;  %v4660_v41 = vmul.f32 %v4348_v52, %v13191_v63  ;;  %v2545_v14 = vpop.f32.mrf.mxu0 }
 0x492   :  { %v6998_v55 = vmul.f32 %v6686_v42, %v6062_v4  ;;  %v6735_v53 = vadd.f32 1.0, %v7807_v10  ;;  %7816 = vtanh.f32 %v5545_v61  ;;  %v5544_v48 = vmul.f32 0.7978846, %v5232_v3  ;;  %v2646_v10 = vpop.f32.mrf.mxu1 }
 0x493   :  { %v7809_v6 = vpop.eup %7808  ;;  %7308 = vst [vmem:[%s15559_s5 + $0x6e8] sm:$0xff] %v6996_v49  ;;  %v5234_v62 = vadd.f32 %v4922_v26, %v13173_v15  ;;  %v5283_v21 = vadd.f32 %v4971_v31, %v13176_v40  ;;  %v4973_v46 = vmul.f32 0.044715, %v4661_v17  ;;  %v6112_v37 = vmul.f32 0.5, %v13114_v60 }
 0x494   :  { %7310 = vst [vmem:[%s15559_s5 + $0x6f8] sm:$0xff] %v6998_v55  ;;  %v7047_v25 = vmul.f32 %v6735_v53, %v6111_v35  ;;  %v6737_v45 = vadd.f32 1.0, %v7809_v6  ;;  %7818 = vtanh.f32 %v5544_v48  ;;  %v4972_v13 = vmul.f32 0.044715, %v4660_v41 }
 0x495   :  { %v5546_v47 = vmul.f32 0.7978846, %v5234_v62  ;;  %v5595_v58 = vmul.f32 0.7978846, %v5283_v21  ;;  %v5285_v5 = vadd.f32 %v4973_v46, %v13181_v38  ;;  %v13219_v56 = vadd.f32 %v2636_v9, %v16289_v16 }
 0x496   :  { %v7811_v7 = vpop.eup %7810  ;;  %7359 = vst [vmem:[%s15559_s5 + $0x880] sm:$0x7f] %v7047_v25  ;;  %v7049_v19 = vmul.f32 %v6737_v45, %v6113_v32  ;;  %v13222_v57 = vadd.f32 %v2539_v54, %v16302_v59  ;;  %v13225_v60 = vadd.f32 %v2640_v39, %v16302_v59  ;;  %v5284_v1 = vadd.f32 %v4972_v13, %v13191_v63 }
 0x497   :  { %v7813_v8 = vpop.eup %7812  ;;  %v6736_v28 = vadd.f32 1.0, %v7811_v7  ;;  %7820 = vtanh.f32 %v5546_v47  ;;  %v5597_v4 = vmul.f32 0.7978846, %v5285_v5  ;;  %v6114_v23 = vmul.f32 0.5, %v13117_v18 }
 0x498   :  { %7361 = vst [vmem:[%s15559_s5 + $0x890] sm:$0x7f] %v7049_v19  ;;  %v6738_v50 = vadd.f32 1.0, %v7813_v8  ;;  %7822 = vtanh.f32 %v5595_v58  ;;  %v4350_v43 = vmul.f32 %v13219_v56, %v13219_v56  ;;  %v5596_v2 = vmul.f32 0.7978846, %v5284_v1  ;;  %v2547_v19 = vpop.f32.mrf.mxu0 }
 0x499   :  { %v7048_v35 = vmul.f32 %v6736_v28, %v6112_v37  ;;  %7824 = vtanh.f32 %v5597_v4  ;;  %v4399_v22 = vmul.f32 %v13222_v57, %v13222_v57  ;;  %v5855_v24 = vmul.f32 0.5, %v13128_v33 }
 0x49a   :  { %v7815_v11 = vpop.eup %7814  ;;  %v7050_v29 = vmul.f32 %v6738_v50, %v6114_v23  ;;  %v4662_v32 = vmul.f32 %v4350_v43, %v13219_v56  ;;  %v4401_v18 = vmul.f32 %v13225_v60, %v13225_v60  ;;  %v5857_v9 = vmul.f32 0.5, %v13149_v27 }
 0x49b   :  { %7360 = vst [vmem:[%s15559_s5 + $0x888] sm:$0x7f] %v7048_v35  ;;  %v6479_v30 = vadd.f32 1.0, %v7815_v11  ;;  %7826 = vtanh.f32 %v5596_v2  ;;  %v4711_v42 = vmul.f32 %v4399_v22, %v13222_v57  ;;  %v13250_v3 = vadd.f32 %v2541_v0, %v16302_v59  ;;  %v2648_v0 = vpop.f32.mrf.mxu1 }
 0x49c   :  { %7362 = vst [vmem:[%s15559_s5 + $0x898] sm:$0x7f] %v7050_v29  ;;  %v4974_v33 = vmul.f32 0.044715, %v4662_v32  ;;  %v4713_v61 = vmul.f32 %v4401_v18, %v13225_v60  ;;  %v13253_v17 = vadd.f32 %v2642_v51, %v16302_v59  ;;  %v5856_v27 = vmul.f32 0.5, %v13159_v20  ;;  %v2551_v18 = vpop.f32.mrf.mxu0 }
 0x49d   :  { %v6791_v49 = vmul.f32 %v6479_v30, %v5855_v24  ;;  %v5023_v26 = vmul.f32 0.044715, %v4711_v42  ;;  %v13257_v31 = vadd.f32 %v2545_v14, %v16316_v34  ;;  %v5858_v52 = vmul.f32 0.5, %v13173_v15  ;;  %v2652_v14 = vpop.f32.mrf.mxu1 }
 0x49e   :  { %v5286_v55 = vadd.f32 %v4974_v33, %v13219_v56  ;;  %v5025_v53 = vmul.f32 0.044715, %v4713_v61  ;;  %v4400_v48 = vmul.f32 %v13250_v3, %v13250_v3  ;;  %v4402_v20 = vmul.f32 %v13253_v17, %v13253_v17 }
 0x49f   :  { %v7817_v54 = vpop.eup %7816  ;;  %7103 = vst [vmem:[%s15559_s5 + $0x80] sm:$0xff] %v6791_v49  ;;  %v5335_v6 = vadd.f32 %v5023_v26, %v13222_v57  ;;  %v4451_v62 = vmul.f32 %v13257_v31, %v13257_v31  ;;  %v13272_v15 = vadd.f32 %v2646_v10, %v16316_v34  ;;  %v5907_v45 = vmul.f32 0.5, %v13176_v40 }
 0x4a0   :  { %v6481_v21 = vadd.f32 1.0, %v7817_v54  ;;  %v5598_v46 = vmul.f32 0.7978846, %v5286_v55  ;;  %v5337_v41 = vadd.f32 %v5025_v53, %v13225_v60  ;;  %v4712_v39 = vmul.f32 %v4400_v48, %v13250_v3 }
 0x4a1   :  { %v7819_v25 = vpop.eup %7818  ;;  %v5647_v37 = vmul.f32 0.7978846, %v5335_v6  ;;  %v4714_v47 = vmul.f32 %v4402_v20, %v13253_v17  ;;  %v4763_v58 = vmul.f32 %v4451_v62, %v13257_v31  ;;  %v5909_v23 = vmul.f32 0.5, %v13181_v38  ;;  %v2553_v20 = vpop.f32.mrf.mxu0 }
 0x4a2   :  { %v6793_v5 = vmul.f32 %v6481_v21, %v5857_v9  ;;  %v6480_v13 = vadd.f32 1.0, %v7819_v25  ;;  %7828 = vtanh.f32 %v5598_v46  ;;  %v5649_v7 = vmul.f32 0.7978846, %v5337_v41  ;;  %v2654_v62 = vpop.f32.mrf.mxu1 }
 0x4a3   :  { %7830 = vtanh.f32 %v5647_v37  ;;  %v5024_v8 = vmul.f32 0.044715, %v4712_v39  ;;  %v5026_v28 = vmul.f32 0.044715, %v4714_v47  ;;  %v5075_v4 = vmul.f32 0.044715, %v4763_v58 }
 0x4a4   :  { %v7821_v1 = vpop.eup %7820  ;;  %7105 = vst [vmem:[%s15559_s5 + $0x90] sm:$0xff] %v6793_v5  ;;  %v6792_v40 = vmul.f32 %v6480_v13, %v5856_v27  ;;  %7832 = vtanh.f32 %v5649_v7  ;;  %v4453_v50 = vmul.f32 %v13272_v15, %v13272_v15  ;;  %v13293_v24 = vadd.f32 %v2547_v19, %v16316_v34 }
 0x4a5   :  { %v7823_v43 = vpop.eup %7822  ;;  %v6482_v51 = vadd.f32 1.0, %v7821_v1  ;;  %v5336_v35 = vadd.f32 %v5024_v8, %v13250_v3  ;;  %v5338_v2 = vadd.f32 %v5026_v28, %v13253_v17  ;;  %v5387_v22 = vadd.f32 %v5075_v4, %v13257_v31  ;;  %v2557_v4 = vpop.f32.mrf.mxu0 }
 0x4a6   :  { %v7825_v11 = vpop.eup %7824  ;;  %7104 = vst [vmem:[%s15559_s5 + $0x88] sm:$0xff] %v6792_v40  ;;  %v6531_v29 = vadd.f32 1.0, %v7823_v43  ;;  %v4765_v38 = vmul.f32 %v4453_v50, %v13272_v15  ;;  %v13296_v32 = vadd.f32 %v2648_v0, %v16316_v34  ;;  %v4452_v26 = vmul.f32 %v13293_v24, %v13293_v24 }
 0x4a7   :  { %v6794_v30 = vmul.f32 %v6482_v51, %v5858_v52  ;;  %v6533_v9 = vadd.f32 1.0, %v7825_v11  ;;  %v5648_v42 = vmul.f32 0.7978846, %v5336_v35  ;;  %v5650_v33 = vmul.f32 0.7978846, %v5338_v2 }
 0x4a8   :  { %v7827_v61 = vpop.eup %7826  ;;  %v6843_v10 = vmul.f32 %v6531_v29, %v5907_v45  ;;  %v5699_v49 = vmul.f32 0.7978846, %v5387_v22  ;;  %v5077_v27 = vmul.f32 0.044715, %v4765_v38  ;;  %v5908_v53 = vmul.f32 0.5, %v13191_v63  ;;  %v2658_v22 = vpop.f32.mrf.mxu1 }
 0x4a9   :  { %7106 = vst [vmem:[%s15559_s5 + $0x98] sm:$0xff] %v6794_v30  ;;  %v6845_v55 = vmul.f32 %v6533_v9, %v5909_v23  ;;  %v6532_v48 = vadd.f32 1.0, %v7827_v61  ;;  %7834 = vtanh.f32 %v5648_v42  ;;  %v4764_v54 = vmul.f32 %v4452_v26, %v13293_v24  ;;  %v2559_v42 = vpop.f32.mrf.mxu0 }
 0x4aa   :  { %7155 = vst [vmem:[%s15559_s5 + $0x220] sm:$0xff] %v6843_v10  ;;  %7836 = vtanh.f32 %v5650_v33  ;;  %v5389_v52 = vadd.f32 %v5077_v27, %v13272_v15  ;;  %v4454_v6 = vmul.f32 %v13296_v32, %v13296_v32  ;;  %v5910_v21 = vmul.f32 0.5, %v13219_v56 }
 0x4ab   :  { %7157 = vst [vmem:[%s15559_s5 + $0x230] sm:$0xff] %v6845_v55  ;;  %v6844_v63 = vmul.f32 %v6532_v48, %v5908_v53  ;;  %7838 = vtanh.f32 %v5699_v49  ;;  %v13316_v46 = vadd.f32 %v2551_v18, %v11763_v12  ;;  %v5076_v39 = vmul.f32 0.044715, %v4764_v54  ;;  %v2660_v53 = vpop.f32.mrf.mxu1 }
 0x4ac   :  { %v5701_v41 = vmul.f32 0.7978846, %v5389_v52  ;;  %v4766_v25 = vmul.f32 %v4454_v6, %v13296_v32  ;;  %v13320_v45 = vadd.f32 %v2652_v14, %v11763_v12  ;;  %v5959_v37 = vmul.f32 0.5, %v13222_v57 }
 0x4ad   :  { %7156 = vst [vmem:[%s15559_s5 + $0x228] sm:$0xff] %v6844_v63  ;;  %v4503_v56 = vmul.f32 %v13316_v46, %v13316_v46  ;;  %v13329_v47 = vadd.f32 %v2553_v20, %v11763_v12  ;;  %v13332_v58 = vadd.f32 %v2654_v62, %v11763_v12  ;;  %v5388_v5 = vadd.f32 %v5076_v39, %v13293_v24 }
 0x4ae   :  { %7840 = vtanh.f32 %v5701_v41  ;;  %v5078_v13 = vmul.f32 0.044715, %v4766_v25  ;;  %v4505_v7 = vmul.f32 %v13320_v45, %v13320_v45  ;;  %v5961_v0 = vmul.f32 0.5, %v13225_v60 }
 0x4af   :  { %v7829_v19 = vpop.eup %7828  ;;  %v5960_v57 = vmul.f32 0.5, %v13250_v3  ;;  %v4815_v8 = vmul.f32 %v4503_v56, %v13316_v46  ;;  %v4504_v28 = vmul.f32 %v13329_v47, %v13329_v47  ;;  %v5700_v23 = vmul.f32 0.7978846, %v5388_v5 }
 0x4b0   :  { %v7831_v1 = vpop.eup %7830  ;;  %v6534_v40 = vadd.f32 1.0, %v7829_v19  ;;  %v5390_v50 = vadd.f32 %v5078_v13, %v13296_v32  ;;  %v4817_v43 = vmul.f32 %v4505_v7, %v13320_v45  ;;  %v4506_v3 = vmul.f32 %v13332_v58, %v13332_v58  ;;  %v2729_v7 = vpop.f32.mrf.mxu0 }
 0x4b1   :  { %v7833_v51 = vpop.eup %7832  ;;  %v6583_v35 = vadd.f32 1.0, %v7831_v1  ;;  %v5127_v2 = vmul.f32 0.044715, %v4815_v8  ;;  %v4816_v60 = vmul.f32 %v4504_v28, %v13329_v47  ;;  %7842 = vtanh.f32 %v5700_v23  ;;  %v2830_v23 = vpop.f32.mrf.mxu1 }
 0x4b2   :  { %v6846_v11 = vmul.f32 %v6534_v40, %v5910_v21  ;;  %v6585_v29 = vadd.f32 1.0, %v7833_v51  ;;  %v5702_v38 = vmul.f32 0.7978846, %v5390_v50  ;;  %v5129_v30 = vmul.f32 0.044715, %v4817_v43 }
 0x4b3   :  { %v6895_v18 = vmul.f32 %v6583_v35, %v5959_v37  ;;  %v5439_v14 = vadd.f32 %v5127_v2, %v13316_v46  ;;  %v5128_v9 = vmul.f32 0.044715, %v4816_v60  ;;  %v5962_v61 = vmul.f32 0.5, %v13253_v17 }
 0x4b4   :  { %7158 = vst [vmem:[%s15559_s5 + $0x238] sm:$0xff] %v6846_v11  ;;  %v6897_v33 = vmul.f32 %v6585_v29, %v5961_v0  ;;  %7844 = vtanh.f32 %v5702_v38  ;;  %v4818_v10 = vmul.f32 %v4506_v3, %v13332_v58  ;;  %v5441_v27 = vadd.f32 %v5129_v30, %v13320_v45  ;;  %v2731_v3 = vpop.f32.mrf.mxu0 }
 0x4b5   :  { %7207 = vst [vmem:[%s15559_s5 + $0x3c0] sm:$0xff] %v6895_v18  ;;  %v5751_v49 = vmul.f32 0.7978846, %v5439_v14  ;;  %v5440_v26 = vadd.f32 %v5128_v9, %v13329_v47  ;;  %v13359_v55 = vadd.f32 %v2557_v4, %v11846_v44  ;;  %v6011_v17 = vmul.f32 0.5, %v13257_v31 }
 0x4b6   :  { %v7835_v48 = vpop.eup %7834  ;;  %7209 = vst [vmem:[%s15559_s5 + $0x3d0] sm:$0xff] %v6897_v33  ;;  %v5130_v52 = vmul.f32 0.044715, %v4818_v10  ;;  %v13366_v54 = vadd.f32 %v2658_v22, %v11846_v44  ;;  %v13369_v6 = vadd.f32 %v2559_v42, %v11846_v44  ;;  %v5753_v63 = vmul.f32 0.7978846, %v5441_v27 }
 0x4b7   :  { %v7837_v20 = vpop.eup %7836  ;;  %v6584_v62 = vadd.f32 1.0, %v7835_v48  ;;  %7846 = vtanh.f32 %v5751_v49  ;;  %v5752_v21 = vmul.f32 0.7978846, %v5440_v26  ;;  %v4555_v37 = vmul.f32 %v13359_v55, %v13359_v55 }
 0x4b8   :  { %v7839_v41 = vpop.eup %7838  ;;  %v6586_v39 = vadd.f32 1.0, %v7837_v20  ;;  %v5442_v25 = vadd.f32 %v5130_v52, %v13332_v58  ;;  %v13375_v31 = vadd.f32 %v2660_v53, %v11846_v44  ;;  %7848 = vtanh.f32 %v5753_v63  ;;  %v2832_v52 = vpop.f32.mrf.mxu1 }
 0x4b9   :  { %v6896_v56 = vmul.f32 %v6584_v62, %v5960_v57  ;;  %v6635_v5 = vadd.f32 1.0, %v7839_v41  ;;  %v4557_v13 = vmul.f32 %v13366_v54, %v13366_v54  ;;  %7850 = vtanh.f32 %v5752_v21  ;;  %v2735_v21 = vpop.f32.mrf.mxu0 }
 0x4ba   :  { %v6898_v19 = vmul.f32 %v6586_v39, %v5962_v61  ;;  %v5754_v0 = vmul.f32 0.7978846, %v5442_v25  ;;  %v4867_v8 = vmul.f32 %v4555_v37, %v13359_v55  ;;  %v6013_v1 = vmul.f32 0.5, %v13272_v15 }
 0x4bb   :  { %v7841_v28 = vpop.eup %7840  ;;  %7208 = vst [vmem:[%s15559_s5 + $0x3c8] sm:$0xff] %v6896_v56  ;;  %v6947_v4 = vmul.f32 %v6635_v5, %v6011_v17  ;;  %v4869_v57 = vmul.f32 %v4557_v13, %v13366_v54  ;;  %v4556_v40 = vmul.f32 %v13369_v6, %v13369_v6  ;;  %v6012_v43 = vmul.f32 0.5, %v13293_v24 }
 0x4bc   :  { %7210 = vst [vmem:[%s15559_s5 + $0x3d8] sm:$0xff] %v6898_v19  ;;  %v6637_v50 = vadd.f32 1.0, %v7841_v28  ;;  %7852 = vtanh.f32 %v5754_v0  ;;  %v5179_v51 = vmul.f32 0.044715, %v4867_v8  ;;  %v6014_v15 = vmul.f32 0.5, %v13296_v32 }
 0x4bd   :  { %7259 = vst [vmem:[%s15559_s5 + $0x560] sm:$0xff] %v6947_v4  ;;  %v5181_v35 = vmul.f32 0.044715, %v4869_v57  ;;  %v4868_v2 = vmul.f32 %v4556_v40, %v13369_v6  ;;  %v4558_v60 = vmul.f32 %v13375_v31, %v13375_v31  ;;  %v13400_v24 = vadd.f32 %v2729_v7, %v11442_v36  ;;  %v2836_v4 = vpop.f32.mrf.mxu1 }
 0x4be   :  { %v6949_v22 = vmul.f32 %v6637_v50, %v6013_v1  ;;  %v5491_v11 = vadd.f32 %v5179_v51, %v13359_v55  ;;  %v13403_v29 = vadd.f32 %v2830_v23, %v11442_v36  ;;  %v7843_v38 = vpop.eup %7842  ;;  %v6063_v18 = vmul.f32 0.5, %v13316_v46  ;;  %v2737_v50 = vpop.f32.mrf.mxu0 }
 0x4bf   :  { %v5493_v32 = vadd.f32 %v5181_v35, %v13366_v54  ;;  %v5180_v14 = vmul.f32 0.044715, %v4868_v2  ;;  %v4870_v30 = vmul.f32 %v4558_v60, %v13375_v31  ;;  %v6636_v9 = vadd.f32 1.0, %v7843_v38 }
 0x4c0   :  { %7261 = vst [vmem:[%s15559_s5 + $0x570] sm:$0xff] %v6949_v22  ;;  %v5803_v42 = vmul.f32 0.7978846, %v5491_v11  ;;  %v4299_v33 = vmul.f32 %v13400_v24, %v13400_v24  ;;  %v13414_v61 = vadd.f32 %v2731_v3, %v11442_v36  ;;  %v4301_v26 = vmul.f32 %v13403_v29, %v13403_v29 }
 0x4c1   :  { %v7845_v10 = vpop.eup %7844  ;;  %v5805_v49 = vmul.f32 0.7978846, %v5493_v32  ;;  %v5492_v46 = vadd.f32 %v5180_v14, %v13369_v6  ;;  %v5182_v27 = vmul.f32 0.044715, %v4870_v30  ;;  %v6948_v53 = vmul.f32 %v6636_v9, %v6012_v43  ;;  %v2838_v32 = vpop.f32.mrf.mxu1 }
 0x4c2   :  { %v6638_v48 = vadd.f32 1.0, %v7845_v10  ;;  %7854 = vtanh.f32 %v5803_v42  ;;  %v4611_v17 = vmul.f32 %v4299_v33, %v13400_v24  ;;  %v4613_v63 = vmul.f32 %v4301_v26, %v13403_v29  ;;  %v2741_v9 = vpop.f32.mrf.mxu0 }
 0x4c3   :  { %7856 = vtanh.f32 %v5805_v49  ;;  %v5804_v20 = vmul.f32 0.7978846, %v5492_v46  ;;  %v5494_v62 = vadd.f32 %v5182_v27, %v13375_v31  ;;  %7260 = vst [vmem:[%s15559_s5 + $0x568] sm:$0xff] %v6948_v53  ;;  %v6065_v25 = vmul.f32 0.5, %v13320_v45 }
 0x4c4   :  { %v7847_v41 = vpop.eup %7846  ;;  %v6950_v39 = vmul.f32 %v6638_v48, %v6014_v15  ;;  %v4923_v37 = vmul.f32 0.044715, %v4611_v17  ;;  %v4300_v56 = vmul.f32 %v13414_v61, %v13414_v61  ;;  %v4925_v7 = vmul.f32 0.044715, %v4613_v63 }
 0x4c5   :  { %v6687_v5 = vadd.f32 1.0, %v7847_v41  ;;  %7858 = vtanh.f32 %v5804_v20  ;;  %v5806_v13 = vmul.f32 0.7978846, %v5494_v62  ;;  %v7849_v19 = vpop.eup %7848  ;;  %v6064_v0 = vmul.f32 0.5, %v13329_v47 }
 0x4c6   :  { %7262 = vst [vmem:[%s15559_s5 + $0x578] sm:$0xff] %v6950_v39  ;;  %v5235_v8 = vadd.f32 %v4923_v37, %v13400_v24  ;;  %v4612_v28 = vmul.f32 %v4300_v56, %v13414_v61  ;;  %v13435_v45 = vadd.f32 %v2832_v52, %v11442_v36  ;;  %v7851_v1 = vpop.eup %7850  ;;  %v6689_v40 = vadd.f32 1.0, %v7849_v19  ;;  %v2842_v56 = vpop.f32.mrf.mxu1 }
 0x4c7   :  { %v6999_v57 = vmul.f32 %v6687_v5, %v6063_v18  ;;  %7860 = vtanh.f32 %v5806_v13  ;;  %v5237_v23 = vadd.f32 %v4925_v7, %v13403_v29  ;;  %v6688_v43 = vadd.f32 1.0, %v7851_v1 }
 0x4c8   :  { %v5547_v51 = vmul.f32 0.7978846, %v5235_v8  ;;  %v4924_v15 = vmul.f32 0.044715, %v4612_v28  ;;  %v4302_v47 = vmul.f32 %v13435_v45, %v13435_v45  ;;  %v7001_v2 = vmul.f32 %v6689_v40, %v6065_v25  ;;  %v2743_v40 = vpop.f32.mrf.mxu0 }
 0x4c9   :  { %v7853_v35 = vpop.eup %7852  ;;  %7311 = vst [vmem:[%s15559_s5 + $0x700] sm:$0xff] %v6999_v57  ;;  %v6066_v60 = vmul.f32 0.5, %v13332_v58  ;;  %v5549_v3 = vmul.f32 0.7978846, %v5237_v23  ;;  %v13445_v22 = vadd.f32 %v2735_v21, %v16289_v16  ;;  %v7000_v11 = vmul.f32 %v6688_v43, %v6064_v0 }
 0x4ca   :  { %v6690_v38 = vadd.f32 1.0, %v7853_v35  ;;  %7862 = vtanh.f32 %v5547_v51  ;;  %v5236_v18 = vadd.f32 %v4924_v15, %v13414_v61  ;;  %7313 = vst [vmem:[%s15559_s5 + $0x710] sm:$0xff] %v7001_v2  ;;  %v6115_v14 = vmul.f32 0.5, %v13359_v55 }
 0x4cb   :  { %7864 = vtanh.f32 %v5549_v3  ;;  %v4614_v30 = vmul.f32 %v4302_v47, %v13435_v45  ;;  %v4351_v58 = vmul.f32 %v13445_v22, %v13445_v22  ;;  %7312 = vst [vmem:[%s15559_s5 + $0x708] sm:$0xff] %v7000_v11  ;;  %v13459_v10 = vadd.f32 %v2836_v4, %v16289_v16  ;;  %v2844_v47 = vpop.f32.mrf.mxu1 }
 0x4cc   :  { %v7002_v42 = vmul.f32 %v6690_v38, %v6066_v60  ;;  %v5548_v33 = vmul.f32 0.7978846, %v5236_v18  ;;  %v13462_v49 = vadd.f32 %v2737_v50, %v16289_v16  ;;  %v6117_v55 = vmul.f32 0.5, %v13366_v54 }
 0x4cd   :  { %v4926_v46 = vmul.f32 0.044715, %v4614_v30  ;;  %v4663_v27 = vmul.f32 %v4351_v58, %v13445_v22  ;;  %v13467_v26 = vadd.f32 %v2838_v32, %v16289_v16  ;;  %v4353_v53 = vmul.f32 %v13459_v10, %v13459_v10 }
 0x4ce   :  { %7314 = vst [vmem:[%s15559_s5 + $0x718] sm:$0xff] %v7002_v42  ;;  %7866 = vtanh.f32 %v5548_v33  ;;  %v4352_v48 = vmul.f32 %v13462_v49, %v13462_v49  ;;  %v13477_v17 = vadd.f32 %v2741_v9, %v16302_v59  ;;  %v6116_v52 = vmul.f32 0.5, %v13369_v6  ;;  %v2747_v9 = vpop.f32.mrf.mxu0 }
 0x4cf   :  { %v7855_v54 = vpop.eup %7854  ;;  %v5238_v20 = vadd.f32 %v4926_v46, %v13435_v45  ;;  %v4975_v62 = vmul.f32 0.044715, %v4663_v27  ;;  %v4354_v63 = vmul.f32 %v13467_v26, %v13467_v26  ;;  %v6118_v39 = vmul.f32 0.5, %v13375_v31 }
 0x4d0   :  { %v7857_v21 = vpop.eup %7856  ;;  %v6739_v41 = vadd.f32 1.0, %v7855_v54  ;;  %v4665_v25 = vmul.f32 %v4353_v53, %v13459_v10  ;;  %v4664_v37 = vmul.f32 %v4352_v48, %v13462_v49  ;;  %v4403_v4 = vmul.f32 %v13477_v17, %v13477_v17  ;;  %v2848_v54 = vpop.f32.mrf.mxu1 }
 0x4d1   :  { %v6741_v5 = vadd.f32 1.0, %v7857_v21  ;;  %v5550_v13 = vmul.f32 0.7978846, %v5238_v20  ;;  %v5287_v7 = vadd.f32 %v4975_v62, %v13445_v22  ;;  %v4666_v6 = vmul.f32 %v4354_v63, %v13467_v26 }
 0x4d2   :  { %v7859_v19 = vpop.eup %7858  ;;  %v7051_v0 = vmul.f32 %v6739_v41, %v6115_v14  ;;  %v4977_v8 = vmul.f32 0.044715, %v4665_v25  ;;  %v4976_v28 = vmul.f32 0.044715, %v4664_v37  ;;  %v4715_v15 = vmul.f32 %v4403_v4, %v13477_v17  ;;  %v2749_v25 = vpop.f32.mrf.mxu0 }
 0x4d3   :  { %v7053_v1 = vmul.f32 %v6741_v5, %v6117_v55  ;;  %v6740_v31 = vadd.f32 1.0, %v7859_v19  ;;  %7868 = vtanh.f32 %v5550_v13  ;;  %v5599_v57 = vmul.f32 0.7978846, %v5287_v7  ;;  %v2850_v19 = vpop.f32.mrf.mxu1 }
 0x4d4   :  { %v7861_v23 = vpop.eup %7860  ;;  %7363 = vst [vmem:[%s15559_s5 + $0x8a0] sm:$0x7f] %v7051_v0  ;;  %v5289_v50 = vadd.f32 %v4977_v8, %v13459_v10  ;;  %v5288_v43 = vadd.f32 %v4976_v28, %v13462_v49  ;;  %v4978_v51 = vmul.f32 0.044715, %v4666_v6  ;;  %v5859_v60 = vmul.f32 0.5, %v13400_v24 }
 0x4d5   :  { %7365 = vst [vmem:[%s15559_s5 + $0x8b0] sm:$0x7f] %v7053_v1  ;;  %v7052_v35 = vmul.f32 %v6740_v31, %v6116_v52  ;;  %v6742_v2 = vadd.f32 1.0, %v7861_v23  ;;  %7870 = vtanh.f32 %v5599_v57  ;;  %v5027_v18 = vmul.f32 0.044715, %v4715_v15 }
 0x4d6   :  { %v5601_v3 = vmul.f32 0.7978846, %v5289_v50  ;;  %v5600_v11 = vmul.f32 0.7978846, %v5288_v43  ;;  %v5290_v38 = vadd.f32 %v4978_v51, %v13467_v26  ;;  %v13505_v30 = vadd.f32 %v2842_v56, %v16302_v59 }
 0x4d7   :  { %v7863_v32 = vpop.eup %7862  ;;  %7364 = vst [vmem:[%s15559_s5 + $0x8a8] sm:$0x7f] %v7052_v35  ;;  %v7054_v14 = vmul.f32 %v6742_v2, %v6118_v39  ;;  %v13508_v58 = vadd.f32 %v2743_v40, %v16302_v59  ;;  %v13511_v24 = vadd.f32 %v2844_v47, %v16302_v59  ;;  %v5339_v46 = vadd.f32 %v5027_v18, %v13477_v17 }
 0x4d8   :  { %v7865_v42 = vpop.eup %7864  ;;  %v6483_v33 = vadd.f32 1.0, %v7863_v32  ;;  %7872 = vtanh.f32 %v5601_v3  ;;  %v5602_v55 = vmul.f32 0.7978846, %v5290_v38  ;;  %v5861_v27 = vmul.f32 0.5, %v13403_v29 }
 0x4d9   :  { %7366 = vst [vmem:[%s15559_s5 + $0x8b8] sm:$0x7f] %v7054_v14  ;;  %v6485_v53 = vadd.f32 1.0, %v7865_v42  ;;  %7874 = vtanh.f32 %v5600_v11  ;;  %v4405_v48 = vmul.f32 %v13505_v30, %v13505_v30  ;;  %v5651_v20 = vmul.f32 0.7978846, %v5339_v46  ;;  %v2753_v14 = vpop.f32.mrf.mxu0 }
 0x4da   :  { %v6795_v52 = vmul.f32 %v6483_v33, %v5859_v60  ;;  %7876 = vtanh.f32 %v5602_v55  ;;  %v4404_v62 = vmul.f32 %v13508_v58, %v13508_v58  ;;  %v5860_v41 = vmul.f32 0.5, %v13414_v61 }
 0x4db   :  { %v7867_v63 = vpop.eup %7866  ;;  %v6797_v21 = vmul.f32 %v6485_v53, %v5861_v27  ;;  %v4717_v39 = vmul.f32 %v4405_v48, %v13505_v30  ;;  %v4406_v29 = vmul.f32 %v13511_v24, %v13511_v24  ;;  %v5862_v56 = vmul.f32 0.5, %v13435_v45 }
 0x4dc   :  { %7107 = vst [vmem:[%s15559_s5 + $0xa0] sm:$0xff] %v6795_v52  ;;  %v6484_v37 = vadd.f32 1.0, %v7867_v63  ;;  %7878 = vtanh.f32 %v5651_v20  ;;  %v4716_v5 = vmul.f32 %v4404_v62, %v13508_v58  ;;  %v13536_v7 = vadd.f32 %v2747_v9, %v16316_v34  ;;  %v2854_v9 = vpop.f32.mrf.mxu1 }
 0x4dd   :  { %7109 = vst [vmem:[%s15559_s5 + $0xb0] sm:$0xff] %v6797_v21  ;;  %v5029_v61 = vmul.f32 0.044715, %v4717_v39  ;;  %v4718_v13 = vmul.f32 %v4406_v29, %v13511_v24  ;;  %v13539_v6 = vadd.f32 %v2848_v54, %v16316_v34  ;;  %v5911_v45 = vmul.f32 0.5, %v13445_v22  ;;  %v2755_v29 = vpop.f32.mrf.mxu0 }
 0x4de   :  { %v6796_v0 = vmul.f32 %v6484_v37, %v5860_v41  ;;  %v5028_v8 = vmul.f32 0.044715, %v4716_v5  ;;  %v13543_v28 = vadd.f32 %v2749_v25, %v16316_v34  ;;  %v5913_v4 = vmul.f32 0.5, %v13459_v10  ;;  %v2856_v25 = vpop.f32.mrf.mxu1 }
 0x4df   :  { %v5341_v1 = vadd.f32 %v5029_v61, %v13505_v30  ;;  %v5030_v31 = vmul.f32 0.044715, %v4718_v13  ;;  %v4455_v57 = vmul.f32 %v13536_v7, %v13536_v7  ;;  %v4457_v22 = vmul.f32 %v13539_v6, %v13539_v6 }
 0x4e0   :  { %v7869_v40 = vpop.eup %7868  ;;  %7108 = vst [vmem:[%s15559_s5 + $0xa8] sm:$0xff] %v6796_v0  ;;  %v5340_v23 = vadd.f32 %v5028_v8, %v13508_v58  ;;  %v4456_v50 = vmul.f32 %v13543_v28, %v13543_v28  ;;  %v13558_v10 = vadd.f32 %v2850_v19, %v16316_v34  ;;  %v5912_v2 = vmul.f32 0.5, %v13462_v49 }
 0x4e1   :  { %v6486_v43 = vadd.f32 1.0, %v7869_v40  ;;  %v5653_v51 = vmul.f32 0.7978846, %v5341_v1  ;;  %v5342_v15 = vadd.f32 %v5030_v31, %v13511_v24  ;;  %v4767_v47 = vmul.f32 %v4455_v57, %v13536_v7 }
 0x4e2   :  { %v7871_v35 = vpop.eup %7870  ;;  %v5652_v60 = vmul.f32 0.7978846, %v5340_v23  ;;  %v4769_v3 = vmul.f32 %v4457_v22, %v13539_v6  ;;  %v4768_v11 = vmul.f32 %v4456_v50, %v13543_v28  ;;  %v5914_v27 = vmul.f32 0.5, %v13467_v26  ;;  %v2759_v22 = vpop.f32.mrf.mxu0 }
 0x4e3   :  { %v6798_v38 = vmul.f32 %v6486_v43, %v5862_v56  ;;  %v6535_v18 = vadd.f32 1.0, %v7871_v35  ;;  %7880 = vtanh.f32 %v5653_v51  ;;  %v5654_v32 = vmul.f32 0.7978846, %v5342_v15  ;;  %v2860_v50 = vpop.f32.mrf.mxu1 }
 0x4e4   :  { %7882 = vtanh.f32 %v5652_v60  ;;  %v5079_v42 = vmul.f32 0.044715, %v4767_v47  ;;  %v5081_v33 = vmul.f32 0.044715, %v4769_v3  ;;  %v5080_v55 = vmul.f32 0.044715, %v4768_v11 }
 0x4e5   :  { %v7873_v46 = vpop.eup %7872  ;;  %7110 = vst [vmem:[%s15559_s5 + $0xb8] sm:$0xff] %v6798_v38  ;;  %v6847_v49 = vmul.f32 %v6535_v18, %v5911_v45  ;;  %7884 = vtanh.f32 %v5654_v32  ;;  %v4458_v53 = vmul.f32 %v13558_v10, %v13558_v10  ;;  %v13579_v41 = vadd.f32 %v2753_v14, %v11763_v12 }
 0x4e6   :  { %v7875_v48 = vpop.eup %7874  ;;  %v6537_v54 = vadd.f32 1.0, %v7873_v46  ;;  %v5391_v52 = vadd.f32 %v5079_v42, %v13536_v7  ;;  %v5393_v20 = vadd.f32 %v5081_v33, %v13539_v6  ;;  %v5392_v62 = vadd.f32 %v5080_v55, %v13543_v28  ;;  %v2761_v55 = vpop.f32.mrf.mxu0 }
 0x4e7   :  { %v7877_v63 = vpop.eup %7876  ;;  %7159 = vst [vmem:[%s15559_s5 + $0x240] sm:$0xff] %v6847_v49  ;;  %v6536_v21 = vadd.f32 1.0, %v7875_v48  ;;  %v4770_v26 = vmul.f32 %v4458_v53, %v13558_v10  ;;  %v13582_v39 = vadd.f32 %v2854_v9, %v11763_v12  ;;  %v4507_v8 = vmul.f32 %v13579_v41, %v13579_v41 }
 0x4e8   :  { %v6849_v37 = vmul.f32 %v6537_v54, %v5913_v4  ;;  %v6538_v56 = vadd.f32 1.0, %v7877_v63  ;;  %v5703_v5 = vmul.f32 0.7978846, %v5391_v52  ;;  %v5705_v61 = vmul.f32 0.7978846, %v5393_v20 }
 0x4e9   :  { %v7879_v13 = vpop.eup %7878  ;;  %v6848_v19 = vmul.f32 %v6536_v21, %v5912_v2  ;;  %v5704_v0 = vmul.f32 0.7978846, %v5392_v62  ;;  %v5082_v45 = vmul.f32 0.044715, %v4770_v26  ;;  %v5963_v31 = vmul.f32 0.5, %v13477_v17  ;;  %v2862_v62 = vpop.f32.mrf.mxu1 }
 0x4ea   :  { %7161 = vst [vmem:[%s15559_s5 + $0x250] sm:$0xff] %v6849_v37  ;;  %v6850_v1 = vmul.f32 %v6538_v56, %v5914_v27  ;;  %v6587_v57 = vadd.f32 1.0, %v7879_v13  ;;  %7886 = vtanh.f32 %v5703_v5  ;;  %v4819_v40 = vmul.f32 %v4507_v8, %v13579_v41  ;;  %v2931_v5 = vpop.f32.mrf.mxu0 }
 0x4eb   :  { %7160 = vst [vmem:[%s15559_s5 + $0x248] sm:$0xff] %v6848_v19  ;;  %7888 = vtanh.f32 %v5705_v61  ;;  %v5394_v4 = vadd.f32 %v5082_v45, %v13558_v10  ;;  %v4509_v23 = vmul.f32 %v13582_v39, %v13582_v39  ;;  %v5965_v43 = vmul.f32 0.5, %v13505_v30 }
 0x4ec   :  { %7162 = vst [vmem:[%s15559_s5 + $0x258] sm:$0xff] %v6850_v1  ;;  %v6899_v17 = vmul.f32 %v6587_v57, %v5963_v31  ;;  %7890 = vtanh.f32 %v5704_v0  ;;  %v13602_v51 = vadd.f32 %v2755_v29, %v11763_v12  ;;  %v5131_v47 = vmul.f32 0.044715, %v4819_v40  ;;  %v3032_v31 = vpop.f32.mrf.mxu1 }
 0x4ed   :  { %v5706_v15 = vmul.f32 0.7978846, %v5394_v4  ;;  %v4821_v35 = vmul.f32 %v4509_v23, %v13582_v39  ;;  %v13606_v2 = vadd.f32 %v2856_v25, %v11763_v12  ;;  %v5964_v60 = vmul.f32 0.5, %v13508_v58 }
 0x4ee   :  { %7211 = vst [vmem:[%s15559_s5 + $0x3e0] sm:$0xff] %v6899_v17  ;;  %v4508_v30 = vmul.f32 %v13602_v51, %v13602_v51  ;;  %v13615_v3 = vadd.f32 %v2759_v22, %v11846_v44  ;;  %v13618_v11 = vadd.f32 %v2860_v50, %v11846_v44  ;;  %v5443_v38 = vadd.f32 %v5131_v47, %v13579_v41 }
 0x4ef   :  { %7892 = vtanh.f32 %v5706_v15  ;;  %v5133_v18 = vmul.f32 0.044715, %v4821_v35  ;;  %v4510_v32 = vmul.f32 %v13606_v2, %v13606_v2  ;;  %v5966_v9 = vmul.f32 0.5, %v13511_v24 }
 0x4f0   :  { %v7881_v14 = vpop.eup %7880  ;;  %v6015_v58 = vmul.f32 0.5, %v13536_v7  ;;  %v4820_v42 = vmul.f32 %v4508_v30, %v13602_v51  ;;  %v4559_v33 = vmul.f32 %v13615_v3, %v13615_v3  ;;  %v5755_v27 = vmul.f32 0.7978846, %v5443_v38 }
 0x4f1   :  { %v7883_v46 = vpop.eup %7882  ;;  %v6589_v49 = vadd.f32 1.0, %v7881_v14  ;;  %v5445_v53 = vadd.f32 %v5133_v18, %v13582_v39  ;;  %v4822_v48 = vmul.f32 %v4510_v32, %v13606_v2  ;;  %v4561_v7 = vmul.f32 %v13618_v11, %v13618_v11  ;;  %v2933_v32 = vpop.f32.mrf.mxu0 }
 0x4f2   :  { %v7885_v54 = vpop.eup %7884  ;;  %v6588_v52 = vadd.f32 1.0, %v7883_v46  ;;  %v5132_v20 = vmul.f32 0.044715, %v4820_v42  ;;  %v4871_v24 = vmul.f32 %v4559_v33, %v13615_v3  ;;  %7894 = vtanh.f32 %v5755_v27  ;;  %v3034_v27 = vpop.f32.mrf.mxu1 }
 0x4f3   :  { %v6901_v63 = vmul.f32 %v6589_v49, %v5965_v43  ;;  %v6590_v21 = vadd.f32 1.0, %v7885_v54  ;;  %v5757_v26 = vmul.f32 0.7978846, %v5445_v53  ;;  %v5134_v37 = vmul.f32 0.044715, %v4822_v48 }
 0x4f4   :  { %v6900_v29 = vmul.f32 %v6588_v52, %v5964_v60  ;;  %v5444_v25 = vadd.f32 %v5132_v20, %v13602_v51  ;;  %v5183_v56 = vmul.f32 0.044715, %v4871_v24  ;;  %v6017_v13 = vmul.f32 0.5, %v13539_v6 }
 0x4f5   :  { %7213 = vst [vmem:[%s15559_s5 + $0x3f0] sm:$0xff] %v6901_v63  ;;  %v6902_v61 = vmul.f32 %v6590_v21, %v5966_v9  ;;  %7896 = vtanh.f32 %v5757_v26  ;;  %v4873_v19 = vmul.f32 %v4561_v7, %v13618_v11  ;;  %v5446_v45 = vadd.f32 %v5134_v37, %v13606_v2  ;;  %v2937_v7 = vpop.f32.mrf.mxu0 }
 0x4f6   :  { %7212 = vst [vmem:[%s15559_s5 + $0x3e8] sm:$0xff] %v6900_v29  ;;  %v5756_v0 = vmul.f32 0.7978846, %v5444_v25  ;;  %v5495_v8 = vadd.f32 %v5183_v56, %v13615_v3  ;;  %v13645_v1 = vadd.f32 %v2761_v55, %v11846_v44  ;;  %v6016_v6 = vmul.f32 0.5, %v13543_v28 }
 0x4f7   :  { %v7887_v57 = vpop.eup %7886  ;;  %7214 = vst [vmem:[%s15559_s5 + $0x3f8] sm:$0xff] %v6902_v61  ;;  %v5185_v4 = vmul.f32 0.044715, %v4873_v19  ;;  %v13652_v40 = vadd.f32 %v2862_v62, %v11846_v44  ;;  %v13655_v23 = vadd.f32 %v2931_v5, %v11442_v36  ;;  %v5758_v17 = vmul.f32 0.7978846, %v5446_v45 }
 0x4f8   :  { %v7889_v22 = vpop.eup %7888  ;;  %v6639_v50 = vadd.f32 1.0, %v7887_v57  ;;  %7898 = vtanh.f32 %v5756_v0  ;;  %v5807_v43 = vmul.f32 0.7978846, %v5495_v8  ;;  %v4560_v60 = vmul.f32 %v13645_v1, %v13645_v1 }
 0x4f9   :  { %v7891_v15 = vpop.eup %7890  ;;  %v6641_v47 = vadd.f32 1.0, %v7889_v22  ;;  %v5497_v35 = vadd.f32 %v5185_v4, %v13618_v11  ;;  %v13661_v28 = vadd.f32 %v3032_v31, %v11442_v36  ;;  %7900 = vtanh.f32 %v5758_v17  ;;  %v3038_v4 = vpop.f32.mrf.mxu1 }
 0x4fa   :  { %v6951_v30 = vmul.f32 %v6639_v50, %v6015_v58  ;;  %v6640_v38 = vadd.f32 1.0, %v7891_v15  ;;  %v4562_v18 = vmul.f32 %v13652_v40, %v13652_v40  ;;  %7902 = vtanh.f32 %v5807_v43  ;;  %v2939_v43 = vpop.f32.mrf.mxu0 }
 0x4fb   :  { %v6953_v14 = vmul.f32 %v6641_v47, %v6017_v13  ;;  %v5809_v9 = vmul.f32 0.7978846, %v5497_v35  ;;  %v4872_v42 = vmul.f32 %v4560_v60, %v13645_v1  ;;  %v6018_v46 = vmul.f32 0.5, %v13558_v10 }
 0x4fc   :  { %v7893_v33 = vpop.eup %7892  ;;  %7263 = vst [vmem:[%s15559_s5 + $0x580] sm:$0xff] %v6951_v30  ;;  %v6952_v55 = vmul.f32 %v6640_v38, %v6016_v6  ;;  %v4874_v58 = vmul.f32 %v4562_v18, %v13652_v40  ;;  %v4303_v49 = vmul.f32 %v13655_v23, %v13655_v23  ;;  %v6067_v48 = vmul.f32 0.5, %v13579_v41 }
 0x4fd   :  { %7265 = vst [vmem:[%s15559_s5 + $0x590] sm:$0xff] %v6953_v14  ;;  %v6642_v53 = vadd.f32 1.0, %v7893_v33  ;;  %7904 = vtanh.f32 %v5809_v9  ;;  %v5184_v54 = vmul.f32 0.044715, %v4872_v42  ;;  %v6069_v10 = vmul.f32 0.5, %v13582_v39 }
 0x4fe   :  { %7264 = vst [vmem:[%s15559_s5 + $0x588] sm:$0xff] %v6952_v55  ;;  %v5186_v52 = vmul.f32 0.044715, %v4874_v58  ;;  %v4615_v20 = vmul.f32 %v4303_v49, %v13655_v23  ;;  %v4305_v24 = vmul.f32 %v13661_v28, %v13661_v28  ;;  %v13686_v41 = vadd.f32 %v2933_v32, %v11442_v36  ;;  %v3040_v55 = vpop.f32.mrf.mxu1 }
 0x4ff   :  { %v6954_v62 = vmul.f32 %v6642_v53, %v6018_v46  ;;  %v5496_v63 = vadd.f32 %v5184_v54, %v13645_v1  ;;  %v13689_v21 = vadd.f32 %v3034_v27, %v11442_v36  ;;  %v7895_v26 = vpop.eup %7894  ;;  %v6068_v29 = vmul.f32 0.5, %v13602_v51  ;;  %v2943_v53 = vpop.f32.mrf.mxu0 }
 0x500   :  { %v5498_v39 = vadd.f32 %v5186_v52, %v13652_v40  ;;  %v4927_v25 = vmul.f32 0.044715, %v4615_v20  ;;  %v4617_v37 = vmul.f32 %v4305_v24, %v13661_v28  ;;  %v6691_v56 = vadd.f32 1.0, %v7895_v26 }
 0x501   :  { %7266 = vst [vmem:[%s15559_s5 + $0x598] sm:$0xff] %v6954_v62  ;;  %v5808_v5 = vmul.f32 0.7978846, %v5496_v63  ;;  %v4304_v61 = vmul.f32 %v13686_v41, %v13686_v41  ;;  %v13700_v13 = vadd.f32 %v2937_v7, %v16289_v16  ;;  %v4306_v8 = vmul.f32 %v13689_v21, %v13689_v21 }
 0x502   :  { %v7897_v19 = vpop.eup %7896  ;;  %v5810_v0 = vmul.f32 0.7978846, %v5498_v39  ;;  %v5239_v51 = vadd.f32 %v4927_v25, %v13655_v23  ;;  %v4929_v45 = vmul.f32 0.044715, %v4617_v37  ;;  %v7003_v31 = vmul.f32 %v6691_v56, %v6067_v48  ;;  %v3044_v39 = vpop.f32.mrf.mxu1 }
 0x503   :  { %v6693_v57 = vadd.f32 1.0, %v7897_v19  ;;  %7906 = vtanh.f32 %v5808_v5  ;;  %v4616_v6 = vmul.f32 %v4304_v61, %v13686_v41  ;;  %v4618_v17 = vmul.f32 %v4306_v8, %v13689_v21  ;;  %v2945_v56 = vpop.f32.mrf.mxu0 }
 0x504   :  { %7908 = vtanh.f32 %v5810_v0  ;;  %v5551_v22 = vmul.f32 0.7978846, %v5239_v51  ;;  %v5241_v50 = vadd.f32 %v4929_v45, %v13661_v28  ;;  %7315 = vst [vmem:[%s15559_s5 + $0x720] sm:$0xff] %v7003_v31  ;;  %v6070_v35 = vmul.f32 0.5, %v13606_v2 }
 0x505   :  { %v7899_v15 = vpop.eup %7898  ;;  %v7005_v47 = vmul.f32 %v6693_v57, %v6069_v10  ;;  %v4928_v60 = vmul.f32 0.044715, %v4616_v6  ;;  %v4355_v30 = vmul.f32 %v13700_v13, %v13700_v13  ;;  %v4930_v32 = vmul.f32 0.044715, %v4618_v17 }
 0x506   :  { %v6692_v38 = vadd.f32 1.0, %v7899_v15  ;;  %7910 = vtanh.f32 %v5551_v22  ;;  %v5553_v18 = vmul.f32 0.7978846, %v5241_v50  ;;  %v7901_v14 = vpop.eup %7900  ;;  %v6119_v9 = vmul.f32 0.5, %v13615_v3 }
 0x507   :  { %7317 = vst [vmem:[%s15559_s5 + $0x730] sm:$0xff] %v7005_v47  ;;  %v5240_v42 = vadd.f32 %v4928_v60, %v13686_v41  ;;  %v4667_v33 = vmul.f32 %v4355_v30, %v13700_v13  ;;  %v13721_v2 = vadd.f32 %v3038_v4, %v16289_v16  ;;  %v7903_v46 = vpop.eup %7902  ;;  %v6694_v49 = vadd.f32 1.0, %v7901_v14  ;;  %v3046_v30 = vpop.f32.mrf.mxu1 }
 0x508   :  { %v7004_v58 = vmul.f32 %v6692_v38, %v6068_v29  ;;  %7912 = vtanh.f32 %v5553_v18  ;;  %v5242_v27 = vadd.f32 %v4930_v32, %v13689_v21  ;;  %v6743_v48 = vadd.f32 1.0, %v7903_v46 }
 0x509   :  { %v5552_v54 = vmul.f32 0.7978846, %v5240_v42  ;;  %v4979_v10 = vmul.f32 0.044715, %v4667_v33  ;;  %v4357_v3 = vmul.f32 %v13721_v2, %v13721_v2  ;;  %v7006_v20 = vmul.f32 %v6694_v49, %v6070_v35  ;;  %v2949_v49 = vpop.f32.mrf.mxu0 }
 0x50a   :  { %v7905_v52 = vpop.eup %7904  ;;  %7316 = vst [vmem:[%s15559_s5 + $0x728] sm:$0xff] %v7004_v58  ;;  %v6121_v24 = vmul.f32 0.5, %v13618_v11  ;;  %v5554_v7 = vmul.f32 0.7978846, %v5242_v27  ;;  %v13731_v62 = vadd.f32 %v2939_v43, %v16289_v16  ;;  %v7055_v63 = vmul.f32 %v6743_v48, %v6119_v9 }
 0x50b   :  { %v6745_v26 = vadd.f32 1.0, %v7905_v52  ;;  %7914 = vtanh.f32 %v5552_v54  ;;  %v5291_v29 = vadd.f32 %v4979_v10, %v13700_v13  ;;  %7318 = vst [vmem:[%s15559_s5 + $0x738] sm:$0xff] %v7006_v20  ;;  %v6120_v25 = vmul.f32 0.5, %v13645_v1 }
 0x50c   :  { %7916 = vtanh.f32 %v5554_v7  ;;  %v4669_v37 = vmul.f32 %v4357_v3, %v13721_v2  ;;  %v4356_v11 = vmul.f32 %v13731_v62, %v13731_v62  ;;  %7367 = vst [vmem:[%s15559_s5 + $0x8c0] sm:$0x7f] %v7055_v63  ;;  %v13745_v19 = vadd.f32 %v3040_v55, %v16289_v16  ;;  %v3050_v3 = vpop.f32.mrf.mxu1 }
 0x50d   :  { %v7057_v5 = vmul.f32 %v6745_v26, %v6121_v24  ;;  %v5603_v61 = vmul.f32 0.7978846, %v5291_v29  ;;  %v13748_v0 = vadd.f32 %v2943_v53, %v16302_v59  ;;  %v6122_v1 = vmul.f32 0.5, %v13652_v40 }
 0x50e   :  { %v4981_v51 = vmul.f32 0.044715, %v4669_v37  ;;  %v4668_v45 = vmul.f32 %v4356_v11, %v13731_v62  ;;  %v13753_v8 = vadd.f32 %v3044_v39, %v16302_v59  ;;  %v4358_v31 = vmul.f32 %v13745_v19, %v13745_v19 }
 0x50f   :  { %7369 = vst [vmem:[%s15559_s5 + $0x8d0] sm:$0x7f] %v7057_v5  ;;  %7918 = vtanh.f32 %v5603_v61  ;;  %v4407_v57 = vmul.f32 %v13748_v0, %v13748_v0  ;;  %v13763_v6 = vadd.f32 %v2945_v56, %v16302_v59  ;;  %v5863_v4 = vmul.f32 0.5, %v13655_v23  ;;  %v2951_v56 = vpop.f32.mrf.mxu0 }
 0x510   :  { %v7907_v40 = vpop.eup %7906  ;;  %v5293_v22 = vadd.f32 %v4981_v51, %v13721_v2  ;;  %v4980_v50 = vmul.f32 0.044715, %v4668_v45  ;;  %v4409_v17 = vmul.f32 %v13753_v8, %v13753_v8  ;;  %v5865_v47 = vmul.f32 0.5, %v13661_v28 }
 0x511   :  { %v7909_v43 = vpop.eup %7908  ;;  %v6744_v15 = vadd.f32 1.0, %v7907_v40  ;;  %v4670_v35 = vmul.f32 %v4358_v31, %v13745_v19  ;;  %v4719_v60 = vmul.f32 %v4407_v57, %v13748_v0  ;;  %v4408_v55 = vmul.f32 %v13763_v6, %v13763_v6  ;;  %v3052_v40 = vpop.f32.mrf.mxu1 }
 0x512   :  { %v6746_v38 = vadd.f32 1.0, %v7909_v43  ;;  %v5605_v18 = vmul.f32 0.7978846, %v5293_v22  ;;  %v5292_v32 = vadd.f32 %v4980_v50, %v13731_v62  ;;  %v4721_v23 = vmul.f32 %v4409_v17, %v13753_v8 }
 0x513   :  { %v7911_v14 = vpop.eup %7910  ;;  %v7056_v9 = vmul.f32 %v6744_v15, %v6120_v25  ;;  %v4982_v42 = vmul.f32 0.044715, %v4670_v35  ;;  %v5031_v33 = vmul.f32 0.044715, %v4719_v60  ;;  %v4720_v10 = vmul.f32 %v4408_v55, %v13763_v6  ;;  %v2955_v35 = vpop.f32.mrf.mxu0 }
 0x514   :  { %v7058_v46 = vmul.f32 %v6746_v38, %v6122_v1  ;;  %v6487_v28 = vadd.f32 1.0, %v7911_v14  ;;  %7920 = vtanh.f32 %v5605_v18  ;;  %v5604_v58 = vmul.f32 0.7978846, %v5292_v32  ;;  %v3056_v14 = vpop.f32.mrf.mxu1 }
 0x515   :  { %v7913_v27 = vpop.eup %7912  ;;  %7368 = vst [vmem:[%s15559_s5 + $0x8c8] sm:$0x7f] %v7056_v9  ;;  %v5294_v53 = vadd.f32 %v4982_v42, %v13745_v19  ;;  %v5343_v48 = vadd.f32 %v5031_v33, %v13748_v0  ;;  %v5033_v54 = vmul.f32 0.044715, %v4721_v23  ;;  %v5864_v24 = vmul.f32 0.5, %v13686_v41 }
 0x516   :  { %7370 = vst [vmem:[%s15559_s5 + $0x8d8] sm:$0x7f] %v7058_v46  ;;  %v6799_v52 = vmul.f32 %v6487_v28, %v5863_v4  ;;  %v6489_v20 = vadd.f32 1.0, %v7913_v27  ;;  %7922 = vtanh.f32 %v5604_v58  ;;  %v5032_v29 = vmul.f32 0.044715, %v4720_v10 }
 0x517   :  { %v5606_v7 = vmul.f32 0.7978846, %v5294_v53  ;;  %v5655_v63 = vmul.f32 0.7978846, %v5343_v48  ;;  %v5345_v26 = vadd.f32 %v5033_v54, %v13753_v8  ;;  %v13791_v37 = vadd.f32 %v3046_v30, %v16302_v59 }
 0x518   :  { %v7915_v39 = vpop.eup %7914  ;;  %7111 = vst [vmem:[%s15559_s5 + $0xc0] sm:$0xff] %v6799_v52  ;;  %v6801_v25 = vmul.f32 %v6489_v20, %v5865_v47  ;;  %v13794_v11 = vadd.f32 %v2949_v49, %v16316_v34  ;;  %v13797_v41 = vadd.f32 %v3050_v3, %v16316_v34  ;;  %v5344_v51 = vadd.f32 %v5032_v29, %v13763_v6 }
 0x519   :  { %v7917_v5 = vpop.eup %7916  ;;  %v6488_v61 = vadd.f32 1.0, %v7915_v39  ;;  %7924 = vtanh.f32 %v5606_v7  ;;  %v5657_v1 = vmul.f32 0.7978846, %v5345_v26  ;;  %v5866_v45 = vmul.f32 0.5, %v13689_v21 }
 0x51a   :  { %7113 = vst [vmem:[%s15559_s5 + $0xd0] sm:$0xff] %v6801_v25  ;;  %v6490_v31 = vadd.f32 1.0, %v7917_v5  ;;  %7926 = vtanh.f32 %v5655_v63  ;;  %v4410_v57 = vmul.f32 %v13791_v37, %v13791_v37  ;;  %v5656_v22 = vmul.f32 0.7978846, %v5344_v51  ;;  %v2957_v25 = vpop.f32.mrf.mxu0 }
 0x51b   :  { %v6800_v4 = vmul.f32 %v6488_v61, %v5864_v24  ;;  %7928 = vtanh.f32 %v5657_v1  ;;  %v4459_v50 = vmul.f32 %v13794_v11, %v13794_v11  ;;  %v5915_v15 = vmul.f32 0.5, %v13700_v13 }
 0x51c   :  { %v7919_v17 = vpop.eup %7918  ;;  %v6802_v43 = vmul.f32 %v6490_v31, %v5866_v45  ;;  %v4722_v47 = vmul.f32 %v4410_v57, %v13791_v37  ;;  %v4461_v21 = vmul.f32 %v13797_v41, %v13797_v41  ;;  %v5917_v30 = vmul.f32 0.5, %v13721_v2 }
 0x51d   :  { %7112 = vst [vmem:[%s15559_s5 + $0xc8] sm:$0xff] %v6800_v4  ;;  %v6539_v60 = vadd.f32 1.0, %v7919_v17  ;;  %7930 = vtanh.f32 %v5656_v22  ;;  %v4771_v38 = vmul.f32 %v4459_v50, %v13794_v11  ;;  %v13822_v32 = vadd.f32 %v2951_v56, %v16316_v34  ;;  %v3058_v56 = vpop.f32.mrf.mxu1 }
 0x51e   :  { %7114 = vst [vmem:[%s15559_s5 + $0xd8] sm:$0xff] %v6802_v43  ;;  %v5034_v13 = vmul.f32 0.044715, %v4722_v47  ;;  %v4773_v18 = vmul.f32 %v4461_v21, %v13797_v41  ;;  %v13825_v23 = vadd.f32 %v3052_v40, %v16316_v34  ;;  %v5916_v2 = vmul.f32 0.5, %v13731_v62  ;;  %v2961_v21 = vpop.f32.mrf.mxu0 }
 0x51f   :  { %v6851_v9 = vmul.f32 %v6539_v60, %v5915_v15  ;;  %v5083_v42 = vmul.f32 0.044715, %v4771_v38  ;;  %v13829_v33 = vadd.f32 %v2955_v35, %v11763_v12  ;;  %v5918_v55 = vmul.f32 0.5, %v13745_v19  ;;  %v3062_v35 = vpop.f32.mrf.mxu1 }
 0x520   :  { %v5346_v46 = vadd.f32 %v5034_v13, %v13791_v37  ;;  %v5085_v28 = vmul.f32 0.044715, %v4773_v18  ;;  %v4460_v58 = vmul.f32 %v13822_v32, %v13822_v32  ;;  %v4462_v62 = vmul.f32 %v13825_v23, %v13825_v23 }
 0x521   :  { %v7921_v49 = vpop.eup %7920  ;;  %7163 = vst [vmem:[%s15559_s5 + $0x260] sm:$0xff] %v6851_v9  ;;  %v5395_v27 = vadd.f32 %v5083_v42, %v13794_v11  ;;  %v4511_v53 = vmul.f32 %v13829_v33, %v13829_v33  ;;  %v13844_v19 = vadd.f32 %v3056_v14, %v11763_v12  ;;  %v5967_v20 = vmul.f32 0.5, %v13748_v0 }
 0x522   :  { %v6541_v48 = vadd.f32 1.0, %v7921_v49  ;;  %v5658_v54 = vmul.f32 0.7978846, %v5346_v46  ;;  %v5397_v10 = vadd.f32 %v5085_v28, %v13797_v41  ;;  %v4772_v3 = vmul.f32 %v4460_v58, %v13822_v32 }
 0x523   :  { %v7923_v52 = vpop.eup %7922  ;;  %v5707_v24 = vmul.f32 0.7978846, %v5395_v27  ;;  %v4774_v7 = vmul.f32 %v4462_v62, %v13825_v23  ;;  %v4823_v63 = vmul.f32 %v4511_v53, %v13829_v33  ;;  %v5969_v45 = vmul.f32 0.5, %v13753_v8  ;;  %v2963_v62 = vpop.f32.mrf.mxu0 }
 0x524   :  { %v6853_v26 = vmul.f32 %v6541_v48, %v5917_v30  ;;  %v6540_v29 = vadd.f32 1.0, %v7923_v52  ;;  %7932 = vtanh.f32 %v5658_v54  ;;  %v5709_v39 = vmul.f32 0.7978846, %v5397_v10  ;;  %v3064_v53 = vpop.f32.mrf.mxu1 }
 0x525   :  { %7934 = vtanh.f32 %v5707_v24  ;;  %v5084_v5 = vmul.f32 0.044715, %v4772_v3  ;;  %v5086_v61 = vmul.f32 0.044715, %v4774_v7  ;;  %v5135_v1 = vmul.f32 0.044715, %v4823_v63 }
 0x526   :  { %v7925_v51 = vpop.eup %7924  ;;  %7165 = vst [vmem:[%s15559_s5 + $0x270] sm:$0xff] %v6853_v26  ;;  %v6852_v0 = vmul.f32 %v6540_v29, %v5916_v2  ;;  %7936 = vtanh.f32 %v5709_v39  ;;  %v4513_v31 = vmul.f32 %v13844_v19, %v13844_v19  ;;  %v13865_v15 = vadd.f32 %v2957_v25, %v11763_v12 }
 0x527   :  { %v7927_v57 = vpop.eup %7926  ;;  %v6542_v40 = vadd.f32 1.0, %v7925_v51  ;;  %v5396_v4 = vadd.f32 %v5084_v5, %v13822_v32  ;;  %v5398_v22 = vadd.f32 %v5086_v61, %v13825_v23  ;;  %v5447_v50 = vadd.f32 %v5135_v1, %v13829_v33  ;;  %v3133_v1 = vpop.f32.mrf.mxu0 }
 0x528   :  { %v7929_v17 = vpop.eup %7928  ;;  %7164 = vst [vmem:[%s15559_s5 + $0x268] sm:$0xff] %v6852_v0  ;;  %v6591_v43 = vadd.f32 1.0, %v7927_v57  ;;  %v4825_v8 = vmul.f32 %v4513_v31, %v13844_v19  ;;  %v13868_v47 = vadd.f32 %v3058_v56, %v11763_v12  ;;  %v4512_v42 = vmul.f32 %v13865_v15, %v13865_v15 }
 0x529   :  { %v6854_v60 = vmul.f32 %v6542_v40, %v5918_v55  ;;  %v6593_v30 = vadd.f32 1.0, %v7929_v17  ;;  %v5708_v38 = vmul.f32 0.7978846, %v5396_v4  ;;  %v5710_v13 = vmul.f32 0.7978846, %v5398_v22 }
 0x52a   :  { %v7931_v18 = vpop.eup %7930  ;;  %v6903_v14 = vmul.f32 %v6591_v43, %v5967_v20  ;;  %v5759_v9 = vmul.f32 0.7978846, %v5447_v50  ;;  %v5137_v2 = vmul.f32 0.044715, %v4825_v8  ;;  %v5968_v28 = vmul.f32 0.5, %v13763_v6  ;;  %v3234_v50 = vpop.f32.mrf.mxu1 }
 0x52b   :  { %7166 = vst [vmem:[%s15559_s5 + $0x278] sm:$0xff] %v6854_v60  ;;  %v6905_v46 = vmul.f32 %v6593_v30, %v5969_v45  ;;  %v6592_v58 = vadd.f32 1.0, %v7931_v18  ;;  %7938 = vtanh.f32 %v5708_v38  ;;  %v4824_v49 = vmul.f32 %v4512_v42, %v13865_v15  ;;  %v3135_v38 = vpop.f32.mrf.mxu0 }
 0x52c   :  { %7215 = vst [vmem:[%s15559_s5 + $0x400] sm:$0xff] %v6903_v14  ;;  %7940 = vtanh.f32 %v5710_v13  ;;  %v5449_v55 = vadd.f32 %v5137_v2, %v13844_v19  ;;  %v4514_v27 = vmul.f32 %v13868_v47, %v13868_v47  ;;  %v5970_v48 = vmul.f32 0.5, %v13791_v37 }
 0x52d   :  { %7217 = vst [vmem:[%s15559_s5 + $0x410] sm:$0xff] %v6905_v46  ;;  %v6904_v6 = vmul.f32 %v6592_v58, %v5968_v28  ;;  %7942 = vtanh.f32 %v5759_v9  ;;  %v13888_v54 = vadd.f32 %v2961_v21, %v11846_v44  ;;  %v5136_v3 = vmul.f32 0.044715, %v4824_v49  ;;  %v3236_v28 = vpop.f32.mrf.mxu1 }
 0x52e   :  { %v5761_v10 = vmul.f32 0.7978846, %v5449_v55  ;;  %v4826_v52 = vmul.f32 %v4514_v27, %v13868_v47  ;;  %v13892_v20 = vadd.f32 %v3062_v35, %v11846_v44  ;;  %v6019_v24 = vmul.f32 0.5, %v13794_v11 }
 0x52f   :  { %7216 = vst [vmem:[%s15559_s5 + $0x408] sm:$0xff] %v6904_v6  ;;  %v4563_v37 = vmul.f32 %v13888_v54, %v13888_v54  ;;  %v13901_v7 = vadd.f32 %v2963_v62, %v11846_v44  ;;  %v13904_v63 = vadd.f32 %v3064_v53, %v11846_v44  ;;  %v5448_v26 = vadd.f32 %v5136_v3, %v13865_v15 }
 0x530   :  { %7944 = vtanh.f32 %v5761_v10  ;;  %v5138_v29 = vmul.f32 0.044715, %v4826_v52  ;;  %v4565_v39 = vmul.f32 %v13892_v20, %v13892_v20  ;;  %v6021_v56 = vmul.f32 0.5, %v13797_v41 }
 0x531   :  { %v7933_v25 = vpop.eup %7932  ;;  %v6020_v11 = vmul.f32 0.5, %v13822_v32  ;;  %v4875_v5 = vmul.f32 %v4563_v37, %v13888_v54  ;;  %v4564_v61 = vmul.f32 %v13901_v7, %v13901_v7  ;;  %v5760_v45 = vmul.f32 0.7978846, %v5448_v26 }
 0x532   :  { %v7935_v51 = vpop.eup %7934  ;;  %v6594_v0 = vadd.f32 1.0, %v7933_v25  ;;  %v5450_v31 = vadd.f32 %v5138_v29, %v13868_v47  ;;  %v4877_v57 = vmul.f32 %v4565_v39, %v13892_v20  ;;  %v4566_v32 = vmul.f32 %v13904_v63, %v13904_v63  ;;  %v3139_v39 = vpop.f32.mrf.mxu0 }
 0x533   :  { %v7937_v40 = vpop.eup %7936  ;;  %v6643_v4 = vadd.f32 1.0, %v7935_v51  ;;  %v5187_v22 = vmul.f32 0.044715, %v4875_v5  ;;  %v4876_v41 = vmul.f32 %v4564_v61, %v13901_v7  ;;  %7946 = vtanh.f32 %v5760_v45  ;;  %v3240_v45 = vpop.f32.mrf.mxu1 }
 0x534   :  { %v6906_v17 = vmul.f32 %v6594_v0, %v5970_v48  ;;  %v6645_v43 = vadd.f32 1.0, %v7937_v40  ;;  %v5762_v8 = vmul.f32 0.7978846, %v5450_v31  ;;  %v5189_v60 = vmul.f32 0.044715, %v4877_v57 }
 0x535   :  { %v6955_v21 = vmul.f32 %v6643_v4, %v6019_v24  ;;  %v5499_v35 = vadd.f32 %v5187_v22, %v13888_v54  ;;  %v5188_v30 = vmul.f32 0.044715, %v4876_v41  ;;  %v6022_v18 = vmul.f32 0.5, %v13825_v23 }
 0x536   :  { %7218 = vst [vmem:[%s15559_s5 + $0x418] sm:$0xff] %v6906_v17  ;;  %v6957_v13 = vmul.f32 %v6645_v43, %v6021_v56  ;;  %7948 = vtanh.f32 %v5762_v8  ;;  %v4878_v14 = vmul.f32 %v4566_v32, %v13904_v63  ;;  %v5501_v2 = vadd.f32 %v5189_v60, %v13892_v20  ;;  %v3141_v32 = vpop.f32.mrf.mxu0 }
 0x537   :  { %7267 = vst [vmem:[%s15559_s5 + $0x5a0] sm:$0xff] %v6955_v21  ;;  %v5811_v9 = vmul.f32 0.7978846, %v5499_v35  ;;  %v5500_v42 = vadd.f32 %v5188_v30, %v13901_v7  ;;  %v13931_v46 = vadd.f32 %v3133_v1, %v11442_v36  ;;  %v6071_v23 = vmul.f32 0.5, %v13829_v33 }
 0x538   :  { %v7939_v58 = vpop.eup %7938  ;;  %7269 = vst [vmem:[%s15559_s5 + $0x5b0] sm:$0xff] %v6957_v13  ;;  %v5190_v55 = vmul.f32 0.044715, %v4878_v14  ;;  %v13938_v49 = vadd.f32 %v3234_v50, %v11442_v36  ;;  %v13941_v27 = vadd.f32 %v3135_v38, %v11442_v36  ;;  %v5813_v6 = vmul.f32 0.7978846, %v5501_v2 }
 0x539   :  { %v7941_v62 = vpop.eup %7940  ;;  %v6644_v53 = vadd.f32 1.0, %v7939_v58  ;;  %7950 = vtanh.f32 %v5811_v9  ;;  %v5812_v48 = vmul.f32 0.7978846, %v5500_v42  ;;  %v4307_v24 = vmul.f32 %v13931_v46, %v13931_v46 }
 0x53a   :  { %v7943_v10 = vpop.eup %7942  ;;  %v6646_v3 = vadd.f32 1.0, %v7941_v62  ;;  %v5502_v52 = vadd.f32 %v5190_v55, %v13904_v63  ;;  %v13947_v33 = vadd.f32 %v3236_v28, %v11442_v36  ;;  %7952 = vtanh.f32 %v5813_v6  ;;  %v3242_v55 = vpop.f32.mrf.mxu1 }
 0x53b   :  { %v6956_v37 = vmul.f32 %v6644_v53, %v6020_v11  ;;  %v6695_v26 = vadd.f32 1.0, %v7943_v10  ;;  %v4309_v29 = vmul.f32 %v13938_v49, %v13938_v49  ;;  %7954 = vtanh.f32 %v5812_v48  ;;  %v3145_v48 = vpop.f32.mrf.mxu0 }
 0x53c   :  { %v6958_v25 = vmul.f32 %v6646_v3, %v6022_v18  ;;  %v5814_v56 = vmul.f32 0.7978846, %v5502_v52  ;;  %v4619_v5 = vmul.f32 %v4307_v24, %v13931_v46  ;;  %v6073_v51 = vmul.f32 0.5, %v13844_v19 }
 0x53d   :  { %v7945_v61 = vpop.eup %7944  ;;  %7268 = vst [vmem:[%s15559_s5 + $0x5a8] sm:$0xff] %v6956_v37  ;;  %v7007_v1 = vmul.f32 %v6695_v26, %v6071_v23  ;;  %v4621_v11 = vmul.f32 %v4309_v29, %v13938_v49  ;;  %v4308_v0 = vmul.f32 %v13941_v27, %v13941_v27  ;;  %v6072_v57 = vmul.f32 0.5, %v13865_v15 }
 0x53e   :  { %7270 = vst [vmem:[%s15559_s5 + $0x5b8] sm:$0xff] %v6958_v25  ;;  %v6697_v31 = vadd.f32 1.0, %v7945_v61  ;;  %7956 = vtanh.f32 %v5814_v56  ;;  %v4931_v40 = vmul.f32 0.044715, %v4619_v5  ;;  %v6074_v19 = vmul.f32 0.5, %v13868_v47 }
 0x53f   :  { %7319 = vst [vmem:[%s15559_s5 + $0x740] sm:$0xff] %v7007_v1  ;;  %v4933_v4 = vmul.f32 0.044715, %v4621_v11  ;;  %v4620_v22 = vmul.f32 %v4308_v0, %v13941_v27  ;;  %v4310_v41 = vmul.f32 %v13947_v33, %v13947_v33  ;;  %v13972_v15 = vadd.f32 %v3139_v39, %v16289_v16  ;;  %v3246_v1 = vpop.f32.mrf.mxu1 }
 0x540   :  { %v7009_v50 = vmul.f32 %v6697_v31, %v6073_v51  ;;  %v5243_v17 = vadd.f32 %v4931_v40, %v13931_v46  ;;  %v13975_v43 = vadd.f32 %v3240_v45, %v16289_v16  ;;  %v7947_v8 = vpop.eup %7946  ;;  %v6123_v21 = vmul.f32 0.5, %v13888_v54  ;;  %v3147_v31 = vpop.f32.mrf.mxu0 }
 0x541   :  { %v5245_v47 = vadd.f32 %v4933_v4, %v13938_v49  ;;  %v4932_v35 = vmul.f32 0.044715, %v4620_v22  ;;  %v4622_v60 = vmul.f32 %v4310_v41, %v13947_v33  ;;  %v6696_v30 = vadd.f32 1.0, %v7947_v8 }
 0x542   :  { %7321 = vst [vmem:[%s15559_s5 + $0x750] sm:$0xff] %v7009_v50  ;;  %v5555_v38 = vmul.f32 0.7978846, %v5243_v17  ;;  %v4359_v13 = vmul.f32 %v13972_v15, %v13972_v15  ;;  %v13986_v18 = vadd.f32 %v3141_v32, %v16289_v16  ;;  %v4361_v42 = vmul.f32 %v13975_v43, %v13975_v43 }
 0x543   :  { %v7949_v14 = vpop.eup %7948  ;;  %v5557_v9 = vmul.f32 0.7978846, %v5245_v47  ;;  %v5244_v54 = vadd.f32 %v4932_v35, %v13941_v27  ;;  %v4934_v2 = vmul.f32 0.044715, %v4622_v60  ;;  %v7008_v28 = vmul.f32 %v6696_v30, %v6072_v57  ;;  %v3248_v47 = vpop.f32.mrf.mxu1 }
 0x544   :  { %v6698_v58 = vadd.f32 1.0, %v7949_v14  ;;  %7958 = vtanh.f32 %v5555_v38  ;;  %v4671_v23 = vmul.f32 %v4359_v13, %v13972_v15  ;;  %v4673_v6 = vmul.f32 %v4361_v42, %v13975_v43  ;;  %v3151_v30 = vpop.f32.mrf.mxu0 }
 0x545   :  { %7960 = vtanh.f32 %v5557_v9  ;;  %v5556_v62 = vmul.f32 0.7978846, %v5244_v54  ;;  %v5246_v53 = vadd.f32 %v4934_v2, %v13947_v33  ;;  %7320 = vst [vmem:[%s15559_s5 + $0x748] sm:$0xff] %v7008_v28  ;;  %v6125_v52 = vmul.f32 0.5, %v13892_v20 }
 0x546   :  { %v7951_v10 = vpop.eup %7950  ;;  %v7010_v3 = vmul.f32 %v6698_v58, %v6074_v19  ;;  %v4983_v24 = vmul.f32 0.044715, %v4671_v23  ;;  %v4360_v37 = vmul.f32 %v13986_v18, %v13986_v18  ;;  %v4985_v39 = vmul.f32 0.044715, %v4673_v6 }
 0x547   :  { %v6747_v26 = vadd.f32 1.0, %v7951_v10  ;;  %7962 = vtanh.f32 %v5556_v62  ;;  %v5558_v29 = vmul.f32 0.7978846, %v5246_v53  ;;  %v7953_v25 = vpop.eup %7952  ;;  %v6124_v56 = vmul.f32 0.5, %v13901_v7 }
 0x548   :  { %7322 = vst [vmem:[%s15559_s5 + $0x758] sm:$0xff] %v7010_v3  ;;  %v5295_v5 = vadd.f32 %v4983_v24, %v13972_v15  ;;  %v4672_v61 = vmul.f32 %v4360_v37, %v13986_v18  ;;  %v14007_v20 = vadd.f32 %v3242_v55, %v16289_v16  ;;  %v7955_v51 = vpop.eup %7954  ;;  %v6749_v0 = vadd.f32 1.0, %v7953_v25  ;;  %v3252_v37 = vpop.f32.mrf.mxu1 }
 0x549   :  { %v7059_v11 = vmul.f32 %v6747_v26, %v6123_v21  ;;  %7964 = vtanh.f32 %v5558_v29  ;;  %v5297_v45 = vadd.f32 %v4985_v39, %v13975_v43  ;;  %v6748_v57 = vadd.f32 1.0, %v7955_v51 }
 0x54a   :  { %v5607_v40 = vmul.f32 0.7978846, %v5295_v5  ;;  %v4984_v19 = vmul.f32 0.044715, %v4672_v61  ;;  %v4362_v7 = vmul.f32 %v14007_v20, %v14007_v20  ;;  %v7061_v22 = vmul.f32 %v6749_v0, %v6125_v52  ;;  %v3153_v0 = vpop.f32.mrf.mxu0 }
 0x54b   :  { %v7957_v4 = vpop.eup %7956  ;;  %7371 = vst [vmem:[%s15559_s5 + $0x8e0] sm:$0x7f] %v7059_v11  ;;  %v6126_v41 = vmul.f32 0.5, %v13904_v63  ;;  %v5609_v32 = vmul.f32 0.7978846, %v5297_v45  ;;  %v14017_v50 = vadd.f32 %v3145_v48, %v16302_v59  ;;  %v7060_v17 = vmul.f32 %v6748_v57, %v6124_v56 }
 0x54c   :  { %v6750_v8 = vadd.f32 1.0, %v7957_v4  ;;  %7966 = vtanh.f32 %v5607_v40  ;;  %v5296_v21 = vadd.f32 %v4984_v19, %v13986_v18  ;;  %7373 = vst [vmem:[%s15559_s5 + $0x8f0] sm:$0x7f] %v7061_v22  ;;  %v5867_v35 = vmul.f32 0.5, %v13931_v46 }
 0x54d   :  { %7968 = vtanh.f32 %v5609_v32  ;;  %v4674_v60 = vmul.f32 %v4362_v7, %v14007_v20  ;;  %v4411_v63 = vmul.f32 %v14017_v50, %v14017_v50  ;;  %7372 = vst [vmem:[%s15559_s5 + $0x8e8] sm:$0x7f] %v7060_v17  ;;  %v14031_v14 = vadd.f32 %v3246_v1, %v16302_v59  ;;  %v3254_v7 = vpop.f32.mrf.mxu1 }
 0x54e   :  { %v7062_v38 = vmul.f32 %v6750_v8, %v6126_v41  ;;  %v5608_v13 = vmul.f32 0.7978846, %v5296_v21  ;;  %v14034_v9 = vadd.f32 %v3147_v31, %v16302_v59  ;;  %v5869_v46 = vmul.f32 0.5, %v13938_v49 }
 0x54f   :  { %v4986_v54 = vmul.f32 0.044715, %v4674_v60  ;;  %v4723_v2 = vmul.f32 %v4411_v63, %v14017_v50  ;;  %v14039_v42 = vadd.f32 %v3248_v47, %v16302_v59  ;;  %v4413_v28 = vmul.f32 %v14031_v14, %v14031_v14 }
 0x550   :  { %7374 = vst [vmem:[%s15559_s5 + $0x8f8] sm:$0x7f] %v7062_v38  ;;  %7970 = vtanh.f32 %v5608_v13  ;;  %v4412_v58 = vmul.f32 %v14034_v9, %v14034_v9  ;;  %v14049_v23 = vadd.f32 %v3151_v30, %v16316_v34  ;;  %v5868_v55 = vmul.f32 0.5, %v13941_v27  ;;  %v3157_v30 = vpop.f32.mrf.mxu0 }
 0x551   :  { %v7959_v49 = vpop.eup %7958  ;;  %v5298_v62 = vadd.f32 %v4986_v54, %v14007_v20  ;;  %v5035_v53 = vmul.f32 0.044715, %v4723_v2  ;;  %v4414_v6 = vmul.f32 %v14039_v42, %v14039_v42  ;;  %v5870_v3 = vmul.f32 0.5, %v13947_v33 }
 0x552   :  { %v7961_v48 = vpop.eup %7960  ;;  %v6491_v10 = vadd.f32 1.0, %v7959_v49  ;;  %v4725_v52 = vmul.f32 %v4413_v28, %v14031_v14  ;;  %v4724_v24 = vmul.f32 %v4412_v58, %v14034_v9  ;;  %v4463_v1 = vmul.f32 %v14049_v23, %v14049_v23  ;;  %v3258_v49 = vpop.f32.mrf.mxu1 }
 0x553   :  { %v6493_v26 = vadd.f32 1.0, %v7961_v48  ;;  %v5610_v29 = vmul.f32 0.7978846, %v5298_v62  ;;  %v5347_v39 = vadd.f32 %v5035_v53, %v14017_v50  ;;  %v4726_v27 = vmul.f32 %v4414_v6, %v14039_v42 }
 0x554   :  { %v7963_v25 = vpop.eup %7962  ;;  %v6803_v56 = vmul.f32 %v6491_v10, %v5867_v35  ;;  %v5037_v5 = vmul.f32 0.044715, %v4725_v52  ;;  %v5036_v61 = vmul.f32 0.044715, %v4724_v24  ;;  %v4775_v19 = vmul.f32 %v4463_v1, %v14049_v23  ;;  %v3159_v52 = vpop.f32.mrf.mxu0 }
 0x555   :  { %v6805_v51 = vmul.f32 %v6493_v26, %v5869_v46  ;;  %v6492_v33 = vadd.f32 1.0, %v7963_v25  ;;  %7972 = vtanh.f32 %v5610_v29  ;;  %v5659_v11 = vmul.f32 0.7978846, %v5347_v39  ;;  %v3260_v25 = vpop.f32.mrf.mxu1 }
 0x556   :  { %v7965_v45 = vpop.eup %7964  ;;  %7115 = vst [vmem:[%s15559_s5 + $0xe0] sm:$0xff] %v6803_v56  ;;  %v5349_v31 = vadd.f32 %v5037_v5, %v14031_v14  ;;  %v5348_v57 = vadd.f32 %v5036_v61, %v14034_v9  ;;  %v5038_v40 = vmul.f32 0.044715, %v4726_v27  ;;  %v5919_v41 = vmul.f32 0.5, %v13972_v15 }
 0x557   :  { %7117 = vst [vmem:[%s15559_s5 + $0xf0] sm:$0xff] %v6805_v51  ;;  %v6804_v4 = vmul.f32 %v6492_v33, %v5868_v55  ;;  %v6494_v22 = vadd.f32 1.0, %v7965_v45  ;;  %7974 = vtanh.f32 %v5659_v11  ;;  %v5087_v21 = vmul.f32 0.044715, %v4775_v19 }
 0x558   :  { %v5661_v32 = vmul.f32 0.7978846, %v5349_v31  ;;  %v5660_v17 = vmul.f32 0.7978846, %v5348_v57  ;;  %v5350_v8 = vadd.f32 %v5038_v40, %v14039_v42  ;;  %v14077_v60 = vadd.f32 %v3252_v37, %v16316_v34 }
 0x559   :  { %v7967_v47 = vpop.eup %7966  ;;  %7116 = vst [vmem:[%s15559_s5 + $0xe8] sm:$0xff] %v6804_v4  ;;  %v6806_v35 = vmul.f32 %v6494_v22, %v5870_v3  ;;  %v14080_v63 = vadd.f32 %v3153_v0, %v16316_v34  ;;  %v14083_v15 = vadd.f32 %v3254_v7, %v16316_v34  ;;  %v5399_v54 = vadd.f32 %v5087_v21, %v14049_v23 }
 0x55a   :  { %v7969_v38 = vpop.eup %7968  ;;  %v6543_v13 = vadd.f32 1.0, %v7967_v47  ;;  %7976 = vtanh.f32 %v5661_v32  ;;  %v5662_v46 = vmul.f32 0.7978846, %v5350_v8  ;;  %v5921_v2 = vmul.f32 0.5, %v13975_v43 }
 0x55b   :  { %7118 = vst [vmem:[%s15559_s5 + $0xf8] sm:$0xff] %v6806_v35  ;;  %v6545_v28 = vadd.f32 1.0, %v7969_v38  ;;  %7978 = vtanh.f32 %v5660_v17  ;;  %v4465_v58 = vmul.f32 %v14077_v60, %v14077_v60  ;;  %v5711_v62 = vmul.f32 0.7978846, %v5399_v54  ;;  %v3163_v35 = vpop.f32.mrf.mxu0 }
 0x55c   :  { %v6855_v55 = vmul.f32 %v6543_v13, %v5919_v41  ;;  %7980 = vtanh.f32 %v5662_v46  ;;  %v4464_v53 = vmul.f32 %v14080_v63, %v14080_v63  ;;  %v5920_v10 = vmul.f32 0.5, %v13986_v18 }
 0x55d   :  { %v7971_v6 = vpop.eup %7970  ;;  %v6857_v48 = vmul.f32 %v6545_v28, %v5921_v2  ;;  %v4777_v3 = vmul.f32 %v4465_v58, %v14077_v60  ;;  %v4466_v43 = vmul.f32 %v14083_v15, %v14083_v15  ;;  %v5922_v37 = vmul.f32 0.5, %v14007_v20 }
 0x55e   :  { %7167 = vst [vmem:[%s15559_s5 + $0x280] sm:$0xff] %v6855_v55  ;;  %v6544_v24 = vadd.f32 1.0, %v7971_v6  ;;  %7982 = vtanh.f32 %v5711_v62  ;;  %v4776_v26 = vmul.f32 %v4464_v53, %v14080_v63  ;;  %v14108_v39 = vadd.f32 %v3157_v30, %v11763_v12  ;;  %v3264_v30 = vpop.f32.mrf.mxu1 }
 0x55f   :  { %7169 = vst [vmem:[%s15559_s5 + $0x290] sm:$0xff] %v6857_v48  ;;  %v5089_v18 = vmul.f32 0.044715, %v4777_v3  ;;  %v4778_v29 = vmul.f32 %v4466_v43, %v14083_v15  ;;  %v14111_v27 = vadd.f32 %v3258_v49, %v11763_v12  ;;  %v5971_v20 = vmul.f32 0.5, %v14017_v50  ;;  %v3165_v43 = vpop.f32.mrf.mxu0 }
 0x560   :  { %v6856_v56 = vmul.f32 %v6544_v24, %v5920_v10  ;;  %v5088_v5 = vmul.f32 0.044715, %v4776_v26  ;;  %v14115_v61 = vadd.f32 %v3159_v52, %v11763_v12  ;;  %v5973_v1 = vmul.f32 0.5, %v14031_v14  ;;  %v3266_v52 = vpop.f32.mrf.mxu1 }
 0x561   :  { %v5401_v51 = vadd.f32 %v5089_v18, %v14077_v60  ;;  %v5090_v33 = vmul.f32 0.044715, %v4778_v29  ;;  %v4515_v11 = vmul.f32 %v14108_v39, %v14108_v39  ;;  %v4517_v50 = vmul.f32 %v14111_v27, %v14111_v27 }
 0x562   :  { %v7973_v0 = vpop.eup %7972  ;;  %7168 = vst [vmem:[%s15559_s5 + $0x288] sm:$0xff] %v6856_v56  ;;  %v5400_v45 = vadd.f32 %v5088_v5, %v14080_v63  ;;  %v4516_v31 = vmul.f32 %v14115_v61, %v14115_v61  ;;  %v14130_v14 = vadd.f32 %v3260_v25, %v11763_v12  ;;  %v5972_v22 = vmul.f32 0.5, %v14034_v9 }
 0x563   :  { %v6546_v57 = vadd.f32 1.0, %v7973_v0  ;;  %v5713_v40 = vmul.f32 0.7978846, %v5401_v51  ;;  %v5402_v19 = vadd.f32 %v5090_v33, %v14083_v15  ;;  %v4827_v7 = vmul.f32 %v4515_v11, %v14108_v39 }
 0x564   :  { %v7975_v4 = vpop.eup %7974  ;;  %v5712_v41 = vmul.f32 0.7978846, %v5400_v45  ;;  %v4829_v32 = vmul.f32 %v4517_v50, %v14111_v27  ;;  %v4828_v17 = vmul.f32 %v4516_v31, %v14115_v61  ;;  %v5974_v2 = vmul.f32 0.5, %v14039_v42  ;;  %v3335_v50 = vpop.f32.mrf.mxu0 }
 0x565   :  { %v6858_v8 = vmul.f32 %v6546_v57, %v5922_v37  ;;  %v6595_v21 = vadd.f32 1.0, %v7975_v4  ;;  %7984 = vtanh.f32 %v5713_v40  ;;  %v5714_v47 = vmul.f32 0.7978846, %v5402_v19  ;;  %v3436_v31 = vpop.f32.mrf.mxu1 }
 0x566   :  { %7986 = vtanh.f32 %v5712_v41  ;;  %v5139_v38 = vmul.f32 0.044715, %v4827_v7  ;;  %v5141_v13 = vmul.f32 0.044715, %v4829_v32  ;;  %v5140_v46 = vmul.f32 0.044715, %v4828_v17 }
 0x567   :  { %v7977_v54 = vpop.eup %7976  ;;  %7170 = vst [vmem:[%s15559_s5 + $0x298] sm:$0xff] %v6858_v8  ;;  %v6907_v9 = vmul.f32 %v6595_v21, %v5971_v20  ;;  %7988 = vtanh.f32 %v5714_v47  ;;  %v4518_v28 = vmul.f32 %v14130_v14, %v14130_v14  ;;  %v14151_v10 = vadd.f32 %v3163_v35, %v11846_v44 }
 0x568   :  { %v7979_v58 = vpop.eup %7978  ;;  %v6597_v49 = vadd.f32 1.0, %v7977_v54  ;;  %v5451_v55 = vadd.f32 %v5139_v38, %v14108_v39  ;;  %v5453_v62 = vadd.f32 %v5141_v13, %v14111_v27  ;;  %v5452_v53 = vadd.f32 %v5140_v46, %v14115_v61  ;;  %v3337_v46 = vpop.f32.mrf.mxu0 }
 0x569   :  { %v7981_v6 = vpop.eup %7980  ;;  %7219 = vst [vmem:[%s15559_s5 + $0x420] sm:$0xff] %v6907_v9  ;;  %v6596_v48 = vadd.f32 1.0, %v7979_v58  ;;  %v4830_v42 = vmul.f32 %v4518_v28, %v14130_v14  ;;  %v14154_v3 = vadd.f32 %v3264_v30, %v11846_v44  ;;  %v4567_v5 = vmul.f32 %v14151_v10, %v14151_v10 }
 0x56a   :  { %v6909_v24 = vmul.f32 %v6597_v49, %v5973_v1  ;;  %v6598_v37 = vadd.f32 1.0, %v7981_v6  ;;  %v5763_v26 = vmul.f32 0.7978846, %v5451_v55  ;;  %v5765_v18 = vmul.f32 0.7978846, %v5453_v62 }
 0x56b   :  { %v7983_v29 = vpop.eup %7982  ;;  %v6908_v25 = vmul.f32 %v6596_v48, %v5972_v22  ;;  %v5764_v56 = vmul.f32 0.7978846, %v5452_v53  ;;  %v5142_v20 = vmul.f32 0.044715, %v4830_v42  ;;  %v6023_v33 = vmul.f32 0.5, %v14049_v23  ;;  %v3438_v53 = vpop.f32.mrf.mxu1 }
 0x56c   :  { %7221 = vst [vmem:[%s15559_s5 + $0x430] sm:$0xff] %v6909_v24  ;;  %v6910_v51 = vmul.f32 %v6598_v37, %v5974_v2  ;;  %v6647_v11 = vadd.f32 1.0, %v7983_v29  ;;  %7990 = vtanh.f32 %v5763_v26  ;;  %v4879_v0 = vmul.f32 %v4567_v5, %v14151_v10  ;;  %v3341_v26 = vpop.f32.mrf.mxu0 }
 0x56d   :  { %7220 = vst [vmem:[%s15559_s5 + $0x428] sm:$0xff] %v6908_v25  ;;  %7992 = vtanh.f32 %v5765_v18  ;;  %v5454_v1 = vadd.f32 %v5142_v20, %v14130_v14  ;;  %v4569_v45 = vmul.f32 %v14154_v3, %v14154_v3  ;;  %v6025_v57 = vmul.f32 0.5, %v14077_v60 }
 0x56e   :  { %7222 = vst [vmem:[%s15559_s5 + $0x438] sm:$0xff] %v6910_v51  ;;  %v6959_v23 = vmul.f32 %v6647_v11, %v6023_v33  ;;  %7994 = vtanh.f32 %v5764_v56  ;;  %v14174_v40 = vadd.f32 %v3165_v43, %v11846_v44  ;;  %v5191_v7 = vmul.f32 0.044715, %v4879_v0  ;;  %v3442_v33 = vpop.f32.mrf.mxu1 }
 0x56f   :  { %v5766_v19 = vmul.f32 0.7978846, %v5454_v1  ;;  %v4881_v4 = vmul.f32 %v4569_v45, %v14154_v3  ;;  %v14178_v22 = vadd.f32 %v3266_v52, %v11846_v44  ;;  %v6024_v41 = vmul.f32 0.5, %v14080_v63 }
 0x570   :  { %7271 = vst [vmem:[%s15559_s5 + $0x5c0] sm:$0xff] %v6959_v23  ;;  %v4568_v60 = vmul.f32 %v14174_v40, %v14174_v40  ;;  %v14187_v32 = vadd.f32 %v3335_v50, %v11442_v36  ;;  %v14190_v17 = vadd.f32 %v3436_v31, %v11442_v36  ;;  %v5503_v8 = vadd.f32 %v5191_v7, %v14151_v10 }
 0x571   :  { %7996 = vtanh.f32 %v5766_v19  ;;  %v5193_v21 = vmul.f32 0.044715, %v4881_v4  ;;  %v4570_v47 = vmul.f32 %v14178_v22, %v14178_v22  ;;  %v6026_v30 = vmul.f32 0.5, %v14083_v15 }
 0x572   :  { %v7985_v35 = vpop.eup %7984  ;;  %v6075_v63 = vmul.f32 0.5, %v14108_v39  ;;  %v4880_v38 = vmul.f32 %v4568_v60, %v14174_v40  ;;  %v4311_v13 = vmul.f32 %v14187_v32, %v14187_v32  ;;  %v5815_v2 = vmul.f32 0.7978846, %v5503_v8 }
 0x573   :  { %v7987_v54 = vpop.eup %7986  ;;  %v6649_v9 = vadd.f32 1.0, %v7985_v35  ;;  %v5505_v28 = vadd.f32 %v5193_v21, %v14154_v3  ;;  %v4882_v58 = vmul.f32 %v4570_v47, %v14178_v22  ;;  %v4313_v39 = vmul.f32 %v14190_v17, %v14190_v17  ;;  %v3343_v47 = vpop.f32.mrf.mxu0 }
 0x574   :  { %v7989_v49 = vpop.eup %7988  ;;  %v6648_v55 = vadd.f32 1.0, %v7987_v54  ;;  %v5192_v62 = vmul.f32 0.044715, %v4880_v38  ;;  %v4623_v15 = vmul.f32 %v4311_v13, %v14187_v32  ;;  %7998 = vtanh.f32 %v5815_v2  ;;  %v3444_v2 = vpop.f32.mrf.mxu1 }
 0x575   :  { %v6961_v6 = vmul.f32 %v6649_v9, %v6025_v57  ;;  %v6650_v48 = vadd.f32 1.0, %v7989_v49  ;;  %v5817_v42 = vmul.f32 0.7978846, %v5505_v28  ;;  %v5194_v24 = vmul.f32 0.044715, %v4882_v58 }
 0x576   :  { %v6960_v43 = vmul.f32 %v6648_v55, %v6024_v41  ;;  %v5504_v52 = vadd.f32 %v5192_v62, %v14174_v40  ;;  %v4935_v37 = vmul.f32 0.044715, %v4623_v15  ;;  %v6077_v29 = vmul.f32 0.5, %v14111_v27 }
 0x577   :  { %7273 = vst [vmem:[%s15559_s5 + $0x5d0] sm:$0xff] %v6961_v6  ;;  %v6962_v18 = vmul.f32 %v6650_v48, %v6026_v30  ;;  %8000 = vtanh.f32 %v5817_v42  ;;  %v4625_v25 = vmul.f32 %v4313_v39, %v14190_v17  ;;  %v5506_v20 = vadd.f32 %v5194_v24, %v14178_v22  ;;  %v3347_v39 = vpop.f32.mrf.mxu0 }
 0x578   :  { %7272 = vst [vmem:[%s15559_s5 + $0x5c8] sm:$0xff] %v6960_v43  ;;  %v5816_v56 = vmul.f32 0.7978846, %v5504_v52  ;;  %v5247_v5 = vadd.f32 %v4935_v37, %v14187_v32  ;;  %v14217_v51 = vadd.f32 %v3337_v46, %v11442_v36  ;;  %v6076_v27 = vmul.f32 0.5, %v14115_v61 }
 0x579   :  { %v7991_v11 = vpop.eup %7990  ;;  %7274 = vst [vmem:[%s15559_s5 + $0x5d8] sm:$0xff] %v6962_v18  ;;  %v4937_v1 = vmul.f32 0.044715, %v4625_v25  ;;  %v14224_v0 = vadd.f32 %v3438_v53, %v11442_v36  ;;  %v14227_v45 = vadd.f32 %v3341_v26, %v16289_v16  ;;  %v5818_v23 = vmul.f32 0.7978846, %v5506_v20 }
 0x57a   :  { %v7993_v50 = vpop.eup %7992  ;;  %v6699_v31 = vadd.f32 1.0, %v7991_v11  ;;  %8002 = vtanh.f32 %v5816_v56  ;;  %v5559_v57 = vmul.f32 0.7978846, %v5247_v5  ;;  %v4312_v41 = vmul.f32 %v14217_v51, %v14217_v51 }
 0x57b   :  { %v7995_v19 = vpop.eup %7994  ;;  %v6701_v7 = vadd.f32 1.0, %v7993_v50  ;;  %v5249_v4 = vadd.f32 %v4937_v1, %v14190_v17  ;;  %v14233_v61 = vadd.f32 %v3442_v33, %v16289_v16  ;;  %8004 = vtanh.f32 %v5818_v23  ;;  %v3448_v1 = vpop.f32.mrf.mxu1 }
 0x57c   :  { %v7011_v60 = vmul.f32 %v6699_v31, %v6075_v63  ;;  %v6700_v8 = vadd.f32 1.0, %v7995_v19  ;;  %v4314_v21 = vmul.f32 %v14224_v0, %v14224_v0  ;;  %8006 = vtanh.f32 %v5559_v57  ;;  %v3349_v57 = vpop.f32.mrf.mxu0 }
 0x57d   :  { %v7013_v35 = vmul.f32 %v6701_v7, %v6077_v29  ;;  %v5561_v30 = vmul.f32 0.7978846, %v5249_v4  ;;  %v4624_v38 = vmul.f32 %v4312_v41, %v14217_v51  ;;  %v6078_v54 = vmul.f32 0.5, %v14130_v14 }
 0x57e   :  { %v7997_v13 = vpop.eup %7996  ;;  %7323 = vst [vmem:[%s15559_s5 + $0x760] sm:$0xff] %v7011_v60  ;;  %v7012_v46 = vmul.f32 %v6700_v8, %v6076_v27  ;;  %v4626_v63 = vmul.f32 %v4314_v21, %v14224_v0  ;;  %v4363_v9 = vmul.f32 %v14227_v45, %v14227_v45  ;;  %v6127_v58 = vmul.f32 0.5, %v14151_v10 }
 0x57f   :  { %7325 = vst [vmem:[%s15559_s5 + $0x770] sm:$0xff] %v7013_v35  ;;  %v6702_v28 = vadd.f32 1.0, %v7997_v13  ;;  %8008 = vtanh.f32 %v5561_v30  ;;  %v4936_v49 = vmul.f32 0.044715, %v4624_v38  ;;  %v6129_v14 = vmul.f32 0.5, %v14154_v3 }
 0x580   :  { %7324 = vst [vmem:[%s15559_s5 + $0x768] sm:$0xff] %v7012_v46  ;;  %v4938_v55 = vmul.f32 0.044715, %v4626_v63  ;;  %v4675_v62 = vmul.f32 %v4363_v9, %v14227_v45  ;;  %v4365_v15 = vmul.f32 %v14233_v61, %v14233_v61  ;;  %v14258_v10 = vadd.f32 %v3343_v47, %v16289_v16  ;;  %v3450_v46 = vpop.f32.mrf.mxu1 }
 0x581   :  { %v7014_v53 = vmul.f32 %v6702_v28, %v6078_v54  ;;  %v5248_v6 = vadd.f32 %v4936_v49, %v14217_v51  ;;  %v14261_v48 = vadd.f32 %v3444_v2, %v16289_v16  ;;  %v7999_v42 = vpop.eup %7998  ;;  %v6128_v43 = vmul.f32 0.5, %v14174_v40  ;;  %v3353_v28 = vpop.f32.mrf.mxu0 }
 0x582   :  { %v5250_v3 = vadd.f32 %v4938_v55, %v14224_v0  ;;  %v4987_v52 = vmul.f32 0.044715, %v4675_v62  ;;  %v4677_v24 = vmul.f32 %v4365_v15, %v14233_v61  ;;  %v6751_v37 = vadd.f32 1.0, %v7999_v42 }
 0x583   :  { %7326 = vst [vmem:[%s15559_s5 + $0x778] sm:$0xff] %v7014_v53  ;;  %v5560_v26 = vmul.f32 0.7978846, %v5248_v6  ;;  %v4364_v18 = vmul.f32 %v14258_v10, %v14258_v10  ;;  %v14272_v29 = vadd.f32 %v3347_v39, %v16302_v59  ;;  %v4366_v5 = vmul.f32 %v14261_v48, %v14261_v48 }
 0x584   :  { %v8001_v25 = vpop.eup %8000  ;;  %v5562_v56 = vmul.f32 0.7978846, %v5250_v3  ;;  %v5299_v40 = vadd.f32 %v4987_v52, %v14227_v45  ;;  %v4989_v20 = vmul.f32 0.044715, %v4677_v24  ;;  %v7063_v33 = vmul.f32 %v6751_v37, %v6127_v58  ;;  %v3454_v3 = vpop.f32.mrf.mxu1 }
 0x585   :  { %v6753_v11 = vadd.f32 1.0, %v8001_v25  ;;  %8010 = vtanh.f32 %v5560_v26  ;;  %v4676_v27 = vmul.f32 %v4364_v18, %v14258_v10  ;;  %v4678_v23 = vmul.f32 %v4366_v5, %v14261_v48  ;;  %v3355_v37 = vpop.f32.mrf.mxu0 }
 0x586   :  { %8012 = vtanh.f32 %v5562_v56  ;;  %v5611_v50 = vmul.f32 0.7978846, %v5299_v40  ;;  %v5301_v31 = vadd.f32 %v4989_v20, %v14233_v61  ;;  %7375 = vst [vmem:[%s15559_s5 + $0x900] sm:$0x7f] %v7063_v33  ;;  %v6130_v4 = vmul.f32 0.5, %v14178_v22 }
 0x587   :  { %v8003_v19 = vpop.eup %8002  ;;  %v7065_v7 = vmul.f32 %v6753_v11, %v6129_v14  ;;  %v4988_v41 = vmul.f32 0.044715, %v4676_v27  ;;  %v4415_v60 = vmul.f32 %v14272_v29, %v14272_v29  ;;  %v4990_v47 = vmul.f32 0.044715, %v4678_v23 }
 0x588   :  { %v6752_v8 = vadd.f32 1.0, %v8003_v19  ;;  %8014 = vtanh.f32 %v5611_v50  ;;  %v5613_v21 = vmul.f32 0.7978846, %v5301_v31  ;;  %v8005_v35 = vpop.eup %8004  ;;  %v5871_v30 = vmul.f32 0.5, %v14187_v32 }
 0x589   :  { %7377 = vst [vmem:[%s15559_s5 + $0x910] sm:$0x7f] %v7065_v7  ;;  %v5300_v38 = vadd.f32 %v4988_v41, %v14258_v10  ;;  %v4727_v13 = vmul.f32 %v4415_v60, %v14272_v29  ;;  %v14293_v22 = vadd.f32 %v3448_v1, %v16302_v59  ;;  %v8007_v54 = vpop.eup %8006  ;;  %v6754_v9 = vadd.f32 1.0, %v8005_v35  ;;  %v3456_v60 = vpop.f32.mrf.mxu1 }
 0x58a   :  { %v7064_v63 = vmul.f32 %v6752_v8, %v6128_v43  ;;  %8016 = vtanh.f32 %v5613_v21  ;;  %v5302_v2 = vadd.f32 %v4990_v47, %v14261_v48  ;;  %v6495_v58 = vadd.f32 1.0, %v8007_v54 }
 0x58b   :  { %v5612_v49 = vmul.f32 0.7978846, %v5300_v38  ;;  %v5039_v14 = vmul.f32 0.044715, %v4727_v13  ;;  %v4417_v32 = vmul.f32 %v14293_v22, %v14293_v22  ;;  %v7066_v62 = vmul.f32 %v6754_v9, %v6130_v4  ;;  %v3359_v9 = vpop.f32.mrf.mxu0 }
 0x58c   :  { %v8009_v55 = vpop.eup %8008  ;;  %7376 = vst [vmem:[%s15559_s5 + $0x908] sm:$0x7f] %v7064_v63  ;;  %v5873_v15 = vmul.f32 0.5, %v14190_v17  ;;  %v5614_v39 = vmul.f32 0.7978846, %v5302_v2  ;;  %v14303_v53 = vadd.f32 %v3349_v57, %v16302_v59  ;;  %v6807_v6 = vmul.f32 %v6495_v58, %v5871_v30 }
 0x58d   :  { %v6497_v42 = vadd.f32 1.0, %v8009_v55  ;;  %8018 = vtanh.f32 %v5612_v49  ;;  %v5351_v43 = vadd.f32 %v5039_v14, %v14272_v29  ;;  %7378 = vst [vmem:[%s15559_s5 + $0x918] sm:$0x7f] %v7066_v62  ;;  %v5872_v52 = vmul.f32 0.5, %v14217_v51 }
 0x58e   :  { %8020 = vtanh.f32 %v5614_v39  ;;  %v4729_v24 = vmul.f32 %v4417_v32, %v14293_v22  ;;  %v4416_v17 = vmul.f32 %v14303_v53, %v14303_v53  ;;  %7119 = vst [vmem:[%s15559_s5 + $0x100] sm:$0xff] %v6807_v6  ;;  %v14317_v25 = vadd.f32 %v3450_v46, %v16302_v59  ;;  %v3460_v32 = vpop.f32.mrf.mxu1 }
 0x58f   :  { %v6809_v26 = vmul.f32 %v6497_v42, %v5873_v15  ;;  %v5663_v18 = vmul.f32 0.7978846, %v5351_v43  ;;  %v14320_v56 = vadd.f32 %v3353_v28, %v16316_v34  ;;  %v5874_v51 = vmul.f32 0.5, %v14224_v0 }
 0x590   :  { %v5041_v40 = vmul.f32 0.044715, %v4729_v24  ;;  %v4728_v20 = vmul.f32 %v4416_v17, %v14303_v53  ;;  %v14325_v5 = vadd.f32 %v3454_v3, %v16316_v34  ;;  %v4418_v33 = vmul.f32 %v14317_v25, %v14317_v25 }
 0x591   :  { %7121 = vst [vmem:[%s15559_s5 + $0x110] sm:$0xff] %v6809_v26  ;;  %8022 = vtanh.f32 %v5663_v18  ;;  %v4467_v11 = vmul.f32 %v14320_v56, %v14320_v56  ;;  %v14335_v27 = vadd.f32 %v3355_v37, %v16316_v34  ;;  %v5923_v1 = vmul.f32 0.5, %v14227_v45  ;;  %v3361_v37 = vpop.f32.mrf.mxu0 }
 0x592   :  { %v8011_v0 = vpop.eup %8010  ;;  %v5353_v50 = vadd.f32 %v5041_v40, %v14293_v22  ;;  %v5040_v31 = vmul.f32 0.044715, %v4728_v20  ;;  %v4469_v23 = vmul.f32 %v14325_v5, %v14325_v5  ;;  %v5925_v7 = vmul.f32 0.5, %v14233_v61 }
 0x593   :  { %v8013_v57 = vpop.eup %8012  ;;  %v6496_v19 = vadd.f32 1.0, %v8011_v0  ;;  %v4730_v4 = vmul.f32 %v4418_v33, %v14317_v25  ;;  %v4779_v41 = vmul.f32 %v4467_v11, %v14320_v56  ;;  %v4468_v46 = vmul.f32 %v14335_v27, %v14335_v27  ;;  %v3462_v0 = vpop.f32.mrf.mxu1 }
 0x594   :  { %v6498_v8 = vadd.f32 1.0, %v8013_v57  ;;  %v5665_v21 = vmul.f32 0.7978846, %v5353_v50  ;;  %v5352_v47 = vadd.f32 %v5040_v31, %v14303_v53  ;;  %v4781_v45 = vmul.f32 %v4469_v23, %v14325_v5 }
 0x595   :  { %v8015_v35 = vpop.eup %8014  ;;  %v6808_v30 = vmul.f32 %v6496_v19, %v5872_v52  ;;  %v5042_v38 = vmul.f32 0.044715, %v4730_v4  ;;  %v5091_v13 = vmul.f32 0.044715, %v4779_v41  ;;  %v4780_v14 = vmul.f32 %v4468_v46, %v14335_v27  ;;  %v3365_v4 = vpop.f32.mrf.mxu0 }
 0x596   :  { %v6810_v54 = vmul.f32 %v6498_v8, %v5874_v51  ;;  %v6547_v61 = vadd.f32 1.0, %v8015_v35  ;;  %8024 = vtanh.f32 %v5665_v21  ;;  %v5664_v63 = vmul.f32 0.7978846, %v5352_v47  ;;  %v3466_v35 = vpop.f32.mrf.mxu1 }
 0x597   :  { %v8017_v2 = vpop.eup %8016  ;;  %7120 = vst [vmem:[%s15559_s5 + $0x108] sm:$0xff] %v6808_v30  ;;  %v5354_v28 = vadd.f32 %v5042_v38, %v14317_v25  ;;  %v5403_v58 = vadd.f32 %v5091_v13, %v14320_v56  ;;  %v5093_v49 = vmul.f32 0.044715, %v4781_v45  ;;  %v5924_v15 = vmul.f32 0.5, %v14258_v10 }
 0x598   :  { %7122 = vst [vmem:[%s15559_s5 + $0x118] sm:$0xff] %v6810_v54  ;;  %v6859_v55 = vmul.f32 %v6547_v61, %v5923_v1  ;;  %v6549_v62 = vadd.f32 1.0, %v8017_v2  ;;  %8026 = vtanh.f32 %v5664_v63  ;;  %v5092_v43 = vmul.f32 0.044715, %v4780_v14 }
 0x599   :  { %v5666_v39 = vmul.f32 0.7978846, %v5354_v28  ;;  %v5715_v6 = vmul.f32 0.7978846, %v5403_v58  ;;  %v5405_v42 = vadd.f32 %v5093_v49, %v14325_v5  ;;  %v14363_v24 = vadd.f32 %v3456_v60, %v16316_v34 }
 0x59a   :  { %v8019_v3 = vpop.eup %8018  ;;  %7171 = vst [vmem:[%s15559_s5 + $0x2a0] sm:$0xff] %v6859_v55  ;;  %v6861_v52 = vmul.f32 %v6549_v62, %v5925_v7  ;;  %v14366_v17 = vadd.f32 %v3359_v9, %v11763_v12  ;;  %v14369_v10 = vadd.f32 %v3460_v32, %v11763_v12  ;;  %v5404_v40 = vadd.f32 %v5092_v43, %v14335_v27 }
 0x59b   :  { %v8021_v26 = vpop.eup %8020  ;;  %v6548_v18 = vadd.f32 1.0, %v8019_v3  ;;  %8028 = vtanh.f32 %v5666_v39  ;;  %v5717_v51 = vmul.f32 0.7978846, %v5405_v42  ;;  %v5926_v20 = vmul.f32 0.5, %v14261_v48 }
 0x59c   :  { %7173 = vst [vmem:[%s15559_s5 + $0x2b0] sm:$0xff] %v6861_v52  ;;  %v6550_v33 = vadd.f32 1.0, %v8021_v26  ;;  %8030 = vtanh.f32 %v5715_v6  ;;  %v4470_v11 = vmul.f32 %v14363_v24, %v14363_v24  ;;  %v5716_v50 = vmul.f32 0.7978846, %v5404_v40  ;;  %v3367_v52 = vpop.f32.mrf.mxu0 }
 0x59d   :  { %v6860_v1 = vmul.f32 %v6548_v18, %v5924_v15  ;;  %8032 = vtanh.f32 %v5717_v51  ;;  %v4519_v31 = vmul.f32 %v14366_v17, %v14366_v17  ;;  %v5975_v19 = vmul.f32 0.5, %v14272_v29 }
 0x59e   :  { %v8023_v23 = vpop.eup %8022  ;;  %v6862_v57 = vmul.f32 %v6550_v33, %v5926_v20  ;;  %v4782_v7 = vmul.f32 %v4470_v11, %v14363_v24  ;;  %v4521_v48 = vmul.f32 %v14369_v10, %v14369_v10  ;;  %v5977_v60 = vmul.f32 0.5, %v14293_v22 }
 0x59f   :  { %7172 = vst [vmem:[%s15559_s5 + $0x2a8] sm:$0xff] %v6860_v1  ;;  %v6599_v41 = vadd.f32 1.0, %v8023_v23  ;;  %8034 = vtanh.f32 %v5716_v50  ;;  %v4831_v8 = vmul.f32 %v4519_v31, %v14366_v17  ;;  %v14394_v47 = vadd.f32 %v3361_v37, %v11763_v12  ;;  %v3468_v37 = vpop.f32.mrf.mxu1 }
 0x5a0   :  { %7174 = vst [vmem:[%s15559_s5 + $0x2b8] sm:$0xff] %v6862_v57  ;;  %v5094_v29 = vmul.f32 0.044715, %v4782_v7  ;;  %v4833_v21 = vmul.f32 %v4521_v48, %v14369_v10  ;;  %v14397_v45 = vadd.f32 %v3462_v0, %v11763_v12  ;;  %v5976_v22 = vmul.f32 0.5, %v14303_v53  ;;  %v3537_v48 = vpop.f32.mrf.mxu0 }
 0x5a1   :  { %v6911_v30 = vmul.f32 %v6599_v41, %v5975_v19  ;;  %v5143_v38 = vmul.f32 0.044715, %v4831_v8  ;;  %v14401_v13 = vadd.f32 %v3365_v4, %v11846_v44  ;;  %v5978_v46 = vmul.f32 0.5, %v14317_v25  ;;  %v3638_v4 = vpop.f32.mrf.mxu1 }
 0x5a2   :  { %v5406_v54 = vadd.f32 %v5094_v29, %v14363_v24  ;;  %v5145_v61 = vmul.f32 0.044715, %v4833_v21  ;;  %v4520_v63 = vmul.f32 %v14394_v47, %v14394_v47  ;;  %v4522_v53 = vmul.f32 %v14397_v45, %v14397_v45 }
 0x5a3   :  { %v8025_v9 = vpop.eup %8024  ;;  %7223 = vst [vmem:[%s15559_s5 + $0x440] sm:$0xff] %v6911_v30  ;;  %v5455_v2 = vadd.f32 %v5143_v38, %v14366_v17  ;;  %v4571_v28 = vmul.f32 %v14401_v13, %v14401_v13  ;;  %v14416_v25 = vadd.f32 %v3466_v35, %v11846_v44  ;;  %v6027_v62 = vmul.f32 0.5, %v14320_v56 }
 0x5a4   :  { %v6601_v58 = vadd.f32 1.0, %v8025_v9  ;;  %v5718_v49 = vmul.f32 0.7978846, %v5406_v54  ;;  %v5457_v14 = vadd.f32 %v5145_v61, %v14369_v10  ;;  %v4832_v32 = vmul.f32 %v4520_v63, %v14394_v47 }
 0x5a5   :  { %v8027_v55 = vpop.eup %8026  ;;  %v5767_v15 = vmul.f32 0.7978846, %v5455_v2  ;;  %v4834_v39 = vmul.f32 %v4522_v53, %v14397_v45  ;;  %v4883_v6 = vmul.f32 %v4571_v28, %v14401_v13  ;;  %v6029_v20 = vmul.f32 0.5, %v14325_v5  ;;  %v3539_v53 = vpop.f32.mrf.mxu0 }
 0x5a6   :  { %v6913_v42 = vmul.f32 %v6601_v58, %v5977_v60  ;;  %v6600_v43 = vadd.f32 1.0, %v8027_v55  ;;  %8036 = vtanh.f32 %v5718_v49  ;;  %v5769_v3 = vmul.f32 0.7978846, %v5457_v14  ;;  %v3640_v28 = vpop.f32.mrf.mxu1 }
 0x5a7   :  { %8038 = vtanh.f32 %v5767_v15  ;;  %v5144_v26 = vmul.f32 0.044715, %v4832_v32  ;;  %v5146_v18 = vmul.f32 0.044715, %v4834_v39  ;;  %v5195_v51 = vmul.f32 0.044715, %v4883_v6 }
 0x5a8   :  { %v8029_v40 = vpop.eup %8028  ;;  %7225 = vst [vmem:[%s15559_s5 + $0x450] sm:$0xff] %v6913_v42  ;;  %v6912_v56 = vmul.f32 %v6600_v43, %v5976_v22  ;;  %8040 = vtanh.f32 %v5769_v3  ;;  %v4573_v33 = vmul.f32 %v14416_v25, %v14416_v25  ;;  %v14437_v19 = vadd.f32 %v3367_v52, %v11846_v44 }
 0x5a9   :  { %v8031_v11 = vpop.eup %8030  ;;  %v6602_v0 = vadd.f32 1.0, %v8029_v40  ;;  %v5456_v1 = vadd.f32 %v5144_v26, %v14394_v47  ;;  %v5458_v50 = vadd.f32 %v5146_v18, %v14397_v45  ;;  %v5507_v31 = vadd.f32 %v5195_v51, %v14401_v13  ;;  %v3543_v51 = vpop.f32.mrf.mxu0 }
 0x5aa   :  { %v8033_v23 = vpop.eup %8032  ;;  %7224 = vst [vmem:[%s15559_s5 + $0x448] sm:$0xff] %v6912_v56  ;;  %v6651_v57 = vadd.f32 1.0, %v8031_v11  ;;  %v4885_v5 = vmul.f32 %v4573_v33, %v14416_v25  ;;  %v14440_v7 = vadd.f32 %v3468_v37, %v11846_v44  ;;  %v4572_v38 = vmul.f32 %v14437_v19, %v14437_v19 }
 0x5ab   :  { %v6914_v41 = vmul.f32 %v6602_v0, %v5978_v46  ;;  %v6653_v60 = vadd.f32 1.0, %v8033_v23  ;;  %v5768_v8 = vmul.f32 0.7978846, %v5456_v1  ;;  %v5770_v29 = vmul.f32 0.7978846, %v5458_v50 }
 0x5ac   :  { %v8035_v21 = vpop.eup %8034  ;;  %v6963_v35 = vmul.f32 %v6651_v57, %v6027_v62  ;;  %v5819_v30 = vmul.f32 0.7978846, %v5507_v31  ;;  %v5197_v22 = vmul.f32 0.044715, %v4885_v5  ;;  %v6028_v61 = vmul.f32 0.5, %v14335_v27  ;;  %v3644_v31 = vpop.f32.mrf.mxu1 }
 0x5ad   :  { %7226 = vst [vmem:[%s15559_s5 + $0x458] sm:$0xff] %v6914_v41  ;;  %v6965_v54 = vmul.f32 %v6653_v60, %v6029_v20  ;;  %v6652_v63 = vadd.f32 1.0, %v8035_v21  ;;  %8042 = vtanh.f32 %v5768_v8  ;;  %v4884_v9 = vmul.f32 %v4572_v38, %v14437_v19  ;;  %v3545_v8 = vpop.f32.mrf.mxu0 }
 0x5ae   :  { %7275 = vst [vmem:[%s15559_s5 + $0x5e0] sm:$0xff] %v6963_v35  ;;  %8044 = vtanh.f32 %v5770_v29  ;;  %v5509_v46 = vadd.f32 %v5197_v22, %v14416_v25  ;;  %v4574_v2 = vmul.f32 %v14440_v7, %v14440_v7  ;;  %v6030_v58 = vmul.f32 0.5, %v14363_v24 }
 0x5af   :  { %7277 = vst [vmem:[%s15559_s5 + $0x5f0] sm:$0xff] %v6965_v54  ;;  %v6964_v27 = vmul.f32 %v6652_v63, %v6028_v61  ;;  %8046 = vtanh.f32 %v5819_v30  ;;  %v14460_v49 = vadd.f32 %v3537_v48, %v11442_v36  ;;  %v5196_v32 = vmul.f32 0.044715, %v4884_v9  ;;  %v3646_v61 = vpop.f32.mrf.mxu1 }
 0x5b0   :  { %v5821_v14 = vmul.f32 0.7978846, %v5509_v46  ;;  %v4886_v55 = vmul.f32 %v4574_v2, %v14440_v7  ;;  %v14464_v62 = vadd.f32 %v3638_v4, %v11442_v36  ;;  %v6079_v15 = vmul.f32 0.5, %v14366_v17 }
 0x5b1   :  { %7276 = vst [vmem:[%s15559_s5 + $0x5e8] sm:$0xff] %v6964_v27  ;;  %v4315_v24 = vmul.f32 %v14460_v49, %v14460_v49  ;;  %v14473_v39 = vadd.f32 %v3539_v53, %v11442_v36  ;;  %v14476_v6 = vadd.f32 %v3640_v28, %v11442_v36  ;;  %v5508_v42 = vadd.f32 %v5196_v32, %v14437_v19 }
 0x5b2   :  { %8048 = vtanh.f32 %v5821_v14  ;;  %v5198_v43 = vmul.f32 0.044715, %v4886_v55  ;;  %v4317_v3 = vmul.f32 %v14464_v62, %v14464_v62  ;;  %v6081_v37 = vmul.f32 0.5, %v14369_v10 }
 0x5b3   :  { %v8037_v52 = vpop.eup %8036  ;;  %v6080_v17 = vmul.f32 0.5, %v14394_v47  ;;  %v4627_v26 = vmul.f32 %v4315_v24, %v14460_v49  ;;  %v4316_v18 = vmul.f32 %v14473_v39, %v14473_v39  ;;  %v5820_v20 = vmul.f32 0.7978846, %v5508_v42 }
 0x5b4   :  { %v8039_v40 = vpop.eup %8038  ;;  %v6654_v56 = vadd.f32 1.0, %v8037_v52  ;;  %v5510_v33 = vadd.f32 %v5198_v43, %v14440_v7  ;;  %v4629_v11 = vmul.f32 %v4317_v3, %v14464_v62  ;;  %v4318_v47 = vmul.f32 %v14476_v6, %v14476_v6  ;;  %v3549_v3 = vpop.f32.mrf.mxu0 }
 0x5b5   :  { %v8041_v0 = vpop.eup %8040  ;;  %v6703_v1 = vadd.f32 1.0, %v8039_v40  ;;  %v4939_v50 = vmul.f32 0.044715, %v4627_v26  ;;  %v4628_v10 = vmul.f32 %v4316_v18, %v14473_v39  ;;  %8050 = vtanh.f32 %v5820_v20  ;;  %v3650_v20 = vpop.f32.mrf.mxu1 }
 0x5b6   :  { %v6966_v23 = vmul.f32 %v6654_v56, %v6030_v58  ;;  %v6705_v57 = vadd.f32 1.0, %v8041_v0  ;;  %v5822_v5 = vmul.f32 0.7978846, %v5510_v33  ;;  %v4941_v41 = vmul.f32 0.044715, %v4629_v11 }
 0x5b7   :  { %v7015_v48 = vmul.f32 %v6703_v1, %v6079_v15  ;;  %v5251_v4 = vadd.f32 %v4939_v50, %v14460_v49  ;;  %v4940_v60 = vmul.f32 0.044715, %v4628_v10  ;;  %v6082_v21 = vmul.f32 0.5, %v14397_v45 }
 0x5b8   :  { %7278 = vst [vmem:[%s15559_s5 + $0x5f8] sm:$0xff] %v6966_v23  ;;  %v7017_v29 = vmul.f32 %v6705_v57, %v6081_v37  ;;  %8052 = vtanh.f32 %v5822_v5  ;;  %v4630_v35 = vmul.f32 %v4318_v47, %v14476_v6  ;;  %v5253_v22 = vadd.f32 %v4941_v41, %v14464_v62  ;;  %v3551_v47 = vpop.f32.mrf.mxu0 }
 0x5b9   :  { %7327 = vst [vmem:[%s15559_s5 + $0x780] sm:$0xff] %v7015_v48  ;;  %v5563_v30 = vmul.f32 0.7978846, %v5251_v4  ;;  %v5252_v38 = vadd.f32 %v4940_v60, %v14473_v39  ;;  %v14503_v54 = vadd.f32 %v3543_v51, %v16289_v16  ;;  %v6131_v45 = vmul.f32 0.5, %v14401_v13 }
 0x5ba   :  { %v8043_v63 = vpop.eup %8042  ;;  %7329 = vst [vmem:[%s15559_s5 + $0x790] sm:$0xff] %v7017_v29  ;;  %v4942_v46 = vmul.f32 0.044715, %v4630_v35  ;;  %v14510_v9 = vadd.f32 %v3644_v31, %v16289_v16  ;;  %v14513_v2 = vadd.f32 %v3545_v8, %v16289_v16  ;;  %v5565_v27 = vmul.f32 0.7978846, %v5253_v22 }
 0x5bb   :  { %v8045_v53 = vpop.eup %8044  ;;  %v6704_v28 = vadd.f32 1.0, %v8043_v63  ;;  %8054 = vtanh.f32 %v5563_v30  ;;  %v5564_v58 = vmul.f32 0.7978846, %v5252_v38  ;;  %v4367_v15 = vmul.f32 %v14503_v54, %v14503_v54 }
 0x5bc   :  { %v8047_v14 = vpop.eup %8046  ;;  %v6706_v32 = vadd.f32 1.0, %v8045_v53  ;;  %v5254_v55 = vadd.f32 %v4942_v46, %v14476_v6  ;;  %v14519_v13 = vadd.f32 %v3646_v61, %v16289_v16  ;;  %8056 = vtanh.f32 %v5565_v27  ;;  %v3652_v46 = vpop.f32.mrf.mxu1 }
 0x5bd   :  { %v7016_v24 = vmul.f32 %v6704_v28, %v6080_v17  ;;  %v6755_v42 = vadd.f32 1.0, %v8047_v14  ;;  %v4369_v43 = vmul.f32 %v14510_v9, %v14510_v9  ;;  %8058 = vtanh.f32 %v5564_v58  ;;  %v3555_v58 = vpop.f32.mrf.mxu0 }
 0x5be   :  { %v7018_v52 = vmul.f32 %v6706_v32, %v6082_v21  ;;  %v5566_v37 = vmul.f32 0.7978846, %v5254_v55  ;;  %v4679_v26 = vmul.f32 %v4367_v15, %v14503_v54  ;;  %v6133_v40 = vmul.f32 0.5, %v14416_v25 }
 0x5bf   :  { %v8049_v18 = vpop.eup %8048  ;;  %7328 = vst [vmem:[%s15559_s5 + $0x788] sm:$0xff] %v7016_v24  ;;  %v7067_v51 = vmul.f32 %v6755_v42, %v6131_v45  ;;  %v4681_v17 = vmul.f32 %v4369_v43, %v14510_v9  ;;  %v4368_v56 = vmul.f32 %v14513_v2, %v14513_v2  ;;  %v6132_v11 = vmul.f32 0.5, %v14437_v19 }
 0x5c0   :  { %7330 = vst [vmem:[%s15559_s5 + $0x798] sm:$0xff] %v7018_v52  ;;  %v6757_v33 = vadd.f32 1.0, %v8049_v18  ;;  %8060 = vtanh.f32 %v5566_v37  ;;  %v4991_v0 = vmul.f32 0.044715, %v4679_v26  ;;  %v6134_v25 = vmul.f32 0.5, %v14440_v7 }
 0x5c1   :  { %7379 = vst [vmem:[%s15559_s5 + $0x920] sm:$0x7f] %v7067_v51  ;;  %v4993_v1 = vmul.f32 0.044715, %v4681_v17  ;;  %v4680_v50 = vmul.f32 %v4368_v56, %v14513_v2  ;;  %v4370_v10 = vmul.f32 %v14519_v13, %v14519_v13  ;;  %v14544_v19 = vadd.f32 %v3549_v3, %v16302_v59  ;;  %v3656_v51 = vpop.f32.mrf.mxu1 }
 0x5c2   :  { %v7069_v31 = vmul.f32 %v6757_v33, %v6133_v40  ;;  %v5303_v23 = vadd.f32 %v4991_v0, %v14503_v54  ;;  %v14547_v57 = vadd.f32 %v3650_v20, %v16302_v59  ;;  %v8051_v5 = vpop.eup %8050  ;;  %v5875_v48 = vmul.f32 0.5, %v14460_v49  ;;  %v3557_v33 = vpop.f32.mrf.mxu0 }
 0x5c3   :  { %v5305_v7 = vadd.f32 %v4993_v1, %v14510_v9  ;;  %v4992_v4 = vmul.f32 0.044715, %v4680_v50  ;;  %v4682_v41 = vmul.f32 %v4370_v10, %v14519_v13  ;;  %v6756_v60 = vadd.f32 1.0, %v8051_v5 }
 0x5c4   :  { %7381 = vst [vmem:[%s15559_s5 + $0x930] sm:$0x7f] %v7069_v31  ;;  %v5615_v8 = vmul.f32 0.7978846, %v5303_v23  ;;  %v4419_v29 = vmul.f32 %v14544_v19, %v14544_v19  ;;  %v14558_v21 = vadd.f32 %v3551_v47, %v16302_v59  ;;  %v4421_v38 = vmul.f32 %v14547_v57, %v14547_v57 }
 0x5c5   :  { %v8053_v35 = vpop.eup %8052  ;;  %v5617_v30 = vmul.f32 0.7978846, %v5305_v7  ;;  %v5304_v49 = vadd.f32 %v4992_v4, %v14513_v2  ;;  %v4994_v22 = vmul.f32 0.044715, %v4682_v41  ;;  %v7068_v61 = vmul.f32 %v6756_v60, %v6132_v11  ;;  %v3658_v7 = vpop.f32.mrf.mxu1 }
 0x5c6   :  { %v6758_v63 = vadd.f32 1.0, %v8053_v35  ;;  %8062 = vtanh.f32 %v5615_v8  ;;  %v4731_v45 = vmul.f32 %v4419_v29, %v14544_v19  ;;  %v4733_v27 = vmul.f32 %v4421_v38, %v14547_v57  ;;  %v3561_v60 = vpop.f32.mrf.mxu0 }
 0x5c7   :  { %8064 = vtanh.f32 %v5617_v30  ;;  %v5616_v53 = vmul.f32 0.7978846, %v5304_v49  ;;  %v5306_v28 = vadd.f32 %v4994_v22, %v14519_v13  ;;  %7380 = vst [vmem:[%s15559_s5 + $0x928] sm:$0x7f] %v7068_v61  ;;  %v5877_v55 = vmul.f32 0.5, %v14464_v62 }
 0x5c8   :  { %v8055_v14 = vpop.eup %8054  ;;  %v7070_v32 = vmul.f32 %v6758_v63, %v6134_v25  ;;  %v5043_v15 = vmul.f32 0.044715, %v4731_v45  ;;  %v4420_v24 = vmul.f32 %v14558_v21, %v14558_v21  ;;  %v5045_v3 = vmul.f32 0.044715, %v4733_v27 }
 0x5c9   :  { %v6499_v42 = vadd.f32 1.0, %v8055_v14  ;;  %8066 = vtanh.f32 %v5616_v53  ;;  %v5618_v43 = vmul.f32 0.7978846, %v5306_v28  ;;  %v8057_v52 = vpop.eup %8056  ;;  %v5876_v37 = vmul.f32 0.5, %v14473_v39 }
 0x5ca   :  { %7382 = vst [vmem:[%s15559_s5 + $0x938] sm:$0x7f] %v7070_v32  ;;  %v5355_v26 = vadd.f32 %v5043_v15, %v14544_v19  ;;  %v4732_v18 = vmul.f32 %v4420_v24, %v14558_v21  ;;  %v14579_v62 = vadd.f32 %v3652_v46, %v16302_v59  ;;  %v8059_v40 = vpop.eup %8058  ;;  %v6501_v56 = vadd.f32 1.0, %v8057_v52  ;;  %v3662_v24 = vpop.f32.mrf.mxu1 }
 0x5cb   :  { %v6811_v17 = vmul.f32 %v6499_v42, %v5875_v48  ;;  %8068 = vtanh.f32 %v5618_v43  ;;  %v5357_v20 = vadd.f32 %v5045_v3, %v14547_v57  ;;  %v6500_v11 = vadd.f32 1.0, %v8059_v40 }
 0x5cc   :  { %v5667_v0 = vmul.f32 0.7978846, %v5355_v26  ;;  %v5044_v25 = vmul.f32 0.044715, %v4732_v18  ;;  %v4422_v39 = vmul.f32 %v14579_v62, %v14579_v62  ;;  %v6813_v50 = vmul.f32 %v6501_v56, %v5877_v55  ;;  %v3563_v56 = vpop.f32.mrf.mxu0 }
 0x5cd   :  { %v8061_v1 = vpop.eup %8060  ;;  %7123 = vst [vmem:[%s15559_s5 + $0x120] sm:$0xff] %v6811_v17  ;;  %v5878_v10 = vmul.f32 0.5, %v14476_v6  ;;  %v5669_v47 = vmul.f32 0.7978846, %v5357_v20  ;;  %v14589_v31 = vadd.f32 %v3555_v58, %v16316_v34  ;;  %v6812_v23 = vmul.f32 %v6500_v11, %v5876_v37 }
 0x5ce   :  { %v6502_v5 = vadd.f32 1.0, %v8061_v1  ;;  %8070 = vtanh.f32 %v5667_v0  ;;  %v5356_v48 = vadd.f32 %v5044_v25, %v14558_v21  ;;  %7125 = vst [vmem:[%s15559_s5 + $0x130] sm:$0xff] %v6813_v50  ;;  %v5927_v4 = vmul.f32 0.5, %v14503_v54 }
 0x5cf   :  { %8072 = vtanh.f32 %v5669_v47  ;;  %v4734_v41 = vmul.f32 %v4422_v39, %v14579_v62  ;;  %v4471_v6 = vmul.f32 %v14589_v31, %v14589_v31  ;;  %7124 = vst [vmem:[%s15559_s5 + $0x128] sm:$0xff] %v6812_v23  ;;  %v14603_v35 = vadd.f32 %v3656_v51, %v16316_v34  ;;  %v3664_v39 = vpop.f32.mrf.mxu1 }
 0x5d0   :  { %v6814_v8 = vmul.f32 %v6502_v5, %v5878_v10  ;;  %v5668_v29 = vmul.f32 0.7978846, %v5356_v48  ;;  %v14606_v30 = vadd.f32 %v3557_v33, %v16316_v34  ;;  %v5929_v54 = vmul.f32 0.5, %v14510_v9 }
 0x5d1   :  { %v5046_v49 = vmul.f32 0.044715, %v4734_v41  ;;  %v4783_v22 = vmul.f32 %v4471_v6, %v14589_v31  ;;  %v14611_v38 = vadd.f32 %v3658_v7, %v16316_v34  ;;  %v4473_v61 = vmul.f32 %v14603_v35, %v14603_v35 }
 0x5d2   :  { %7126 = vst [vmem:[%s15559_s5 + $0x138] sm:$0xff] %v6814_v8  ;;  %8074 = vtanh.f32 %v5668_v29  ;;  %v4472_v63 = vmul.f32 %v14606_v30, %v14606_v30  ;;  %v14621_v45 = vadd.f32 %v3561_v60, %v11763_v12  ;;  %v5928_v46 = vmul.f32 0.5, %v14513_v2  ;;  %v3567_v60 = vpop.f32.mrf.mxu0 }
 0x5d3   :  { %v8063_v9 = vpop.eup %8062  ;;  %v5358_v53 = vadd.f32 %v5046_v49, %v14579_v62  ;;  %v5095_v28 = vmul.f32 0.044715, %v4783_v22  ;;  %v4474_v27 = vmul.f32 %v14611_v38, %v14611_v38  ;;  %v5930_v32 = vmul.f32 0.5, %v14519_v13 }
 0x5d4   :  { %v8065_v58 = vpop.eup %8064  ;;  %v6551_v14 = vadd.f32 1.0, %v8063_v9  ;;  %v4785_v55 = vmul.f32 %v4473_v61, %v14603_v35  ;;  %v4784_v15 = vmul.f32 %v4472_v63, %v14606_v30  ;;  %v4523_v51 = vmul.f32 %v14621_v45, %v14621_v45  ;;  %v3668_v9 = vpop.f32.mrf.mxu1 }
 0x5d5   :  { %v6553_v42 = vadd.f32 1.0, %v8065_v58  ;;  %v5670_v43 = vmul.f32 0.7978846, %v5358_v53  ;;  %v5407_v3 = vadd.f32 %v5095_v28, %v14589_v31  ;;  %v4786_v2 = vmul.f32 %v4474_v27, %v14611_v38 }
 0x5d6   :  { %v8067_v52 = vpop.eup %8066  ;;  %v6863_v37 = vmul.f32 %v6551_v14, %v5927_v4  ;;  %v5097_v26 = vmul.f32 0.044715, %v4785_v55  ;;  %v5096_v18 = vmul.f32 0.044715, %v4784_v15  ;;  %v4835_v25 = vmul.f32 %v4523_v51, %v14621_v45  ;;  %v3569_v55 = vpop.f32.mrf.mxu0 }
 0x5d7   :  { %v6865_v40 = vmul.f32 %v6553_v42, %v5929_v54  ;;  %v6552_v13 = vadd.f32 1.0, %v8067_v52  ;;  %8076 = vtanh.f32 %v5670_v43  ;;  %v5719_v17 = vmul.f32 0.7978846, %v5407_v3  ;;  %v3670_v52 = vpop.f32.mrf.mxu1 }
 0x5d8   :  { %v8069_v20 = vpop.eup %8068  ;;  %7175 = vst [vmem:[%s15559_s5 + $0x2c0] sm:$0xff] %v6863_v37  ;;  %v5409_v33 = vadd.f32 %v5097_v26, %v14603_v35  ;;  %v5408_v11 = vadd.f32 %v5096_v18, %v14606_v30  ;;  %v5098_v0 = vmul.f32 0.044715, %v4786_v2  ;;  %v5979_v10 = vmul.f32 0.5, %v14544_v19 }
 0x5d9   :  { %7177 = vst [vmem:[%s15559_s5 + $0x2d0] sm:$0xff] %v6865_v40  ;;  %v6864_v1 = vmul.f32 %v6552_v13, %v5928_v46  ;;  %v6554_v50 = vadd.f32 1.0, %v8069_v20  ;;  %8078 = vtanh.f32 %v5719_v17  ;;  %v5147_v48 = vmul.f32 0.044715, %v4835_v25 }
 0x5da   :  { %v5721_v47 = vmul.f32 0.7978846, %v5409_v33  ;;  %v5720_v23 = vmul.f32 0.7978846, %v5408_v11  ;;  %v5410_v5 = vadd.f32 %v5098_v0, %v14611_v38  ;;  %v14649_v41 = vadd.f32 %v3662_v24, %v11763_v12 }
 0x5db   :  { %v8071_v7 = vpop.eup %8070  ;;  %7176 = vst [vmem:[%s15559_s5 + $0x2c8] sm:$0xff] %v6864_v1  ;;  %v6866_v4 = vmul.f32 %v6554_v50, %v5930_v32  ;;  %v14652_v6 = vadd.f32 %v3563_v56, %v11763_v12  ;;  %v14655_v19 = vadd.f32 %v3664_v39, %v11763_v12  ;;  %v5459_v49 = vadd.f32 %v5147_v48, %v14621_v45 }
 0x5dc   :  { %v8073_v8 = vpop.eup %8072  ;;  %v6603_v29 = vadd.f32 1.0, %v8071_v7  ;;  %8080 = vtanh.f32 %v5721_v47  ;;  %v5722_v54 = vmul.f32 0.7978846, %v5410_v5  ;;  %v5981_v22 = vmul.f32 0.5, %v14547_v57 }
 0x5dd   :  { %7178 = vst [vmem:[%s15559_s5 + $0x2d8] sm:$0xff] %v6866_v4  ;;  %v6605_v61 = vadd.f32 1.0, %v8073_v8  ;;  %8082 = vtanh.f32 %v5720_v23  ;;  %v4525_v63 = vmul.f32 %v14649_v41, %v14649_v41  ;;  %v5771_v53 = vmul.f32 0.7978846, %v5459_v49  ;;  %v3739_v4 = vpop.f32.mrf.mxu0 }
 0x5de   :  { %v6915_v46 = vmul.f32 %v6603_v29, %v5979_v10  ;;  %8084 = vtanh.f32 %v5722_v54  ;;  %v4524_v28 = vmul.f32 %v14652_v6, %v14652_v6  ;;  %v5980_v14 = vmul.f32 0.5, %v14558_v21 }
 0x5df   :  { %v8075_v27 = vpop.eup %8074  ;;  %v6917_v58 = vmul.f32 %v6605_v61, %v5981_v22  ;;  %v4837_v32 = vmul.f32 %v4525_v63, %v14649_v41  ;;  %v4526_v57 = vmul.f32 %v14655_v19, %v14655_v19  ;;  %v5982_v24 = vmul.f32 0.5, %v14579_v62 }
 0x5e0   :  { %7227 = vst [vmem:[%s15559_s5 + $0x460] sm:$0xff] %v6915_v46  ;;  %v6604_v15 = vadd.f32 1.0, %v8075_v27  ;;  %8086 = vtanh.f32 %v5771_v53  ;;  %v4836_v42 = vmul.f32 %v4524_v28, %v14652_v6  ;;  %v14680_v3 = vadd.f32 %v3567_v60, %v11846_v44  ;;  %v3840_v60 = vpop.f32.mrf.mxu1 }
 0x5e1   :  { %7229 = vst [vmem:[%s15559_s5 + $0x470] sm:$0xff] %v6917_v58  ;;  %v5149_v21 = vmul.f32 0.044715, %v4837_v32  ;;  %v4838_v43 = vmul.f32 %v4526_v57, %v14655_v19  ;;  %v14683_v2 = vadd.f32 %v3668_v9, %v11846_v44  ;;  %v6031_v62 = vmul.f32 0.5, %v14589_v31  ;;  %v3741_v57 = vpop.f32.mrf.mxu0 }
 0x5e2   :  { %v6916_v37 = vmul.f32 %v6604_v15, %v5980_v14  ;;  %v5148_v26 = vmul.f32 0.044715, %v4836_v42  ;;  %v14687_v18 = vadd.f32 %v3569_v55, %v11846_v44  ;;  %v6033_v51 = vmul.f32 0.5, %v14603_v35  ;;  %v3842_v55 = vpop.f32.mrf.mxu1 }
 0x5e3   :  { %v5461_v40 = vadd.f32 %v5149_v21, %v14649_v41  ;;  %v5150_v13 = vmul.f32 0.044715, %v4838_v43  ;;  %v4575_v17 = vmul.f32 %v14680_v3, %v14680_v3  ;;  %v4577_v31 = vmul.f32 %v14683_v2, %v14683_v2 }
 0x5e4   :  { %v8077_v56 = vpop.eup %8076  ;;  %7228 = vst [vmem:[%s15559_s5 + $0x468] sm:$0xff] %v6916_v37  ;;  %v5460_v20 = vadd.f32 %v5148_v26, %v14652_v6  ;;  %v4576_v33 = vmul.f32 %v14687_v18, %v14687_v18  ;;  %v14702_v35 = vadd.f32 %v3670_v52, %v11846_v44  ;;  %v6032_v50 = vmul.f32 0.5, %v14606_v30 }
 0x5e5   :  { %v6606_v11 = vadd.f32 1.0, %v8077_v56  ;;  %v5773_v0 = vmul.f32 0.7978846, %v5461_v40  ;;  %v5462_v25 = vadd.f32 %v5150_v13, %v14655_v19  ;;  %v4887_v39 = vmul.f32 %v4575_v17, %v14680_v3 }
 0x5e6   :  { %v8079_v1 = vpop.eup %8078  ;;  %v5772_v10 = vmul.f32 0.7978846, %v5460_v20  ;;  %v4889_v47 = vmul.f32 %v4577_v31, %v14683_v2  ;;  %v4888_v23 = vmul.f32 %v4576_v33, %v14687_v18  ;;  %v6034_v22 = vmul.f32 0.5, %v14611_v38  ;;  %v3745_v31 = vpop.f32.mrf.mxu0 }
 0x5e7   :  { %v6918_v5 = vmul.f32 %v6606_v11, %v5982_v24  ;;  %v6655_v48 = vadd.f32 1.0, %v8079_v1  ;;  %8088 = vtanh.f32 %v5773_v0  ;;  %v5774_v7 = vmul.f32 0.7978846, %v5462_v25  ;;  %v3846_v33 = vpop.f32.mrf.mxu1 }
 0x5e8   :  { %8090 = vtanh.f32 %v5772_v10  ;;  %v5199_v8 = vmul.f32 0.044715, %v4887_v39  ;;  %v5201_v29 = vmul.f32 0.044715, %v4889_v47  ;;  %v5200_v54 = vmul.f32 0.044715, %v4888_v23 }
 0x5e9   :  { %v8081_v49 = vpop.eup %8080  ;;  %7230 = vst [vmem:[%s15559_s5 + $0x478] sm:$0xff] %v6918_v5  ;;  %v6967_v30 = vmul.f32 %v6655_v48, %v6031_v62  ;;  %8092 = vtanh.f32 %v5774_v7  ;;  %v4578_v61 = vmul.f32 %v14702_v35, %v14702_v35  ;;  %v14723_v14 = vadd.f32 %v3739_v4, %v11442_v36 }
 0x5ea   :  { %v8083_v63 = vpop.eup %8082  ;;  %v6657_v9 = vadd.f32 1.0, %v8081_v49  ;;  %v5511_v46 = vadd.f32 %v5199_v8, %v14680_v3  ;;  %v5513_v53 = vadd.f32 %v5201_v29, %v14683_v2  ;;  %v5512_v28 = vadd.f32 %v5200_v54, %v14687_v18  ;;  %v3747_v54 = vpop.f32.mrf.mxu0 }
 0x5eb   :  { %v8085_v27 = vpop.eup %8084  ;;  %7279 = vst [vmem:[%s15559_s5 + $0x600] sm:$0xff] %v6967_v30  ;;  %v6656_v58 = vadd.f32 1.0, %v8083_v63  ;;  %v4890_v38 = vmul.f32 %v4578_v61, %v14702_v35  ;;  %v14726_v32 = vadd.f32 %v3840_v60, %v11442_v36  ;;  %v4319_v26 = vmul.f32 %v14723_v14, %v14723_v14 }
 0x5ec   :  { %v6969_v15 = vmul.f32 %v6657_v9, %v6033_v51  ;;  %v6658_v24 = vadd.f32 1.0, %v8085_v27  ;;  %v5823_v42 = vmul.f32 0.7978846, %v5511_v46  ;;  %v5825_v21 = vmul.f32 0.7978846, %v5513_v53 }
 0x5ed   :  { %v8087_v43 = vpop.eup %8086  ;;  %v6968_v52 = vmul.f32 %v6656_v58, %v6032_v50  ;;  %v5824_v37 = vmul.f32 0.7978846, %v5512_v28  ;;  %v5202_v62 = vmul.f32 0.044715, %v4890_v38  ;;  %v6083_v13 = vmul.f32 0.5, %v14621_v45  ;;  %v3848_v28 = vpop.f32.mrf.mxu1 }
 0x5ee   :  { %7281 = vst [vmem:[%s15559_s5 + $0x610] sm:$0xff] %v6969_v15  ;;  %v6970_v40 = vmul.f32 %v6658_v24, %v6034_v22  ;;  %v6707_v17 = vadd.f32 1.0, %v8087_v43  ;;  %8094 = vtanh.f32 %v5823_v42  ;;  %v4631_v56 = vmul.f32 %v4319_v26, %v14723_v14  ;;  %v3751_v42 = vpop.f32.mrf.mxu0 }
 0x5ef   :  { %7280 = vst [vmem:[%s15559_s5 + $0x608] sm:$0xff] %v6968_v52  ;;  %8096 = vtanh.f32 %v5825_v21  ;;  %v5514_v51 = vadd.f32 %v5202_v62, %v14702_v35  ;;  %v4321_v20 = vmul.f32 %v14726_v32, %v14726_v32  ;;  %v6085_v11 = vmul.f32 0.5, %v14649_v41 }
 0x5f0   :  { %7282 = vst [vmem:[%s15559_s5 + $0x618] sm:$0xff] %v6970_v40  ;;  %v7019_v45 = vmul.f32 %v6707_v17, %v6083_v13  ;;  %8098 = vtanh.f32 %v5824_v37  ;;  %v14746_v0 = vadd.f32 %v3741_v57, %v11442_v36  ;;  %v4943_v39 = vmul.f32 0.044715, %v4631_v56  ;;  %v3852_v13 = vpop.f32.mrf.mxu1 }
 0x5f1   :  { %v5826_v25 = vmul.f32 0.7978846, %v5514_v51  ;;  %v4633_v1 = vmul.f32 %v4321_v20, %v14726_v32  ;;  %v14750_v50 = vadd.f32 %v3842_v55, %v11442_v36  ;;  %v6084_v10 = vmul.f32 0.5, %v14652_v6 }
 0x5f2   :  { %7331 = vst [vmem:[%s15559_s5 + $0x7a0] sm:$0xff] %v7019_v45  ;;  %v4320_v41 = vmul.f32 %v14746_v0, %v14746_v0  ;;  %v14759_v47 = vadd.f32 %v3745_v31, %v16289_v16  ;;  %v14762_v23 = vadd.f32 %v3846_v33, %v16289_v16  ;;  %v5255_v5 = vadd.f32 %v4943_v39, %v14723_v14 }
 0x5f3   :  { %8100 = vtanh.f32 %v5826_v25  ;;  %v4945_v48 = vmul.f32 0.044715, %v4633_v1  ;;  %v4322_v7 = vmul.f32 %v14750_v50, %v14750_v50  ;;  %v6086_v60 = vmul.f32 0.5, %v14655_v19 }
 0x5f4   :  { %v8089_v4 = vpop.eup %8088  ;;  %v6135_v6 = vmul.f32 0.5, %v14680_v3  ;;  %v4632_v8 = vmul.f32 %v4320_v41, %v14746_v0  ;;  %v4371_v29 = vmul.f32 %v14759_v47, %v14759_v47  ;;  %v5567_v22 = vmul.f32 0.7978846, %v5255_v5 }
 0x5f5   :  { %v8091_v49 = vpop.eup %8090  ;;  %v6709_v30 = vadd.f32 1.0, %v8089_v4  ;;  %v5257_v61 = vadd.f32 %v4945_v48, %v14726_v32  ;;  %v4634_v63 = vmul.f32 %v4322_v7, %v14750_v50  ;;  %v4373_v3 = vmul.f32 %v14762_v23, %v14762_v23  ;;  %v3753_v7 = vpop.f32.mrf.mxu0 }
 0x5f6   :  { %v8093_v9 = vpop.eup %8092  ;;  %v6708_v46 = vadd.f32 1.0, %v8091_v49  ;;  %v4944_v53 = vmul.f32 0.044715, %v4632_v8  ;;  %v4683_v19 = vmul.f32 %v4371_v29, %v14759_v47  ;;  %8102 = vtanh.f32 %v5567_v22  ;;  %v3854_v22 = vpop.f32.mrf.mxu1 }
 0x5f7   :  { %v7021_v27 = vmul.f32 %v6709_v30, %v6085_v11  ;;  %v6710_v58 = vadd.f32 1.0, %v8093_v9  ;;  %v5569_v38 = vmul.f32 0.7978846, %v5257_v61  ;;  %v4946_v15 = vmul.f32 0.044715, %v4634_v63 }
 0x5f8   :  { %v7020_v57 = vmul.f32 %v6708_v46, %v6084_v10  ;;  %v5256_v55 = vadd.f32 %v4944_v53, %v14746_v0  ;;  %v4995_v24 = vmul.f32 0.044715, %v4683_v19  ;;  %v6137_v43 = vmul.f32 0.5, %v14683_v2 }
 0x5f9   :  { %7333 = vst [vmem:[%s15559_s5 + $0x7b0] sm:$0xff] %v7021_v27  ;;  %v7022_v21 = vmul.f32 %v6710_v58, %v6086_v60  ;;  %8104 = vtanh.f32 %v5569_v38  ;;  %v4685_v52 = vmul.f32 %v4373_v3, %v14762_v23  ;;  %v5258_v62 = vadd.f32 %v4946_v15, %v14750_v50  ;;  %v3757_v3 = vpop.f32.mrf.mxu0 }
 0x5fa   :  { %7332 = vst [vmem:[%s15559_s5 + $0x7a8] sm:$0xff] %v7020_v57  ;;  %v5568_v37 = vmul.f32 0.7978846, %v5256_v55  ;;  %v5307_v26 = vadd.f32 %v4995_v24, %v14759_v47  ;;  %v14789_v40 = vadd.f32 %v3747_v54, %v16289_v16  ;;  %v6136_v2 = vmul.f32 0.5, %v14687_v18 }
 0x5fb   :  { %v8095_v17 = vpop.eup %8094  ;;  %7334 = vst [vmem:[%s15559_s5 + $0x7b8] sm:$0xff] %v7022_v21  ;;  %v4997_v51 = vmul.f32 0.044715, %v4685_v52  ;;  %v14796_v56 = vadd.f32 %v3848_v28, %v16289_v16  ;;  %v14799_v20 = vadd.f32 %v3751_v42, %v16302_v59  ;;  %v5570_v45 = vmul.f32 0.7978846, %v5258_v62 }
 0x5fc   :  { %v8097_v31 = vpop.eup %8096  ;;  %v6759_v33 = vadd.f32 1.0, %v8095_v17  ;;  %8106 = vtanh.f32 %v5568_v37  ;;  %v5619_v11 = vmul.f32 0.7978846, %v5307_v26  ;;  %v4372_v10 = vmul.f32 %v14789_v40, %v14789_v40 }
 0x5fd   :  { %v8099_v25 = vpop.eup %8098  ;;  %v6761_v39 = vadd.f32 1.0, %v8097_v31  ;;  %v5309_v1 = vadd.f32 %v4997_v51, %v14762_v23  ;;  %v14805_v18 = vadd.f32 %v3852_v13, %v16302_v59  ;;  %8108 = vtanh.f32 %v5570_v45  ;;  %v3858_v51 = vpop.f32.mrf.mxu1 }
 0x5fe   :  { %v7071_v41 = vmul.f32 %v6759_v33, %v6135_v6  ;;  %v6760_v5 = vadd.f32 1.0, %v8099_v25  ;;  %v4374_v48 = vmul.f32 %v14796_v56, %v14796_v56  ;;  %8110 = vtanh.f32 %v5619_v11  ;;  %v3759_v11 = vpop.f32.mrf.mxu0 }
 0x5ff   :  { %v7073_v4 = vmul.f32 %v6761_v39, %v6137_v43  ;;  %v5621_v60 = vmul.f32 0.7978846, %v5309_v1  ;;  %v4684_v8 = vmul.f32 %v4372_v10, %v14789_v40  ;;  %v6138_v49 = vmul.f32 0.5, %v14702_v35 }
 0x600   :  { %v8101_v29 = vpop.eup %8100  ;;  %7383 = vst [vmem:[%s15559_s5 + $0x940] sm:$0x7f] %v7071_v41  ;;  %v7072_v54 = vmul.f32 %v6760_v5, %v6136_v2  ;;  %v4686_v6 = vmul.f32 %v4374_v48, %v14796_v56  ;;  %v4423_v30 = vmul.f32 %v14799_v20, %v14799_v20  ;;  %v5879_v63 = vmul.f32 0.5, %v14723_v14 }
 0x601   :  { %7385 = vst [vmem:[%s15559_s5 + $0x950] sm:$0x7f] %v7073_v4  ;;  %v6762_v61 = vadd.f32 1.0, %v8101_v29  ;;  %8112 = vtanh.f32 %v5621_v60  ;;  %v4996_v9 = vmul.f32 0.044715, %v4684_v8  ;;  %v5881_v35 = vmul.f32 0.5, %v14726_v32 }
 0x602   :  { %7384 = vst [vmem:[%s15559_s5 + $0x948] sm:$0x7f] %v7072_v54  ;;  %v4998_v46 = vmul.f32 0.044715, %v4686_v6  ;;  %v4735_v53 = vmul.f32 %v4423_v30, %v14799_v20  ;;  %v4425_v19 = vmul.f32 %v14805_v18, %v14805_v18  ;;  %v14830_v14 = vadd.f32 %v3753_v7, %v16302_v59  ;;  %v3860_v54 = vpop.f32.mrf.mxu1 }
 0x603   :  { %v7074_v28 = vmul.f32 %v6762_v61, %v6138_v49  ;;  %v5308_v27 = vadd.f32 %v4996_v9, %v14789_v40  ;;  %v14833_v58 = vadd.f32 %v3854_v22, %v16302_v59  ;;  %v8103_v38 = vpop.eup %8102  ;;  %v5880_v57 = vmul.f32 0.5, %v14746_v0  ;;  %v3763_v61 = vpop.f32.mrf.mxu0 }
 0x604   :  { %v5310_v32 = vadd.f32 %v4998_v46, %v14796_v56  ;;  %v5047_v55 = vmul.f32 0.044715, %v4735_v53  ;;  %v4737_v15 = vmul.f32 %v4425_v19, %v14805_v18  ;;  %v6503_v24 = vadd.f32 1.0, %v8103_v38 }
 0x605   :  { %7386 = vst [vmem:[%s15559_s5 + $0x958] sm:$0x7f] %v7074_v28  ;;  %v5620_v42 = vmul.f32 0.7978846, %v5308_v27  ;;  %v4424_v21 = vmul.f32 %v14830_v14, %v14830_v14  ;;  %v14844_v43 = vadd.f32 %v3757_v3, %v16316_v34  ;;  %v4426_v26 = vmul.f32 %v14833_v58, %v14833_v58 }
 0x606   :  { %v8105_v52 = vpop.eup %8104  ;;  %v5622_v37 = vmul.f32 0.7978846, %v5310_v32  ;;  %v5359_v0 = vadd.f32 %v5047_v55, %v14799_v20  ;;  %v5049_v62 = vmul.f32 0.044715, %v4737_v15  ;;  %v6815_v13 = vmul.f32 %v6503_v24, %v5879_v63  ;;  %v3864_v32 = vpop.f32.mrf.mxu1 }
 0x607   :  { %v6505_v17 = vadd.f32 1.0, %v8105_v52  ;;  %8114 = vtanh.f32 %v5620_v42  ;;  %v4736_v2 = vmul.f32 %v4424_v21, %v14830_v14  ;;  %v4738_v45 = vmul.f32 %v4426_v26, %v14833_v58  ;;  %v3765_v24 = vpop.f32.mrf.mxu0 }
 0x608   :  { %8116 = vtanh.f32 %v5622_v37  ;;  %v5671_v31 = vmul.f32 0.7978846, %v5359_v0  ;;  %v5361_v33 = vadd.f32 %v5049_v62, %v14805_v18  ;;  %7127 = vst [vmem:[%s15559_s5 + $0x140] sm:$0xff] %v6815_v13  ;;  %v5882_v1 = vmul.f32 0.5, %v14750_v50 }
 0x609   :  { %v8107_v25 = vpop.eup %8106  ;;  %v6817_v39 = vmul.f32 %v6505_v17, %v5881_v35  ;;  %v5048_v10 = vmul.f32 0.044715, %v4736_v2  ;;  %v4475_v41 = vmul.f32 %v14844_v43, %v14844_v43  ;;  %v5050_v7 = vmul.f32 0.044715, %v4738_v45 }
 0x60a   :  { %v6504_v5 = vadd.f32 1.0, %v8107_v25  ;;  %8118 = vtanh.f32 %v5671_v31  ;;  %v5673_v48 = vmul.f32 0.7978846, %v5361_v33  ;;  %v8109_v4 = vpop.eup %8108  ;;  %v5931_v60 = vmul.f32 0.5, %v14759_v47 }
 0x60b   :  { %7129 = vst [vmem:[%s15559_s5 + $0x150] sm:$0xff] %v6817_v39  ;;  %v5360_v8 = vadd.f32 %v5048_v10, %v14830_v14  ;;  %v4787_v29 = vmul.f32 %v4475_v41, %v14844_v43  ;;  %v14865_v50 = vadd.f32 %v3858_v51, %v16316_v34  ;;  %v8111_v49 = vpop.eup %8110  ;;  %v6506_v30 = vadd.f32 1.0, %v8109_v4  ;;  %v3866_v41 = vpop.f32.mrf.mxu1 }
 0x60c   :  { %v6816_v6 = vmul.f32 %v6504_v5, %v5880_v57  ;;  %8120 = vtanh.f32 %v5673_v48  ;;  %v5362_v22 = vadd.f32 %v5050_v7, %v14833_v58  ;;  %v6555_v63 = vadd.f32 1.0, %v8111_v49 }
 0x60d   :  { %v5672_v9 = vmul.f32 0.7978846, %v5360_v8  ;;  %v5099_v35 = vmul.f32 0.044715, %v4787_v29  ;;  %v4477_v47 = vmul.f32 %v14865_v50, %v14865_v50  ;;  %v6818_v53 = vmul.f32 %v6506_v30, %v5882_v1  ;;  %v3769_v30 = vpop.f32.mrf.mxu0 }
 0x60e   :  { %v8113_v46 = vpop.eup %8112  ;;  %7128 = vst [vmem:[%s15559_s5 + $0x148] sm:$0xff] %v6816_v6  ;;  %v5933_v19 = vmul.f32 0.5, %v14762_v23  ;;  %v5674_v3 = vmul.f32 0.7978846, %v5362_v22  ;;  %v14875_v28 = vadd.f32 %v3759_v11, %v16316_v34  ;;  %v6867_v27 = vmul.f32 %v6555_v63, %v5931_v60 }
 0x60f   :  { %v6557_v38 = vadd.f32 1.0, %v8113_v46  ;;  %8122 = vtanh.f32 %v5672_v9  ;;  %v5411_v57 = vadd.f32 %v5099_v35, %v14844_v43  ;;  %7130 = vst [vmem:[%s15559_s5 + $0x158] sm:$0xff] %v6818_v53  ;;  %v5932_v55 = vmul.f32 0.5, %v14789_v40 }
 0x610   :  { %8124 = vtanh.f32 %v5674_v3  ;;  %v4789_v15 = vmul.f32 %v4477_v47, %v14865_v50  ;;  %v4476_v23 = vmul.f32 %v14875_v28, %v14875_v28  ;;  %7179 = vst [vmem:[%s15559_s5 + $0x2e0] sm:$0xff] %v6867_v27  ;;  %v14889_v52 = vadd.f32 %v3860_v54, %v16316_v34  ;;  %v3870_v47 = vpop.f32.mrf.mxu1 }
 0x611   :  { %v6869_v42 = vmul.f32 %v6557_v38, %v5933_v19  ;;  %v5723_v21 = vmul.f32 0.7978846, %v5411_v57  ;;  %v14892_v37 = vadd.f32 %v3763_v61, %v11763_v12  ;;  %v5934_v40 = vmul.f32 0.5, %v14796_v56 }
 0x612   :  { %v5101_v0 = vmul.f32 0.044715, %v4789_v15  ;;  %v4788_v62 = vmul.f32 %v4476_v23, %v14875_v28  ;;  %v14897_v26 = vadd.f32 %v3864_v32, %v11763_v12  ;;  %v4478_v13 = vmul.f32 %v14889_v52, %v14889_v52 }
 0x613   :  { %7181 = vst [vmem:[%s15559_s5 + $0x2f0] sm:$0xff] %v6869_v42  ;;  %8126 = vtanh.f32 %v5723_v21  ;;  %v4527_v17 = vmul.f32 %v14892_v37, %v14892_v37  ;;  %v14907_v2 = vadd.f32 %v3765_v24, %v11763_v12  ;;  %v5983_v51 = vmul.f32 0.5, %v14799_v20  ;;  %v3771_v24 = vpop.f32.mrf.mxu0 }
 0x614   :  { %v8115_v56 = vpop.eup %8114  ;;  %v5413_v31 = vadd.f32 %v5101_v0, %v14865_v50  ;;  %v5100_v33 = vmul.f32 0.044715, %v4788_v62  ;;  %v4529_v45 = vmul.f32 %v14897_v26, %v14897_v26  ;;  %v5985_v39 = vmul.f32 0.5, %v14805_v18 }
 0x615   :  { %v8117_v11 = vpop.eup %8116  ;;  %v6556_v25 = vadd.f32 1.0, %v8115_v56  ;;  %v4790_v1 = vmul.f32 %v4478_v13, %v14889_v52  ;;  %v4839_v10 = vmul.f32 %v4527_v17, %v14892_v37  ;;  %v4528_v54 = vmul.f32 %v14907_v2, %v14907_v2  ;;  %v3872_v56 = vpop.f32.mrf.mxu1 }
 0x616   :  { %v6558_v5 = vadd.f32 1.0, %v8117_v11  ;;  %v5725_v48 = vmul.f32 0.7978846, %v5413_v31  ;;  %v5412_v7 = vadd.f32 %v5100_v33, %v14875_v28  ;;  %v4841_v20 = vmul.f32 %v4529_v45, %v14897_v26 }
 0x617   :  { %v8119_v4 = vpop.eup %8118  ;;  %v6868_v60 = vmul.f32 %v6556_v25, %v5932_v55  ;;  %v5102_v8 = vmul.f32 0.044715, %v4790_v1  ;;  %v5151_v29 = vmul.f32 0.044715, %v4839_v10  ;;  %v4840_v35 = vmul.f32 %v4528_v54, %v14907_v2  ;;  %v3941_v1 = vpop.f32.mrf.mxu0 }
 0x618   :  { %v6870_v49 = vmul.f32 %v6558_v5, %v5934_v40  ;;  %v6607_v18 = vadd.f32 1.0, %v8119_v4  ;;  %8128 = vtanh.f32 %v5725_v48  ;;  %v5724_v6 = vmul.f32 0.7978846, %v5412_v7  ;;  %v4042_v4 = vpop.f32.mrf.mxu1 }
 0x619   :  { %v8121_v22 = vpop.eup %8120  ;;  %7180 = vst [vmem:[%s15559_s5 + $0x2e8] sm:$0xff] %v6868_v60  ;;  %v5414_v61 = vadd.f32 %v5102_v8, %v14889_v52  ;;  %v5463_v63 = vadd.f32 %v5151_v29, %v14892_v37  ;;  %v5153_v9 = vmul.f32 0.044715, %v4841_v20  ;;  %v5984_v19 = vmul.f32 0.5, %v14830_v14 }
 0x61a   :  { %7182 = vst [vmem:[%s15559_s5 + $0x2f8] sm:$0xff] %v6870_v49  ;;  %v6919_v46 = vmul.f32 %v6607_v18, %v5983_v51  ;;  %v6609_v53 = vadd.f32 1.0, %v8121_v22  ;;  %8130 = vtanh.f32 %v5724_v6  ;;  %v5152_v57 = vmul.f32 0.044715, %v4840_v35 }
 0x61b   :  { %v5726_v3 = vmul.f32 0.7978846, %v5414_v61  ;;  %v5775_v27 = vmul.f32 0.7978846, %v5463_v63  ;;  %v5465_v38 = vadd.f32 %v5153_v9, %v14897_v26  ;;  %v14935_v15 = vadd.f32 %v3866_v41, %v11763_v12 }
 0x61c   :  { %v8123_v32 = vpop.eup %8122  ;;  %7231 = vst [vmem:[%s15559_s5 + $0x480] sm:$0xff] %v6919_v46  ;;  %v6921_v55 = vmul.f32 %v6609_v53, %v5985_v39  ;;  %v14938_v23 = vadd.f32 %v3769_v30, %v11846_v44  ;;  %v14941_v14 = vadd.f32 %v3870_v47, %v11846_v44  ;;  %v5464_v0 = vadd.f32 %v5152_v57, %v14907_v2 }
 0x61d   :  { %v8125_v42 = vpop.eup %8124  ;;  %v6608_v21 = vadd.f32 1.0, %v8123_v32  ;;  %8132 = vtanh.f32 %v5726_v3  ;;  %v5777_v40 = vmul.f32 0.7978846, %v5465_v38  ;;  %v5986_v62 = vmul.f32 0.5, %v14833_v58 }
 0x61e   :  { %7233 = vst [vmem:[%s15559_s5 + $0x490] sm:$0xff] %v6921_v55  ;;  %v6610_v13 = vadd.f32 1.0, %v8125_v42  ;;  %8134 = vtanh.f32 %v5775_v27  ;;  %v4530_v17 = vmul.f32 %v14935_v15, %v14935_v15  ;;  %v5776_v31 = vmul.f32 0.7978846, %v5464_v0  ;;  %v3943_v55 = vpop.f32.mrf.mxu0 }
 0x61f   :  { %v6920_v51 = vmul.f32 %v6608_v21, %v5984_v19  ;;  %8136 = vtanh.f32 %v5777_v40  ;;  %v4579_v33 = vmul.f32 %v14938_v23, %v14938_v23  ;;  %v6035_v25 = vmul.f32 0.5, %v14844_v43 }
 0x620   :  { %v8127_v45 = vpop.eup %8126  ;;  %v6922_v11 = vmul.f32 %v6610_v13, %v5986_v62  ;;  %v4842_v39 = vmul.f32 %v4530_v17, %v14935_v15  ;;  %v4581_v58 = vmul.f32 %v14941_v14, %v14941_v14  ;;  %v6037_v41 = vmul.f32 0.5, %v14865_v50 }
 0x621   :  { %7232 = vst [vmem:[%s15559_s5 + $0x488] sm:$0xff] %v6920_v51  ;;  %v6659_v10 = vadd.f32 1.0, %v8127_v45  ;;  %8138 = vtanh.f32 %v5776_v31  ;;  %v4891_v5 = vmul.f32 %v4579_v33, %v14938_v23  ;;  %v14966_v7 = vadd.f32 %v3771_v24, %v11846_v44  ;;  %v4044_v24 = vpop.f32.mrf.mxu1 }
 0x622   :  { %7234 = vst [vmem:[%s15559_s5 + $0x498] sm:$0xff] %v6922_v11  ;;  %v5154_v43 = vmul.f32 0.044715, %v4842_v39  ;;  %v4893_v48 = vmul.f32 %v4581_v58, %v14941_v14  ;;  %v14969_v20 = vadd.f32 %v3872_v56, %v11846_v44  ;;  %v6036_v50 = vmul.f32 0.5, %v14875_v28  ;;  %v3947_v58 = vpop.f32.mrf.mxu0 }
 0x623   :  { %v6971_v60 = vmul.f32 %v6659_v10, %v6035_v25  ;;  %v5203_v8 = vmul.f32 0.044715, %v4891_v5  ;;  %v14973_v29 = vadd.f32 %v3941_v1, %v11442_v36  ;;  %v6038_v54 = vmul.f32 0.5, %v14889_v52  ;;  %v4048_v1 = vpop.f32.mrf.mxu1 }
 0x624   :  { %v5466_v49 = vadd.f32 %v5154_v43, %v14935_v15  ;;  %v5205_v18 = vmul.f32 0.044715, %v4893_v48  ;;  %v4580_v6 = vmul.f32 %v14966_v7, %v14966_v7  ;;  %v4582_v28 = vmul.f32 %v14969_v20, %v14969_v20 }
 0x625   :  { %v8129_v30 = vpop.eup %8128  ;;  %7283 = vst [vmem:[%s15559_s5 + $0x620] sm:$0xff] %v6971_v60  ;;  %v5515_v22 = vadd.f32 %v5203_v8, %v14938_v23  ;;  %v4323_v61 = vmul.f32 %v14973_v29, %v14973_v29  ;;  %v14988_v52 = vadd.f32 %v4042_v4, %v11442_v36  ;;  %v6087_v53 = vmul.f32 0.5, %v14892_v37 }
 0x626   :  { %v6661_v63 = vadd.f32 1.0, %v8129_v30  ;;  %v5778_v9 = vmul.f32 0.7978846, %v5466_v49  ;;  %v5517_v35 = vadd.f32 %v5205_v18, %v14941_v14  ;;  %v4892_v47 = vmul.f32 %v4580_v6, %v14966_v7 }
 0x627   :  { %v8131_v46 = vpop.eup %8130  ;;  %v5827_v19 = vmul.f32 0.7978846, %v5515_v22  ;;  %v4894_v3 = vmul.f32 %v4582_v28, %v14969_v20  ;;  %v4635_v27 = vmul.f32 %v4323_v61, %v14973_v29  ;;  %v6089_v62 = vmul.f32 0.5, %v14897_v26  ;;  %v3949_v28 = vpop.f32.mrf.mxu0 }
 0x628   :  { %v6973_v38 = vmul.f32 %v6661_v63, %v6037_v41  ;;  %v6660_v57 = vadd.f32 1.0, %v8131_v46  ;;  %8140 = vtanh.f32 %v5778_v9  ;;  %v5829_v32 = vmul.f32 0.7978846, %v5517_v35  ;;  %v4050_v61 = vpop.f32.mrf.mxu1 }
 0x629   :  { %8142 = vtanh.f32 %v5827_v19  ;;  %v5204_v42 = vmul.f32 0.044715, %v4892_v47  ;;  %v5206_v21 = vmul.f32 0.044715, %v4894_v3  ;;  %v4947_v40 = vmul.f32 0.044715, %v4635_v27 }
 0x62a   :  { %v8133_v0 = vpop.eup %8132  ;;  %7285 = vst [vmem:[%s15559_s5 + $0x630] sm:$0xff] %v6973_v38  ;;  %v6972_v37 = vmul.f32 %v6660_v57, %v6036_v50  ;;  %8144 = vtanh.f32 %v5829_v32  ;;  %v4325_v13 = vmul.f32 %v14988_v52, %v14988_v52  ;;  %v15009_v25 = vadd.f32 %v3943_v55, %v11442_v36 }
 0x62b   :  { %v8135_v17 = vpop.eup %8134  ;;  %v6662_v56 = vadd.f32 1.0, %v8133_v0  ;;  %v5516_v51 = vadd.f32 %v5204_v42, %v14966_v7  ;;  %v5518_v31 = vadd.f32 %v5206_v21, %v14969_v20  ;;  %v5259_v33 = vadd.f32 %v4947_v40, %v14973_v29  ;;  %v3953_v40 = vpop.f32.mrf.mxu0 }
 0x62c   :  { %v8137_v45 = vpop.eup %8136  ;;  %7284 = vst [vmem:[%s15559_s5 + $0x628] sm:$0xff] %v6972_v37  ;;  %v6711_v11 = vadd.f32 1.0, %v8135_v17  ;;  %v4637_v26 = vmul.f32 %v4325_v13, %v14988_v52  ;;  %v15012_v39 = vadd.f32 %v4044_v24, %v11442_v36  ;;  %v4324_v8 = vmul.f32 %v15009_v25, %v15009_v25 }
 0x62d   :  { %v6974_v10 = vmul.f32 %v6662_v56, %v6038_v54  ;;  %v6713_v41 = vadd.f32 1.0, %v8137_v45  ;;  %v5828_v5 = vmul.f32 0.7978846, %v5516_v51  ;;  %v5830_v43 = vmul.f32 0.7978846, %v5518_v31 }
 0x62e   :  { %v8139_v48 = vpop.eup %8138  ;;  %v7023_v4 = vmul.f32 %v6711_v11, %v6087_v53  ;;  %v5571_v60 = vmul.f32 0.7978846, %v5259_v33  ;;  %v4949_v50 = vmul.f32 0.044715, %v4637_v26  ;;  %v6088_v18 = vmul.f32 0.5, %v14907_v2  ;;  %v4054_v33 = vpop.f32.mrf.mxu1 }
 0x62f   :  { %7286 = vst [vmem:[%s15559_s5 + $0x638] sm:$0xff] %v6974_v10  ;;  %v7025_v49 = vmul.f32 %v6713_v41, %v6089_v62  ;;  %v6712_v6 = vadd.f32 1.0, %v8139_v48  ;;  %8146 = vtanh.f32 %v5828_v5  ;;  %v4636_v30 = vmul.f32 %v4324_v8, %v15009_v25  ;;  %v3955_v5 = vpop.f32.mrf.mxu0 }
 0x630   :  { %7335 = vst [vmem:[%s15559_s5 + $0x7c0] sm:$0xff] %v7023_v4  ;;  %8148 = vtanh.f32 %v5830_v43  ;;  %v5261_v54 = vadd.f32 %v4949_v50, %v14988_v52  ;;  %v4326_v22 = vmul.f32 %v15012_v39, %v15012_v39  ;;  %v6090_v63 = vmul.f32 0.5, %v14935_v15 }
 0x631   :  { %7337 = vst [vmem:[%s15559_s5 + $0x7d0] sm:$0xff] %v7025_v49  ;;  %v7024_v2 = vmul.f32 %v6712_v6, %v6088_v18  ;;  %8150 = vtanh.f32 %v5571_v60  ;;  %v15032_v9 = vadd.f32 %v3947_v58, %v16289_v16  ;;  %v4948_v47 = vmul.f32 0.044715, %v4636_v30  ;;  %v4056_v18 = vpop.f32.mrf.mxu1 }
 0x632   :  { %v5573_v35 = vmul.f32 0.7978846, %v5261_v54  ;;  %v4638_v46 = vmul.f32 %v4326_v22, %v15012_v39  ;;  %v15036_v53 = vadd.f32 %v4048_v1, %v16289_v16  ;;  %v6139_v19 = vmul.f32 0.5, %v14938_v23 }
 0x633   :  { %7336 = vst [vmem:[%s15559_s5 + $0x7c8] sm:$0xff] %v7024_v2  ;;  %v4375_v15 = vmul.f32 %v15032_v9, %v15032_v9  ;;  %v15045_v3 = vadd.f32 %v3949_v28, %v16289_v16  ;;  %v15048_v27 = vadd.f32 %v4050_v61, %v16289_v16  ;;  %v5260_v38 = vadd.f32 %v4948_v47, %v15009_v25 }
 0x634   :  { %8152 = vtanh.f32 %v5573_v35  ;;  %v4950_v57 = vmul.f32 0.044715, %v4638_v46  ;;  %v4377_v32 = vmul.f32 %v15036_v53, %v15036_v53  ;;  %v6141_v24 = vmul.f32 0.5, %v14941_v14 }
 0x635   :  { %v8141_v55 = vpop.eup %8140  ;;  %v6140_v23 = vmul.f32 0.5, %v14966_v7  ;;  %v4687_v42 = vmul.f32 %v4375_v15, %v15032_v9  ;;  %v4376_v21 = vmul.f32 %v15045_v3, %v15045_v3  ;;  %v5572_v62 = vmul.f32 0.7978846, %v5260_v38 }
 0x636   :  { %v8143_v0 = vpop.eup %8142  ;;  %v6714_v37 = vadd.f32 1.0, %v8141_v55  ;;  %v5262_v13 = vadd.f32 %v4950_v57, %v15012_v39  ;;  %v4689_v17 = vmul.f32 %v4377_v32, %v15036_v53  ;;  %v4378_v7 = vmul.f32 %v15048_v27, %v15048_v27  ;;  %v3959_v32 = vpop.f32.mrf.mxu0 }
 0x637   :  { %v8145_v56 = vpop.eup %8144  ;;  %v6763_v51 = vadd.f32 1.0, %v8143_v0  ;;  %v4999_v31 = vmul.f32 0.044715, %v4687_v42  ;;  %v4688_v14 = vmul.f32 %v4376_v21, %v15045_v3  ;;  %8154 = vtanh.f32 %v5572_v62  ;;  %v4060_v62 = vpop.f32.mrf.mxu1 }
 0x638   :  { %v7026_v45 = vmul.f32 %v6714_v37, %v6090_v63  ;;  %v6765_v11 = vadd.f32 1.0, %v8145_v56  ;;  %v5574_v26 = vmul.f32 0.7978846, %v5262_v13  ;;  %v5001_v10 = vmul.f32 0.044715, %v4689_v17 }
 0x639   :  { %v7075_v58 = vmul.f32 %v6763_v51, %v6139_v19  ;;  %v5311_v1 = vadd.f32 %v4999_v31, %v15032_v9  ;;  %v5000_v41 = vmul.f32 0.044715, %v4688_v14  ;;  %v6142_v48 = vmul.f32 0.5, %v14969_v20 }
 0x63a   :  { %7338 = vst [vmem:[%s15559_s5 + $0x7d8] sm:$0xff] %v7026_v45  ;;  %v7077_v43 = vmul.f32 %v6765_v11, %v6141_v24  ;;  %8156 = vtanh.f32 %v5574_v26  ;;  %v4690_v4 = vmul.f32 %v4378_v7, %v15048_v27  ;;  %v5313_v50 = vadd.f32 %v5001_v10, %v15036_v53  ;;  %v3961_v7 = vpop.f32.mrf.mxu0 }
 0x63b   :  { %7387 = vst [vmem:[%s15559_s5 + $0x960] sm:$0x7f] %v7075_v58  ;;  %v5623_v60 = vmul.f32 0.7978846, %v5311_v1  ;;  %v5312_v8 = vadd.f32 %v5000_v41, %v15045_v3  ;;  %v15075_v49 = vadd.f32 %v3953_v40, %v16302_v59  ;;  %v5883_v20 = vmul.f32 0.5, %v14973_v29 }
 0x63c   :  { %v8147_v6 = vpop.eup %8146  ;;  %7389 = vst [vmem:[%s15559_s5 + $0x970] sm:$0x7f] %v7077_v43  ;;  %v5002_v54 = vmul.f32 0.044715, %v4690_v4  ;;  %v15082_v30 = vadd.f32 %v4054_v33, %v16302_v59  ;;  %v15085_v22 = vadd.f32 %v3955_v5, %v16302_v59  ;;  %v5625_v2 = vmul.f32 0.7978846, %v5313_v50 }
 0x63d   :  { %v8149_v28 = vpop.eup %8148  ;;  %v6764_v61 = vadd.f32 1.0, %v8147_v6  ;;  %8158 = vtanh.f32 %v5623_v60  ;;  %v5624_v63 = vmul.f32 0.7978846, %v5312_v8  ;;  %v4427_v19 = vmul.f32 %v15075_v49, %v15075_v49 }
 0x63e   :  { %v8151_v35 = vpop.eup %8150  ;;  %v6766_v47 = vadd.f32 1.0, %v8149_v28  ;;  %v5314_v46 = vadd.f32 %v5002_v54, %v15048_v27  ;;  %v15091_v29 = vadd.f32 %v4056_v18, %v16302_v59  ;;  %8160 = vtanh.f32 %v5625_v2  ;;  %v4062_v54 = vpop.f32.mrf.mxu1 }
 0x63f   :  { %v7076_v15 = vmul.f32 %v6764_v61, %v6140_v23  ;;  %v6507_v38 = vadd.f32 1.0, %v8151_v35  ;;  %v4429_v57 = vmul.f32 %v15082_v30, %v15082_v30  ;;  %8162 = vtanh.f32 %v5624_v63  ;;  %v3965_v63 = vpop.f32.mrf.mxu0 }
 0x640   :  { %v7078_v55 = vmul.f32 %v6766_v47, %v6142_v48  ;;  %v5626_v24 = vmul.f32 0.7978846, %v5314_v46  ;;  %v4739_v42 = vmul.f32 %v4427_v19, %v15075_v49  ;;  %v5885_v0 = vmul.f32 0.5, %v14988_v52 }
 0x641   :  { %v8153_v21 = vpop.eup %8152  ;;  %7388 = vst [vmem:[%s15559_s5 + $0x968] sm:$0x7f] %v7076_v15  ;;  %v6819_v40 = vmul.f32 %v6507_v38, %v5883_v20  ;;  %v4741_v23 = vmul.f32 %v4429_v57, %v15082_v30  ;;  %v4428_v37 = vmul.f32 %v15085_v22, %v15085_v22  ;;  %v5884_v17 = vmul.f32 0.5, %v15009_v25 }
 0x642   :  { %7390 = vst [vmem:[%s15559_s5 + $0x978] sm:$0x7f] %v7078_v55  ;;  %v6509_v13 = vadd.f32 1.0, %v8153_v21  ;;  %8164 = vtanh.f32 %v5626_v24  ;;  %v5051_v56 = vmul.f32 0.044715, %v4739_v42  ;;  %v5886_v52 = vmul.f32 0.5, %v15012_v39 }
 0x643   :  { %7131 = vst [vmem:[%s15559_s5 + $0x160] sm:$0xff] %v6819_v40  ;;  %v5053_v51 = vmul.f32 0.044715, %v4741_v23  ;;  %v4740_v31 = vmul.f32 %v4428_v37, %v15085_v22  ;;  %v4430_v14 = vmul.f32 %v15091_v29, %v15091_v29  ;;  %v15116_v25 = vadd.f32 %v3959_v32, %v16316_v34  ;;  %v4066_v40 = vpop.f32.mrf.mxu1 }
 0x644   :  { %v6821_v33 = vmul.f32 %v6509_v13, %v5885_v0  ;;  %v5363_v45 = vadd.f32 %v5051_v56, %v15075_v49  ;;  %v15119_v11 = vadd.f32 %v4060_v62, %v16316_v34  ;;  %v8155_v26 = vpop.eup %8154  ;;  %v5935_v58 = vmul.f32 0.5, %v15032_v9  ;;  %v3967_v13 = vpop.f32.mrf.mxu0 }
 0x645   :  { %v5365_v39 = vadd.f32 %v5053_v51, %v15082_v30  ;;  %v5052_v1 = vmul.f32 0.044715, %v4740_v31  ;;  %v4742_v10 = vmul.f32 %v4430_v14, %v15091_v29  ;;  %v6508_v41 = vadd.f32 1.0, %v8155_v26 }
 0x646   :  { %7133 = vst [vmem:[%s15559_s5 + $0x170] sm:$0xff] %v6821_v33  ;;  %v5675_v5 = vmul.f32 0.7978846, %v5363_v45  ;;  %v4479_v43 = vmul.f32 %v15116_v25, %v15116_v25  ;;  %v15130_v48 = vadd.f32 %v3961_v7, %v16316_v34  ;;  %v4481_v8 = vmul.f32 %v15119_v11, %v15119_v11 }
 0x647   :  { %v8157_v4 = vpop.eup %8156  ;;  %v5677_v60 = vmul.f32 0.7978846, %v5365_v39  ;;  %v5364_v9 = vadd.f32 %v5052_v1, %v15085_v22  ;;  %v5054_v50 = vmul.f32 0.044715, %v4742_v10  ;;  %v6820_v18 = vmul.f32 %v6508_v41, %v5884_v17  ;;  %v4068_v39 = vpop.f32.mrf.mxu1 }
 0x648   :  { %v6510_v6 = vadd.f32 1.0, %v8157_v4  ;;  %8166 = vtanh.f32 %v5675_v5  ;;  %v4791_v20 = vmul.f32 %v4479_v43, %v15116_v25  ;;  %v4793_v2 = vmul.f32 %v4481_v8, %v15119_v11  ;;  %v3971_v41 = vpop.f32.mrf.mxu0 }
 0x649   :  { %8168 = vtanh.f32 %v5677_v60  ;;  %v5676_v28 = vmul.f32 0.7978846, %v5364_v9  ;;  %v5366_v61 = vadd.f32 %v5054_v50, %v15091_v29  ;;  %7132 = vst [vmem:[%s15559_s5 + $0x168] sm:$0xff] %v6820_v18  ;;  %v5937_v46 = vmul.f32 0.5, %v15036_v53 }
 0x64a   :  { %v8159_v35 = vpop.eup %8158  ;;  %v6822_v47 = vmul.f32 %v6510_v6, %v5886_v52  ;;  %v5103_v19 = vmul.f32 0.044715, %v4791_v20  ;;  %v4480_v15 = vmul.f32 %v15130_v48, %v15130_v48  ;;  %v5105_v32 = vmul.f32 0.044715, %v4793_v2 }
 0x64b   :  { %v6559_v38 = vadd.f32 1.0, %v8159_v35  ;;  %8170 = vtanh.f32 %v5676_v28  ;;  %v5678_v57 = vmul.f32 0.7978846, %v5366_v61  ;;  %v8161_v55 = vpop.eup %8160  ;;  %v5936_v24 = vmul.f32 0.5, %v15045_v3 }
 0x64c   :  { %7134 = vst [vmem:[%s15559_s5 + $0x178] sm:$0xff] %v6822_v47  ;;  %v5415_v42 = vadd.f32 %v5103_v19, %v15116_v25  ;;  %v4792_v21 = vmul.f32 %v4480_v15, %v15130_v48  ;;  %v15151_v53 = vadd.f32 %v4062_v54, %v16316_v34  ;;  %v8163_v0 = vpop.eup %8162  ;;  %v6561_v37 = vadd.f32 1.0, %v8161_v55  ;;  %v4072_v15 = vpop.f32.mrf.mxu1 }
 0x64d   :  { %v6871_v23 = vmul.f32 %v6559_v38, %v5935_v58  ;;  %8172 = vtanh.f32 %v5678_v57  ;;  %v5417_v62 = vadd.f32 %v5105_v32, %v15119_v11  ;;  %v6560_v17 = vadd.f32 1.0, %v8163_v0 }
 0x64e   :  { %v5727_v56 = vmul.f32 0.7978846, %v5415_v42  ;;  %v5104_v52 = vmul.f32 0.044715, %v4792_v21  ;;  %v4482_v3 = vmul.f32 %v15151_v53, %v15151_v53  ;;  %v6873_v31 = vmul.f32 %v6561_v37, %v5937_v46  ;;  %v3973_v37 = vpop.f32.mrf.mxu0 }
 0x64f   :  { %v8165_v51 = vpop.eup %8164  ;;  %7183 = vst [vmem:[%s15559_s5 + $0x300] sm:$0xff] %v6871_v23  ;;  %v5938_v14 = vmul.f32 0.5, %v15048_v27  ;;  %v5729_v7 = vmul.f32 0.7978846, %v5417_v62  ;;  %v15161_v33 = vadd.f32 %v3965_v63, %v11763_v12  ;;  %v6872_v45 = vmul.f32 %v6560_v17, %v5936_v24 }
 0x650   :  { %v6562_v26 = vadd.f32 1.0, %v8165_v51  ;;  %8174 = vtanh.f32 %v5727_v56  ;;  %v5416_v58 = vadd.f32 %v5104_v52, %v15130_v48  ;;  %7185 = vst [vmem:[%s15559_s5 + $0x310] sm:$0xff] %v6873_v31  ;;  %v5987_v1 = vmul.f32 0.5, %v15075_v49 }
 0x651   :  { %8176 = vtanh.f32 %v5729_v7  ;;  %v4794_v10 = vmul.f32 %v4482_v3, %v15151_v53  ;;  %v4531_v27 = vmul.f32 %v15161_v33, %v15161_v33  ;;  %7184 = vst [vmem:[%s15559_s5 + $0x308] sm:$0xff] %v6872_v45  ;;  %v15175_v4 = vadd.f32 %v4066_v40, %v11763_v12  ;;  %v4074_v3 = vpop.f32.mrf.mxu1 }
 0x652   :  { %v6874_v5 = vmul.f32 %v6562_v26, %v5938_v14  ;;  %v5728_v43 = vmul.f32 0.7978846, %v5416_v58  ;;  %v15178_v60 = vadd.f32 %v3967_v13, %v11763_v12  ;;  %v5989_v49 = vmul.f32 0.5, %v15082_v30 }
 0x653   :  { %v5106_v9 = vmul.f32 0.044715, %v4794_v10  ;;  %v4843_v50 = vmul.f32 %v4531_v27, %v15161_v33  ;;  %v15183_v8 = vadd.f32 %v4068_v39, %v11763_v12  ;;  %v4533_v18 = vmul.f32 %v15175_v4, %v15175_v4 }
 0x654   :  { %7186 = vst [vmem:[%s15559_s5 + $0x318] sm:$0xff] %v6874_v5  ;;  %8178 = vtanh.f32 %v5728_v43  ;;  %v4532_v6 = vmul.f32 %v15178_v60, %v15178_v60  ;;  %v15193_v20 = vadd.f32 %v3971_v41, %v11846_v44  ;;  %v5988_v54 = vmul.f32 0.5, %v15085_v22  ;;  %v4143_v41 = vpop.f32.mrf.mxu0 }
 0x655   :  { %v8167_v30 = vpop.eup %8166  ;;  %v5418_v28 = vadd.f32 %v5106_v9, %v15151_v53  ;;  %v5155_v61 = vmul.f32 0.044715, %v4843_v50  ;;  %v4534_v2 = vmul.f32 %v15183_v8, %v15183_v8  ;;  %v5990_v47 = vmul.f32 0.5, %v15091_v29 }
 0x656   :  { %v8169_v63 = vpop.eup %8168  ;;  %v6611_v35 = vadd.f32 1.0, %v8167_v30  ;;  %v4845_v46 = vmul.f32 %v4533_v18, %v15175_v4  ;;  %v4844_v19 = vmul.f32 %v4532_v6, %v15178_v60  ;;  %v4583_v40 = vmul.f32 %v15193_v20, %v15193_v20  ;;  %v4244_v30 = vpop.f32.mrf.mxu1 }
 0x657   :  { %v6613_v38 = vadd.f32 1.0, %v8169_v63  ;;  %v5730_v57 = vmul.f32 0.7978846, %v5418_v28  ;;  %v5467_v32 = vadd.f32 %v5155_v61, %v15161_v33  ;;  %v4846_v22 = vmul.f32 %v4534_v2, %v15183_v8 }
 0x658   :  { %v8171_v55 = vpop.eup %8170  ;;  %v6923_v24 = vmul.f32 %v6611_v35, %v5987_v1  ;;  %v5157_v42 = vmul.f32 0.044715, %v4845_v46  ;;  %v5156_v21 = vmul.f32 0.044715, %v4844_v19  ;;  %v4895_v52 = vmul.f32 %v4583_v40, %v15193_v20  ;;  %v4145_v46 = vpop.f32.mrf.mxu0 }
 0x659   :  { %v6925_v0 = vmul.f32 %v6613_v38, %v5989_v49  ;;  %v6612_v29 = vadd.f32 1.0, %v8171_v55  ;;  %8180 = vtanh.f32 %v5730_v57  ;;  %v5779_v23 = vmul.f32 0.7978846, %v5467_v32  ;;  %v4246_v55 = vpop.f32.mrf.mxu1 }
 0x65a   :  { %v8173_v62 = vpop.eup %8172  ;;  %7235 = vst [vmem:[%s15559_s5 + $0x4a0] sm:$0xff] %v6923_v24  ;;  %v5469_v13 = vadd.f32 %v5157_v42, %v15175_v4  ;;  %v5468_v17 = vadd.f32 %v5156_v21, %v15178_v60  ;;  %v5158_v56 = vmul.f32 0.044715, %v4846_v22  ;;  %v6039_v14 = vmul.f32 0.5, %v15116_v25 }
 0x65b   :  { %7237 = vst [vmem:[%s15559_s5 + $0x4b0] sm:$0xff] %v6925_v0  ;;  %v6924_v51 = vmul.f32 %v6612_v29, %v5988_v54  ;;  %v6614_v31 = vadd.f32 1.0, %v8173_v62  ;;  %8182 = vtanh.f32 %v5779_v23  ;;  %v5207_v58 = vmul.f32 0.044715, %v4895_v52 }
 0x65c   :  { %v5781_v7 = vmul.f32 0.7978846, %v5469_v13  ;;  %v5780_v45 = vmul.f32 0.7978846, %v5468_v17  ;;  %v5470_v26 = vadd.f32 %v5158_v56, %v15183_v8  ;;  %v15221_v10 = vadd.f32 %v4072_v15, %v11846_v44 }
 0x65d   :  { %v8175_v39 = vpop.eup %8174  ;;  %7236 = vst [vmem:[%s15559_s5 + $0x4a8] sm:$0xff] %v6924_v51  ;;  %v6926_v1 = vmul.f32 %v6614_v31, %v5990_v47  ;;  %v15224_v27 = vadd.f32 %v3973_v37, %v11846_v44  ;;  %v15227_v25 = vadd.f32 %v4074_v3, %v11846_v44  ;;  %v5519_v9 = vadd.f32 %v5207_v58, %v15193_v20 }
 0x65e   :  { %v8177_v5 = vpop.eup %8176  ;;  %v6663_v43 = vadd.f32 1.0, %v8175_v39  ;;  %8184 = vtanh.f32 %v5781_v7  ;;  %v5782_v49 = vmul.f32 0.7978846, %v5470_v26  ;;  %v6041_v50 = vmul.f32 0.5, %v15119_v11 }
 0x65f   :  { %7238 = vst [vmem:[%s15559_s5 + $0x4b8] sm:$0xff] %v6926_v1  ;;  %v6665_v18 = vadd.f32 1.0, %v8177_v5  ;;  %8186 = vtanh.f32 %v5780_v45  ;;  %v4585_v6 = vmul.f32 %v15221_v10, %v15221_v10  ;;  %v5831_v28 = vmul.f32 0.7978846, %v5519_v9  ;;  %v4250_v1 = vpop.f32.mrf.mxu1 }
 0x660   :  { %v6975_v54 = vmul.f32 %v6663_v43, %v6039_v14  ;;  %8188 = vtanh.f32 %v5782_v49  ;;  %v4584_v61 = vmul.f32 %v15224_v27, %v15224_v27  ;;  %v6040_v35 = vmul.f32 0.5, %v15130_v48 }
 0x661   :  { %v8179_v2 = vpop.eup %8178  ;;  %v6977_v63 = vmul.f32 %v6665_v18, %v6041_v50  ;;  %v4897_v47 = vmul.f32 %v4585_v6, %v15221_v10  ;;  %v4586_v11 = vmul.f32 %v15227_v25, %v15227_v25  ;;  %v6042_v15 = vmul.f32 0.5, %v15151_v53 }
 0x662   :  { %7287 = vst [vmem:[%s15559_s5 + $0x640] sm:$0xff] %v6975_v54  ;;  %v6664_v19 = vadd.f32 1.0, %v8179_v2  ;;  %8190 = vtanh.f32 %v5831_v28  ;;  %v4896_v38 = vmul.f32 %v4584_v61, %v15224_v27  ;;  %v15252_v32 = vadd.f32 %v4143_v41, %v11442_v36 }
 0x663   :  { %7289 = vst [vmem:[%s15559_s5 + $0x650] sm:$0xff] %v6977_v63  ;;  %v5209_v48 = vmul.f32 0.044715, %v4897_v47  ;;  %v4898_v57 = vmul.f32 %v4586_v11, %v15227_v25  ;;  %v15255_v22 = vadd.f32 %v4244_v30, %v11442_v36  ;;  %v6091_v53 = vmul.f32 0.5, %v15161_v33  ;;  %v4252_v11 = vpop.f32.mrf.mxu1 }
 0x664   :  { %v6976_v24 = vmul.f32 %v6664_v19, %v6040_v35  ;;  %v5208_v42 = vmul.f32 0.044715, %v4896_v38  ;;  %v15259_v21 = vadd.f32 %v4145_v46, %v11442_v36  ;;  %v6093_v40 = vmul.f32 0.5, %v15175_v4 }
 0x665   :  { %v5521_v0 = vadd.f32 %v5209_v48, %v15221_v10  ;;  %v5210_v29 = vmul.f32 0.044715, %v4898_v57  ;;  %v4327_v23 = vmul.f32 %v15252_v32, %v15252_v32  ;;  %v4329_v33 = vmul.f32 %v15255_v22, %v15255_v22 }
 0x666   :  { %v8181_v37 = vpop.eup %8180  ;;  %7288 = vst [vmem:[%s15559_s5 + $0x648] sm:$0xff] %v6976_v24  ;;  %v5520_v62 = vadd.f32 %v5208_v42, %v15224_v27  ;;  %v4328_v13 = vmul.f32 %v15259_v21, %v15259_v21  ;;  %v15274_v4 = vadd.f32 %v4246_v55, %v11442_v36  ;;  %v6092_v31 = vmul.f32 0.5, %v15178_v60  ;;  %v4149_v36 = vpop.f32.mrf.mxu0 }
 0x667   :  { %v6666_v17 = vadd.f32 1.0, %v8181_v37  ;;  %v5833_v56 = vmul.f32 0.7978846, %v5521_v0  ;;  %v5522_v52 = vadd.f32 %v5210_v29, %v15227_v25  ;;  %v4639_v3 = vmul.f32 %v4327_v23, %v15252_v32 }
 0x668   :  { %v8183_v51 = vpop.eup %8182  ;;  %v5832_v14 = vmul.f32 0.7978846, %v5520_v62  ;;  %v4641_v7 = vmul.f32 %v4329_v33, %v15255_v22  ;;  %v4640_v45 = vmul.f32 %v4328_v13, %v15259_v21  ;;  %v6094_v9 = vmul.f32 0.5, %v15183_v8  ;;  %v4151_v47 = vpop.f32.mrf.mxu0 }
 0x669   :  { %v6978_v26 = vmul.f32 %v6666_v17, %v6042_v15  ;;  %v6715_v58 = vadd.f32 1.0, %v8183_v51  ;;  %8192 = vtanh.f32 %v5833_v56  ;;  %v5834_v39 = vmul.f32 0.7978846, %v5522_v52  ;;  %v4256_v33 = vpop.f32.mrf.mxu1 }
 0x66a   :  { %8194 = vtanh.f32 %v5832_v14  ;;  %v4951_v41 = vmul.f32 0.044715, %v4639_v3  ;;  %v4953_v5 = vmul.f32 0.044715, %v4641_v7  ;;  %v4952_v43 = vmul.f32 0.044715, %v4640_v45  ;;  %v4155_v62 = vpop.f32.mrf.mxu0 }
 0x66b   :  { %v8185_v49 = vpop.eup %8184  ;;  %7290 = vst [vmem:[%s15559_s5 + $0x658] sm:$0xff] %v6978_v26  ;;  %v7027_v60 = vmul.f32 %v6715_v58, %v6091_v53  ;;  %8196 = vtanh.f32 %v5834_v39  ;;  %v4330_v50 = vmul.f32 %v15274_v4, %v15274_v4  ;;  %v15295_v63 = vadd.f32 %v4149_v36, %v16289_v16 }
 0x66c   :  { %v8187_v18 = vpop.eup %8186  ;;  %v6717_v6 = vadd.f32 1.0, %v8185_v49  ;;  %v5263_v30 = vadd.f32 %v4951_v41, %v15252_v32  ;;  %v5265_v54 = vadd.f32 %v4953_v5, %v15255_v22  ;;  %v5264_v28 = vadd.f32 %v4952_v43, %v15259_v21  ;;  %v4157_v41 = vpop.f32.mrf.mxu0 }
 0x66d   :  { %v8189_v61 = vpop.eup %8188  ;;  %7339 = vst [vmem:[%s15559_s5 + $0x7e0] sm:$0xff] %v7027_v60  ;;  %v6716_v2 = vadd.f32 1.0, %v8187_v18  ;;  %v4642_v8 = vmul.f32 %v4330_v50, %v15274_v4  ;;  %v15298_v35 = vadd.f32 %v4250_v1, %v16289_v16  ;;  %v4379_v53 = vmul.f32 %v15295_v63, %v15295_v63 }
 0x66e   :  { %v7029_v46 = vmul.f32 %v6717_v6, %v6093_v40  ;;  %v6718_v19 = vadd.f32 1.0, %v8189_v61  ;;  %v5575_v15 = vmul.f32 0.7978846, %v5263_v30  ;;  %v5577_v38 = vmul.f32 0.7978846, %v5265_v54  ;;  %v4258_v30 = vpop.f32.mrf.mxu1 }
 0x66f   :  { %v8191_v48 = vpop.eup %8190  ;;  %v7028_v57 = vmul.f32 %v6716_v2, %v6092_v31  ;;  %v5576_v55 = vmul.f32 0.7978846, %v5264_v28  ;;  %v4954_v24 = vmul.f32 0.044715, %v4642_v8  ;;  %v6143_v0 = vmul.f32 0.5, %v15193_v20 }
 0x670   :  { %7341 = vst [vmem:[%s15559_s5 + $0x7f0] sm:$0xff] %v7029_v46  ;;  %v7030_v42 = vmul.f32 %v6718_v19, %v6094_v9  ;;  %v6767_v29 = vadd.f32 1.0, %v8191_v48  ;;  %8198 = vtanh.f32 %v5575_v15  ;;  %v4691_v23 = vmul.f32 %v4379_v53, %v15295_v63  ;;  %v4161_v46 = vpop.f32.mrf.mxu0  ;;  %v4262_v53 = vpop.f32.mrf.mxu1 }
 0x671   :  { %7340 = vst [vmem:[%s15559_s5 + $0x7e8] sm:$0xff] %v7028_v57  ;;  %8200 = vtanh.f32 %v5577_v38  ;;  %v5266_v40 = vadd.f32 %v4954_v24, %v15274_v4  ;;  %v4381_v37 = vmul.f32 %v15298_v35, %v15298_v35  ;;  %v6145_v13 = vmul.f32 0.5, %v15221_v10 }
 0x672   :  { %7342 = vst [vmem:[%s15559_s5 + $0x7f8] sm:$0xff] %v7030_v42  ;;  %v7079_v20 = vmul.f32 %v6767_v29, %v6143_v0  ;;  %8202 = vtanh.f32 %v5576_v55  ;;  %v15318_v17 = vadd.f32 %v4151_v47, %v16289_v16  ;;  %v5003_v52 = vmul.f32 0.044715, %v4691_v23 }
 0x673   :  { %v5578_v56 = vmul.f32 0.7978846, %v5266_v40  ;;  %v4693_v3 = vmul.f32 %v4381_v37, %v15298_v35  ;;  %v15322_v51 = vadd.f32 %v4252_v11, %v16289_v16  ;;  %v6144_v31 = vmul.f32 0.5, %v15224_v27 }
 0x674   :  { %7391 = vst [vmem:[%s15559_s5 + $0x980] sm:$0x7f] %v7079_v20  ;;  %v4380_v10 = vmul.f32 %v15318_v17, %v15318_v17  ;;  %v15331_v14 = vadd.f32 %v4155_v62, %v16302_v59  ;;  %v15334_v7 = vadd.f32 %v4256_v33, %v16302_v59  ;;  %v5315_v45 = vadd.f32 %v5003_v52, %v15295_v63 }
 0x675   :  { %8204 = vtanh.f32 %v5578_v56  ;;  %v5005_v16 = vmul.f32 0.044715, %v4693_v3  ;;  %v4382_v26 = vmul.f32 %v15322_v51, %v15322_v51  ;;  %v6146_v39 = vmul.f32 0.5, %v15227_v25 }
 0x676   :  { %v8193_v58 = vpop.eup %8192  ;;  %v5887_v27 = vmul.f32 0.5, %v15252_v32  ;;  %v4692_v36 = vmul.f32 %v4380_v10, %v15318_v17  ;;  %v4431_v1 = vmul.f32 %v15331_v14, %v15331_v14  ;;  %v5627_v49 = vmul.f32 0.7978846, %v5315_v45  ;;  %v4163_v10 = vpop.f32.mrf.mxu0 }
 0x677   :  { %v8195_v5 = vpop.eup %8194  ;;  %v6769_v43 = vadd.f32 1.0, %v8193_v58  ;;  %v5317_v60 = vadd.f32 %v5005_v16, %v15298_v35  ;;  %v4694_v9 = vmul.f32 %v4382_v26, %v15322_v51  ;;  %v4433_v32 = vmul.f32 %v15334_v7, %v15334_v7 }
 0x678   :  { %v8197_v50 = vpop.eup %8196  ;;  %v6768_v18 = vadd.f32 1.0, %v8195_v5  ;;  %v5004_v6 = vmul.f32 0.044715, %v4692_v36  ;;  %v4743_v25 = vmul.f32 %v4431_v1, %v15331_v14  ;;  %8206 = vtanh.f32 %v5627_v49 }
 0x679   :  { %v7081_v54 = vmul.f32 %v6769_v43, %v6145_v13  ;;  %v6770_v28 = vadd.f32 1.0, %v8197_v50  ;;  %v5629_v61 = vmul.f32 0.7978846, %v5317_v60  ;;  %v5006_v47 = vmul.f32 0.044715, %v4694_v9 }
 0x67a   :  { %v7080_v2 = vmul.f32 %v6768_v18, %v6144_v31  ;;  %v5316_v8 = vadd.f32 %v5004_v6, %v15318_v17  ;;  %v5055_v11 = vmul.f32 0.044715, %v4743_v25  ;;  %v5889_v15 = vmul.f32 0.5, %v15255_v22  ;;  %v4167_v18 = vpop.f32.mrf.mxu0 }
 0x67b   :  { %7393 = vst [vmem:[%s15559_s5 + $0x990] sm:$0x7f] %v7081_v54  ;;  %v7082_v19 = vmul.f32 %v6770_v28, %v6146_v39  ;;  %8208 = vtanh.f32 %v5629_v61  ;;  %v4745_v38 = vmul.f32 %v4433_v32, %v15334_v7  ;;  %v5318_v57 = vadd.f32 %v5006_v47, %v15322_v51 }
 0x67c   :  { %7392 = vst [vmem:[%s15559_s5 + $0x988] sm:$0x7f] %v7080_v2  ;;  %v5628_v48 = vmul.f32 0.7978846, %v5316_v8  ;;  %v5367_v55 = vadd.f32 %v5055_v11, %v15331_v14  ;;  %v15361_v24 = vadd.f32 %v4157_v41, %v16302_v59  ;;  %v5888_v22 = vmul.f32 0.5, %v15259_v21  ;;  %v4264_v41 = vpop.f32.mrf.mxu1 }
 0x67d   :  { %v8199_v42 = vpop.eup %8198  ;;  %7394 = vst [vmem:[%s15559_s5 + $0x998] sm:$0x7f] %v7082_v19  ;;  %v5057_v0 = vmul.f32 0.044715, %v4745_v38  ;;  %v15368_v29 = vadd.f32 %v4258_v30, %v16302_v59  ;;  %v15371_v40 = vadd.f32 %v4161_v46, %v16316_v34  ;;  %v5630_v62 = vmul.f32 0.7978846, %v5318_v57 }
 0x67e   :  { %v8201_v23 = vpop.eup %8200  ;;  %v6511_v37 = vadd.f32 1.0, %v8199_v42  ;;  %8210 = vtanh.f32 %v5628_v48  ;;  %v5679_v33 = vmul.f32 0.7978846, %v5367_v55  ;;  %v4432_v52 = vmul.f32 %v15361_v24, %v15361_v24  ;;  %v4268_v55 = vpop.f32.mrf.mxu1 }
 0x67f   :  { %v8203_v20 = vpop.eup %8202  ;;  %v6513_v13 = vadd.f32 1.0, %v8201_v23  ;;  %v5369_v56 = vadd.f32 %v5057_v0, %v15334_v7  ;;  %v15377_v21 = vadd.f32 %v4262_v53, %v16316_v34  ;;  %8212 = vtanh.f32 %v5630_v62  ;;  %v4169_v0 = vpop.f32.mrf.mxu0 }
 0x680   :  { %v6823_v59 = vmul.f32 %v6511_v37, %v5887_v27  ;;  %v6512_v3 = vadd.f32 1.0, %v8203_v20  ;;  %v4434_v31 = vmul.f32 %v15368_v29, %v15368_v29  ;;  %8214 = vtanh.f32 %v5679_v33 }
 0x681   :  { %v6825_v45 = vmul.f32 %v6513_v13, %v5889_v15  ;;  %v5681_v16 = vmul.f32 0.7978846, %v5369_v56  ;;  %v4744_v26 = vmul.f32 %v4432_v52, %v15361_v24  ;;  %v5890_v36 = vmul.f32 0.5, %v15274_v4 }
 0x682   :  { %v8205_v58 = vpop.eup %8204  ;;  %7135 = vst [vmem:[%s15559_s5 + $0x180] sm:$0xff] %v6823_v59  ;;  %v6824_v39 = vmul.f32 %v6512_v3, %v5888_v22  ;;  %v4746_v27 = vmul.f32 %v4434_v31, %v15368_v29  ;;  %v4483_v1 = vmul.f32 %v15371_v40, %v15371_v40  ;;  %v5939_v43 = vmul.f32 0.5, %v15295_v63 }
 0x683   :  { %7137 = vst [vmem:[%s15559_s5 + $0x190] sm:$0xff] %v6825_v45  ;;  %v6514_v5 = vadd.f32 1.0, %v8205_v58  ;;  %8216 = vtanh.f32 %v5681_v16  ;;  %v5056_v49 = vmul.f32 0.044715, %v4744_v26  ;;  %v5941_v4 = vmul.f32 0.5, %v15298_v35  ;;  %v4270_v45 = vpop.f32.mrf.mxu1 }
 0x684   :  { %7136 = vst [vmem:[%s15559_s5 + $0x188] sm:$0xff] %v6824_v39  ;;  %v5058_v60 = vmul.f32 0.044715, %v4746_v27  ;;  %v4795_v9 = vmul.f32 %v4483_v1, %v15371_v40  ;;  %v4485_v50 = vmul.f32 %v15377_v21, %v15377_v21  ;;  %v15402_v63 = vadd.f32 %v4163_v10, %v16316_v34 }
 0x685   :  { %v6826_v6 = vmul.f32 %v6514_v5, %v5890_v36  ;;  %v5368_v25 = vadd.f32 %v5056_v49, %v15361_v24  ;;  %v15405_v32 = vadd.f32 %v4264_v41, %v16316_v34  ;;  %v8207_v30 = vpop.eup %8206  ;;  %v5940_v54 = vmul.f32 0.5, %v15318_v17  ;;  %v4173_v36 = vpop.f32.mrf.mxu0 }
 0x686   :  { %v5370_v35 = vadd.f32 %v5058_v60, %v15368_v29  ;;  %v5107_v28 = vmul.f32 0.044715, %v4795_v9  ;;  %v4797_v61 = vmul.f32 %v4485_v50, %v15377_v21  ;;  %v6563_v2 = vadd.f32 1.0, %v8207_v30 }
 0x687   :  { %7138 = vst.msk [vmem:[%s15559_s5 + $0x198] sm:$0xff] %vm226_vm1, %v6826_v6  ;;  %v5680_v8 = vmul.f32 0.7978846, %v5368_v25  ;;  %v4484_v47 = vmul.f32 %v15402_v63, %v15402_v63  ;;  %v15417_v34 = vadd.f32 %v4167_v18, %v11763_v12  ;;  %v4486_v15 = vmul.f32 %v15405_v32, %v15405_v32  ;;  %v4274_v6 = vpop.f32.mrf.mxu1  ;;  %v4175_v30 = vpop.f32.mrf.mxu0 }
 0x688   :  { %v8209_v11 = vpop.eup %8208  ;;  %v5682_v17 = vmul.f32 0.7978846, %v5370_v35  ;;  %v5419_v46 = vadd.f32 %v5107_v28, %v15371_v40  ;;  %v5109_v19 = vmul.f32 0.044715, %v4797_v61  ;;  %v6875_v38 = vmul.f32 %v6563_v2, %v5939_v43 }
 0x689   :  { %v6565_v48 = vadd.f32 1.0, %v8209_v11  ;;  %8218 = vtanh.f32 %v5680_v8  ;;  %v4796_v57 = vmul.f32 %v4484_v47, %v15402_v63  ;;  %v4798_v22 = vmul.f32 %v4486_v15, %v15405_v32 }
 0x68a   :  { %8220 = vtanh.f32 %v5682_v17  ;;  %v5731_v53 = vmul.f32 0.7978846, %v5419_v46  ;;  %v5421_v42 = vadd.f32 %v5109_v19, %v15377_v21  ;;  %7187 = vst [vmem:[%s15559_s5 + $0x320] sm:$0xff] %v6875_v38  ;;  %v5942_v62 = vmul.f32 0.5, %v15322_v51 }
 0x68b   :  { %v8211_v23 = vpop.eup %8210  ;;  %v6877_v37 = vmul.f32 %v6565_v48, %v5941_v4  ;;  %v5108_v33 = vmul.f32 0.044715, %v4796_v57  ;;  %v4535_v20 = vmul.f32 %v15417_v34, %v15417_v34  ;;  %v5110_v52 = vmul.f32 0.044715, %v4798_v22 }
 0x68c   :  { %v6564_v13 = vadd.f32 1.0, %v8211_v23  ;;  %8222 = vtanh.f32 %v5731_v53  ;;  %v5733_v56 = vmul.f32 0.7978846, %v5421_v42  ;;  %v8213_v59 = vpop.eup %8212  ;;  %v5991_v3 = vmul.f32 0.5, %v15331_v14 }
 0x68d   :  { %7189 = vst [vmem:[%s15559_s5 + $0x330] sm:$0xff] %v6877_v37  ;;  %v5420_v31 = vadd.f32 %v5108_v33, %v15402_v63  ;;  %v4847_v10 = vmul.f32 %v4535_v20, %v15417_v34  ;;  %v15438_v51 = vadd.f32 %v4268_v55, %v11763_v12  ;;  %v8215_v16 = vpop.eup %8214  ;;  %v6566_v58 = vadd.f32 1.0, %v8213_v59 }
 0x68e   :  { %v6876_v26 = vmul.f32 %v6564_v13, %v5940_v54  ;;  %8224 = vtanh.f32 %v5733_v56  ;;  %v5422_v39 = vadd.f32 %v5110_v52, %v15405_v32  ;;  %v6615_v27 = vadd.f32 1.0, %v8215_v16 }
 0x68f   :  { %v5732_v1 = vmul.f32 0.7978846, %v5420_v31  ;;  %v5159_v41 = vmul.f32 0.044715, %v4847_v10  ;;  %v4537_v14 = vmul.f32 %v15438_v51, %v15438_v51  ;;  %v6878_v43 = vmul.f32 %v6566_v58, %v5942_v62 }
 0x690   :  { %v8217_v5 = vpop.eup %8216  ;;  %7188 = vst [vmem:[%s15559_s5 + $0x328] sm:$0xff] %v6876_v26  ;;  %v5993_v49 = vmul.f32 0.5, %v15334_v7  ;;  %v5734_v4 = vmul.f32 0.7978846, %v5422_v39  ;;  %v15448_v60 = vadd.f32 %v4169_v0, %v11763_v12  ;;  %v6927_v9 = vmul.f32 %v6615_v27, %v5991_v3  ;;  %v4276_v26 = vpop.f32.mrf.mxu1 }
 0x691   :  { %v6617_v50 = vadd.f32 1.0, %v8217_v5  ;;  %8226 = vtanh.f32 %v5732_v1  ;;  %v5471_v18 = vadd.f32 %v5159_v41, %v15417_v34  ;;  %7190 = vst.msk [vmem:[%s15559_s5 + $0x338] sm:$0xff] %vm226_vm1, %v6878_v43  ;;  %v4849_v25 = vmul.f32 %v4537_v14, %v15438_v51 }
 0x692   :  { %8228 = vtanh.f32 %v5734_v4  ;;  %v4536_v7 = vmul.f32 %v15448_v60, %v15448_v60  ;;  %7239 = vst [vmem:[%s15559_s5 + $0x4c0] sm:$0xff] %v6927_v9  ;;  %v15462_v28 = vadd.f32 %v4270_v45, %v11763_v12  ;;  %v15465_v61 = vadd.f32 %v4173_v36, %v11846_v44 }
 0x693   :  { %v6929_v54 = vmul.f32 %v6617_v50, %v5993_v49  ;;  %v5783_v35 = vmul.f32 0.7978846, %v5471_v18  ;;  %v5992_v2 = vmul.f32 0.5, %v15361_v24  ;;  %v5161_v8 = vmul.f32 0.044715, %v4849_v25 }
 0x694   :  { %v4848_v47 = vmul.f32 %v4536_v7, %v15448_v60  ;;  %v15470_v11 = vadd.f32 %v4274_v6, %v11846_v44  ;;  %v4538_v12 = vmul.f32 %v15462_v28, %v15462_v28  ;;  %v4587_v17 = vmul.f32 %v15465_v61, %v15465_v61 }
 0x695   :  { %7241 = vst [vmem:[%s15559_s5 + $0x4d0] sm:$0xff] %v6929_v54  ;;  %8230 = vtanh.f32 %v5783_v35  ;;  %v15480_v46 = vadd.f32 %v4175_v30, %v11846_v44  ;;  %v5994_v19 = vmul.f32 0.5, %v15368_v29  ;;  %v5473_v15 = vadd.f32 %v5161_v8, %v15438_v51 }
 0x696   :  { %v8219_v24 = vpop.eup %8218  ;;  %v5160_v38 = vmul.f32 0.044715, %v4848_v47  ;;  %v4589_v48 = vmul.f32 %v15470_v11, %v15470_v11  ;;  %v6043_v53 = vmul.f32 0.5, %v15371_v40  ;;  %v4850_v42 = vmul.f32 %v4538_v12, %v15462_v28 }
 0x697   :  { %v8221_v57 = vpop.eup %8220  ;;  %v6616_v55 = vadd.f32 1.0, %v8219_v24  ;;  %v4899_v22 = vmul.f32 %v4587_v17, %v15465_v61  ;;  %v5785_v23 = vmul.f32 0.7978846, %v5473_v15  ;;  %v4588_v56 = vmul.f32 %v15480_v46, %v15480_v46 }
 0x698   :  { %v6618_v0 = vadd.f32 1.0, %v8221_v57  ;;  %v5472_v37 = vadd.f32 %v5160_v38, %v15448_v60  ;;  %v4901_v29 = vmul.f32 %v4589_v48, %v15470_v11  ;;  %v5162_v20 = vmul.f32 0.044715, %v4850_v42 }
 0x699   :  { %v8223_v62 = vpop.eup %8222  ;;  %v6928_v33 = vmul.f32 %v6616_v55, %v5992_v2  ;;  %v5211_v13 = vmul.f32 0.044715, %v4899_v22  ;;  %8232 = vtanh.f32 %v5785_v23  ;;  %v4900_v16 = vmul.f32 %v4588_v56, %v15480_v46 }
 0x69a   :  { %v6930_v52 = vmul.f32 %v6618_v0, %v5994_v19  ;;  %v6667_v59 = vadd.f32 1.0, %v8223_v62  ;;  %v5784_v40 = vmul.f32 0.7978846, %v5472_v37  ;;  %v5474_v31 = vadd.f32 %v5162_v20, %v15462_v28 }
 0x69b   :  { %v8225_v3 = vpop.eup %8224  ;;  %7240 = vst [vmem:[%s15559_s5 + $0x4c8] sm:$0xff] %v6928_v33  ;;  %v5523_v10 = vadd.f32 %v5211_v13, %v15465_v61  ;;  %v5213_v45 = vmul.f32 0.044715, %v4901_v29  ;;  %v6045_v39 = vmul.f32 0.5, %v15377_v21  ;;  %v5212_v14 = vmul.f32 0.044715, %v4900_v16 }
 0x69c   :  { %7242 = vst.msk [vmem:[%s15559_s5 + $0x4d8] sm:$0xff] %vm226_vm1, %v6930_v52  ;;  %v6979_v58 = vmul.f32 %v6667_v59, %v6043_v53  ;;  %v6669_v36 = vadd.f32 1.0, %v8225_v3  ;;  %8234 = vtanh.f32 %v5784_v40  ;;  %v5786_v27 = vmul.f32 0.7978846, %v5474_v31 }
 0x69d   :  { %v5835_v1 = vmul.f32 0.7978846, %v5523_v10  ;;  %v5525_v41 = vadd.f32 %v5213_v45, %v15470_v11  ;;  %v6044_v49 = vmul.f32 0.5, %v15402_v63  ;;  %v4277_v4 = vadd.f32 %v4276_v26, %v11846_v44 }
 0x69e   :  { %v8227_v5 = vpop.eup %8226  ;;  %7291 = vst [vmem:[%s15559_s5 + $0x660] sm:$0xff] %v6979_v58  ;;  %v6981_v43 = vmul.f32 %v6669_v36, %v6045_v39  ;;  %8236 = vtanh.f32 %v5786_v27  ;;  %v5524_v18 = vadd.f32 %v5212_v14, %v15480_v46  ;;  %v6046_v6 = vmul.f32 0.5, %v15405_v32 }
 0x69f   :  { %v8229_v9 = vpop.eup %8228  ;;  %v6668_v50 = vadd.f32 1.0, %v8227_v5  ;;  %v5837_v21 = vmul.f32 0.7978846, %v5525_v41  ;;  %8238 = vtanh.f32 %v5835_v1  ;;  %v4590_v7 = vmul.f32 %v4277_v4, %v4277_v4 }
 0x6a0   :  { %7293 = vst [vmem:[%s15559_s5 + $0x670] sm:$0xff] %v6981_v43  ;;  %v6670_v25 = vadd.f32 1.0, %v8229_v9  ;;  %v5836_v63 = vmul.f32 0.7978846, %v5524_v18  ;;  %v6095_v2 = vmul.f32 0.5, %v15417_v34  ;;  %v6097_v24 = vmul.f32 0.5, %v15438_v51 }
 0x6a1   :  { %v6980_v30 = vmul.f32 %v6668_v50, %v6044_v49  ;;  %8240 = vtanh.f32 %v5837_v21  ;;  %v4902_v35 = vmul.f32 %v4590_v7, %v4277_v4  ;;  %v6096_v48 = vmul.f32 0.5, %v15448_v60 }
 0x6a2   :  { %v8231_v54 = vpop.eup %8230  ;;  %v6982_v44 = vmul.f32 %v6670_v25, %v6046_v6  ;;  %8242 = vtanh.f32 %v5836_v63  ;;  %v6098_v22 = vmul.f32 0.5, %v15462_v28  ;;  %v6147_v51 = vmul.f32 0.5, %v15465_v61 }
 0x6a3   :  { %7292 = vst [vmem:[%s15559_s5 + $0x668] sm:$0xff] %v6980_v30  ;;  %v6719_v8 = vadd.f32 1.0, %v8231_v54  ;;  %v5214_v32 = vmul.f32 0.044715, %v4902_v35  ;;  %v6149_v29 = vmul.f32 0.5, %v15470_v11  ;;  %v6148_v13 = vmul.f32 0.5, %v15480_v46 }
 0x6a4   :  { %7294 = vst.msk [vmem:[%s15559_s5 + $0x678] sm:$0xff] %vm226_vm1, %v6982_v44  ;;  %v6150_v52 = vmul.f32 0.5, %v4277_v4 }
 0x6a5   :  { %v7031_v47 = vmul.f32 %v6719_v8, %v6095_v2  ;;  %v5526_v12 = vadd.f32 %v5214_v32, %v4277_v4 }
 0x6a6   :  { %v8233_v17 = vpop.eup %8232 }
 0x6a7   :  { %7343 = vst [vmem:[%s15559_s5 + $0x800] sm:$0xff] %v7031_v47  ;;  %v6721_v19 = vadd.f32 1.0, %v8233_v17  ;;  %v5838_v15 = vmul.f32 0.7978846, %v5526_v12 }
 0x6a9   :  { %v8235_v34 = vpop.eup %8234  ;;  %v7033_v38 = vmul.f32 %v6721_v19, %v6097_v24  ;;  %8244 = vtanh.f32 %v5838_v15 }
 0x6aa   :  { %v6720_v57 = vadd.f32 1.0, %v8235_v34 }
 0x6ab   :  { %v8237_v55 = vpop.eup %8236  ;;  %7345 = vst [vmem:[%s15559_s5 + $0x810] sm:$0xff] %v7033_v38 }
 0x6ac   :  { %v7032_v53 = vmul.f32 %v6720_v57, %v6096_v48  ;;  %v8239_v42 = vpop.eup %8238  ;;  %v6722_v0 = vadd.f32 1.0, %v8237_v55 }
 0x6ad   :  { %v6771_v60 = vadd.f32 1.0, %v8239_v42 }
 0x6ae   :  { %v8241_v23 = vpop.eup %8240  ;;  %7344 = vst [vmem:[%s15559_s5 + $0x808] sm:$0xff] %v7032_v53  ;;  %v7034_v37 = vmul.f32 %v6722_v0, %v6098_v22 }
 0x6af   :  { %v6773_v62 = vadd.f32 1.0, %v8241_v23  ;;  %v8243_v33 = vpop.eup %8242  ;;  %v7083_v20 = vmul.f32 %v6771_v60, %v6147_v51 }
 0x6b0   :  { %7346 = vst.msk [vmem:[%s15559_s5 + $0x818] sm:$0xff] %vm226_vm1, %v7034_v37  ;;  %v6772_v56 = vadd.f32 1.0, %v8243_v33 }
 0x6b1   :  { %v7085_v28 = vmul.f32 %v6773_v62, %v6149_v29  ;;  %7395 = vst [vmem:[%s15559_s5 + $0x9a0] sm:$0x7f] %v7083_v20 }
 0x6b2   :  { %v7084_v61 = vmul.f32 %v6772_v56, %v6148_v13 }
 0x6b3   :  { %7397 = vst [vmem:[%s15559_s5 + $0x9b0] sm:$0x7f] %v7085_v28 }
 0x6b4   :  { %7396 = vst [vmem:[%s15559_s5 + $0x9a8] sm:$0x7f] %v7084_v61 }
 0x6b6   :  { %v8245_v11 = vpop.eup %8244 }
 0x6b7   :  { %v6774_v59 = vadd.f32 1.0, %v8245_v11 }
 0x6b9   :  { %v7086_v40 = vmul.f32 %v6774_v59, %v6150_v52 }
 0x6bb   :  { %7399 = vst.msk [vmem:[%s15559_s5 + $0x9b8] sm:$0x7f] %vm7398_vm4, %v7086_v40 }

</bundles_post_ra>
